<compile_context>
chip_gen: v7x
topology: tpu7x:2x2x1
jax: 0.10.0
libtpu: 0.0.40
codegen_flags: <defaults>
</compile_context>

<pallas_src>
import functools

import jax
import jax.numpy as jnp
from jax.experimental import pallas as pl
from jax.experimental.pallas import tpu as pltpu


def _fused_aux_kernel(x_ref, cw_ref, cb_ref, w1_ref, b1_ref, w2_ref, b2_ref, o_ref,
                      *, hk, wk, compute_dtype):
    # x_ref : (bb, H, W, C)  f32 batch tile, NHWC (C on lanes)
    # cw_ref: (C, 128)       1x1-conv weight (compute_dtype)
    # cb_ref: (1, 128)       conv bias (f32)
    # w1_ref: (2048, 1024)   fc1 weight, rows permuted to cell-major order (compute_dtype)
    # b1_ref: (1, 1024)      fc1 bias (f32)
    # w2_ref: (1024, Npad)   fc2 weight, output padded to lane multiple (compute_dtype)
    # b2_ref: (1, Npad)      fc2 bias padded (f32)
    # o_ref : (bb, Npad)     f32 output tile
    bb = x_ref.shape[0]
    inv_k = 1.0 / float(hk * wk)

    cw = cw_ref[...]
    cb = cb_ref[...]

    # fc1 accumulator initialised with its bias; ReLU applied after full accumulation.
    h = jnp.zeros((bb, b1_ref.shape[1]), jnp.float32) + b1_ref[...]

    # Static unroll over the 16 adaptive-pool cells:
    #   pool window -> 1x1 conv + ReLU -> partial fc1 contribution.
    for cell in range(16):
        i, j = divmod(cell, 4)
        window = x_ref[:, i * hk:(i + 1) * hk, j * wk:(j + 1) * wk, :]      # (bb, hk, wk, C)
        pooled = jnp.sum(window, axis=(1, 2)) * inv_k                       # (bb, C) f32
        conv = jnp.dot(pooled.astype(compute_dtype), cw,
                       preferred_element_type=jnp.float32) + cb             # (bb, 128)
        conv = jnp.maximum(conv, 0.0)                                       # BasicConv2d ReLU
        h = h + jnp.dot(conv.astype(compute_dtype),
                        w1_ref[cell * 128:(cell + 1) * 128, :],
                        preferred_element_type=jnp.float32)                 # (bb, 1024)

    h = jnp.maximum(h, 0.0)                                                 # relu(fc1(x))
    # TODO(synk): F.dropout(p=0.7) is identity in eval mode; training-mode RNG not replicated.
    out = jnp.dot(h.astype(compute_dtype), w2_ref[...],
                  preferred_element_type=jnp.float32) + b2_ref[...]         # (bb, Npad)
    o_ref[...] = out.astype(o_ref.dtype)


def inception_aux_forward(x, params, *, compute_dtype=jnp.bfloat16):
    """x: (B, C, H, W) float32 (NCHW, as in PyTorch). H, W divisible by 4."""
    B, C, H, W = x.shape
    assert H % 4 == 0 and W % 4 == 0, "adaptive_avg_pool2d implemented for evenly divisible bins"
    hk, wk = H // 4, W // 4

    # ---- one-time layout / weight prep (outside the hot kernel) ----------------
    # Present the input with C on the lane axis (single NHWC transpose).
    x_nhwc = jnp.transpose(x, (0, 2, 3, 1)).astype(jnp.float32)             # (B, H, W, C)

    cw = params["conv_w"].reshape(128, C).T.astype(compute_dtype)           # (C, 128)
    cb = params["conv_b"].reshape(1, 128).astype(jnp.float32)

    # Fold torch.flatten's channel-major ordering into fc1's weight rows:
    # PyTorch flat index = o*16 + cell ; kernel consumes cell-major (cell*128 + o).
    w1_t = params["fc1_w"].T                                                # (2048, 1024)
    n1 = w1_t.shape[1]
    w1_perm = (w1_t.reshape(128, 16, n1).transpose(1, 0, 2)
               .reshape(2048, n1)).astype(compute_dtype)
    b1 = params["fc1_b"].reshape(1, -1).astype(jnp.float32)

    nc = params["fc2_w"].shape[0]
    nc_pad = max(128, ((nc + 127) // 128) * 128)                            # lane-dense output
    w2_pad = jnp.zeros((n1, nc_pad), compute_dtype).at[:, :nc].set(
        params["fc2_w"].T.astype(compute_dtype))
    b2_pad = jnp.zeros((1, nc_pad), jnp.float32).at[:, :nc].set(
        params["fc2_b"].reshape(1, -1).astype(jnp.float32))

    # ---- batch-row tiling (pipelining + megacore sharding on v7x) --------------
    bytes_per_row = H * W * C * 4
    row_cap = min(128, max(8, (8 * 1024 * 1024) // max(bytes_per_row, 1)))
    if B <= row_cap:
        row_tile = B
    else:
        row_tile = (row_cap // 8) * 8                                       # (8,·) sublane rule
    n_blk = pl.cdiv(B, row_tile)
    B_pad = n_blk * row_tile
    if B_pad != B:
        x_nhwc = jnp.pad(x_nhwc, ((0, B_pad - B), (0, 0), (0, 0), (0, 0)))

    kernel = functools.partial(_fused_aux_kernel, hk=hk, wk=wk, compute_dtype=compute_dtype)

    itemsize = jnp.dtype(compute_dtype).itemsize
    flops = 2 * B_pad * (16 * C * 128 + 2048 * n1 + n1 * nc_pad)
    bytes_accessed = (x_nhwc.size * 4
                      + (cw.size + w1_perm.size + w2_pad.size) * itemsize
                      + (cb.size + b1.size + b2_pad.size) * 4
                      + B_pad * nc_pad * 4)

    out = pl.pallas_call(
        kernel,
        out_shape=jax.ShapeDtypeStruct((B_pad, nc_pad), jnp.float32),
        grid_spec=pltpu.PrefetchScalarGridSpec(
            num_scalar_prefetch=0,
            grid=(n_blk,),
            in_specs=[
                pl.BlockSpec((row_tile, H, W, C), lambda b: (b, 0, 0, 0)),   # x tile
                pl.BlockSpec((C, 128), lambda b: (0, 0)),                    # conv w (resident)
                pl.BlockSpec((1, 128), lambda b: (0, 0)),                    # conv b
                pl.BlockSpec((2048, n1), lambda b: (0, 0)),                  # fc1 w (resident)
                pl.BlockSpec((1, n1), lambda b: (0, 0)),                     # fc1 b
                pl.BlockSpec((n1, nc_pad), lambda b: (0, 0)),                # fc2 w (resident)
                pl.BlockSpec((1, nc_pad), lambda b: (0, 0)),                 # fc2 b
            ],
            out_specs=pl.BlockSpec((row_tile, nc_pad), lambda b: (b, 0)),
        ),
        compiler_params=pltpu.CompilerParams(
            dimension_semantics=("parallel",),
        ),
        cost_estimate=pl.CostEstimate(flops=flops, transcendentals=0,
                                      bytes_accessed=bytes_accessed),
    )(x_nhwc, cw, cb, w1_perm, b1, w2_pad, b2_pad)

    return out[:B, :nc]


def inception_aux_reference(x, params):
    """Pure-JAX f32 reference with exact PyTorch semantics (eval mode)."""
    B, C, H, W = x.shape
    hk, wk = H // 4, W // 4
    pooled = x.reshape(B, C, 4, hk, 4, wk).mean(axis=(3, 5))                 # (B, C, 4, 4)
    conv = jnp.einsum("bchw,oc->bohw", pooled, params["conv_w"].reshape(128, C))
    conv = jax.nn.relu(conv + params["conv_b"][None, :, None, None])         # (B, 128, 4, 4)
    flat = conv.reshape(B, -1)                                               # (B, 2048)
    h = jax.nn.relu(flat @ params["fc1_w"].T + params["fc1_b"])
    return h @ params["fc2_w"].T + params["fc2_b"]


if __name__ == "__main__":
    key = jax.random.PRNGKey(0)
    B, C, H, W, NC = 2, 16, 8, 8, 10   # small synthetic shapes (pooled spatial is fixed 4x4 -> 2048)
    keys = jax.random.split(key, 7)

    x = jax.random.normal(keys[0], (B, C, H, W), dtype=jnp.float32)
    params = {
        # shapes mirror the PyTorch module's parameters
        "conv_w": 0.05 * jax.random.normal(keys[1], (128, C, 1, 1), jnp.float32),
        "conv_b": 0.05 * jax.random.normal(keys[2], (128,), jnp.float32),
        "fc1_w": 0.02 * jax.random.normal(keys[3], (1024, 2048), jnp.float32),
        "fc1_b": 0.02 * jax.random.normal(keys[4], (1024,), jnp.float32),
        "fc2_w": 0.02 * jax.random.normal(keys[5], (NC, 1024), jnp.float32),
        "fc2_b": 0.02 * jax.random.normal(keys[6], (NC,), jnp.float32),
    }

    out = jax.block_until_ready(inception_aux_forward(x, params))
    ref = inception_aux_reference(x, params)

    assert out.shape == (B, NC), out.shape
    # bf16 matmul inputs (f32 accumulation) -> loosened tolerance vs the f32 reference.
    max_err = float(jnp.max(jnp.abs(out - ref)))
    assert jnp.allclose(out, ref, atol=2e-2, rtol=2e-2), max_err
    print("KERNEL_OK")
</pallas_src>

<mosaic_0001>
module attributes {stable_mosaic.version = 11 : i64} {
  func.func @_fused_aux_kernel(%arg0: i32, %arg1: memref<2x8x8x16xf32, #tpu.memory_space<vmem>>, %arg2: memref<16x128xbf16, #tpu.memory_space<vmem>>, %arg3: memref<1x128xf32, #tpu.memory_space<vmem>>, %arg4: memref<2048x1024xbf16, #tpu.memory_space<vmem>>, %arg5: memref<1x1024xf32, #tpu.memory_space<vmem>>, %arg6: memref<1024x128xbf16, #tpu.memory_space<vmem>>, %arg7: memref<1x128xf32, #tpu.memory_space<vmem>>, %arg8: memref<2x128xf32, #tpu.memory_space<vmem>>) attributes {dimension_semantics = [#tpu.dimension_semantics<parallel>], iteration_bounds = array<i64: 1>, scalar_prefetch = 0 : i64, scratch_operands = 0 : i64, tpu.core_type = #tpu.core_type<tc>, window_params = [{transform_indices = @transform_0, window_bounds = array<i64: 2, 8, 8, 16>}, {pipeline_mode = #tpu.pipeline_mode<synchronous>, transform_indices = @transform_1, window_bounds = array<i64: 16, 128>}, {pipeline_mode = #tpu.pipeline_mode<synchronous>, transform_indices = @transform_2, window_bounds = array<i64: 1, 128>}, {pipeline_mode = #tpu.pipeline_mode<synchronous>, transform_indices = @transform_3, window_bounds = array<i64: 2048, 1024>}, {pipeline_mode = #tpu.pipeline_mode<synchronous>, transform_indices = @transform_4, window_bounds = array<i64: 1, 1024>}, {pipeline_mode = #tpu.pipeline_mode<synchronous>, transform_indices = @transform_5, window_bounds = array<i64: 1024, 128>}, {pipeline_mode = #tpu.pipeline_mode<synchronous>, transform_indices = @transform_6, window_bounds = array<i64: 1, 128>}, {transform_indices = @transform_7, window_bounds = array<i64: 2, 128>}]} {
    %c0 = arith.constant 0 : index
    %c0_0 = arith.constant 0 : index
    %0 = vector.load %arg2[%c0, %c0_0] : memref<16x128xbf16, #tpu.memory_space<vmem>>, vector<16x128xbf16>
    %c0_1 = arith.constant 0 : index
    %c0_2 = arith.constant 0 : index
    %1 = vector.load %arg3[%c0_1, %c0_2] : memref<1x128xf32, #tpu.memory_space<vmem>>, vector<1x128xf32>
    %cst = arith.constant 0.000000e+00 : f32
    %2 = vector.broadcast %cst : f32 to vector<2x1024xf32>
    %c0_3 = arith.constant 0 : index
    %c0_4 = arith.constant 0 : index
    %3 = vector.load %arg5[%c0_3, %c0_4] : memref<1x1024xf32, #tpu.memory_space<vmem>>, vector<1x1024xf32>
    %4 = vector.broadcast %3 : vector<1x1024xf32> to vector<2x1024xf32>
    %5 = arith.addf %2, %4 : vector<2x1024xf32>
    %c0_5 = arith.constant 0 : index
    %c0_6 = arith.constant 0 : index
    %c0_7 = arith.constant 0 : index
    %c0_8 = arith.constant 0 : index
    %6 = vector.load %arg1[%c0_5, %c0_6, %c0_7, %c0_8] : memref<2x8x8x16xf32, #tpu.memory_space<vmem>>, vector<2x2x2x16xf32>
    %cst_9 = arith.constant dense<0.000000e+00> : vector<2x16xf32>
    %7 = vector.multi_reduction <add>, %6, %cst_9 [1, 2] : vector<2x2x2x16xf32> to vector<2x16xf32>
    %cst_10 = arith.constant 2.500000e-01 : f32
    %8 = vector.broadcast %cst_10 : f32 to vector<2x16xf32>
    %9 = arith.mulf %7, %8 : vector<2x16xf32>
    %10 = arith.truncf %9 : vector<2x16xf32> to vector<2x16xbf16>
    %cst_11 = arith.constant dense<0.000000e+00> : vector<2x128xf32>
    %11 = tpu.matmul %10, %0, %cst_11 {dimension_numbers = #tpu.dot_dimension_numbers<[1], [0], [0], [1], [0, 0, 1, 1], [], []>} : vector<2x16xbf16>, vector<16x128xbf16>, vector<2x128xf32> -> vector<2x128xf32>
    %12 = vector.broadcast %1 : vector<1x128xf32> to vector<2x128xf32>
    %13 = arith.addf %11, %12 : vector<2x128xf32>
    %cst_12 = arith.constant 0.000000e+00 : f32
    %14 = vector.broadcast %cst_12 : f32 to vector<2x128xf32>
    %15 = arith.maximumf %13, %14 : vector<2x128xf32>
    %16 = arith.truncf %15 : vector<2x128xf32> to vector<2x128xbf16>
    %c0_13 = arith.constant 0 : index
    %c0_14 = arith.constant 0 : index
    %17 = vector.load %arg4[%c0_13, %c0_14] : memref<2048x1024xbf16, #tpu.memory_space<vmem>>, vector<128x1024xbf16>
    %cst_15 = arith.constant dense<0.000000e+00> : vector<2x1024xf32>
    %18 = tpu.matmul %16, %17, %cst_15 {dimension_numbers = #tpu.dot_dimension_numbers<[1], [0], [0], [1], [0, 0, 1, 1], [], []>} : vector<2x128xbf16>, vector<128x1024xbf16>, vector<2x1024xf32> -> vector<2x1024xf32>
    %19 = arith.addf %5, %18 : vector<2x1024xf32>
    %c0_16 = arith.constant 0 : index
    %c0_17 = arith.constant 0 : index
    %c2 = arith.constant 2 : index
    %c0_18 = arith.constant 0 : index
    %20 = vector.load %arg1[%c0_16, %c0_17, %c2, %c0_18] : memref<2x8x8x16xf32, #tpu.memory_space<vmem>>, vector<2x2x2x16xf32>
    %cst_19 = arith.constant dense<0.000000e+00> : vector<2x16xf32>
    %21 = vector.multi_reduction <add>, %20, %cst_19 [1, 2] : vector<2x2x2x16xf32> to vector<2x16xf32>
    %cst_20 = arith.constant 2.500000e-01 : f32
    %22 = vector.broadcast %cst_20 : f32 to vector<2x16xf32>
    %23 = arith.mulf %21, %22 : vector<2x16xf32>
    %24 = arith.truncf %23 : vector<2x16xf32> to vector<2x16xbf16>
    %cst_21 = arith.constant dense<0.000000e+00> : vector<2x128xf32>
    %25 = tpu.matmul %24, %0, %cst_21 {dimension_numbers = #tpu.dot_dimension_numbers<[1], [0], [0], [1], [0, 0, 1, 1], [], []>} : vector<2x16xbf16>, vector<16x128xbf16>, vector<2x128xf32> -> vector<2x128xf32>
    %26 = vector.broadcast %1 : vector<1x128xf32> to vector<2x128xf32>
    %27 = arith.addf %25, %26 : vector<2x128xf32>
    %cst_22 = arith.constant 0.000000e+00 : f32
    %28 = vector.broadcast %cst_22 : f32 to vector<2x128xf32>
    %29 = arith.maximumf %27, %28 : vector<2x128xf32>
    %30 = arith.truncf %29 : vector<2x128xf32> to vector<2x128xbf16>
    %c128 = arith.constant 128 : index
    %c0_23 = arith.constant 0 : index
    %31 = vector.load %arg4[%c128, %c0_23] : memref<2048x1024xbf16, #tpu.memory_space<vmem>>, vector<128x1024xbf16>
    %cst_24 = arith.constant dense<0.000000e+00> : vector<2x1024xf32>
    %32 = tpu.matmul %30, %31, %cst_24 {dimension_numbers = #tpu.dot_dimension_numbers<[1], [0], [0], [1], [0, 0, 1, 1], [], []>} : vector<2x128xbf16>, vector<128x1024xbf16>, vector<2x1024xf32> -> vector<2x1024xf32>
    %33 = arith.addf %19, %32 : vector<2x1024xf32>
    %c0_25 = arith.constant 0 : index
    %c0_26 = arith.constant 0 : index
    %c4 = arith.constant 4 : index
    %c0_27 = arith.constant 0 : index
    %34 = vector.load %arg1[%c0_25, %c0_26, %c4, %c0_27] : memref<2x8x8x16xf32, #tpu.memory_space<vmem>>, vector<2x2x2x16xf32>
    %cst_28 = arith.constant dense<0.000000e+00> : vector<2x16xf32>
    %35 = vector.multi_reduction <add>, %34, %cst_28 [1, 2] : vector<2x2x2x16xf32> to vector<2x16xf32>
    %cst_29 = arith.constant 2.500000e-01 : f32
    %36 = vector.broadcast %cst_29 : f32 to vector<2x16xf32>
    %37 = arith.mulf %35, %36 : vector<2x16xf32>
    %38 = arith.truncf %37 : vector<2x16xf32> to vector<2x16xbf16>
    %cst_30 = arith.constant dense<0.000000e+00> : vector<2x128xf32>
    %39 = tpu.matmul %38, %0, %cst_30 {dimension_numbers = #tpu.dot_dimension_numbers<[1], [0], [0], [1], [0, 0, 1, 1], [], []>} : vector<2x16xbf16>, vector<16x128xbf16>, vector<2x128xf32> -> vector<2x128xf32>
    %40 = vector.broadcast %1 : vector<1x128xf32> to vector<2x128xf32>
    %41 = arith.addf %39, %40 : vector<2x128xf32>
    %cst_31 = arith.constant 0.000000e+00 : f32
    %42 = vector.broadcast %cst_31 : f32 to vector<2x128xf32>
    %43 = arith.maximumf %41, %42 : vector<2x128xf32>
    %44 = arith.truncf %43 : vector<2x128xf32> to vector<2x128xbf16>
    %c256 = arith.constant 256 : index
    %c0_32 = arith.constant 0 : index
    %45 = vector.load %arg4[%c256, %c0_32] : memref<2048x1024xbf16, #tpu.memory_space<vmem>>, vector<128x1024xbf16>
    %cst_33 = arith.constant dense<0.000000e+00> : vector<2x1024xf32>
    %46 = tpu.matmul %44, %45, %cst_33 {dimension_numbers = #tpu.dot_dimension_numbers<[1], [0], [0], [1], [0, 0, 1, 1], [], []>} : vector<2x128xbf16>, vector<128x1024xbf16>, vector<2x1024xf32> -> vector<2x1024xf32>
    %47 = arith.addf %33, %46 : vector<2x1024xf32>
    %c0_34 = arith.constant 0 : index
    %c0_35 = arith.constant 0 : index
    %c6 = arith.constant 6 : index
    %c0_36 = arith.constant 0 : index
    %48 = vector.load %arg1[%c0_34, %c0_35, %c6, %c0_36] : memref<2x8x8x16xf32, #tpu.memory_space<vmem>>, vector<2x2x2x16xf32>
    %cst_37 = arith.constant dense<0.000000e+00> : vector<2x16xf32>
    %49 = vector.multi_reduction <add>, %48, %cst_37 [1, 2] : vector<2x2x2x16xf32> to vector<2x16xf32>
    %cst_38 = arith.constant 2.500000e-01 : f32
    %50 = vector.broadcast %cst_38 : f32 to vector<2x16xf32>
    %51 = arith.mulf %49, %50 : vector<2x16xf32>
    %52 = arith.truncf %51 : vector<2x16xf32> to vector<2x16xbf16>
    %cst_39 = arith.constant dense<0.000000e+00> : vector<2x128xf32>
    %53 = tpu.matmul %52, %0, %cst_39 {dimension_numbers = #tpu.dot_dimension_numbers<[1], [0], [0], [1], [0, 0, 1, 1], [], []>} : vector<2x16xbf16>, vector<16x128xbf16>, vector<2x128xf32> -> vector<2x128xf32>
    %54 = vector.broadcast %1 : vector<1x128xf32> to vector<2x128xf32>
    %55 = arith.addf %53, %54 : vector<2x128xf32>
    %cst_40 = arith.constant 0.000000e+00 : f32
    %56 = vector.broadcast %cst_40 : f32 to vector<2x128xf32>
    %57 = arith.maximumf %55, %56 : vector<2x128xf32>
    %58 = arith.truncf %57 : vector<2x128xf32> to vector<2x128xbf16>
    %c384 = arith.constant 384 : index
    %c0_41 = arith.constant 0 : index
    %59 = vector.load %arg4[%c384, %c0_41] : memref<2048x1024xbf16, #tpu.memory_space<vmem>>, vector<128x1024xbf16>
    %cst_42 = arith.constant dense<0.000000e+00> : vector<2x1024xf32>
    %60 = tpu.matmul %58, %59, %cst_42 {dimension_numbers = #tpu.dot_dimension_numbers<[1], [0], [0], [1], [0, 0, 1, 1], [], []>} : vector<2x128xbf16>, vector<128x1024xbf16>, vector<2x1024xf32> -> vector<2x1024xf32>
    %61 = arith.addf %47, %60 : vector<2x1024xf32>
    %c0_43 = arith.constant 0 : index
    %c2_44 = arith.constant 2 : index
    %c0_45 = arith.constant 0 : index
    %c0_46 = arith.constant 0 : index
    %62 = vector.load %arg1[%c0_43, %c2_44, %c0_45, %c0_46] : memref<2x8x8x16xf32, #tpu.memory_space<vmem>>, vector<2x2x2x16xf32>
    %cst_47 = arith.constant dense<0.000000e+00> : vector<2x16xf32>
    %63 = vector.multi_reduction <add>, %62, %cst_47 [1, 2] : vector<2x2x2x16xf32> to vector<2x16xf32>
    %cst_48 = arith.constant 2.500000e-01 : f32
    %64 = vector.broadcast %cst_48 : f32 to vector<2x16xf32>
    %65 = arith.mulf %63, %64 : vector<2x16xf32>
    %66 = arith.truncf %65 : vector<2x16xf32> to vector<2x16xbf16>
    %cst_49 = arith.constant dense<0.000000e+00> : vector<2x128xf32>
    %67 = tpu.matmul %66, %0, %cst_49 {dimension_numbers = #tpu.dot_dimension_numbers<[1], [0], [0], [1], [0, 0, 1, 1], [], []>} : vector<2x16xbf16>, vector<16x128xbf16>, vector<2x128xf32> -> vector<2x128xf32>
    %68 = vector.broadcast %1 : vector<1x128xf32> to vector<2x128xf32>
    %69 = arith.addf %67, %68 : vector<2x128xf32>
    %cst_50 = arith.constant 0.000000e+00 : f32
    %70 = vector.broadcast %cst_50 : f32 to vector<2x128xf32>
    %71 = arith.maximumf %69, %70 : vector<2x128xf32>
    %72 = arith.truncf %71 : vector<2x128xf32> to vector<2x128xbf16>
    %c512 = arith.constant 512 : index
    %c0_51 = arith.constant 0 : index
    %73 = vector.load %arg4[%c512, %c0_51] : memref<2048x1024xbf16, #tpu.memory_space<vmem>>, vector<128x1024xbf16>
    %cst_52 = arith.constant dense<0.000000e+00> : vector<2x1024xf32>
    %74 = tpu.matmul %72, %73, %cst_52 {dimension_numbers = #tpu.dot_dimension_numbers<[1], [0], [0], [1], [0, 0, 1, 1], [], []>} : vector<2x128xbf16>, vector<128x1024xbf16>, vector<2x1024xf32> -> vector<2x1024xf32>
    %75 = arith.addf %61, %74 : vector<2x1024xf32>
    %c0_53 = arith.constant 0 : index
    %c2_54 = arith.constant 2 : index
    %c2_55 = arith.constant 2 : index
    %c0_56 = arith.constant 0 : index
    %76 = vector.load %arg1[%c0_53, %c2_54, %c2_55, %c0_56] : memref<2x8x8x16xf32, #tpu.memory_space<vmem>>, vector<2x2x2x16xf32>
    %cst_57 = arith.constant dense<0.000000e+00> : vector<2x16xf32>
    %77 = vector.multi_reduction <add>, %76, %cst_57 [1, 2] : vector<2x2x2x16xf32> to vector<2x16xf32>
    %cst_58 = arith.constant 2.500000e-01 : f32
    %78 = vector.broadcast %cst_58 : f32 to vector<2x16xf32>
    %79 = arith.mulf %77, %78 : vector<2x16xf32>
    %80 = arith.truncf %79 : vector<2x16xf32> to vector<2x16xbf16>
    %cst_59 = arith.constant dense<0.000000e+00> : vector<2x128xf32>
    %81 = tpu.matmul %80, %0, %cst_59 {dimension_numbers = #tpu.dot_dimension_numbers<[1], [0], [0], [1], [0, 0, 1, 1], [], []>} : vector<2x16xbf16>, vector<16x128xbf16>, vector<2x128xf32> -> vector<2x128xf32>
    %82 = vector.broadcast %1 : vector<1x128xf32> to vector<2x128xf32>
    %83 = arith.addf %81, %82 : vector<2x128xf32>
    %cst_60 = arith.constant 0.000000e+00 : f32
    %84 = vector.broadcast %cst_60 : f32 to vector<2x128xf32>
    %85 = arith.maximumf %83, %84 : vector<2x128xf32>
    %86 = arith.truncf %85 : vector<2x128xf32> to vector<2x128xbf16>
    %c640 = arith.constant 640 : index
    %c0_61 = arith.constant 0 : index
    %87 = vector.load %arg4[%c640, %c0_61] : memref<2048x1024xbf16, #tpu.memory_space<vmem>>, vector<128x1024xbf16>
    %cst_62 = arith.constant dense<0.000000e+00> : vector<2x1024xf32>
    %88 = tpu.matmul %86, %87, %cst_62 {dimension_numbers = #tpu.dot_dimension_numbers<[1], [0], [0], [1], [0, 0, 1, 1], [], []>} : vector<2x128xbf16>, vector<128x1024xbf16>, vector<2x1024xf32> -> vector<2x1024xf32>
    %89 = arith.addf %75, %88 : vector<2x1024xf32>
    %c0_63 = arith.constant 0 : index
    %c2_64 = arith.constant 2 : index
    %c4_65 = arith.constant 4 : index
    %c0_66 = arith.constant 0 : index
    %90 = vector.load %arg1[%c0_63, %c2_64, %c4_65, %c0_66] : memref<2x8x8x16xf32, #tpu.memory_space<vmem>>, vector<2x2x2x16xf32>
    %cst_67 = arith.constant dense<0.000000e+00> : vector<2x16xf32>
    %91 = vector.multi_reduction <add>, %90, %cst_67 [1, 2] : vector<2x2x2x16xf32> to vector<2x16xf32>
    %cst_68 = arith.constant 2.500000e-01 : f32
    %92 = vector.broadcast %cst_68 : f32 to vector<2x16xf32>
    %93 = arith.mulf %91, %92 : vector<2x16xf32>
    %94 = arith.truncf %93 : vector<2x16xf32> to vector<2x16xbf16>
    %cst_69 = arith.constant dense<0.000000e+00> : vector<2x128xf32>
    %95 = tpu.matmul %94, %0, %cst_69 {dimension_numbers = #tpu.dot_dimension_numbers<[1], [0], [0], [1], [0, 0, 1, 1], [], []>} : vector<2x16xbf16>, vector<16x128xbf16>, vector<2x128xf32> -> vector<2x128xf32>
    %96 = vector.broadcast %1 : vector<1x128xf32> to vector<2x128xf32>
    %97 = arith.addf %95, %96 : vector<2x128xf32>
    %cst_70 = arith.constant 0.000000e+00 : f32
    %98 = vector.broadcast %cst_70 : f32 to vector<2x128xf32>
    %99 = arith.maximumf %97, %98 : vector<2x128xf32>
    %100 = arith.truncf %99 : vector<2x128xf32> to vector<2x128xbf16>
    %c768 = arith.constant 768 : index
    %c0_71 = arith.constant 0 : index
    %101 = vector.load %arg4[%c768, %c0_71] : memref<2048x1024xbf16, #tpu.memory_space<vmem>>, vector<128x1024xbf16>
    %cst_72 = arith.constant dense<0.000000e+00> : vector<2x1024xf32>
    %102 = tpu.matmul %100, %101, %cst_72 {dimension_numbers = #tpu.dot_dimension_numbers<[1], [0], [0], [1], [0, 0, 1, 1], [], []>} : vector<2x128xbf16>, vector<128x1024xbf16>, vector<2x1024xf32> -> vector<2x1024xf32>
    %103 = arith.addf %89, %102 : vector<2x1024xf32>
    %c0_73 = arith.constant 0 : index
    %c2_74 = arith.constant 2 : index
    %c6_75 = arith.constant 6 : index
    %c0_76 = arith.constant 0 : index
    %104 = vector.load %arg1[%c0_73, %c2_74, %c6_75, %c0_76] : memref<2x8x8x16xf32, #tpu.memory_space<vmem>>, vector<2x2x2x16xf32>
    %cst_77 = arith.constant dense<0.000000e+00> : vector<2x16xf32>
    %105 = vector.multi_reduction <add>, %104, %cst_77 [1, 2] : vector<2x2x2x16xf32> to vector<2x16xf32>
    %cst_78 = arith.constant 2.500000e-01 : f32
    %106 = vector.broadcast %cst_78 : f32 to vector<2x16xf32>
    %107 = arith.mulf %105, %106 : vector<2x16xf32>
    %108 = arith.truncf %107 : vector<2x16xf32> to vector<2x16xbf16>
    %cst_79 = arith.constant dense<0.000000e+00> : vector<2x128xf32>
    %109 = tpu.matmul %108, %0, %cst_79 {dimension_numbers = #tpu.dot_dimension_numbers<[1], [0], [0], [1], [0, 0, 1, 1], [], []>} : vector<2x16xbf16>, vector<16x128xbf16>, vector<2x128xf32> -> vector<2x128xf32>
    %110 = vector.broadcast %1 : vector<1x128xf32> to vector<2x128xf32>
    %111 = arith.addf %109, %110 : vector<2x128xf32>
    %cst_80 = arith.constant 0.000000e+00 : f32
    %112 = vector.broadcast %cst_80 : f32 to vector<2x128xf32>
    %113 = arith.maximumf %111, %112 : vector<2x128xf32>
    %114 = arith.truncf %113 : vector<2x128xf32> to vector<2x128xbf16>
    %c896 = arith.constant 896 : index
    %c0_81 = arith.constant 0 : index
    %115 = vector.load %arg4[%c896, %c0_81] : memref<2048x1024xbf16, #tpu.memory_space<vmem>>, vector<128x1024xbf16>
    %cst_82 = arith.constant dense<0.000000e+00> : vector<2x1024xf32>
    %116 = tpu.matmul %114, %115, %cst_82 {dimension_numbers = #tpu.dot_dimension_numbers<[1], [0], [0], [1], [0, 0, 1, 1], [], []>} : vector<2x128xbf16>, vector<128x1024xbf16>, vector<2x1024xf32> -> vector<2x1024xf32>
    %117 = arith.addf %103, %116 : vector<2x1024xf32>
    %c0_83 = arith.constant 0 : index
    %c4_84 = arith.constant 4 : index
    %c0_85 = arith.constant 0 : index
    %c0_86 = arith.constant 0 : index
    %118 = vector.load %arg1[%c0_83, %c4_84, %c0_85, %c0_86] : memref<2x8x8x16xf32, #tpu.memory_space<vmem>>, vector<2x2x2x16xf32>
    %cst_87 = arith.constant dense<0.000000e+00> : vector<2x16xf32>
    %119 = vector.multi_reduction <add>, %118, %cst_87 [1, 2] : vector<2x2x2x16xf32> to vector<2x16xf32>
    %cst_88 = arith.constant 2.500000e-01 : f32
    %120 = vector.broadcast %cst_88 : f32 to vector<2x16xf32>
    %121 = arith.mulf %119, %120 : vector<2x16xf32>
    %122 = arith.truncf %121 : vector<2x16xf32> to vector<2x16xbf16>
    %cst_89 = arith.constant dense<0.000000e+00> : vector<2x128xf32>
    %123 = tpu.matmul %122, %0, %cst_89 {dimension_numbers = #tpu.dot_dimension_numbers<[1], [0], [0], [1], [0, 0, 1, 1], [], []>} : vector<2x16xbf16>, vector<16x128xbf16>, vector<2x128xf32> -> vector<2x128xf32>
    %124 = vector.broadcast %1 : vector<1x128xf32> to vector<2x128xf32>
    %125 = arith.addf %123, %124 : vector<2x128xf32>
    %cst_90 = arith.constant 0.000000e+00 : f32
    %126 = vector.broadcast %cst_90 : f32 to vector<2x128xf32>
    %127 = arith.maximumf %125, %126 : vector<2x128xf32>
    %128 = arith.truncf %127 : vector<2x128xf32> to vector<2x128xbf16>
    %c1024 = arith.constant 1024 : index
    %c0_91 = arith.constant 0 : index
    %129 = vector.load %arg4[%c1024, %c0_91] : memref<2048x1024xbf16, #tpu.memory_space<vmem>>, vector<128x1024xbf16>
    %cst_92 = arith.constant dense<0.000000e+00> : vector<2x1024xf32>
    %130 = tpu.matmul %128, %129, %cst_92 {dimension_numbers = #tpu.dot_dimension_numbers<[1], [0], [0], [1], [0, 0, 1, 1], [], []>} : vector<2x128xbf16>, vector<128x1024xbf16>, vector<2x1024xf32> -> vector<2x1024xf32>
    %131 = arith.addf %117, %130 : vector<2x1024xf32>
    %c0_93 = arith.constant 0 : index
    %c4_94 = arith.constant 4 : index
    %c2_95 = arith.constant 2 : index
    %c0_96 = arith.constant 0 : index
    %132 = vector.load %arg1[%c0_93, %c4_94, %c2_95, %c0_96] : memref<2x8x8x16xf32, #tpu.memory_space<vmem>>, vector<2x2x2x16xf32>
    %cst_97 = arith.constant dense<0.000000e+00> : vector<2x16xf32>
    %133 = vector.multi_reduction <add>, %132, %cst_97 [1, 2] : vector<2x2x2x16xf32> to vector<2x16xf32>
    %cst_98 = arith.constant 2.500000e-01 : f32
    %134 = vector.broadcast %cst_98 : f32 to vector<2x16xf32>
    %135 = arith.mulf %133, %134 : vector<2x16xf32>
    %136 = arith.truncf %135 : vector<2x16xf32> to vector<2x16xbf16>
    %cst_99 = arith.constant dense<0.000000e+00> : vector<2x128xf32>
    %137 = tpu.matmul %136, %0, %cst_99 {dimension_numbers = #tpu.dot_dimension_numbers<[1], [0], [0], [1], [0, 0, 1, 1], [], []>} : vector<2x16xbf16>, vector<16x128xbf16>, vector<2x128xf32> -> vector<2x128xf32>
    %138 = vector.broadcast %1 : vector<1x128xf32> to vector<2x128xf32>
    %139 = arith.addf %137, %138 : vector<2x128xf32>
    %cst_100 = arith.constant 0.000000e+00 : f32
    %140 = vector.broadcast %cst_100 : f32 to vector<2x128xf32>
    %141 = arith.maximumf %139, %140 : vector<2x128xf32>
    %142 = arith.truncf %141 : vector<2x128xf32> to vector<2x128xbf16>
    %c1152 = arith.constant 1152 : index
    %c0_101 = arith.constant 0 : index
    %143 = vector.load %arg4[%c1152, %c0_101] : memref<2048x1024xbf16, #tpu.memory_space<vmem>>, vector<128x1024xbf16>
    %cst_102 = arith.constant dense<0.000000e+00> : vector<2x1024xf32>
    %144 = tpu.matmul %142, %143, %cst_102 {dimension_numbers = #tpu.dot_dimension_numbers<[1], [0], [0], [1], [0, 0, 1, 1], [], []>} : vector<2x128xbf16>, vector<128x1024xbf16>, vector<2x1024xf32> -> vector<2x1024xf32>
    %145 = arith.addf %131, %144 : vector<2x1024xf32>
    %c0_103 = arith.constant 0 : index
    %c4_104 = arith.constant 4 : index
    %c4_105 = arith.constant 4 : index
    %c0_106 = arith.constant 0 : index
    %146 = vector.load %arg1[%c0_103, %c4_104, %c4_105, %c0_106] : memref<2x8x8x16xf32, #tpu.memory_space<vmem>>, vector<2x2x2x16xf32>
    %cst_107 = arith.constant dense<0.000000e+00> : vector<2x16xf32>
    %147 = vector.multi_reduction <add>, %146, %cst_107 [1, 2] : vector<2x2x2x16xf32> to vector<2x16xf32>
    %cst_108 = arith.constant 2.500000e-01 : f32
    %148 = vector.broadcast %cst_108 : f32 to vector<2x16xf32>
    %149 = arith.mulf %147, %148 : vector<2x16xf32>
    %150 = arith.truncf %149 : vector<2x16xf32> to vector<2x16xbf16>
    %cst_109 = arith.constant dense<0.000000e+00> : vector<2x128xf32>
    %151 = tpu.matmul %150, %0, %cst_109 {dimension_numbers = #tpu.dot_dimension_numbers<[1], [0], [0], [1], [0, 0, 1, 1], [], []>} : vector<2x16xbf16>, vector<16x128xbf16>, vector<2x128xf32> -> vector<2x128xf32>
    %152 = vector.broadcast %1 : vector<1x128xf32> to vector<2x128xf32>
    %153 = arith.addf %151, %152 : vector<2x128xf32>
    %cst_110 = arith.constant 0.000000e+00 : f32
    %154 = vector.broadcast %cst_110 : f32 to vector<2x128xf32>
    %155 = arith.maximumf %153, %154 : vector<2x128xf32>
    %156 = arith.truncf %155 : vector<2x128xf32> to vector<2x128xbf16>
    %c1280 = arith.constant 1280 : index
    %c0_111 = arith.constant 0 : index
    %157 = vector.load %arg4[%c1280, %c0_111] : memref<2048x1024xbf16, #tpu.memory_space<vmem>>, vector<128x1024xbf16>
    %cst_112 = arith.constant dense<0.000000e+00> : vector<2x1024xf32>
    %158 = tpu.matmul %156, %157, %cst_112 {dimension_numbers = #tpu.dot_dimension_numbers<[1], [0], [0], [1], [0, 0, 1, 1], [], []>} : vector<2x128xbf16>, vector<128x1024xbf16>, vector<2x1024xf32> -> vector<2x1024xf32>
    %159 = arith.addf %145, %158 : vector<2x1024xf32>
    %c0_113 = arith.constant 0 : index
    %c4_114 = arith.constant 4 : index
    %c6_115 = arith.constant 6 : index
    %c0_116 = arith.constant 0 : index
    %160 = vector.load %arg1[%c0_113, %c4_114, %c6_115, %c0_116] : memref<2x8x8x16xf32, #tpu.memory_space<vmem>>, vector<2x2x2x16xf32>
    %cst_117 = arith.constant dense<0.000000e+00> : vector<2x16xf32>
    %161 = vector.multi_reduction <add>, %160, %cst_117 [1, 2] : vector<2x2x2x16xf32> to vector<2x16xf32>
    %cst_118 = arith.constant 2.500000e-01 : f32
    %162 = vector.broadcast %cst_118 : f32 to vector<2x16xf32>
    %163 = arith.mulf %161, %162 : vector<2x16xf32>
    %164 = arith.truncf %163 : vector<2x16xf32> to vector<2x16xbf16>
    %cst_119 = arith.constant dense<0.000000e+00> : vector<2x128xf32>
    %165 = tpu.matmul %164, %0, %cst_119 {dimension_numbers = #tpu.dot_dimension_numbers<[1], [0], [0], [1], [0, 0, 1, 1], [], []>} : vector<2x16xbf16>, vector<16x128xbf16>, vector<2x128xf32> -> vector<2x128xf32>
    %166 = vector.broadcast %1 : vector<1x128xf32> to vector<2x128xf32>
    %167 = arith.addf %165, %166 : vector<2x128xf32>
    %cst_120 = arith.constant 0.000000e+00 : f32
    %168 = vector.broadcast %cst_120 : f32 to vector<2x128xf32>
    %169 = arith.maximumf %167, %168 : vector<2x128xf32>
    %170 = arith.truncf %169 : vector<2x128xf32> to vector<2x128xbf16>
    %c1408 = arith.constant 1408 : index
    %c0_121 = arith.constant 0 : index
    %171 = vector.load %arg4[%c1408, %c0_121] : memref<2048x1024xbf16, #tpu.memory_space<vmem>>, vector<128x1024xbf16>
    %cst_122 = arith.constant dense<0.000000e+00> : vector<2x1024xf32>
    %172 = tpu.matmul %170, %171, %cst_122 {dimension_numbers = #tpu.dot_dimension_numbers<[1], [0], [0], [1], [0, 0, 1, 1], [], []>} : vector<2x128xbf16>, vector<128x1024xbf16>, vector<2x1024xf32> -> vector<2x1024xf32>
    %173 = arith.addf %159, %172 : vector<2x1024xf32>
    %c0_123 = arith.constant 0 : index
    %c6_124 = arith.constant 6 : index
    %c0_125 = arith.constant 0 : index
    %c0_126 = arith.constant 0 : index
    %174 = vector.load %arg1[%c0_123, %c6_124, %c0_125, %c0_126] : memref<2x8x8x16xf32, #tpu.memory_space<vmem>>, vector<2x2x2x16xf32>
    %cst_127 = arith.constant dense<0.000000e+00> : vector<2x16xf32>
    %175 = vector.multi_reduction <add>, %174, %cst_127 [1, 2] : vector<2x2x2x16xf32> to vector<2x16xf32>
    %cst_128 = arith.constant 2.500000e-01 : f32
    %176 = vector.broadcast %cst_128 : f32 to vector<2x16xf32>
    %177 = arith.mulf %175, %176 : vector<2x16xf32>
    %178 = arith.truncf %177 : vector<2x16xf32> to vector<2x16xbf16>
    %cst_129 = arith.constant dense<0.000000e+00> : vector<2x128xf32>
    %179 = tpu.matmul %178, %0, %cst_129 {dimension_numbers = #tpu.dot_dimension_numbers<[1], [0], [0], [1], [0, 0, 1, 1], [], []>} : vector<2x16xbf16>, vector<16x128xbf16>, vector<2x128xf32> -> vector<2x128xf32>
    %180 = vector.broadcast %1 : vector<1x128xf32> to vector<2x128xf32>
    %181 = arith.addf %179, %180 : vector<2x128xf32>
    %cst_130 = arith.constant 0.000000e+00 : f32
    %182 = vector.broadcast %cst_130 : f32 to vector<2x128xf32>
    %183 = arith.maximumf %181, %182 : vector<2x128xf32>
    %184 = arith.truncf %183 : vector<2x128xf32> to vector<2x128xbf16>
    %c1536 = arith.constant 1536 : index
    %c0_131 = arith.constant 0 : index
    %185 = vector.load %arg4[%c1536, %c0_131] : memref<2048x1024xbf16, #tpu.memory_space<vmem>>, vector<128x1024xbf16>
    %cst_132 = arith.constant dense<0.000000e+00> : vector<2x1024xf32>
    %186 = tpu.matmul %184, %185, %cst_132 {dimension_numbers = #tpu.dot_dimension_numbers<[1], [0], [0], [1], [0, 0, 1, 1], [], []>} : vector<2x128xbf16>, vector<128x1024xbf16>, vector<2x1024xf32> -> vector<2x1024xf32>
    %187 = arith.addf %173, %186 : vector<2x1024xf32>
    %c0_133 = arith.constant 0 : index
    %c6_134 = arith.constant 6 : index
    %c2_135 = arith.constant 2 : index
    %c0_136 = arith.constant 0 : index
    %188 = vector.load %arg1[%c0_133, %c6_134, %c2_135, %c0_136] : memref<2x8x8x16xf32, #tpu.memory_space<vmem>>, vector<2x2x2x16xf32>
    %cst_137 = arith.constant dense<0.000000e+00> : vector<2x16xf32>
    %189 = vector.multi_reduction <add>, %188, %cst_137 [1, 2] : vector<2x2x2x16xf32> to vector<2x16xf32>
    %cst_138 = arith.constant 2.500000e-01 : f32
    %190 = vector.broadcast %cst_138 : f32 to vector<2x16xf32>
    %191 = arith.mulf %189, %190 : vector<2x16xf32>
    %192 = arith.truncf %191 : vector<2x16xf32> to vector<2x16xbf16>
    %cst_139 = arith.constant dense<0.000000e+00> : vector<2x128xf32>
    %193 = tpu.matmul %192, %0, %cst_139 {dimension_numbers = #tpu.dot_dimension_numbers<[1], [0], [0], [1], [0, 0, 1, 1], [], []>} : vector<2x16xbf16>, vector<16x128xbf16>, vector<2x128xf32> -> vector<2x128xf32>
    %194 = vector.broadcast %1 : vector<1x128xf32> to vector<2x128xf32>
    %195 = arith.addf %193, %194 : vector<2x128xf32>
    %cst_140 = arith.constant 0.000000e+00 : f32
    %196 = vector.broadcast %cst_140 : f32 to vector<2x128xf32>
    %197 = arith.maximumf %195, %196 : vector<2x128xf32>
    %198 = arith.truncf %197 : vector<2x128xf32> to vector<2x128xbf16>
    %c1664 = arith.constant 1664 : index
    %c0_141 = arith.constant 0 : index
    %199 = vector.load %arg4[%c1664, %c0_141] : memref<2048x1024xbf16, #tpu.memory_space<vmem>>, vector<128x1024xbf16>
    %cst_142 = arith.constant dense<0.000000e+00> : vector<2x1024xf32>
    %200 = tpu.matmul %198, %199, %cst_142 {dimension_numbers = #tpu.dot_dimension_numbers<[1], [0], [0], [1], [0, 0, 1, 1], [], []>} : vector<2x128xbf16>, vector<128x1024xbf16>, vector<2x1024xf32> -> vector<2x1024xf32>
    %201 = arith.addf %187, %200 : vector<2x1024xf32>
    %c0_143 = arith.constant 0 : index
    %c6_144 = arith.constant 6 : index
    %c4_145 = arith.constant 4 : index
    %c0_146 = arith.constant 0 : index
    %202 = vector.load %arg1[%c0_143, %c6_144, %c4_145, %c0_146] : memref<2x8x8x16xf32, #tpu.memory_space<vmem>>, vector<2x2x2x16xf32>
    %cst_147 = arith.constant dense<0.000000e+00> : vector<2x16xf32>
    %203 = vector.multi_reduction <add>, %202, %cst_147 [1, 2] : vector<2x2x2x16xf32> to vector<2x16xf32>
    %cst_148 = arith.constant 2.500000e-01 : f32
    %204 = vector.broadcast %cst_148 : f32 to vector<2x16xf32>
    %205 = arith.mulf %203, %204 : vector<2x16xf32>
    %206 = arith.truncf %205 : vector<2x16xf32> to vector<2x16xbf16>
    %cst_149 = arith.constant dense<0.000000e+00> : vector<2x128xf32>
    %207 = tpu.matmul %206, %0, %cst_149 {dimension_numbers = #tpu.dot_dimension_numbers<[1], [0], [0], [1], [0, 0, 1, 1], [], []>} : vector<2x16xbf16>, vector<16x128xbf16>, vector<2x128xf32> -> vector<2x128xf32>
    %208 = vector.broadcast %1 : vector<1x128xf32> to vector<2x128xf32>
    %209 = arith.addf %207, %208 : vector<2x128xf32>
    %cst_150 = arith.constant 0.000000e+00 : f32
    %210 = vector.broadcast %cst_150 : f32 to vector<2x128xf32>
    %211 = arith.maximumf %209, %210 : vector<2x128xf32>
    %212 = arith.truncf %211 : vector<2x128xf32> to vector<2x128xbf16>
    %c1792 = arith.constant 1792 : index
    %c0_151 = arith.constant 0 : index
    %213 = vector.load %arg4[%c1792, %c0_151] : memref<2048x1024xbf16, #tpu.memory_space<vmem>>, vector<128x1024xbf16>
    %cst_152 = arith.constant dense<0.000000e+00> : vector<2x1024xf32>
    %214 = tpu.matmul %212, %213, %cst_152 {dimension_numbers = #tpu.dot_dimension_numbers<[1], [0], [0], [1], [0, 0, 1, 1], [], []>} : vector<2x128xbf16>, vector<128x1024xbf16>, vector<2x1024xf32> -> vector<2x1024xf32>
    %215 = arith.addf %201, %214 : vector<2x1024xf32>
    %c0_153 = arith.constant 0 : index
    %c6_154 = arith.constant 6 : index
    %c6_155 = arith.constant 6 : index
    %c0_156 = arith.constant 0 : index
    %216 = vector.load %arg1[%c0_153, %c6_154, %c6_155, %c0_156] : memref<2x8x8x16xf32, #tpu.memory_space<vmem>>, vector<2x2x2x16xf32>
    %cst_157 = arith.constant dense<0.000000e+00> : vector<2x16xf32>
    %217 = vector.multi_reduction <add>, %216, %cst_157 [1, 2] : vector<2x2x2x16xf32> to vector<2x16xf32>
    %cst_158 = arith.constant 2.500000e-01 : f32
    %218 = vector.broadcast %cst_158 : f32 to vector<2x16xf32>
    %219 = arith.mulf %217, %218 : vector<2x16xf32>
    %220 = arith.truncf %219 : vector<2x16xf32> to vector<2x16xbf16>
    %cst_159 = arith.constant dense<0.000000e+00> : vector<2x128xf32>
    %221 = tpu.matmul %220, %0, %cst_159 {dimension_numbers = #tpu.dot_dimension_numbers<[1], [0], [0], [1], [0, 0, 1, 1], [], []>} : vector<2x16xbf16>, vector<16x128xbf16>, vector<2x128xf32> -> vector<2x128xf32>
    %222 = vector.broadcast %1 : vector<1x128xf32> to vector<2x128xf32>
    %223 = arith.addf %221, %222 : vector<2x128xf32>
    %cst_160 = arith.constant 0.000000e+00 : f32
    %224 = vector.broadcast %cst_160 : f32 to vector<2x128xf32>
    %225 = arith.maximumf %223, %224 : vector<2x128xf32>
    %226 = arith.truncf %225 : vector<2x128xf32> to vector<2x128xbf16>
    %c1920 = arith.constant 1920 : index
    %c0_161 = arith.constant 0 : index
    %227 = vector.load %arg4[%c1920, %c0_161] : memref<2048x1024xbf16, #tpu.memory_space<vmem>>, vector<128x1024xbf16>
    %cst_162 = arith.constant dense<0.000000e+00> : vector<2x1024xf32>
    %228 = tpu.matmul %226, %227, %cst_162 {dimension_numbers = #tpu.dot_dimension_numbers<[1], [0], [0], [1], [0, 0, 1, 1], [], []>} : vector<2x128xbf16>, vector<128x1024xbf16>, vector<2x1024xf32> -> vector<2x1024xf32>
    %229 = arith.addf %215, %228 : vector<2x1024xf32>
    %cst_163 = arith.constant 0.000000e+00 : f32
    %230 = vector.broadcast %cst_163 : f32 to vector<2x1024xf32>
    %231 = arith.maximumf %229, %230 : vector<2x1024xf32>
    %232 = arith.truncf %231 : vector<2x1024xf32> to vector<2x1024xbf16>
    %c0_164 = arith.constant 0 : index
    %c0_165 = arith.constant 0 : index
    %233 = vector.load %arg6[%c0_164, %c0_165] : memref<1024x128xbf16, #tpu.memory_space<vmem>>, vector<1024x128xbf16>
    %cst_166 = arith.constant dense<0.000000e+00> : vector<2x128xf32>
    %234 = tpu.matmul %232, %233, %cst_166 {dimension_numbers = #tpu.dot_dimension_numbers<[1], [0], [0], [1], [0, 0, 1, 1], [], []>} : vector<2x1024xbf16>, vector<1024x128xbf16>, vector<2x128xf32> -> vector<2x128xf32>
    %c0_167 = arith.constant 0 : index
    %c0_168 = arith.constant 0 : index
    %235 = vector.load %arg7[%c0_167, %c0_168] : memref<1x128xf32, #tpu.memory_space<vmem>>, vector<1x128xf32>
    %236 = vector.broadcast %235 : vector<1x128xf32> to vector<2x128xf32>
    %237 = arith.addf %234, %236 : vector<2x128xf32>
    %c0_169 = arith.constant 0 : index
    %c0_170 = arith.constant 0 : index
    %238 = vector.load %arg8[%c0_169, %c0_170] : memref<2x128xf32, #tpu.memory_space<vmem>>, vector<2x128xf32>
    tpu.vector_store %arg8[%c0_169, %c0_170], %237 {strides = array<i32>} : memref<2x128xf32, #tpu.memory_space<vmem>>, vector<2x128xf32>,
    return
  }
  func.func @transform_0(%arg0: i32) -> (i32, i32, i32, i32) {
    %c0_i32 = arith.constant 0 : i32
    %c0_i32_0 = arith.constant 0 : i32
    %c0_i32_1 = arith.constant 0 : i32
    %c0_i32_2 = arith.constant 0 : i32
    return %arg0, %c0_i32, %c0_i32_0, %c0_i32_1 : i32, i32, i32, i32
  }
  func.func @transform_1(%arg0: i32) -> (i32, i32) {
    %c0_i32 = arith.constant 0 : i32
    %c0_i32_0 = arith.constant 0 : i32
    %c0_i32_1 = arith.constant 0 : i32
    return %c0_i32, %c0_i32_0 : i32, i32
  }
  func.func @transform_2(%arg0: i32) -> (i32, i32) {
    %c0_i32 = arith.constant 0 : i32
    %c0_i32_0 = arith.constant 0 : i32
    %c0_i32_1 = arith.constant 0 : i32
    return %c0_i32, %c0_i32_0 : i32, i32
  }
  func.func @transform_3(%arg0: i32) -> (i32, i32) {
    %c0_i32 = arith.constant 0 : i32
    %c0_i32_0 = arith.constant 0 : i32
    %c0_i32_1 = arith.constant 0 : i32
    return %c0_i32, %c0_i32_0 : i32, i32
  }
  func.func @transform_4(%arg0: i32) -> (i32, i32) {
    %c0_i32 = arith.constant 0 : i32
    %c0_i32_0 = arith.constant 0 : i32
    %c0_i32_1 = arith.constant 0 : i32
    return %c0_i32, %c0_i32_0 : i32, i32
  }
  func.func @transform_5(%arg0: i32) -> (i32, i32) {
    %c0_i32 = arith.constant 0 : i32
    %c0_i32_0 = arith.constant 0 : i32
    %c0_i32_1 = arith.constant 0 : i32
    return %c0_i32, %c0_i32_0 : i32, i32
  }
  func.func @transform_6(%arg0: i32) -> (i32, i32) {
    %c0_i32 = arith.constant 0 : i32
    %c0_i32_0 = arith.constant 0 : i32
    %c0_i32_1 = arith.constant 0 : i32
    return %c0_i32, %c0_i32_0 : i32, i32
  }
  func.func @transform_7(%arg0: i32) -> (i32, i32) {
    %c0_i32 = arith.constant 0 : i32
    %c0_i32_0 = arith.constant 0 : i32
    return %arg0, %c0_i32 : i32, i32
  }
}

</mosaic_0001>

<bundles_post_ra>
// kernel: tpu_custom_call.1
= control target key start
LH: loop header
LB: loop body
LE: loop exit
PB: predicated region body
PF: predicated region fallthrough
CT: control target
= control target key end

     0   :  { %12 = vsyncpa [#allocation3], 0  ;;  %s13430_s0 = inlined_call_operand.hbm [shape: f32[2,8,8,16], index: 0, kind: input, shape index: {}]   ;;  %s13431_s1 = inlined_call_operand.hbm [shape: bf16[16,128], index: 1, kind: input, shape index: {}]   ;;  %s13432_s2 = inlined_call_operand.hbm [shape: f32[1,128], index: 2, kind: input, shape index: {}]   ;;  %s13433_s3 = inlined_call_operand.hbm [shape: bf16[2048,1024], index: 3, kind: input, shape index: {}]   ;;  %s13434_s4 = inlined_call_operand.hbm [shape: f32[1,1024], index: 4, kind: input, shape index: {}]   ;;  %s13435_s5 = inlined_call_operand.hbm [shape: bf16[1024,128], index: 5, kind: input, shape index: {}]   ;;  %s13436_s6 = inlined_call_operand.hbm [shape: f32[1,128], index: 6, kind: input, shape index: {}]   ;;  %s13437_s7 = inlined_call_operand.hbm [shape: f32[2,128], index: 7, kind: output, shape index: {}]  }
   0x1   :  { %13 = vsyncpa [#allocation6], 0 }
   0x2   :  { %14 = vsyncpa [#allocation9], 0 }
   0x3   :  { %15 = vsyncpa [#allocation12], 0 }
   0x4   :  { %16 = vsyncpa [#allocation4], 0  ;;  %s12879_s24 = smov [#allocation5]   ;;  %s12693_s28 = scalar_lea.hbm %s13431_s1, 128 }
   0x5   :  { %s34_s25 = sshll.u32 %s12879_s24, 4  ;;  %p12694_p0 = scmp.ne.s32.totalorder %s13431_s1, %s12693_s28  ;;  %s35_s25 = int_to_ptr.vmem [resolvable:$true] %s34_s25 }
   0x6   :  { %p12697_p1 = scmp.lt.u32.totalorder %s12693_s28, %s13431_s1 }
   0x8   :  { %p12699_p2 = pnand %p12697_p1, %p12694_p0 }
   0xa   :  { %12702 = shalt.err (!%p12699_p2)
}
   0xb   :  { %s12703_s10 = scalar_lea.vmem %s35_s25, 128  ;;  %p12708_p4 = scmp.lt.s32.totalorder %s35_s25, %s35_s25 }
   0xc   :  { %p12704_p3 = scmp.ne.s32.totalorder %s35_s25, %s12703_s10  ;;  %p12709_p5 = scmp.lt.s32.totalorder %s12703_s10, %s12703_s10 }
   0xe   :  { %p12710_p6 = por %p12709_p5, %p12708_p4 }
  0x10   :  { %p12711_p7 = pnand %p12710_p6, %p12704_p3 }
  0x12   :  { %12714 = shalt.err (!%p12711_p7)
}
  0x13   :  { %s12880_s11 = smov 64   ;;  %s12881_s12 = smov 4  }
  0x14   :  { %40 = dma.hbm_to_vmem [thread:$0]  %s13431_s1, 128, %s35_s25, [#allocation6], %s12880_s11, %s12880_s11, %s12881_s12  }
  0x15   :  { %s12882_s15 = smov [#allocation8]   ;;  %s12715_s19 = scalar_lea.hbm %s13433_s3, 131072 }
  0x16   :  { %s56_s16 = sshll.u32 %s12882_s15, 4  ;;  %p12716_p8 = scmp.ne.s32.totalorder %s13433_s3, %s12715_s19  ;;  %s57_s16 = int_to_ptr.vmem [resolvable:$true] %s56_s16 }
  0x17   :  { %p12719_p9 = scmp.lt.u32.totalorder %s12715_s19, %s13433_s3 }
  0x19   :  { %p12721_p10 = pnand %p12719_p9, %p12716_p8 }
  0x1b   :  { %12724 = shalt.err (!%p12721_p10)
}
  0x1c   :  { %s12725_s24 = scalar_lea.vmem %s57_s16, 131072  ;;  %p12730_p12 = scmp.lt.s32.totalorder %s57_s16, %s57_s16 }
  0x1d   :  { %p12726_p11 = scmp.ne.s32.totalorder %s57_s16, %s12725_s24  ;;  %p12731_p13 = scmp.lt.s32.totalorder %s12725_s24, %s12725_s24 }
  0x1f   :  { %p12732_p0 = por %p12731_p13, %p12730_p12 }
  0x21   :  { %p12733_p1 = pnand %p12732_p0, %p12726_p11 }
  0x23   :  { %12736 = shalt.err (!%p12733_p1)
}
  0x24   :  { %s12883_s1 = smov 512   ;;  %s12884_s25 = smov 32  }
  0x25   :  { %62 = dma.hbm_to_vmem [thread:$0]  %s13433_s3, 131072, %s57_s16, [#allocation9], %s12883_s1, %s12883_s1, %s12884_s25  }
  0x26   :  { %s12885_s28 = smov [#allocation11]   ;;  %s12886_s30 = smov [#allocation2]  }
  0x27   :  { %s78_s29 = sshll.u32 %s12885_s28, 4  ;;  %s22_s8 = sshll.u32 %s12886_s30, 4  ;;  %s79_s29 = int_to_ptr.vmem [resolvable:$true] %s78_s29  ;;  %s12963_s8 = int_to_ptr.vmem [resolvable:$true] %s22_s8 }
  0x28   :  { %s12737_s13 = scalar_lea.hbm %s13435_s5, 8192 }
  0x29   :  { %p12738_p2 = scmp.ne.s32.totalorder %s13435_s5, %s12737_s13  ;;  %p12741_p3 = scmp.lt.u32.totalorder %s12737_s13, %s13435_s5 }
  0x2b   :  { %p12743_p4 = pnand %p12741_p3, %p12738_p2 }
  0x2d   :  { %12746 = shalt.err (!%p12743_p4)
}
  0x2e   :  { %s12747_s3 = scalar_lea.vmem %s79_s29, 8192  ;;  %p12752_p6 = scmp.lt.s32.totalorder %s79_s29, %s79_s29 }
  0x2f   :  { %p12748_p5 = scmp.ne.s32.totalorder %s79_s29, %s12747_s3  ;;  %p12753_p7 = scmp.lt.s32.totalorder %s12747_s3, %s12747_s3 }
  0x31   :  { %p12754_p8 = por %p12753_p7, %p12752_p6 }
  0x33   :  { %p12755_p9 = pnand %p12754_p8, %p12748_p5 }
  0x35   :  { %12758 = shalt.err (!%p12755_p9)
}
  0x36   :  { %84 = dma.hbm_to_vmem [thread:$0]  %s13435_s5, 8192, %s79_s29, [#allocation12], %s12880_s11, %s12880_s11, %s12881_s12  }
  0x37   :  { %s12759_s22 = scalar_lea.hbm %s13430_s0, 2048 }
  0x38   :  { %p12760_p10 = scmp.ne.s32.totalorder %s13430_s0, %s12759_s22  ;;  %p12763_p11 = scmp.lt.u32.totalorder %s12759_s22, %s13430_s0 }
  0x3a   :  { %p12765_p12 = pnand %p12763_p11, %p12760_p10 }
  0x3c   :  { %12768 = shalt.err (!%p12765_p12)
}
  0x3d   :  { %s12769_s26 = scalar_lea.vmem %s12963_s8, 2048  ;;  %p12774_p0 = scmp.lt.s32.totalorder %s12963_s8, %s12963_s8 }
  0x3e   :  { %p12770_p13 = scmp.ne.s32.totalorder %s12963_s8, %s12769_s26  ;;  %p12775_p1 = scmp.lt.s32.totalorder %s12769_s26, %s12769_s26 }
  0x40   :  { %p12776_p2 = por %p12775_p1, %p12774_p0 }
  0x42   :  { %p12777_p3 = pnand %p12776_p2, %p12770_p13 }
  0x44   :  { %12780 = shalt.err (!%p12777_p3)
}
  0x45   :  { %s12887_s5 = smov 128   ;;  %s12888_s11 = smov 8  }
  0x46   :  { %28 = dma.hbm_to_vmem [thread:$0]  %s13430_s0, 2048, %s12963_s8, [#allocation3], %s12887_s5, %s12887_s5, %s12888_s11  }
  0x47   :  { %s12889_s28 = smov [#allocation7]   ;;  %s12890_s30 = smov [#allocation10]  }
  0x48   :  { %s47_s29 = sshll.u32 %s12889_s28, 4  ;;  %s69_s9 = sshll.u32 %s12890_s30, 4  ;;  %s48_s29 = int_to_ptr.vmem [resolvable:$true] %s47_s29  ;;  %s70_s9 = int_to_ptr.vmem [resolvable:$true] %s69_s9 }
  0x49   :  { %s12781_s14 = scalar_lea.hbm %s13432_s2, 16 }
  0x4a   :  { %p12782_p4 = scmp.ne.s32.totalorder %s13432_s2, %s12781_s14  ;;  %p12785_p5 = scmp.lt.u32.totalorder %s12781_s14, %s13432_s2 }
  0x4c   :  { %p12787_p6 = pnand %p12785_p5, %p12782_p4 }
  0x4e   :  { %12790 = shalt.err (!%p12787_p6)
}
  0x4f   :  { %s12791_s0 = scalar_lea.vmem %s48_s29, 16  ;;  %s12795_s8 = scalar_lea.vmem %s48_s29, 32 }
  0x50   :  { %p12792_p7 = scmp.ne.s32.totalorder %s48_s29, %s12791_s0  ;;  %p12796_p8 = scmp.lt.s32.totalorder %s48_s29, %s48_s29 }
  0x51   :  { %p12797_p9 = scmp.lt.s32.totalorder %s12795_s8, %s12791_s0 }
  0x53   :  { %p12798_p10 = por %p12797_p9, %p12796_p8 }
  0x55   :  { %p12799_p11 = pnand %p12798_p10, %p12792_p7 }
  0x57   :  { %12802 = shalt.err (!%p12799_p11)
}
  0x58   :  { %50 = dma.hbm_to_vmem [thread:$0]  %s13432_s2, 16, %s48_s29, [#allocation6]  }
  0x59   :  { %s12803_s22 = scalar_lea.hbm %s13434_s4, 128 }
  0x5a   :  { %p12804_p12 = scmp.ne.s32.totalorder %s13434_s4, %s12803_s22  ;;  %p12807_p13 = scmp.lt.u32.totalorder %s12803_s22, %s13434_s4 }
  0x5c   :  { %p12809_p0 = pnand %p12807_p13, %p12804_p12 }
  0x5e   :  { %12812 = shalt.err (!%p12809_p0)
}
  0x5f   :  { %s12813_s26 = scalar_lea.vmem %s70_s9, 128  ;;  %p12818_p2 = scmp.lt.s32.totalorder %s70_s9, %s70_s9 }
  0x60   :  { %p12814_p1 = scmp.ne.s32.totalorder %s70_s9, %s12813_s26  ;;  %p12819_p3 = scmp.lt.s32.totalorder %s12813_s26, %s12813_s26 }
  0x62   :  { %p12820_p4 = por %p12819_p3, %p12818_p2 }
  0x64   :  { %p12821_p5 = pnand %p12820_p4, %p12814_p1 }
  0x66   :  { %12824 = shalt.err (!%p12821_p5)
}
  0x67   :  { %72 = dma.hbm_to_vmem [thread:$0]  %s13434_s4, 128, %s70_s9, [#allocation9]  }
  0x68   :  { %s12891_s11 = smov [#allocation13]   ;;  %s12825_s29 = scalar_lea.hbm %s13436_s6, 16 }
  0x69   :  { %s91_s12 = sshll.u32 %s12891_s11, 4  ;;  %p12826_p6 = scmp.ne.s32.totalorder %s13436_s6, %s12825_s29  ;;  %s92_s12 = int_to_ptr.vmem [resolvable:$true] %s91_s12 }
  0x6a   :  { %p12829_p7 = scmp.lt.u32.totalorder %s12825_s29, %s13436_s6 }
  0x6c   :  { %p12831_p8 = pnand %p12829_p7, %p12826_p6 }
  0x6e   :  { %12834 = shalt.err (!%p12831_p8)
}
  0x6f   :  { %s12835_s15 = scalar_lea.vmem %s92_s12, 16  ;;  %s12839_s4 = scalar_lea.vmem %s92_s12, 32 }
  0x70   :  { %p12836_p9 = scmp.ne.s32.totalorder %s92_s12, %s12835_s15  ;;  %p12840_p10 = scmp.lt.s32.totalorder %s92_s12, %s92_s12 }
  0x71   :  { %p12841_p11 = scmp.lt.s32.totalorder %s12839_s4, %s12835_s15 }
  0x73   :  { %p12842_p12 = por %p12841_p11, %p12840_p10 }
  0x75   :  { %p12843_p13 = pnand %p12842_p12, %p12836_p9 }
  0x77   :  { %12846 = shalt.err (!%p12843_p13)
}
  0x78   :  { %94 = dma.hbm_to_vmem [thread:$0]  %s13436_s6, 16, %s92_s12, [#allocation12]  }
  0x79   :  { %12869 = dma.done.wait [#allocation3], 2048  }
  0x7a   :  { %12870 = vsyncadd [#allocation3], 4294965248 }
  0x7b   :  { %12871 = dma.done.wait [#allocation6], 144  }
  0x7c   :  { %12872 = vsyncadd [#allocation6], 4294967152 }
  0x7d   :  { %12873 = dma.done.wait [#allocation9], 131200  }
  0x7e   :  { %12874 = vsyncadd [#allocation9], 4294836096 }
  0x7f   :  { %12875 = dma.done.wait [#allocation12], 8208  }
  0x80   :  { %12876 = vsyncadd [#allocation12], 4294959088  ;;  %v12892_v0 = vmov 0.0   ;;  %vm12893_vm0 = vmmov 0   ;;  %vm174_vm1 = vcmask 123904   ;;  %v13036_v1 = vld [vmem:[#allocation5] sm:$0xff]  }
  0x81   :  { %12257 = vmatprep.subr.bf16.mxu0 %v12892_v0  ;;  %12259 = vmatprep.mubr.msk.bf16.mxu0 %vm12893_vm0, %v12892_v0  ;;  %v170_v2 = vld [vmem:[#allocation2] sm:$0x3]  ;;  %v171_v3 = vld [vmem:[#allocation2 + $0x8] sm:$0x3]  ;;  %v262_v9 = vld [vmem:[#allocation8] sm:$0xff]  ;;  %vm207_vm2 = vcmask 1041409  }
  0x82   :  { %v172_v4 = vld [vmem:[#allocation2 + $0x40] sm:$0x3]  ;;  %12258 = vmatpush3.bf16.msra.mxu0 %v13036_v1  ;;  %v173_v5 = vld [vmem:[#allocation2 + $0x48] sm:$0x3]  ;;  %v175_v6 = vsel %vm174_vm1, %v170_v2, 0.0  ;;  %v176_v7 = vsel %vm174_vm1, %v171_v3, 0.0 }
  0x83   :  { %v184_v8 = vsel %vm174_vm1, %v172_v4, 0.0  ;;  %v177_v10 = vadd.f32 %v176_v7, %v175_v6  ;;  %v185_v11 = vsel %vm174_vm1, %v173_v5, 0.0  ;;  %v266_v12 = vld [vmem:[#allocation8 + $0x20] sm:$0xff]  ;;  %v13043_v13 = vld [vmem:[#allocation8 + $0x8] sm:$0xff]  ;;  %vm216_vm3 = vcmask 130048   ;;  %s12895_s6 = smov [#allocation14]  }
  0x84   :  { %v13045_v14 = vld [vmem:[#allocation8 + $0x28] sm:$0xff]  ;;  %v186_v15 = vadd.f32 %v185_v11, %v184_v8  ;;  %v11034_v16 = vcombine.high %v262_v9, %v266_v12  ;;  %v270_v18 = vld [vmem:[#allocation8 + $0x40] sm:$0xff]  ;;  %v11033_v21 = vcombine.low %v262_v9, %v266_v12  ;;  %s11018_s18 = sshll.u32 %s12895_s6, 4  ;;  %s11019_s18 = int_to_ptr.vmem [resolvable:$true] %s11018_s18 }
  0x85   :  { %v11036_v17 = vcombine.high %v13043_v13, %v13045_v14  ;;  %v274_v19 = vld [vmem:[#allocation8 + $0x60] sm:$0xff]  ;;  %v178_v20 = vrot.slane %v177_v10, 4  ;;  %v271_v55 = vld [vmem:[#allocation8 + $0x48] sm:$0xff]  ;;  %v11035_v62 = vcombine.low %v13043_v13, %v13045_v14  ;;  %s12847_s3 = scalar_lea.vmem %s11019_s18, 32  ;;  %p12852_p1 = scmp.lt.s32.totalorder %s11019_s18, %s11019_s18 }
  0x86   :  { %v11042_v22 = vcombine.high %v270_v18, %v274_v19  ;;  %v278_v23 = vld [vmem:[#allocation8 + $0x80] sm:$0xff]  ;;  %v187_v25 = vrot.slane %v186_v15, 4  ;;  %646 = vmatprep.subr.bf16.mxu1 %v11034_v16  ;;  %v11041_v27 = vcombine.low %v270_v18, %v274_v19  ;;  %v275_v56 = vld [vmem:[#allocation8 + $0x68] sm:$0xff]  ;;  %p12848_p0 = scmp.ne.s32.totalorder %s11019_s18, %s12847_s3  ;;  %p12853_p2 = scmp.lt.s32.totalorder %s12847_s3, %s12847_s3 }
  0x87   :  { %v282_v24 = vld [vmem:[#allocation8 + $0xa0] sm:$0xff]  ;;  %687 = vmatprep.subr.bf16.mxu0 %v11036_v17  ;;  %v179_v26 = vadd.f32 %v178_v20, %v177_v10  ;;  %647 = vmatpush1.bf16.msra.mxu1 %v11033_v21  ;;  %v279_v63 = vld [vmem:[#allocation8 + $0x88] sm:$0xff]  ;;  %v11044_v5 = vcombine.high %v271_v55, %v275_v56  ;;  %v11043_v7 = vcombine.low %v271_v55, %v275_v56 }
  0x88   :  { %v188_v28 = vadd.f32 %v187_v25, %v186_v15  ;;  %648 = vmatprep.subr.bf16.mxu1 %v11042_v22  ;;  %v11050_v29 = vcombine.high %v278_v23, %v282_v24  ;;  %v286_v31 = vld [vmem:[#allocation8 + $0xc0] sm:$0xff]  ;;  %v11049_v35 = vcombine.low %v278_v23, %v282_v24  ;;  %v283_v2 = vld [vmem:[#allocation8 + $0xa8] sm:$0xff]  ;;  %p12854_p3 = por %p12853_p2, %p12852_p1 }
  0x89   :  { %v180_v30 = vrot.slane %v179_v26, 2  ;;  %v290_v32 = vld [vmem:[#allocation8 + $0xe0] sm:$0xff]  ;;  %v287_v8 = vld [vmem:[#allocation8 + $0xc8] sm:$0xff]  ;;  %v11052_v10 = vcombine.high %v279_v63, %v283_v2  ;;  %v11051_v11 = vcombine.low %v279_v63, %v283_v2 }
  0x8a   :  { %v189_v33 = vrot.slane %v188_v28, 2  ;;  %v11058_v37 = vcombine.high %v286_v31, %v290_v32  ;;  %v294_v38 = vld [vmem:[#allocation8 + $0x100] sm:$0xff]  ;;  %v11057_v43 = vcombine.low %v286_v31, %v290_v32  ;;  %v291_v9 = vld [vmem:[#allocation8 + $0xe8] sm:$0xff]  ;;  %p12855_p4 = pnand %p12854_p3, %p12848_p0 }
  0x8b   :  { %v181_v34 = vadd.f32 %v180_v30, %v179_v26  ;;  %649 = vmatpush1.bf16.msra.mxu1 %v11041_v27  ;;  %v298_v40 = vld [vmem:[#allocation8 + $0x120] sm:$0xff]  ;;  %v295_v12 = vld [vmem:[#allocation8 + $0x108] sm:$0xff]  ;;  %v11060_v14 = vcombine.high %v287_v8, %v291_v9  ;;  %v11059_v15 = vcombine.low %v287_v8, %v291_v9  ;;  %v284_v8 = vld [vmem:[#allocation8 + $0xb0] sm:$0xff] }
  0x8c   :  { %v190_v36 = vadd.f32 %v189_v33, %v188_v28  ;;  %650 = vmatprep.subr.bf16.mxu1 %v11050_v29  ;;  %v302_v44 = vld [vmem:[#allocation8 + $0x140] sm:$0xff]  ;;  %v11066_v46 = vcombine.high %v294_v38, %v298_v40  ;;  %v11065_v51 = vcombine.low %v294_v38, %v298_v40  ;;  %v299_v13 = vld [vmem:[#allocation8 + $0x128] sm:$0xff]  ;;  %v269_v38 = vld [vmem:[#allocation8 + $0x38] sm:$0xff] }
  0x8d   :  { %v182_v39 = vrot.slane %v181_v34, 1  ;;  %v306_v48 = vld [vmem:[#allocation8 + $0x160] sm:$0xff]  ;;  %v303_v16 = vld [vmem:[#allocation8 + $0x148] sm:$0xff]  ;;  %v11068_v18 = vcombine.high %v295_v12, %v299_v13  ;;  %v11067_v19 = vcombine.low %v295_v12, %v299_v13  ;;  %v281_v9 = vld [vmem:[#allocation8 + $0x98] sm:$0xff] }
  0x8e   :  { %v191_v41 = vrot.slane %v190_v36, 1  ;;  %v310_v52 = vld [vmem:[#allocation8 + $0x180] sm:$0xff]  ;;  %v11074_v57 = vcombine.high %v302_v44, %v306_v48  ;;  %v11073_v60 = vcombine.low %v302_v44, %v306_v48  ;;  %v307_v17 = vld [vmem:[#allocation8 + $0x168] sm:$0xff] }
  0x8f   :  { %v183_v42 = vadd.f32 %v182_v39, %v181_v34  ;;  %651 = vmatpush1.bf16.msra.mxu1 %v11049_v35  ;;  %v314_v53 = vld [vmem:[#allocation8 + $0x1a0] sm:$0xff]  ;;  %v311_v20 = vld [vmem:[#allocation8 + $0x188] sm:$0xff]  ;;  %v11076_v22 = vcombine.high %v303_v16, %v307_v17  ;;  %v11075_v23 = vcombine.low %v303_v16, %v307_v17  ;;  %v264_v34 = vld [vmem:[#allocation8 + $0x10] sm:$0xff] }
  0x90   :  { %v192_v45 = vadd.f32 %v191_v41, %v190_v36  ;;  %652 = vmatprep.subr.bf16.mxu1 %v11058_v37  ;;  %v11082_v3 = vcombine.high %v310_v52, %v314_v53  ;;  %v11081_v6 = vcombine.low %v310_v52, %v314_v53  ;;  %v315_v21 = vld [vmem:[#allocation8 + $0x1a8] sm:$0xff]  ;;  %v318_v26 = vld [vmem:[#allocation8 + $0x1c0] sm:$0xff]  ;;  %v268_v35 = vld [vmem:[#allocation8 + $0x30] sm:$0xff] }
  0x91   :  { %v193_v47 = vmul.f32 0.25, %v183_v42  ;;  %v11084_v24 = vcombine.high %v311_v20, %v315_v21  ;;  %v11083_v25 = vcombine.low %v311_v20, %v315_v21  ;;  %v322_v27 = vld [vmem:[#allocation8 + $0x1e0] sm:$0xff]  ;;  %v319_v28 = vld [vmem:[#allocation8 + $0x1c8] sm:$0xff]  ;;  %v265_v36 = vld [vmem:[#allocation8 + $0x18] sm:$0xff]  ;;  %v11038_v37 = vcombine.high %v264_v34, %v268_v35 }
  0x92   :  { %v194_v49 = vmul.f32 0.25, %v192_v45  ;;  %v11090_v29 = vcombine.high %v318_v26, %v322_v27  ;;  %v323_v30 = vld [vmem:[#allocation8 + $0x1e8] sm:$0xff]  ;;  %v11089_v33 = vcombine.low %v318_v26, %v322_v27  ;;  %v11037_v39 = vcombine.low %v264_v34, %v268_v35  ;;  %v819_v44 = vld [vmem:[#allocation2 + $0xa] sm:$0x3]  ;;  %v820_v45 = vld [vmem:[#allocation2 + $0x42] sm:$0x3] }
  0x93   :  { %v195_v50 = vpack.c.bf16 %v193_v47, %v193_v47  ;;  %653 = vmatpush1.bf16.msra.mxu1 %v11057_v43  ;;  %v11091_v31 = vcombine.low %v319_v28, %v323_v30  ;;  %v11092_v32 = vcombine.high %v319_v28, %v323_v30  ;;  %v11039_v40 = vcombine.low %v265_v36, %v269_v38  ;;  %v818_v43 = vld [vmem:[#allocation2 + $0x2] sm:$0x3]  ;;  %v288_v17 = vld [vmem:[#allocation8 + $0xd0] sm:$0xff] }
  0x94   :  { %v196_v54 = vpack.c.bf16 %v194_v49, %v194_v49  ;;  %654 = vmatprep.subr.bf16.mxu1 %v11066_v46  ;;  %v11040_v41 = vcombine.high %v265_v36, %v269_v38  ;;  %v12894_v42 = vmov 0   ;;  %v821_v46 = vld [vmem:[#allocation2 + $0x4a] sm:$0x3]  ;;  %v822_v47 = vsel %vm174_vm1, %v818_v43, 0.0  ;;  %v293_v20 = vld [vmem:[#allocation8 + $0xf8] sm:$0xff]  ;;  %v296_v27 = vld [vmem:[#allocation8 + $0x110] sm:$0xff] }
  0x95   :  { %v205_v58 = vunpack.c.l.b16 %v195_v50  ;;  %678 = vmatprep.mubr.bf16.mxu1 %v12894_v42  ;;  %v823_v48 = vsel %vm174_vm1, %v819_v44, 0.0  ;;  %v831_v49 = vsel %vm174_vm1, %v820_v45, 0.0  ;;  %v832_v50 = vsel %vm174_vm1, %v821_v46, 0.0  ;;  %v300_v28 = vld [vmem:[#allocation8 + $0x130] sm:$0xff]  ;;  %v301_v30 = vld [vmem:[#allocation8 + $0x138] sm:$0xff] }
  0x96   :  { %v206_v59 = vunpack.c.l.b16 %v196_v54  ;;  %v824_v53 = vadd.f32 %v823_v48, %v822_v47  ;;  %v833_v54 = vadd.f32 %v832_v50, %v831_v49  ;;  %v11070_v35 = vcombine.high %v296_v27, %v300_v28  ;;  %v308_v38 = vld [vmem:[#allocation8 + $0x170] sm:$0xff]  ;;  %v313_v50 = vld [vmem:[#allocation8 + $0x198] sm:$0xff] }
  0x97   :  { %655 = vmatpush1.bf16.msra.mxu1 %v11065_v51  ;;  %v13059_v51 = vld [vmem:[#allocation7] ss:$0 sm:$0xff]  ;;  %v312_v48 = vld [vmem:[#allocation8 + $0x190] sm:$0xff] }
  0x98   :  { %v208_v61 = vsel %vm207_vm2, %v206_v59, %v205_v58  ;;  %656 = vmatprep.subr.bf16.mxu1 %v11074_v57  ;;  %v272_v57 = vld [vmem:[#allocation8 + $0x50] sm:$0xff]  ;;  %v825_v2 = vrot.slane %v824_v53, 4 }
  0x99   :  { %v209_v4 = vpack.c.b16 %v208_v61, %v208_v61  ;;  %v276_v59 = vld [vmem:[#allocation8 + $0x70] sm:$0xff]  ;;  %v277_v61 = vld [vmem:[#allocation8 + $0x78] sm:$0xff] }
  0x9a   :  { %v826_v13 = vadd.f32 %v825_v2, %v824_v53  ;;  %v316_v49 = vld [vmem:[#allocation8 + $0x1b0] sm:$0xff] }
  0x9b   :  { %12260 = vmatmul.mubr.msk.bf16.vlgmr.msra.gmra.mrb[0].mxu0 %vm216_vm3, %v209_v4  ;;  %657 = vmatpush1.bf16.msra.mxu1 %v11073_v60  ;;  %v273_v60 = vld [vmem:[#allocation8 + $0x58] sm:$0xff] }
  0x9c   :  { %688 = vmatpush1.bf16.msra.mxu0 %v11035_v62  ;;  %658 = vmatprep.subr.bf16.mxu1 %v11082_v3  ;;  %v834_v3 = vrot.slane %v833_v54, 4  ;;  %v11047_v12 = vcombine.low %v273_v60, %v277_v61 }
  0x9d   :  { %689 = vmatprep.subr.bf16.mxu0 %v11044_v5  ;;  %719 = vmatprep.mubr.bf16.mxu0 %v12894_v42  ;;  %v11046_v5 = vcombine.high %v272_v57, %v276_v59 }
  0x9f   :  { %659 = vmatpush1.bf16.msra.mxu1 %v11081_v6  ;;  %v11048_v6 = vcombine.high %v273_v60, %v277_v61  ;;  %v324_v60 = vld [vmem:[#allocation8 + $0x1f0] sm:$0xff]  ;;  %v321_v61 = vld [vmem:[#allocation8 + $0x1d8] sm:$0xff] }
  0xa0   :  { %690 = vmatpush1.bf16.msra.mxu0 %v11043_v7  ;;  %660 = vmatprep.subr.bf16.mxu1 %v11090_v29  ;;  %v280_v7 = vld [vmem:[#allocation8 + $0x90] sm:$0xff]  ;;  %v297_v29 = vld [vmem:[#allocation8 + $0x118] sm:$0xff] }
  0xa1   :  { %691 = vmatprep.subr.bf16.mxu0 %v11052_v10  ;;  %v285_v10 = vld [vmem:[#allocation8 + $0xb8] sm:$0xff]  ;;  %v11053_v21 = vcombine.low %v280_v7, %v284_v8  ;;  %v11072_v36 = vcombine.high %v297_v29, %v301_v30  ;;  %v11071_v43 = vcombine.low %v297_v29, %v301_v30  ;;  %v907_v29 = vld [vmem:[#allocation8 + $0x260] sm:$0xff] }
  0xa2   :  { %v11056_v16 = vcombine.high %v281_v9, %v285_v10 }
  0xa3   :  { %661 = vmatpush1.bf16.msra.mxu1 %v11089_v33 }
  0xa4   :  { %692 = vmatpush1.bf16.msra.mxu0 %v11051_v11  ;;  %728 = vmatprep.subr.bf16.mxu1 %v11038_v37  ;;  %v11045_v11 = vcombine.low %v272_v57, %v276_v59  ;;  %v304_v37 = vld [vmem:[#allocation8 + $0x150] sm:$0xff]  ;;  %v11086_v57 = vcombine.high %v312_v48, %v316_v49 }
  0xa5   :  { %693 = vmatprep.subr.bf16.mxu0 %v11060_v14  ;;  %v835_v14 = vadd.f32 %v834_v3, %v833_v54  ;;  %v11078_v46 = vcombine.high %v304_v37, %v308_v38  ;;  %v11077_v53 = vcombine.low %v304_v37, %v308_v38  ;;  %v320_v59 = vld [vmem:[#allocation8 + $0x1d0] sm:$0xff]  ;;  %v928_v38 = vld [vmem:[#allocation8 + $0x308] sm:$0xff] }
  0xa8   :  { %694 = vmatpush1.bf16.msra.mxu0 %v11059_v15  ;;  %v11054_v15 = vcombine.high %v280_v7, %v284_v8  ;;  %v896_v8 = vld [vmem:[#allocation8 + $0x208] sm:$0xff] }
  0xa9   :  { %695 = vmatprep.subr.bf16.mxu0 %v11068_v18  ;;  %v292_v18 = vld [vmem:[#allocation8 + $0xf0] sm:$0xff] }
  0xac   :  { %696 = vmatpush1.bf16.msra.mxu0 %v11067_v19  ;;  %v289_v19 = vld [vmem:[#allocation8 + $0xd8] sm:$0xff] }
  0xad   :  { %697 = vmatprep.subr.bf16.mxu0 %v11076_v22  ;;  %v11055_v22 = vcombine.low %v281_v9, %v285_v10  ;;  %v11064_v26 = vcombine.high %v289_v19, %v293_v20  ;;  %v900_v9 = vld [vmem:[#allocation8 + $0x228] sm:$0xff]  ;;  %v11093_v10 = vcombine.low %v320_v59, %v324_v60 }
  0xb0   :  { %698 = vmatpush1.bf16.msra.mxu0 %v11075_v23  ;;  %v827_v23 = vrot.slane %v826_v13, 2 }
  0xb1   :  { %699 = vmatprep.subr.bf16.mxu0 %v11084_v24  ;;  %v836_v24 = vrot.slane %v835_v14, 2 }
  0xb2   :  { %v828_v33 = vadd.f32 %v827_v23, %v826_v13 }
  0xb3   :  { %v837_v34 = vadd.f32 %v836_v24, %v835_v14  ;;  %v11101_v14 = vcombine.high %v896_v8, %v900_v9  ;;  %v912_v24 = vld [vmem:[#allocation8 + $0x288] sm:$0xff] }
  0xb4   :  { %700 = vmatpush1.bf16.msra.mxu0 %v11083_v25  ;;  %v11062_v25 = vcombine.high %v288_v17, %v292_v18  ;;  %v829_v44 = vrot.slane %v828_v33, 1 }
  0xb5   :  { %701 = vmatprep.subr.bf16.mxu0 %v11092_v32  ;;  %v11063_v32 = vcombine.low %v289_v19, %v293_v20  ;;  %v838_v45 = vrot.slane %v837_v34, 1 }
  0xb8   :  { %702 = vmatpush1.bf16.msra.mxu0 %v11091_v31  ;;  %v11061_v31 = vcombine.low %v288_v17, %v292_v18  ;;  %v904_v17 = vld [vmem:[#allocation8 + $0x248] sm:$0xff] }
  0xb9   :  { %769 = vmatprep.subr.bf16.mxu0 %v11040_v41  ;;  %v11069_v41 = vcombine.low %v296_v27, %v300_v28  ;;  %v908_v18 = vld [vmem:[#allocation8 + $0x268] sm:$0xff]  ;;  %v903_v28 = vld [vmem:[#allocation8 + $0x240] sm:$0xff] }
  0xba   :  { %v11109_v23 = vcombine.high %v904_v17, %v908_v18  ;;  %v11108_v27 = vcombine.low %v904_v17, %v908_v18 }
 0x16e   :  { %v254_v52 = vpop.f32.mrb[0].mxu0 }
 0x16f   :  { %v255_v55 = vadd.f32 %v13059_v51, %v254_v52  ;;  %v12261_v56 = vpop.f32.mrb[1].mxu0  ;;  %v317_v52 = vld [vmem:[#allocation8 + $0x1b8] sm:$0xff] }
 0x170   :  { %v257_v58 = vpop.f32.mrb[2].mxu0  ;;  %v839_v56 = vadd.f32 %v838_v45, %v837_v34  ;;  %v11087_v2 = vcombine.low %v313_v50, %v317_v52  ;;  %v11107_v34 = vcombine.high %v903_v28, %v907_v29  ;;  %v923_v45 = vld [vmem:[#allocation8 + $0x2e0] sm:$0xff] }
 0x171   :  { %v260_v62 = vmax.f32 %v255_v55, 0.0  ;;  %v12262_v63 = vpop.f32.mrb[3].mxu0  ;;  %v830_v55 = vadd.f32 %v829_v44, %v828_v33  ;;  %v11088_v58 = vcombine.high %v313_v50, %v317_v52  ;;  %v919_v44 = vld [vmem:[#allocation8 + $0x2c0] sm:$0xff] }
 0x172   :  { %v11085_v63 = vcombine.low %v312_v48, %v316_v49  ;;  %v940_v48 = vld [vmem:[#allocation8 + $0x368] sm:$0xff]  ;;  %v11123_v50 = vcombine.high %v919_v44, %v923_v45 }
 0x173   :  { %v13062_v4 = vpack.c.bf16 %v260_v62, %v260_v62  ;;  %v325_v62 = vld [vmem:[#allocation8 + $0x1f8] sm:$0xff]  ;;  %v840_v3 = vmul.f32 0.25, %v830_v55 }
 0x174   :  { %v11096_v7 = vcombine.high %v321_v61, %v325_v62 }
 0x175   :  { %679 = vmatmul.mubr.bf16.vlgmr.msra.gmra.mrb[0].mxu1 %v13062_v4  ;;  %720 = vmatmul.mubr.bf16.vlgmr.msra.gmra.mrb[4].mxu0 %v13062_v4 }
 0x176   :  { %729 = vmatpush1.bf16.msra.mxu1 %v11037_v39  ;;  %770 = vmatpush1.bf16.msra.mxu0 %v11039_v40  ;;  %v305_v39 = vld [vmem:[#allocation8 + $0x158] sm:$0xff] }
 0x177   :  { %730 = vmatprep.subr.bf16.mxu1 %v11046_v5  ;;  %771 = vmatprep.subr.bf16.mxu0 %v11048_v6  ;;  %v309_v40 = vld [vmem:[#allocation8 + $0x178] sm:$0xff]  ;;  %v841_v5 = vmul.f32 0.25, %v839_v56  ;;  %v11094_v6 = vcombine.high %v320_v59, %v324_v60  ;;  %v944_v56 = vld [vmem:[#allocation8 + $0x388] sm:$0xff] }
 0x178   :  { %760 = vmatprep.mubr.bf16.mxu1 %v12894_v42  ;;  %801 = vmatprep.mubr.bf16.mxu0 %v12894_v42  ;;  %v11080_v47 = vcombine.high %v305_v39, %v309_v40  ;;  %v11079_v54 = vcombine.low %v305_v39, %v309_v40  ;;  %v932_v39 = vld [vmem:[#allocation8 + $0x328] sm:$0xff]  ;;  %v11106_v40 = vcombine.low %v903_v28, %v907_v29  ;;  %v1452_v28 = vld [vmem:[#allocation2 + $0xc] sm:$0x3]  ;;  %v1453_v29 = vld [vmem:[#allocation2 + $0x44] sm:$0x3] }
 0x179   :  { %v843_v13 = vpack.c.bf16 %v841_v5, %v841_v5  ;;  %v11132_v52 = vcombine.low %v928_v38, %v932_v39 }
 0x17a   :  { %731 = vmatpush1.bf16.msra.mxu1 %v11045_v11  ;;  %772 = vmatpush1.bf16.msra.mxu0 %v11047_v12  ;;  %v11095_v11 = vcombine.low %v321_v61, %v325_v62  ;;  %v842_v12 = vpack.c.bf16 %v840_v3, %v840_v3  ;;  %v935_v61 = vld [vmem:[#allocation8 + $0x340] sm:$0xff] }
 0x17b   :  { %732 = vmatprep.subr.bf16.mxu1 %v11054_v15  ;;  %773 = vmatprep.subr.bf16.mxu0 %v11056_v16  ;;  %v895_v15 = vld [vmem:[#allocation8 + $0x200] sm:$0xff]  ;;  %v847_v20 = vunpack.c.l.b16 %v843_v13  ;;  %v952_v13 = vld [vmem:[#allocation8 + $0x3c8] sm:$0xff] }
 0x17c   :  { %v899_v16 = vld [vmem:[#allocation8 + $0x220] sm:$0xff]  ;;  %v846_v19 = vunpack.c.l.b16 %v842_v12 }
 0x17d   :  { %v11098_v33 = vcombine.low %v895_v15, %v899_v16  ;;  %v939_v62 = vld [vmem:[#allocation8 + $0x360] sm:$0xff] }
 0x17e   :  { %733 = vmatpush1.bf16.msra.mxu1 %v11053_v21  ;;  %774 = vmatpush1.bf16.msra.mxu0 %v11055_v22  ;;  %v11099_v21 = vcombine.high %v895_v15, %v899_v16  ;;  %v11100_v22 = vcombine.low %v896_v8, %v900_v9  ;;  %v11139_v3 = vcombine.high %v935_v61, %v939_v62  ;;  %v955_v12 = vld [vmem:[#allocation8 + $0x3e0] sm:$0xff]  ;;  %v956_v15 = vld [vmem:[#allocation8 + $0x3e8] sm:$0xff] }
 0x17f   :  { %734 = vmatprep.subr.bf16.mxu1 %v11062_v25  ;;  %775 = vmatprep.subr.bf16.mxu0 %v11064_v26  ;;  %v916_v25 = vld [vmem:[#allocation8 + $0x2a8] sm:$0xff]  ;;  %v848_v26 = vsel %vm207_vm2, %v847_v20, %v846_v19  ;;  %v11138_v8 = vcombine.low %v935_v61, %v939_v62  ;;  %v11156_v17 = vcombine.low %v952_v13, %v956_v15  ;;  %v897_v19 = vld [vmem:[#allocation8 + $0x210] sm:$0xff] }
 0x180   :  { %v11117_v30 = vcombine.high %v912_v24, %v916_v25  ;;  %v11157_v18 = vcombine.high %v952_v13, %v956_v15  ;;  %v901_v20 = vld [vmem:[#allocation8 + $0x230] sm:$0xff]  ;;  %v930_v13 = vld [vmem:[#allocation8 + $0x318] sm:$0xff] }
 0x181   :  { %v921_v62 = vld [vmem:[#allocation8 + $0x2d0] sm:$0xff] }
 0x182   :  { %735 = vmatpush1.bf16.msra.mxu1 %v11061_v31  ;;  %776 = vmatpush1.bf16.msra.mxu0 %v11063_v32  ;;  %v849_v31 = vpack.c.b16 %v848_v26, %v848_v26  ;;  %v924_v32 = vld [vmem:[#allocation8 + $0x2e8] sm:$0xff] }
 0x183   :  { %736 = vmatprep.subr.bf16.mxu1 %v11070_v35  ;;  %777 = vmatprep.subr.bf16.mxu0 %v11072_v36  ;;  %v911_v35 = vld [vmem:[#allocation8 + $0x280] sm:$0xff] }
 0x184   :  { %v915_v36 = vld [vmem:[#allocation8 + $0x2a0] sm:$0xff] }
 0x185   :  { %v11114_v49 = vcombine.low %v911_v35, %v915_v36 }
 0x186   :  { %737 = vmatpush1.bf16.msra.mxu1 %v11069_v41  ;;  %778 = vmatpush1.bf16.msra.mxu0 %v11071_v43  ;;  %v11115_v41 = vcombine.high %v911_v35, %v915_v36 }
 0x187   :  { %738 = vmatprep.subr.bf16.mxu1 %v11078_v46  ;;  %779 = vmatprep.subr.bf16.mxu0 %v11080_v47  ;;  %v11133_v46 = vcombine.high %v928_v38, %v932_v39  ;;  %v936_v47 = vld [vmem:[#allocation8 + $0x348] sm:$0xff]  ;;  %v905_v38 = vld [vmem:[#allocation8 + $0x250] sm:$0xff] }
 0x188   :  { %v11141_v55 = vcombine.high %v936_v47, %v940_v48  ;;  %v11140_v60 = vcombine.low %v936_v47, %v940_v48 }
 0x18a   :  { %739 = vmatpush1.bf16.msra.mxu1 %v11077_v53  ;;  %780 = vmatpush1.bf16.msra.mxu0 %v11079_v54  ;;  %v927_v53 = vld [vmem:[#allocation8 + $0x300] sm:$0xff] }
 0x18b   :  { %740 = vmatprep.subr.bf16.mxu1 %v11086_v57  ;;  %781 = vmatprep.subr.bf16.mxu0 %v11088_v58  ;;  %v931_v54 = vld [vmem:[#allocation8 + $0x320] sm:$0xff]  ;;  %v948_v57 = vld [vmem:[#allocation8 + $0x3a8] sm:$0xff]  ;;  %v11122_v58 = vcombine.low %v919_v44, %v923_v45 }
 0x18c   :  { %v11131_v59 = vcombine.high %v927_v53, %v931_v54  ;;  %v11148_v5 = vcombine.low %v944_v56, %v948_v57 }
 0x18e   :  { %741 = vmatpush1.bf16.msra.mxu1 %v11085_v63  ;;  %782 = vmatpush1.bf16.msra.mxu0 %v11087_v2  ;;  %v11149_v63 = vcombine.high %v944_v56, %v948_v57  ;;  %v11130_v2 = vcombine.low %v927_v53, %v931_v54  ;;  %v917_v53 = vld [vmem:[#allocation8 + $0x2b0] sm:$0xff]  ;;  %v914_v54 = vld [vmem:[#allocation8 + $0x298] sm:$0xff] }
 0x18f   :  { %742 = vmatprep.subr.bf16.mxu1 %v11094_v6  ;;  %783 = vmatprep.subr.bf16.mxu0 %v11096_v7  ;;  %v943_v6 = vld [vmem:[#allocation8 + $0x380] sm:$0xff] }
 0x190   :  { %v947_v7 = vld [vmem:[#allocation8 + $0x3a0] sm:$0xff] }
 0x191   :  { %v11147_v9 = vcombine.high %v943_v6, %v947_v7 }
 0x192   :  { %743 = vmatpush1.bf16.msra.mxu1 %v11093_v10  ;;  %784 = vmatpush1.bf16.msra.mxu0 %v11095_v11  ;;  %v11146_v10 = vcombine.low %v943_v6, %v947_v7  ;;  %v951_v11 = vld [vmem:[#allocation8 + $0x3c0] sm:$0xff] }
 0x193   :  { %12263 = vmatprep.subr.bf16.mxu1 %v12892_v0  ;;  %1320 = vmatprep.subr.bf16.mxu0 %v11101_v14  ;;  %v11155_v14 = vcombine.high %v951_v11, %v955_v12  ;;  %v11154_v16 = vcombine.low %v951_v11, %v955_v12  ;;  %v929_v11 = vld [vmem:[#allocation8 + $0x310] sm:$0xff] }
 0x194   :  { %v933_v12 = vld [vmem:[#allocation8 + $0x330] sm:$0xff] }
 0x195   :  { %761 = vmatmul.mubr.bf16.vlgmr.msra.gmra.mrb[4].mxu1 %v13062_v4  ;;  %802 = vmatmul.mubr.bf16.vlgmr.msra.gmra.mrb[8].mxu0 %v13062_v4  ;;  %v920_v4 = vld [vmem:[#allocation8 + $0x2c8] sm:$0xff] }
 0x196   :  { %12264 = vmatpush3.bf16.msra.mxu1 %v13036_v1  ;;  %12265 = vmatprep.mubr.msk.bf16.mxu1 %vm12893_vm0, %v12892_v0  ;;  %v11116_v1 = vcombine.low %v912_v24, %v916_v25  ;;  %v11125_v37 = vcombine.high %v920_v4, %v924_v32  ;;  %v11124_v43 = vcombine.low %v920_v4, %v924_v32  ;;  %v1456_v4 = vsel %vm174_vm1, %v1452_v28, 0.0 }
 0x197   :  { %1279 = vmatprep.subr.bf16.mxu1 %v11099_v21  ;;  %1321 = vmatpush1.bf16.msra.mxu0 %v11100_v22  ;;  %v898_v21 = vld [vmem:[#allocation8 + $0x218] sm:$0xff]  ;;  %v11103_v22 = vcombine.high %v897_v19, %v901_v20  ;;  %v11102_v24 = vcombine.low %v897_v19, %v901_v20  ;;  %v1464_v32 = vsel %vm174_vm1, %v1453_v29, 0.0  ;;  %v11135_v19 = vcombine.high %v929_v11, %v933_v12 }
 0x198   :  { %1322 = vmatprep.subr.bf16.mxu0 %v11109_v23  ;;  %1352 = vmatprep.mubr.bf16.mxu0 %v12894_v42  ;;  %v902_v23 = vld [vmem:[#allocation8 + $0x238] sm:$0xff] }
 0x199   :  { %v11104_v25 = vcombine.low %v898_v21, %v902_v23  ;;  %v11105_v26 = vcombine.high %v898_v21, %v902_v23  ;;  %v937_v21 = vld [vmem:[#allocation8 + $0x350] sm:$0xff]  ;;  %v938_v23 = vld [vmem:[#allocation8 + $0x358] sm:$0xff] }
 0x19b   :  { %1323 = vmatpush1.bf16.msra.mxu0 %v11108_v27  ;;  %v1451_v27 = vld [vmem:[#allocation2 + $0x4] sm:$0x3] }
 0x19c   :  { %1324 = vmatprep.subr.bf16.mxu0 %v11117_v30  ;;  %v1454_v30 = vld [vmem:[#allocation2 + $0x4c] sm:$0x3] }
 0x19d   :  { %12266 = vmatmul.mubr.msk.bf16.vlgmr.msra.gmra.mrb[8].mxu1 %vm216_vm3, %v849_v31  ;;  %v1455_v31 = vsel %vm174_vm1, %v1451_v27, 0.0 }
 0x19e   :  { %1280 = vmatpush1.bf16.msra.mxu1 %v11098_v33  ;;  %1311 = vmatprep.mubr.bf16.mxu1 %v12894_v42  ;;  %v1465_v33 = vsel %vm174_vm1, %v1454_v30, 0.0 }
 0x19f   :  { %1281 = vmatprep.subr.bf16.mxu1 %v11107_v34  ;;  %1325 = vmatpush1.bf16.msra.mxu0 %v11116_v1  ;;  %v1457_v1 = vadd.f32 %v1456_v4, %v1455_v31  ;;  %v1466_v35 = vadd.f32 %v1465_v33, %v1464_v32  ;;  %v945_v31 = vld [vmem:[#allocation8 + $0x390] sm:$0xff]  ;;  %v946_v32 = vld [vmem:[#allocation8 + $0x398] sm:$0xff] }
 0x1a0   :  { %1326 = vmatprep.subr.bf16.mxu0 %v11125_v37  ;;  %v949_v4 = vld [vmem:[#allocation8 + $0x3b0] sm:$0xff]  ;;  %v950_v33 = vld [vmem:[#allocation8 + $0x3b8] sm:$0xff] }
 0x1a1   :  { %v1467_v47 = vrot.slane %v1466_v35, 4 }
 0x1a2   :  { %1282 = vmatpush1.bf16.msra.mxu1 %v11106_v40  ;;  %v909_v40 = vld [vmem:[#allocation8 + $0x270] sm:$0xff] }
 0x1a3   :  { %1283 = vmatprep.subr.bf16.mxu1 %v11115_v41  ;;  %1327 = vmatpush1.bf16.msra.mxu0 %v11124_v43  ;;  %v906_v41 = vld [vmem:[#allocation8 + $0x258] sm:$0xff]  ;;  %v11110_v56 = vcombine.low %v905_v38, %v909_v40 }
 0x1a4   :  { %1328 = vmatprep.subr.bf16.mxu0 %v11133_v46  ;;  %v910_v43 = vld [vmem:[#allocation8 + $0x278] sm:$0xff]  ;;  %v1458_v46 = vrot.slane %v1457_v1, 4 }
 0x1a5   :  { %v11112_v57 = vcombine.low %v906_v41, %v910_v43 }
 0x1a6   :  { %1284 = vmatpush1.bf16.msra.mxu1 %v11114_v49  ;;  %v11111_v49 = vcombine.high %v905_v38, %v909_v40  ;;  %v11153_v38 = vcombine.high %v946_v32, %v950_v33  ;;  %v957_v40 = vld [vmem:[#allocation8 + $0x3f0] sm:$0xff] }
 0x1a7   :  { %1285 = vmatprep.subr.bf16.mxu1 %v11123_v50  ;;  %1329 = vmatpush1.bf16.msra.mxu0 %v11132_v52  ;;  %v11113_v50 = vcombine.high %v906_v41, %v910_v43  ;;  %v913_v52 = vld [vmem:[#allocation8 + $0x290] sm:$0xff]  ;;  %v954_v41 = vld [vmem:[#allocation8 + $0x3d8] sm:$0xff] }
 0x1a8   :  { %1330 = vmatprep.subr.bf16.mxu0 %v11141_v55  ;;  %v918_v55 = vld [vmem:[#allocation8 + $0x2b8] sm:$0xff] }
 0x1a9   :  { %v11121_v61 = vcombine.high %v914_v54, %v918_v55  ;;  %v11120_v6 = vcombine.low %v914_v54, %v918_v55  ;;  %v958_v43 = vld [vmem:[#allocation8 + $0x3f8] sm:$0xff] }
 0x1aa   :  { %1286 = vmatpush1.bf16.msra.mxu1 %v11122_v58  ;;  %v1459_v58 = vadd.f32 %v1458_v46, %v1457_v1  ;;  %v11160_v55 = vcombine.low %v954_v41, %v958_v43 }
 0x1ab   :  { %1287 = vmatprep.subr.bf16.mxu1 %v11131_v59  ;;  %1331 = vmatpush1.bf16.msra.mxu0 %v11140_v60  ;;  %v1468_v59 = vadd.f32 %v1467_v47, %v1466_v35  ;;  %v11119_v60 = vcombine.high %v913_v52, %v917_v53 }
 0x1ac   :  { %1332 = vmatprep.subr.bf16.mxu0 %v11149_v63  ;;  %v925_v63 = vld [vmem:[#allocation8 + $0x2f0] sm:$0xff]  ;;  %v1460_v7 = vrot.slane %v1459_v58, 2 }
 0x1ad   :  { %v11126_v15 = vcombine.low %v921_v62, %v925_v63 }
 0x1ae   :  { %1288 = vmatpush1.bf16.msra.mxu1 %v11130_v2  ;;  %v922_v2 = vld [vmem:[#allocation8 + $0x2d8] sm:$0xff] }
 0x1af   :  { %1289 = vmatprep.subr.bf16.mxu1 %v11139_v3  ;;  %1333 = vmatpush1.bf16.msra.mxu0 %v11148_v5  ;;  %v926_v3 = vld [vmem:[#allocation8 + $0x2f8] sm:$0xff]  ;;  %v11118_v5 = vcombine.low %v913_v52, %v917_v53  ;;  %v1528_v52 = vld [vmem:[#allocation8 + $0x400] sm:$0xff] }
 0x1b0   :  { %1334 = vmatprep.subr.bf16.mxu0 %v11157_v18  ;;  %v1532_v53 = vld [vmem:[#allocation8 + $0x420] sm:$0xff] }
 0x1b2   :  { %1290 = vmatpush1.bf16.msra.mxu1 %v11138_v8  ;;  %v1469_v8 = vrot.slane %v1468_v59, 2 }
 0x1b3   :  { %1291 = vmatprep.subr.bf16.mxu1 %v11147_v9  ;;  %1335 = vmatpush1.bf16.msra.mxu0 %v11156_v17  ;;  %v11127_v9 = vcombine.high %v921_v62, %v925_v63  ;;  %v1461_v17 = vadd.f32 %v1460_v7, %v1459_v58  ;;  %v11164_v58 = vcombine.high %v1528_v52, %v1532_v53  ;;  %v1540_v62 = vld [vmem:[#allocation8 + $0x460] sm:$0xff] }
 0x1b4   :  { %1402 = vmatprep.subr.bf16.mxu0 %v11105_v26  ;;  %v1470_v18 = vadd.f32 %v1469_v8, %v1468_v59  ;;  %v1529_v59 = vld [vmem:[#allocation8 + $0x408] sm:$0xff]  ;;  %v1544_v7 = vld [vmem:[#allocation8 + $0x480] sm:$0xff] }
 0x1b5   :  { %v1462_v27 = vrot.slane %v1461_v17, 1  ;;  %v1548_v8 = vld [vmem:[#allocation8 + $0x4a0] sm:$0xff] }
 0x1b6   :  { %1292 = vmatpush1.bf16.msra.mxu1 %v11146_v10  ;;  %v11129_v10 = vcombine.high %v922_v2, %v926_v3  ;;  %v1471_v28 = vrot.slane %v1470_v18, 1 }
 0x1b7   :  { %1293 = vmatprep.subr.bf16.mxu1 %v11155_v14  ;;  %v934_v14 = vld [vmem:[#allocation8 + $0x338] sm:$0xff]  ;;  %v1463_v35 = vadd.f32 %v1462_v27, %v1461_v17 }
 0x1b8   :  { %v11137_v20 = vcombine.high %v930_v13, %v934_v14  ;;  %v11136_v26 = vcombine.low %v930_v13, %v934_v14  ;;  %v1541_v13 = vld [vmem:[#allocation8 + $0x468] sm:$0xff]  ;;  %v11180_v14 = vcombine.high %v1544_v7, %v1548_v8 }
 0x1b9   :  { %v1473_v46 = vmul.f32 0.25, %v1463_v35  ;;  %v1565_v35 = vld [vmem:[#allocation8 + $0x528] sm:$0xff] }
 0x1ba   :  { %1294 = vmatpush1.bf16.msra.mxu1 %v11154_v16  ;;  %v11128_v16 = vcombine.low %v922_v2, %v926_v3  ;;  %v11163_v3 = vcombine.low %v1528_v52, %v1532_v53  ;;  %v1581_v52 = vld [vmem:[#allocation8 + $0x5a8] sm:$0xff] }
 0x1bb   :  { %1361 = vmatprep.subr.bf16.mxu1 %v11103_v22  ;;  %v941_v22 = vld [vmem:[#allocation8 + $0x370] sm:$0xff] }
 0x1bc   :  { %v11143_v29 = vcombine.high %v937_v21, %v941_v22 }
 0x270   :  { %v887_v34 = vpop.f32.mrb[8].mxu1 }
 0x271   :  { %v888_v36 = vadd.f32 %v13059_v51, %v887_v34  ;;  %v12267_v37 = vpop.f32.mrb[9].mxu1  ;;  %v11142_v34 = vcombine.low %v937_v21, %v941_v22  ;;  %v1549_v21 = vld [vmem:[#allocation8 + $0x4a8] sm:$0xff] }
 0x272   :  { %v890_v39 = vpop.f32.mrb[10].mxu1  ;;  %v11151_v37 = vcombine.high %v945_v31, %v949_v4 }
 0x273   :  { %v893_v44 = vmax.f32 %v888_v36, 0.0  ;;  %v12268_v45 = vpop.f32.mrb[11].mxu1  ;;  %v1472_v36 = vadd.f32 %v1471_v28, %v1470_v18  ;;  %v953_v39 = vld [vmem:[#allocation8 + $0x3d0] sm:$0xff]  ;;  %v1553_v28 = vld [vmem:[#allocation8 + $0x4c8] sm:$0xff] }
 0x274   :  { %v11152_v45 = vcombine.low %v946_v32, %v950_v33  ;;  %v11158_v54 = vcombine.low %v953_v39, %v957_v40 }
 0x275   :  { %v13083_v48 = vpack.c.bf16 %v893_v44, %v893_v44  ;;  %v11150_v44 = vcombine.low %v945_v31, %v949_v4  ;;  %v1474_v47 = vmul.f32 0.25, %v1472_v36  ;;  %v1568_v31 = vld [vmem:[#allocation8 + $0x540] sm:$0xff] }
 0x276   :  { %v1572_v4 = vld [vmem:[#allocation8 + $0x560] sm:$0xff] }
 0x277   :  { %1312 = vmatmul.mubr.bf16.vlgmr.msra.gmra.mrb[0].mxu1 %v13083_v48  ;;  %1353 = vmatmul.mubr.bf16.vlgmr.msra.gmra.mrb[4].mxu0 %v13083_v48  ;;  %v11204_v36 = vcombine.high %v1568_v31, %v1572_v4 }
 0x278   :  { %1362 = vmatpush1.bf16.msra.mxu1 %v11102_v24  ;;  %1403 = vmatpush1.bf16.msra.mxu0 %v11104_v25  ;;  %v942_v24 = vld [vmem:[#allocation8 + $0x378] sm:$0xff]  ;;  %v11134_v25 = vcombine.low %v929_v11, %v933_v12  ;;  %v1537_v12 = vld [vmem:[#allocation8 + $0x448] sm:$0xff] }
 0x279   :  { %1363 = vmatprep.subr.bf16.mxu1 %v11111_v49  ;;  %1404 = vmatprep.subr.bf16.mxu0 %v11113_v50  ;;  %v11145_v30 = vcombine.high %v938_v23, %v942_v24  ;;  %v11144_v1 = vcombine.low %v938_v23, %v942_v24  ;;  %v11159_v49 = vcombine.high %v953_v39, %v957_v40  ;;  %v1560_v23 = vld [vmem:[#allocation8 + $0x500] sm:$0xff] }
 0x27a   :  { %1393 = vmatprep.mubr.bf16.mxu1 %v12894_v42  ;;  %1434 = vmatprep.mubr.bf16.mxu0 %v12894_v42  ;;  %v11161_v50 = vcombine.high %v954_v41, %v958_v43  ;;  %v11174_v18 = vcombine.high %v1537_v12, %v1541_v13  ;;  %v1564_v24 = vld [vmem:[#allocation8 + $0x520] sm:$0xff]  ;;  %v11203_v41 = vcombine.low %v1568_v31, %v1572_v4  ;;  %v1569_v43 = vld [vmem:[#allocation8 + $0x548] sm:$0xff] }
 0x27c   :  { %1364 = vmatpush1.bf16.msra.mxu1 %v11110_v56  ;;  %1405 = vmatpush1.bf16.msra.mxu0 %v11112_v57  ;;  %v1475_v56 = vpack.c.bf16 %v1473_v46, %v1473_v46  ;;  %v1476_v57 = vpack.c.bf16 %v1474_v47, %v1474_v47 }
 0x27d   :  { %1365 = vmatprep.subr.bf16.mxu1 %v11119_v60  ;;  %1406 = vmatprep.subr.bf16.mxu0 %v11121_v61  ;;  %v1533_v60 = vld [vmem:[#allocation8 + $0x428] sm:$0xff]  ;;  %v1536_v61 = vld [vmem:[#allocation8 + $0x440] sm:$0xff] }
 0x27e   :  { %v1479_v63 = vunpack.c.l.b16 %v1475_v56  ;;  %v1480_v2 = vunpack.c.l.b16 %v1476_v57  ;;  %v11171_v11 = vcombine.low %v1536_v61, %v1540_v62  ;;  %v11165_v17 = vcombine.low %v1529_v59, %v1533_v60  ;;  %v1584_v56 = vld [vmem:[#allocation8 + $0x5c0] sm:$0xff] }
 0x27f   :  { %v1588_v57 = vld [vmem:[#allocation8 + $0x5e0] sm:$0xff] }
 0x280   :  { %1366 = vmatpush1.bf16.msra.mxu1 %v11118_v5  ;;  %1407 = vmatpush1.bf16.msra.mxu0 %v11120_v6  ;;  %v11166_v5 = vcombine.high %v1529_v59, %v1533_v60  ;;  %v11172_v6 = vcombine.high %v1536_v61, %v1540_v62  ;;  %v11220_v59 = vcombine.high %v1584_v56, %v1588_v57  ;;  %v1589_v60 = vld [vmem:[#allocation8 + $0x5e8] sm:$0xff] }
 0x281   :  { %1367 = vmatprep.subr.bf16.mxu1 %v11127_v9  ;;  %1408 = vmatprep.subr.bf16.mxu0 %v11129_v10  ;;  %v13092_v9 = vld [vmem:[#allocation5] sm:$0xff]   ;;  %v1481_v10 = vsel %vm207_vm2, %v1480_v2, %v1479_v63  ;;  %v11219_v61 = vcombine.low %v1584_v56, %v1588_v57 }
 0x282   :  { %v1530_v2 = vld [vmem:[#allocation8 + $0x410] sm:$0xff] }
 0x283   :  { %v1562_v56 = vld [vmem:[#allocation8 + $0x510] sm:$0xff] }
 0x284   :  { %1368 = vmatpush1.bf16.msra.mxu1 %v11126_v15  ;;  %1409 = vmatpush1.bf16.msra.mxu0 %v11128_v16  ;;  %v1552_v15 = vld [vmem:[#allocation8 + $0x4c0] sm:$0xff]  ;;  %v1566_v57 = vld [vmem:[#allocation8 + $0x530] sm:$0xff] }
 0x285   :  { %1369 = vmatprep.subr.bf16.mxu1 %v11135_v19  ;;  %1410 = vmatprep.subr.bf16.mxu0 %v11137_v20  ;;  %v1556_v16 = vld [vmem:[#allocation8 + $0x4e0] sm:$0xff]  ;;  %v11179_v19 = vcombine.low %v1544_v7, %v1548_v8  ;;  %v1545_v20 = vld [vmem:[#allocation8 + $0x488] sm:$0xff]  ;;  %v1535_v7 = vld [vmem:[#allocation8 + $0x438] sm:$0xff] }
 0x286   :  { %v11188_v22 = vcombine.high %v1552_v15, %v1556_v16  ;;  %v11187_v27 = vcombine.low %v1552_v15, %v1556_v16  ;;  %v11181_v32 = vcombine.low %v1545_v20, %v1549_v21 }
 0x288   :  { %1370 = vmatpush1.bf16.msra.mxu1 %v11134_v25  ;;  %1411 = vmatpush1.bf16.msra.mxu0 %v11136_v26  ;;  %v11173_v25 = vcombine.low %v1537_v12, %v1541_v13  ;;  %v11182_v26 = vcombine.high %v1545_v20, %v1549_v21  ;;  %v2084_v12 = vld [vmem:[#allocation2 + $0x6] sm:$0x3]  ;;  %v2085_v13 = vld [vmem:[#allocation2 + $0xe] sm:$0x3] }
 0x289   :  { %1371 = vmatprep.subr.bf16.mxu1 %v11143_v29  ;;  %1412 = vmatprep.subr.bf16.mxu0 %v11145_v30  ;;  %v1557_v29 = vld [vmem:[#allocation8 + $0x4e8] sm:$0xff]  ;;  %v11196_v30 = vcombine.high %v1560_v23, %v1564_v24  ;;  %v2088_v15 = vsel %vm174_vm1, %v2084_v12, 0.0  ;;  %v2089_v16 = vsel %vm174_vm1, %v2085_v13, 0.0 }
 0x28a   :  { %v11190_v33 = vcombine.high %v1553_v28, %v1557_v29  ;;  %v11189_v39 = vcombine.low %v1553_v28, %v1557_v29  ;;  %v2090_v20 = vadd.f32 %v2089_v16, %v2088_v15  ;;  %v1543_v28 = vld [vmem:[#allocation8 + $0x478] sm:$0xff]  ;;  %v1578_v15 = vld [vmem:[#allocation8 + $0x590] sm:$0xff] }
 0x28b   :  { %v1582_v16 = vld [vmem:[#allocation8 + $0x5b0] sm:$0xff] }
 0x28c   :  { %1372 = vmatpush1.bf16.msra.mxu1 %v11142_v34  ;;  %1413 = vmatpush1.bf16.msra.mxu0 %v11144_v1  ;;  %v11195_v34 = vcombine.low %v1560_v23, %v1564_v24  ;;  %v1561_v1 = vld [vmem:[#allocation8 + $0x508] sm:$0xff]  ;;  %v1538_v24 = vld [vmem:[#allocation8 + $0x450] sm:$0xff]  ;;  %v2091_v31 = vrot.slane %v2090_v20, 4 }
 0x28d   :  { %1373 = vmatprep.subr.bf16.mxu1 %v11151_v37  ;;  %1414 = vmatprep.subr.bf16.mxu0 %v11153_v38  ;;  %v1576_v37 = vld [vmem:[#allocation8 + $0x580] sm:$0xff]  ;;  %v11198_v40 = vcombine.high %v1561_v1, %v1565_v35  ;;  %v11197_v46 = vcombine.low %v1561_v1, %v1565_v35  ;;  %v1546_v1 = vld [vmem:[#allocation8 + $0x490] sm:$0xff] }
 0x28e   :  { %v1580_v38 = vld [vmem:[#allocation8 + $0x5a0] sm:$0xff]  ;;  %v1550_v35 = vld [vmem:[#allocation8 + $0x4b0] sm:$0xff] }
 0x290   :  { %1374 = vmatpush1.bf16.msra.mxu1 %v11150_v44  ;;  %1415 = vmatpush1.bf16.msra.mxu0 %v11152_v45  ;;  %v1573_v44 = vld [vmem:[#allocation8 + $0x568] sm:$0xff]  ;;  %v11212_v45 = vcombine.high %v1576_v37, %v1580_v38 }
 0x291   :  { %1375 = vmatprep.subr.bf16.mxu1 %v11159_v49  ;;  %1416 = vmatprep.subr.bf16.mxu0 %v11161_v50  ;;  %v11206_v47 = vcombine.high %v1569_v43, %v1573_v44  ;;  %v11211_v49 = vcombine.low %v1576_v37, %v1580_v38  ;;  %v1577_v50 = vld [vmem:[#allocation8 + $0x588] sm:$0xff]  ;;  %v11205_v53 = vcombine.low %v1569_v43, %v1573_v44  ;;  %v1551_v37 = vld [vmem:[#allocation8 + $0x4b8] sm:$0xff]  ;;  %v1554_v44 = vld [vmem:[#allocation8 + $0x4d0] sm:$0xff] }
 0x294   :  { %1376 = vmatpush1.bf16.msra.mxu1 %v11158_v54  ;;  %1417 = vmatpush1.bf16.msra.mxu0 %v11160_v55  ;;  %v11214_v54 = vcombine.high %v1577_v50, %v1581_v52  ;;  %v11213_v55 = vcombine.low %v1577_v50, %v1581_v52 }
 0x295   :  { %12269 = vmatprep.subr.bf16.mxu0 %v12892_v0  ;;  %1912 = vmatprep.subr.bf16.mxu1 %v11164_v58  ;;  %v1585_v58 = vld [vmem:[#allocation8 + $0x5c8] sm:$0xff] }
 0x296   :  { %v11221_v62 = vcombine.low %v1585_v58, %v1589_v60  ;;  %v11222_v63 = vcombine.high %v1585_v58, %v1589_v60  ;;  %v1563_v58 = vld [vmem:[#allocation8 + $0x518] sm:$0xff] }
 0x297   :  { %1394 = vmatmul.mubr.bf16.vlgmr.msra.gmra.mrb[4].mxu1 %v13083_v48  ;;  %1435 = vmatmul.mubr.bf16.vlgmr.msra.gmra.mrb[8].mxu0 %v13083_v48  ;;  %v1482_v48 = vpack.c.b16 %v1481_v10, %v1481_v10 }
 0x298   :  { %12270 = vmatpush3.bf16.msra.mxu0 %v13092_v9  ;;  %12271 = vmatprep.mubr.msk.bf16.mxu0 %vm12893_vm0, %v12892_v0 }
 0x299   :  { %1953 = vmatprep.subr.bf16.mxu0 %v11166_v5  ;;  %1913 = vmatpush1.bf16.msra.mxu1 %v11163_v3  ;;  %v1534_v3 = vld [vmem:[#allocation8 + $0x430] sm:$0xff]  ;;  %v1531_v5 = vld [vmem:[#allocation8 + $0x418] sm:$0xff] }
 0x29a   :  { %1914 = vmatprep.subr.bf16.mxu1 %v11172_v6  ;;  %1944 = vmatprep.mubr.bf16.mxu1 %v12894_v42  ;;  %v11168_v6 = vcombine.high %v1530_v2, %v1534_v3  ;;  %v11167_v8 = vcombine.low %v1530_v2, %v1534_v3  ;;  %v11169_v10 = vcombine.low %v1531_v5, %v1535_v7 }
 0x29b   :  { %v11200_v2 = vcombine.high %v1562_v56, %v1566_v57 }
 0x29d   :  { %1915 = vmatpush1.bf16.msra.mxu1 %v11171_v11  ;;  %v11170_v11 = vcombine.high %v1531_v5, %v1535_v7  ;;  %v1570_v5 = vld [vmem:[#allocation8 + $0x550] sm:$0xff]  ;;  %v1571_v7 = vld [vmem:[#allocation8 + $0x558] sm:$0xff] }
 0x29e   :  { %1916 = vmatprep.subr.bf16.mxu1 %v11180_v14  ;;  %v2086_v14 = vld [vmem:[#allocation2 + $0x46] sm:$0x3] }
 0x29f   :  { %12272 = vmatmul.mubr.msk.bf16.vlgmr.msra.gmra.mrb[12].mxu0 %vm216_vm3, %v1482_v48  ;;  %v2087_v48 = vld [vmem:[#allocation2 + $0x4e] sm:$0x3] }
 0x2a0   :  { %1954 = vmatpush1.bf16.msra.mxu0 %v11165_v17  ;;  %1985 = vmatprep.mubr.bf16.mxu0 %v12894_v42  ;;  %v2097_v17 = vsel %vm174_vm1, %v2086_v14, 0.0 }
 0x2a1   :  { %1955 = vmatprep.subr.bf16.mxu0 %v11174_v18  ;;  %1917 = vmatpush1.bf16.msra.mxu1 %v11179_v19  ;;  %v2098_v18 = vsel %vm174_vm1, %v2087_v48, 0.0 }
 0x2a2   :  { %1918 = vmatprep.subr.bf16.mxu1 %v11188_v22  ;;  %v2099_v21 = vadd.f32 %v2098_v18, %v2097_v17  ;;  %v1579_v17 = vld [vmem:[#allocation8 + $0x598] sm:$0xff] }
 0x2a3   :  { %v1583_v18 = vld [vmem:[#allocation8 + $0x5b8] sm:$0xff] }
 0x2a4   :  { %1956 = vmatpush1.bf16.msra.mxu0 %v11173_v25  ;;  %v2100_v4 = vrot.slane %v2099_v21, 4 }
 0x2a5   :  { %1957 = vmatprep.subr.bf16.mxu0 %v11182_v26  ;;  %1919 = vmatpush1.bf16.msra.mxu1 %v11187_v27  ;;  %v1542_v26 = vld [vmem:[#allocation8 + $0x470] sm:$0xff]  ;;  %v1539_v27 = vld [vmem:[#allocation8 + $0x458] sm:$0xff] }
 0x2a6   :  { %1920 = vmatprep.subr.bf16.mxu1 %v11196_v30  ;;  %v11177_v38 = vcombine.low %v1539_v27, %v1543_v28 }
 0x2a8   :  { %1958 = vmatpush1.bf16.msra.mxu0 %v11181_v32 }
 0x2a9   :  { %1959 = vmatprep.subr.bf16.mxu0 %v11190_v33  ;;  %1921 = vmatpush1.bf16.msra.mxu1 %v11195_v34  ;;  %v11176_v33 = vcombine.high %v1538_v24, %v1542_v26  ;;  %v11178_v34 = vcombine.high %v1539_v27, %v1543_v28  ;;  %v1587_v27 = vld [vmem:[#allocation8 + $0x5d8] sm:$0xff] }
 0x2aa   :  { %1922 = vmatprep.subr.bf16.mxu1 %v11204_v36  ;;  %v1547_v36 = vld [vmem:[#allocation8 + $0x498] sm:$0xff] }
 0x2ab   :  { %v11186_v43 = vcombine.high %v1547_v36, %v1551_v37  ;;  %v11185_v50 = vcombine.low %v1547_v36, %v1551_v37  ;;  %v1591_v28 = vld [vmem:[#allocation8 + $0x5f8] sm:$0xff] }
 0x2ac   :  { %1960 = vmatpush1.bf16.msra.mxu0 %v11189_v39  ;;  %v2092_v39 = vadd.f32 %v2091_v31, %v2090_v20  ;;  %v11225_v37 = vcombine.low %v1587_v27, %v1591_v28 }
 0x2ad   :  { %1961 = vmatprep.subr.bf16.mxu0 %v11198_v40  ;;  %1923 = vmatpush1.bf16.msra.mxu1 %v11203_v41  ;;  %v2101_v40 = vadd.f32 %v2100_v4, %v2099_v21  ;;  %v11184_v41 = vcombine.high %v1546_v1, %v1550_v35 }
 0x2ae   :  { %1924 = vmatprep.subr.bf16.mxu1 %v11212_v45  ;;  %v1558_v45 = vld [vmem:[#allocation8 + $0x4f0] sm:$0xff]  ;;  %v2093_v52 = vrot.slane %v2092_v39, 2 }
 0x2af   :  { %v11191_v60 = vcombine.low %v1554_v44, %v1558_v45 }
 0x2b0   :  { %1962 = vmatpush1.bf16.msra.mxu0 %v11197_v46  ;;  %v1555_v46 = vld [vmem:[#allocation8 + $0x4d8] sm:$0xff] }
 0x2b1   :  { %1963 = vmatprep.subr.bf16.mxu0 %v11206_v47  ;;  %1925 = vmatpush1.bf16.msra.mxu1 %v11211_v49  ;;  %v1559_v47 = vld [vmem:[#allocation8 + $0x4f8] sm:$0xff]  ;;  %v11183_v49 = vcombine.low %v1546_v1, %v1550_v35  ;;  %v2162_v1 = vld [vmem:[#allocation8 + $0x608] sm:$0xff] }
 0x2b2   :  { %1926 = vmatprep.subr.bf16.mxu1 %v11220_v59  ;;  %v1567_v59 = vld [vmem:[#allocation8 + $0x538] sm:$0xff]  ;;  %v2166_v35 = vld [vmem:[#allocation8 + $0x628] sm:$0xff] }
 0x2b3   :  { %v11202_v3 = vcombine.high %v1563_v58, %v1567_v59 }
 0x2b4   :  { %1964 = vmatpush1.bf16.msra.mxu0 %v11205_v53  ;;  %v2102_v53 = vrot.slane %v2101_v40, 2 }
 0x2b5   :  { %1965 = vmatprep.subr.bf16.mxu0 %v11214_v54  ;;  %1927 = vmatpush1.bf16.msra.mxu1 %v11219_v61  ;;  %v11192_v54 = vcombine.high %v1554_v44, %v1558_v45  ;;  %v11193_v61 = vcombine.low %v1555_v46, %v1559_v47  ;;  %v2174_v44 = vld [vmem:[#allocation8 + $0x668] sm:$0xff] }
 0x2b6   :  { %1994 = vmatprep.subr.bf16.mxu1 %v11168_v6  ;;  %v1574_v6 = vld [vmem:[#allocation8 + $0x570] sm:$0xff] }
 0x2b7   :  { %v11208_v14 = vcombine.high %v1570_v5, %v1574_v6 }
 0x2b8   :  { %1966 = vmatpush1.bf16.msra.mxu0 %v11213_v55  ;;  %v11194_v55 = vcombine.high %v1555_v46, %v1559_v47 }
 0x2b9   :  { %1967 = vmatprep.subr.bf16.mxu0 %v11222_v63  ;;  %v2103_v63 = vadd.f32 %v2102_v53, %v2101_v40  ;;  %v2161_v40 = vld [vmem:[#allocation8 + $0x600] sm:$0xff]  ;;  %v2182_v53 = vld [vmem:[#allocation8 + $0x6a8] sm:$0xff] }
 0x2bb   :  { %v2104_v13 = vrot.slane %v2103_v63, 1 }
 0x2bc   :  { %1968 = vmatpush1.bf16.msra.mxu0 %v11221_v62  ;;  %v2094_v62 = vadd.f32 %v2093_v52, %v2092_v39  ;;  %v11231_v39 = vcombine.high %v2162_v1, %v2166_v35  ;;  %v2178_v52 = vld [vmem:[#allocation8 + $0x688] sm:$0xff] }
 0x2bd   :  { %2035 = vmatprep.subr.bf16.mxu0 %v11170_v11  ;;  %v11201_v11 = vcombine.low %v1563_v58, %v1567_v59  ;;  %v11247_v58 = vcombine.high %v2178_v52, %v2182_v53 }
 0x2be   :  { %v2095_v12 = vrot.slane %v2094_v62, 1 }
 0x2c0   :  { %v2096_v21 = vadd.f32 %v2095_v12, %v2094_v62  ;;  %v2185_v12 = vld [vmem:[#allocation8 + $0x6c0] sm:$0xff] }
 0x2c2   :  { %v2106_v31 = vmul.f32 0.25, %v2096_v21 }
 0x372   :  { %v1520_v19 = vpop.f32.mrb[12].mxu0 }
 0x373   :  { %v1521_v22 = vadd.f32 %v13059_v51, %v1520_v19  ;;  %v12273_v23 = vpop.f32.mrb[13].mxu0  ;;  %v11175_v51 = vcombine.low %v1538_v24, %v1542_v26  ;;  %v11207_v19 = vcombine.low %v1570_v5, %v1574_v6  ;;  %v11218_v24 = vcombine.high %v1579_v17, %v1583_v18  ;;  %v1590_v26 = vld [vmem:[#allocation8 + $0x5f0] sm:$0xff]  ;;  %v2194_v6 = vld [vmem:[#allocation8 + $0x708] sm:$0xff] }
 0x374   :  { %v1523_v25 = vpop.f32.mrb[14].mxu0  ;;  %v11216_v23 = vcombine.high %v1578_v15, %v1582_v16 }
 0x375   :  { %v1526_v29 = vmax.f32 %v1521_v22, 0.0  ;;  %v12274_v30 = vpop.f32.mrb[15].mxu0  ;;  %v2105_v22 = vadd.f32 %v2104_v13, %v2103_v63  ;;  %v1586_v25 = vld [vmem:[#allocation8 + $0x5d0] sm:$0xff]  ;;  %v11246_v63 = vcombine.low %v2178_v52, %v2182_v53  ;;  %v2189_v13 = vld [vmem:[#allocation8 + $0x6e0] sm:$0xff] }
 0x376   :  { %v11217_v30 = vcombine.low %v1579_v17, %v1583_v18  ;;  %v11223_v36 = vcombine.low %v1586_v25, %v1590_v26  ;;  %v11253_v17 = vcombine.high %v2185_v12, %v2189_v13 }
 0x377   :  { %v13106_v32 = vpack.c.bf16 %v1526_v29, %v1526_v29  ;;  %v11215_v29 = vcombine.low %v1578_v15, %v1582_v16  ;;  %v2107_v4 = vmul.f32 0.25, %v2105_v22  ;;  %v2206_v15 = vld [vmem:[#allocation8 + $0x768] sm:$0xff] }
 0x378   :  { %v2210_v22 = vld [vmem:[#allocation8 + $0x788] sm:$0xff] }
 0x379   :  { %1945 = vmatmul.mubr.bf16.vlgmr.msra.gmra.mrb[0].mxu1 %v13106_v32  ;;  %1986 = vmatmul.mubr.bf16.vlgmr.msra.gmra.mrb[4].mxu0 %v13106_v32 }
 0x37a   :  { %1995 = vmatpush1.bf16.msra.mxu1 %v11167_v8  ;;  %2036 = vmatpush1.bf16.msra.mxu0 %v11169_v10  ;;  %v1575_v8 = vld [vmem:[#allocation8 + $0x578] sm:$0xff]  ;;  %v11199_v10 = vcombine.low %v1562_v56, %v1566_v57  ;;  %v2169_v56 = vld [vmem:[#allocation8 + $0x640] sm:$0xff] }
 0x37b   :  { %1996 = vmatprep.subr.bf16.mxu1 %v11176_v33  ;;  %2037 = vmatprep.subr.bf16.mxu0 %v11178_v34  ;;  %v11210_v48 = vcombine.high %v1571_v7, %v1575_v8  ;;  %v11209_v20 = vcombine.low %v1571_v7, %v1575_v8  ;;  %v11224_v33 = vcombine.high %v1586_v25, %v1590_v26  ;;  %v2173_v57 = vld [vmem:[#allocation8 + $0x660] sm:$0xff]  ;;  %v2198_v7 = vld [vmem:[#allocation8 + $0x728] sm:$0xff] }
 0x37c   :  { %2026 = vmatprep.mubr.bf16.mxu1 %v12894_v42  ;;  %2067 = vmatprep.mubr.bf16.mxu0 %v12894_v42  ;;  %v11226_v34 = vcombine.high %v1587_v27, %v1591_v28  ;;  %v11237_v62 = vcombine.high %v2169_v56, %v2173_v57  ;;  %v11236_v8 = vcombine.low %v2169_v56, %v2173_v57  ;;  %v2201_v27 = vld [vmem:[#allocation8 + $0x740] sm:$0xff]  ;;  %v2719_v56 = vld [vmem:[#allocation2 + $0x18] sm:$0x3] }
 0x37d   :  { %v11262_v18 = vcombine.low %v2194_v6, %v2198_v7  ;;  %v2205_v28 = vld [vmem:[#allocation8 + $0x760] sm:$0xff] }
 0x37e   :  { %1997 = vmatpush1.bf16.msra.mxu1 %v11175_v51  ;;  %2038 = vmatpush1.bf16.msra.mxu0 %v11177_v38  ;;  %v2108_v51 = vpack.c.bf16 %v2106_v31, %v2106_v31  ;;  %v2109_v38 = vpack.c.bf16 %v2107_v4, %v2107_v4  ;;  %v11269_v31 = vcombine.high %v2201_v27, %v2205_v28  ;;  %v2720_v57 = vld [vmem:[#allocation2 + $0x50] sm:$0x3] }
 0x37f   :  { %1998 = vmatprep.subr.bf16.mxu1 %v11184_v41  ;;  %2039 = vmatprep.subr.bf16.mxu0 %v11186_v43  ;;  %v2165_v41 = vld [vmem:[#allocation8 + $0x620] sm:$0xff]  ;;  %v2170_v43 = vld [vmem:[#allocation8 + $0x648] sm:$0xff] }
 0x380   :  { %v2112_v45 = vunpack.c.l.b16 %v2108_v51  ;;  %v2113_v46 = vunpack.c.l.b16 %v2109_v38  ;;  %v11229_v47 = vcombine.high %v2161_v40, %v2165_v41  ;;  %v2221_v51 = vld [vmem:[#allocation8 + $0x7e0] sm:$0xff]  ;;  %v2218_v38 = vld [vmem:[#allocation8 + $0x7c8] sm:$0xff] }
 0x382   :  { %1999 = vmatpush1.bf16.msra.mxu1 %v11183_v49  ;;  %2040 = vmatpush1.bf16.msra.mxu0 %v11185_v50  ;;  %v11230_v49 = vcombine.low %v2162_v1, %v2166_v35  ;;  %v11239_v50 = vcombine.high %v2170_v43, %v2174_v44  ;;  %v11268_v1 = vcombine.low %v2201_v27, %v2205_v28 }
 0x383   :  { %2000 = vmatprep.subr.bf16.mxu1 %v11192_v54  ;;  %2041 = vmatprep.subr.bf16.mxu0 %v11194_v55  ;;  %v2114_v54 = vsel %vm207_vm2, %v2113_v46, %v2112_v45  ;;  %v11238_v55 = vcombine.low %v2170_v43, %v2174_v44  ;;  %v2163_v45 = vld [vmem:[#allocation8 + $0x610] sm:$0xff] }
 0x384   :  { %v2115_v59 = vpack.c.b16 %v2114_v54, %v2114_v54  ;;  %v2167_v46 = vld [vmem:[#allocation8 + $0x630] sm:$0xff] }
 0x385   :  { %v11232_v52 = vcombine.low %v2163_v45, %v2167_v46 }
 0x386   :  { %2001 = vmatpush1.bf16.msra.mxu1 %v11191_v60  ;;  %2042 = vmatpush1.bf16.msra.mxu0 %v11193_v61  ;;  %v2190_v60 = vld [vmem:[#allocation8 + $0x6e8] sm:$0xff]  ;;  %v11228_v61 = vcombine.low %v2161_v40, %v2165_v41 }
 0x387   :  { %2002 = vmatprep.subr.bf16.mxu1 %v11200_v2  ;;  %2043 = vmatprep.subr.bf16.mxu0 %v11202_v3  ;;  %v2177_v2 = vld [vmem:[#allocation8 + $0x680] sm:$0xff]  ;;  %v2222_v40 = vld [vmem:[#allocation8 + $0x7e8] sm:$0xff] }
 0x388   :  { %v2181_v3 = vld [vmem:[#allocation8 + $0x6a0] sm:$0xff]  ;;  %v11286_v43 = vcombine.low %v2218_v38, %v2222_v40  ;;  %v11287_v44 = vcombine.high %v2218_v38, %v2222_v40  ;;  %v2199_v38 = vld [vmem:[#allocation8 + $0x730] sm:$0xff]  ;;  %v2200_v40 = vld [vmem:[#allocation8 + $0x738] sm:$0xff] }
 0x389   :  { %v11244_v16 = vcombine.low %v2177_v2, %v2181_v3 }
 0x38a   :  { %2003 = vmatpush1.bf16.msra.mxu1 %v11199_v10  ;;  %2044 = vmatpush1.bf16.msra.mxu0 %v11201_v11  ;;  %v11245_v10 = vcombine.high %v2177_v2, %v2181_v3  ;;  %v13126_v3 = vld [vmem:[#allocation7] ss:$0 sm:$0xff] }
 0x38b   :  { %2004 = vmatprep.subr.bf16.mxu1 %v11208_v14  ;;  %2045 = vmatprep.subr.bf16.mxu0 %v11210_v48  ;;  %v11263_v14 = vcombine.high %v2194_v6, %v2198_v7  ;;  %v2202_v48 = vld [vmem:[#allocation8 + $0x748] sm:$0xff]  ;;  %v2171_v7 = vld [vmem:[#allocation8 + $0x650] sm:$0xff] }
 0x38c   :  { %v11271_v21 = vcombine.high %v2202_v48, %v2206_v15  ;;  %v11270_v26 = vcombine.low %v2202_v48, %v2206_v15 }
 0x38e   :  { %2005 = vmatpush1.bf16.msra.mxu1 %v11207_v19  ;;  %2046 = vmatpush1.bf16.msra.mxu0 %v11209_v20  ;;  %v2193_v19 = vld [vmem:[#allocation8 + $0x700] sm:$0xff] }
 0x38f   :  { %2006 = vmatprep.subr.bf16.mxu1 %v11216_v23  ;;  %2047 = vmatprep.subr.bf16.mxu0 %v11218_v24  ;;  %v2197_v20 = vld [vmem:[#allocation8 + $0x720] sm:$0xff]  ;;  %v2214_v23 = vld [vmem:[#allocation8 + $0x7a8] sm:$0xff]  ;;  %v11252_v24 = vcombine.low %v2185_v12, %v2189_v13  ;;  %v2176_v12 = vld [vmem:[#allocation8 + $0x678] sm:$0xff] }
 0x390   :  { %v11261_v25 = vcombine.high %v2193_v19, %v2197_v20  ;;  %v11278_v4 = vcombine.low %v2210_v22, %v2214_v23 }
 0x392   :  { %2007 = vmatpush1.bf16.msra.mxu1 %v11215_v29  ;;  %2048 = vmatpush1.bf16.msra.mxu0 %v11217_v30  ;;  %v11279_v29 = vcombine.high %v2210_v22, %v2214_v23  ;;  %v11260_v30 = vcombine.low %v2193_v19, %v2197_v20  ;;  %v2179_v19 = vld [vmem:[#allocation8 + $0x690] sm:$0xff]  ;;  %v2184_v22 = vld [vmem:[#allocation8 + $0x6b8] sm:$0xff] }
 0x393   :  { %2008 = vmatprep.subr.bf16.mxu1 %v11224_v33  ;;  %2049 = vmatprep.subr.bf16.mxu0 %v11226_v34  ;;  %v2209_v33 = vld [vmem:[#allocation8 + $0x780] sm:$0xff]  ;;  %v2183_v20 = vld [vmem:[#allocation8 + $0x6b0] sm:$0xff] }
 0x394   :  { %v2213_v34 = vld [vmem:[#allocation8 + $0x7a0] sm:$0xff]  ;;  %v11249_v27 = vcombine.high %v2179_v19, %v2183_v20 }
 0x395   :  { %v11277_v35 = vcombine.high %v2209_v33, %v2213_v34 }
 0x396   :  { %2009 = vmatpush1.bf16.msra.mxu1 %v11223_v36  ;;  %2050 = vmatpush1.bf16.msra.mxu0 %v11225_v37  ;;  %v11276_v36 = vcombine.low %v2209_v33, %v2213_v34  ;;  %v2217_v37 = vld [vmem:[#allocation8 + $0x7c0] sm:$0xff]  ;;  %v11248_v33 = vcombine.low %v2179_v19, %v2183_v20 }
 0x397   :  { %12275 = vmatprep.subr.bf16.mxu1 %v12892_v0  ;;  %2586 = vmatprep.subr.bf16.mxu0 %v11231_v39  ;;  %v11285_v39 = vcombine.high %v2217_v37, %v2221_v51  ;;  %v11284_v41 = vcombine.low %v2217_v37, %v2221_v51  ;;  %v2195_v51 = vld [vmem:[#allocation8 + $0x710] sm:$0xff]  ;;  %v2795_v20 = vld [vmem:[#allocation8 + $0x800] sm:$0xff] }
 0x399   :  { %2027 = vmatmul.mubr.bf16.vlgmr.msra.gmra.mrb[4].mxu1 %v13106_v32  ;;  %2068 = vmatmul.mubr.bf16.vlgmr.msra.gmra.mrb[8].mxu0 %v13106_v32  ;;  %v2186_v32 = vld [vmem:[#allocation8 + $0x6c8] sm:$0xff] }
 0x39a   :  { %12276 = vmatpush3.bf16.msra.mxu1 %v13092_v9  ;;  %12277 = vmatprep.mubr.msk.bf16.mxu1 %vm12893_vm0, %v12892_v0  ;;  %v11255_v5 = vcombine.high %v2186_v32, %v2190_v60  ;;  %v11254_v11 = vcombine.low %v2186_v32, %v2190_v60  ;;  %v2723_v32 = vsel %vm174_vm1, %v2719_v56, 0.0  ;;  %v2731_v60 = vsel %vm174_vm1, %v2720_v57, 0.0 }
 0x39b   :  { %2545 = vmatprep.subr.bf16.mxu1 %v11229_v47  ;;  %2587 = vmatpush1.bf16.msra.mxu0 %v11230_v49  ;;  %v2164_v47 = vld [vmem:[#allocation8 + $0x618] sm:$0xff]  ;;  %v11233_v49 = vcombine.high %v2163_v45, %v2167_v46  ;;  %v11265_v46 = vcombine.high %v2195_v51, %v2199_v38 }
 0x39c   :  { %2588 = vmatprep.subr.bf16.mxu0 %v11239_v50  ;;  %2618 = vmatprep.mubr.bf16.mxu0 %v12894_v42  ;;  %v2168_v50 = vld [vmem:[#allocation8 + $0x638] sm:$0xff] }
 0x39d   :  { %v11234_v53 = vcombine.low %v2164_v47, %v2168_v50  ;;  %v11235_v54 = vcombine.high %v2164_v47, %v2168_v50  ;;  %v2207_v50 = vld [vmem:[#allocation8 + $0x770] sm:$0xff] }
 0x39f   :  { %2589 = vmatpush1.bf16.msra.mxu0 %v11238_v55  ;;  %v2718_v55 = vld [vmem:[#allocation2 + $0x10] sm:$0x3] }
 0x3a0   :  { %2590 = vmatprep.subr.bf16.mxu0 %v11247_v58  ;;  %v2721_v58 = vld [vmem:[#allocation2 + $0x58] sm:$0x3] }
 0x3a1   :  { %12278 = vmatmul.mubr.msk.bf16.vlgmr.msra.gmra.mrb[12].mxu1 %vm216_vm3, %v2115_v59  ;;  %v2722_v59 = vsel %vm174_vm1, %v2718_v55, 0.0 }
 0x3a2   :  { %2546 = vmatpush1.bf16.msra.mxu1 %v11228_v61  ;;  %2577 = vmatprep.mubr.bf16.mxu1 %v12894_v42  ;;  %v2732_v61 = vsel %vm174_vm1, %v2721_v58, 0.0 }
 0x3a3   :  { %2547 = vmatprep.subr.bf16.mxu1 %v11237_v62  ;;  %2591 = vmatpush1.bf16.msra.mxu0 %v11246_v63  ;;  %v2724_v63 = vadd.f32 %v2723_v32, %v2722_v59  ;;  %v2733_v2 = vadd.f32 %v2732_v61, %v2731_v60  ;;  %v2211_v32 = vld [vmem:[#allocation8 + $0x790] sm:$0xff]  ;;  %v2212_v61 = vld [vmem:[#allocation8 + $0x798] sm:$0xff] }
 0x3a4   :  { %2592 = vmatprep.subr.bf16.mxu0 %v11255_v5  ;;  %v2215_v60 = vld [vmem:[#allocation8 + $0x7b0] sm:$0xff] }
 0x3a5   :  { %v2725_v48 = vrot.slane %v2724_v63, 4  ;;  %v2734_v15 = vrot.slane %v2733_v2, 4 }
 0x3a6   :  { %2548 = vmatpush1.bf16.msra.mxu1 %v11236_v8 }
 0x3a7   :  { %2549 = vmatprep.subr.bf16.mxu1 %v11245_v10  ;;  %2593 = vmatpush1.bf16.msra.mxu0 %v11254_v11  ;;  %v2175_v10 = vld [vmem:[#allocation8 + $0x670] sm:$0xff]  ;;  %v2172_v11 = vld [vmem:[#allocation8 + $0x658] sm:$0xff] }
 0x3a8   :  { %2594 = vmatprep.subr.bf16.mxu0 %v11263_v14  ;;  %v11240_v23 = vcombine.low %v2171_v7, %v2175_v10 }
 0x3aa   :  { %2550 = vmatpush1.bf16.msra.mxu1 %v11244_v16 }
 0x3ab   :  { %2551 = vmatprep.subr.bf16.mxu1 %v11253_v17  ;;  %2595 = vmatpush1.bf16.msra.mxu0 %v11262_v18  ;;  %v11241_v17 = vcombine.high %v2171_v7, %v2175_v10  ;;  %v11243_v18 = vcombine.high %v2172_v11, %v2176_v12  ;;  %v11281_v7 = vcombine.high %v2211_v32, %v2215_v60  ;;  %v2219_v10 = vld [vmem:[#allocation8 + $0x7d0] sm:$0xff] }
 0x3ac   :  { %2596 = vmatprep.subr.bf16.mxu0 %v11271_v21  ;;  %v2180_v21 = vld [vmem:[#allocation8 + $0x698] sm:$0xff] }
 0x3ad   :  { %v11251_v28 = vcombine.high %v2180_v21, %v2184_v22  ;;  %v11250_v34 = vcombine.low %v2180_v21, %v2184_v22  ;;  %v2799_v21 = vld [vmem:[#allocation8 + $0x820] sm:$0xff] }
 0x3ae   :  { %2552 = vmatpush1.bf16.msra.mxu1 %v11252_v24  ;;  %v11242_v24 = vcombine.low %v2172_v11, %v2176_v12  ;;  %v2223_v11 = vld [vmem:[#allocation8 + $0x7f0] sm:$0xff]  ;;  %v2220_v12 = vld [vmem:[#allocation8 + $0x7d8] sm:$0xff] }
 0x3af   :  { %2553 = vmatprep.subr.bf16.mxu1 %v11261_v25  ;;  %2597 = vmatpush1.bf16.msra.mxu0 %v11270_v26  ;;  %v2726_v25 = vadd.f32 %v2725_v48, %v2724_v63  ;;  %v2735_v26 = vadd.f32 %v2734_v15, %v2733_v2  ;;  %v11288_v22 = vcombine.low %v2219_v10, %v2223_v11 }
 0x3b0   :  { %2598 = vmatprep.subr.bf16.mxu0 %v11279_v29  ;;  %v2187_v29 = vld [vmem:[#allocation8 + $0x6d0] sm:$0xff] }
 0x3b2   :  { %2554 = vmatpush1.bf16.msra.mxu1 %v11260_v30  ;;  %v2191_v30 = vld [vmem:[#allocation8 + $0x6f0] sm:$0xff] }
 0x3b3   :  { %2555 = vmatprep.subr.bf16.mxu1 %v11269_v31  ;;  %2599 = vmatpush1.bf16.msra.mxu0 %v11278_v4  ;;  %v2188_v31 = vld [vmem:[#allocation8 + $0x6d8] sm:$0xff] }
 0x3b4   :  { %2600 = vmatprep.subr.bf16.mxu0 %v11287_v44  ;;  %v2192_v4 = vld [vmem:[#allocation8 + $0x6f8] sm:$0xff] }
 0x3b5   :  { %v11259_v37 = vcombine.high %v2188_v31, %v2192_v4 }
 0x3b6   :  { %2556 = vmatpush1.bf16.msra.mxu1 %v11268_v1  ;;  %v2727_v1 = vrot.slane %v2726_v25, 2 }
 0x3b7   :  { %2557 = vmatprep.subr.bf16.mxu1 %v11277_v35  ;;  %2601 = vmatpush1.bf16.msra.mxu0 %v11286_v43  ;;  %v2736_v35 = vrot.slane %v2735_v26, 2  ;;  %v11258_v43 = vcombine.low %v2188_v31, %v2192_v4 }
 0x3b8   :  { %2668 = vmatprep.subr.bf16.mxu0 %v11235_v54  ;;  %v2728_v44 = vadd.f32 %v2727_v1, %v2726_v25  ;;  %v11264_v54 = vcombine.low %v2195_v51, %v2199_v38  ;;  %v2804_v38 = vld [vmem:[#allocation8 + $0x848] sm:$0xff] }
 0x3b9   :  { %v2737_v45 = vadd.f32 %v2736_v35, %v2735_v26  ;;  %v11294_v26 = vcombine.high %v2795_v20, %v2799_v21  ;;  %v2811_v35 = vld [vmem:[#allocation8 + $0x880] sm:$0xff] }
 0x3ba   :  { %2558 = vmatpush1.bf16.msra.mxu1 %v11276_v36  ;;  %v11257_v36 = vcombine.high %v2187_v29, %v2191_v30  ;;  %v2729_v56 = vrot.slane %v2728_v44, 1 }
 0x3bb   :  { %2559 = vmatprep.subr.bf16.mxu1 %v11285_v39  ;;  %v2196_v39 = vld [vmem:[#allocation8 + $0x718] sm:$0xff]  ;;  %v2738_v57 = vrot.slane %v2737_v45, 1 }
 0x3bc   :  { %v11267_v47 = vcombine.high %v2196_v39, %v2200_v40  ;;  %v11266_v55 = vcombine.low %v2196_v39, %v2200_v40  ;;  %v2808_v39 = vld [vmem:[#allocation8 + $0x868] sm:$0xff] }
 0x3be   :  { %2560 = vmatpush1.bf16.msra.mxu1 %v11284_v41  ;;  %v11256_v41 = vcombine.low %v2187_v29, %v2191_v30  ;;  %v2803_v29 = vld [vmem:[#allocation8 + $0x840] sm:$0xff] }
 0x3bf   :  { %2627 = vmatprep.subr.bf16.mxu1 %v11233_v49  ;;  %v2203_v49 = vld [vmem:[#allocation8 + $0x750] sm:$0xff]  ;;  %v2807_v30 = vld [vmem:[#allocation8 + $0x860] sm:$0xff] }
 0x3c0   :  { %v11273_v58 = vcombine.high %v2203_v49, %v2207_v50  ;;  %v11272_v63 = vcombine.low %v2203_v49, %v2207_v50  ;;  %v11302_v1 = vcombine.high %v2803_v29, %v2807_v30  ;;  %v11301_v51 = vcombine.low %v2803_v29, %v2807_v30  ;;  %v2827_v50 = vld [vmem:[#allocation8 + $0x900] sm:$0xff] }
 0x474   :  { %v2153_v62 = vpop.f32.mrb[12].mxu1 }
 0x475   :  { %v2154_v5 = vadd.f32 %v13126_v3, %v2153_v62  ;;  %v12279_v6 = vpop.f32.mrb[13].mxu1  ;;  %v2216_v62 = vld [vmem:[#allocation8 + $0x7b8] sm:$0xff] }
 0x476   :  { %v2156_v8 = vpop.f32.mrb[14].mxu1  ;;  %v2739_v6 = vadd.f32 %v2738_v57, %v2737_v45  ;;  %v11282_v48 = vcombine.low %v2212_v61, %v2216_v62  ;;  %v11304_v45 = vcombine.high %v2804_v38, %v2808_v39  ;;  %v2824_v57 = vld [vmem:[#allocation8 + $0x8e8] sm:$0xff] }
 0x477   :  { %v2159_v13 = vmax.f32 %v2154_v5, 0.0  ;;  %v12280_v14 = vpop.f32.mrb[15].mxu1  ;;  %v2730_v5 = vadd.f32 %v2729_v56, %v2728_v44  ;;  %v11283_v8 = vcombine.high %v2212_v61, %v2216_v62  ;;  %v2820_v56 = vld [vmem:[#allocation8 + $0x8c8] sm:$0xff] }
 0x478   :  { %v11280_v14 = vcombine.low %v2211_v32, %v2215_v60  ;;  %v2839_v32 = vld [vmem:[#allocation8 + $0x960] sm:$0xff]  ;;  %v11320_v61 = vcombine.high %v2820_v56, %v2824_v57 }
 0x479   :  { %v13129_v16 = vpack.c.bf16 %v2159_v13, %v2159_v13  ;;  %v2224_v13 = vld [vmem:[#allocation8 + $0x7f8] sm:$0xff]  ;;  %v2740_v15 = vmul.f32 0.25, %v2730_v5 }
 0x47a   :  { %v11291_v19 = vcombine.high %v2220_v12, %v2224_v13 }
 0x47b   :  { %2578 = vmatmul.mubr.bf16.vlgmr.msra.gmra.mrb[0].mxu1 %v13129_v16  ;;  %2619 = vmatmul.mubr.bf16.vlgmr.msra.gmra.mrb[4].mxu0 %v13129_v16 }
 0x47c   :  { %2628 = vmatpush1.bf16.msra.mxu1 %v11232_v52  ;;  %2669 = vmatpush1.bf16.msra.mxu0 %v11234_v53  ;;  %v2204_v52 = vld [vmem:[#allocation8 + $0x758] sm:$0xff] }
 0x47d   :  { %2629 = vmatprep.subr.bf16.mxu1 %v11241_v17  ;;  %2670 = vmatprep.subr.bf16.mxu0 %v11243_v18  ;;  %v2208_v53 = vld [vmem:[#allocation8 + $0x778] sm:$0xff]  ;;  %v2741_v17 = vmul.f32 0.25, %v2739_v6  ;;  %v11289_v18 = vcombine.high %v2219_v10, %v2223_v11  ;;  %v2843_v6 = vld [vmem:[#allocation8 + $0x980] sm:$0xff] }
 0x47e   :  { %2659 = vmatprep.mubr.bf16.mxu1 %v12894_v42  ;;  %2700 = vmatprep.mubr.bf16.mxu0 %v12894_v42  ;;  %v11275_v59 = vcombine.high %v2204_v52, %v2208_v53  ;;  %v11274_v2 = vcombine.low %v2204_v52, %v2208_v53  ;;  %v2831_v52 = vld [vmem:[#allocation8 + $0x920] sm:$0xff]  ;;  %v11303_v53 = vcombine.low %v2804_v38, %v2808_v39  ;;  %v3352_v38 = vld [vmem:[#allocation2 + $0x1a] sm:$0x3]  ;;  %v3353_v39 = vld [vmem:[#allocation2 + $0x52] sm:$0x3] }
 0x47f   :  { %v2743_v25 = vpack.c.bf16 %v2741_v17, %v2741_v17  ;;  %v11325_v62 = vcombine.low %v2827_v50, %v2831_v52 }
 0x480   :  { %2630 = vmatpush1.bf16.msra.mxu1 %v11240_v23  ;;  %2671 = vmatpush1.bf16.msra.mxu0 %v11242_v24  ;;  %v11290_v23 = vcombine.low %v2220_v12, %v2224_v13  ;;  %v2742_v24 = vpack.c.bf16 %v2740_v15, %v2740_v15  ;;  %v2836_v12 = vld [vmem:[#allocation8 + $0x948] sm:$0xff] }
 0x481   :  { %2631 = vmatprep.subr.bf16.mxu1 %v11249_v27  ;;  %2672 = vmatprep.subr.bf16.mxu0 %v11251_v28  ;;  %v2796_v27 = vld [vmem:[#allocation8 + $0x808] sm:$0xff]  ;;  %v2747_v4 = vunpack.c.l.b16 %v2743_v25 }
 0x482   :  { %v2800_v28 = vld [vmem:[#allocation8 + $0x828] sm:$0xff]  ;;  %v2746_v31 = vunpack.c.l.b16 %v2742_v24  ;;  %v2855_v24 = vld [vmem:[#allocation8 + $0x9e0] sm:$0xff] }
 0x483   :  { %v11295_v44 = vcombine.low %v2796_v27, %v2800_v28  ;;  %v2840_v13 = vld [vmem:[#allocation8 + $0x968] sm:$0xff] }
 0x484   :  { %2632 = vmatpush1.bf16.msra.mxu1 %v11248_v33  ;;  %2673 = vmatpush1.bf16.msra.mxu0 %v11250_v34  ;;  %v11293_v33 = vcombine.low %v2795_v20, %v2799_v21  ;;  %v11296_v34 = vcombine.high %v2796_v27, %v2800_v28  ;;  %v11336_v15 = vcombine.high %v2836_v12, %v2840_v13  ;;  %v2852_v25 = vld [vmem:[#allocation8 + $0x9c8] sm:$0xff] }
 0x485   :  { %2633 = vmatprep.subr.bf16.mxu1 %v11257_v36  ;;  %2674 = vmatprep.subr.bf16.mxu0 %v11259_v37  ;;  %v2815_v36 = vld [vmem:[#allocation8 + $0x8a0] sm:$0xff]  ;;  %v2748_v37 = vsel %vm207_vm2, %v2747_v4, %v2746_v31  ;;  %v11335_v20 = vcombine.low %v2836_v12, %v2840_v13  ;;  %v2856_v27 = vld [vmem:[#allocation8 + $0x9e8] sm:$0xff]  ;;  %v2797_v31 = vld [vmem:[#allocation8 + $0x810] sm:$0xff] }
 0x486   :  { %v11310_v40 = vcombine.high %v2811_v35, %v2815_v36  ;;  %v11351_v29 = vcombine.low %v2852_v25, %v2856_v27  ;;  %v11352_v30 = vcombine.high %v2852_v25, %v2856_v27  ;;  %v2801_v4 = vld [vmem:[#allocation8 + $0x830] sm:$0xff]  ;;  %v2830_v25 = vld [vmem:[#allocation8 + $0x918] sm:$0xff] }
 0x487   :  { %v2821_v13 = vld [vmem:[#allocation8 + $0x8d0] sm:$0xff] }
 0x488   :  { %2634 = vmatpush1.bf16.msra.mxu1 %v11256_v41  ;;  %2675 = vmatpush1.bf16.msra.mxu0 %v11258_v43  ;;  %v2749_v41 = vpack.c.b16 %v2748_v37, %v2748_v37  ;;  %v2823_v43 = vld [vmem:[#allocation8 + $0x8e0] sm:$0xff] }
 0x489   :  { %2635 = vmatprep.subr.bf16.mxu1 %v11265_v46  ;;  %2676 = vmatprep.subr.bf16.mxu0 %v11267_v47  ;;  %v2812_v46 = vld [vmem:[#allocation8 + $0x888] sm:$0xff] }
 0x48a   :  { %v2816_v47 = vld [vmem:[#allocation8 + $0x8a8] sm:$0xff] }
 0x48b   :  { %v11311_v60 = vcombine.low %v2812_v46, %v2816_v47 }
 0x48c   :  { %2636 = vmatpush1.bf16.msra.mxu1 %v11264_v54  ;;  %2677 = vmatpush1.bf16.msra.mxu0 %v11266_v55  ;;  %v11312_v54 = vcombine.high %v2812_v46, %v2816_v47 }
 0x48d   :  { %2637 = vmatprep.subr.bf16.mxu1 %v11273_v58  ;;  %2678 = vmatprep.subr.bf16.mxu0 %v11275_v59  ;;  %v11326_v58 = vcombine.high %v2827_v50, %v2831_v52  ;;  %v2835_v59 = vld [vmem:[#allocation8 + $0x940] sm:$0xff]  ;;  %v2805_v50 = vld [vmem:[#allocation8 + $0x850] sm:$0xff] }
 0x48e   :  { %v11334_v5 = vcombine.high %v2835_v59, %v2839_v32  ;;  %v11333_v11 = vcombine.low %v2835_v59, %v2839_v32 }
 0x490   :  { %2638 = vmatpush1.bf16.msra.mxu1 %v11272_v63  ;;  %2679 = vmatpush1.bf16.msra.mxu0 %v11274_v2  ;;  %v2828_v63 = vld [vmem:[#allocation8 + $0x908] sm:$0xff] }
 0x491   :  { %2639 = vmatprep.subr.bf16.mxu1 %v11281_v7  ;;  %2680 = vmatprep.subr.bf16.mxu0 %v11283_v8  ;;  %v2832_v2 = vld [vmem:[#allocation8 + $0x928] sm:$0xff]  ;;  %v2847_v7 = vld [vmem:[#allocation8 + $0x9a0] sm:$0xff]  ;;  %v11319_v8 = vcombine.low %v2820_v56, %v2824_v57 }
 0x492   :  { %v11328_v10 = vcombine.high %v2828_v63, %v2832_v2  ;;  %v11341_v17 = vcombine.low %v2843_v6, %v2847_v7 }
 0x494   :  { %2640 = vmatpush1.bf16.msra.mxu1 %v11280_v14  ;;  %2681 = vmatpush1.bf16.msra.mxu0 %v11282_v48  ;;  %v11342_v14 = vcombine.high %v2843_v6, %v2847_v7  ;;  %v11327_v48 = vcombine.low %v2828_v63, %v2832_v2  ;;  %v2817_v63 = vld [vmem:[#allocation8 + $0x8b0] sm:$0xff]  ;;  %v2814_v2 = vld [vmem:[#allocation8 + $0x898] sm:$0xff] }
 0x495   :  { %2641 = vmatprep.subr.bf16.mxu1 %v11289_v18  ;;  %2682 = vmatprep.subr.bf16.mxu0 %v11291_v19  ;;  %v2844_v18 = vld [vmem:[#allocation8 + $0x988] sm:$0xff] }
 0x496   :  { %v2848_v19 = vld [vmem:[#allocation8 + $0x9a8] sm:$0xff] }
 0x497   :  { %v11344_v21 = vcombine.high %v2844_v18, %v2848_v19 }
 0x498   :  { %2642 = vmatpush1.bf16.msra.mxu1 %v11288_v22  ;;  %2683 = vmatpush1.bf16.msra.mxu0 %v11290_v23  ;;  %v11343_v22 = vcombine.low %v2844_v18, %v2848_v19  ;;  %v2851_v23 = vld [vmem:[#allocation8 + $0x9c0] sm:$0xff] }
 0x499   :  { %12281 = vmatprep.subr.bf16.mxu0 %v12892_v0  ;;  %3179 = vmatprep.subr.bf16.mxu1 %v11294_v26  ;;  %v11350_v26 = vcombine.high %v2851_v23, %v2855_v24  ;;  %v11349_v28 = vcombine.low %v2851_v23, %v2855_v24  ;;  %v2829_v23 = vld [vmem:[#allocation8 + $0x910] sm:$0xff] }
 0x49a   :  { %v2833_v24 = vld [vmem:[#allocation8 + $0x930] sm:$0xff] }
 0x49b   :  { %2660 = vmatmul.mubr.bf16.vlgmr.msra.gmra.mrb[4].mxu1 %v13129_v16  ;;  %2701 = vmatmul.mubr.bf16.vlgmr.msra.gmra.mrb[8].mxu0 %v13129_v16  ;;  %v2819_v16 = vld [vmem:[#allocation8 + $0x8c0] sm:$0xff] }
 0x49c   :  { %12282 = vmatpush3.bf16.msra.mxu0 %v13092_v9  ;;  %12283 = vmatprep.mubr.msk.bf16.mxu0 %vm12893_vm0, %v12892_v0  ;;  %v11309_v9 = vcombine.low %v2811_v35, %v2815_v36  ;;  %v11318_v49 = vcombine.high %v2819_v16, %v2823_v43  ;;  %v11317_v55 = vcombine.low %v2819_v16, %v2823_v43  ;;  %v3356_v16 = vsel %vm174_vm1, %v3352_v38, 0.0 }
 0x49d   :  { %3220 = vmatprep.subr.bf16.mxu0 %v11296_v34  ;;  %3180 = vmatpush1.bf16.msra.mxu1 %v11293_v33  ;;  %v2798_v33 = vld [vmem:[#allocation8 + $0x818] sm:$0xff]  ;;  %v11298_v34 = vcombine.high %v2797_v31, %v2801_v4  ;;  %v11297_v35 = vcombine.low %v2797_v31, %v2801_v4  ;;  %v3364_v43 = vsel %vm174_vm1, %v3353_v39, 0.0  ;;  %v11330_v31 = vcombine.high %v2829_v23, %v2833_v24 }
 0x49e   :  { %3181 = vmatprep.subr.bf16.mxu1 %v11302_v1  ;;  %3211 = vmatprep.mubr.bf16.mxu1 %v12894_v42  ;;  %v2802_v1 = vld [vmem:[#allocation8 + $0x838] sm:$0xff] }
 0x49f   :  { %v11299_v36 = vcombine.low %v2798_v33, %v2802_v1  ;;  %v11300_v37 = vcombine.high %v2798_v33, %v2802_v1  ;;  %v2837_v33 = vld [vmem:[#allocation8 + $0x950] sm:$0xff]  ;;  %v2838_v1 = vld [vmem:[#allocation8 + $0x958] sm:$0xff] }
 0x4a1   :  { %3182 = vmatpush1.bf16.msra.mxu1 %v11301_v51  ;;  %v3351_v51 = vld [vmem:[#allocation2 + $0x12] sm:$0x3] }
 0x4a2   :  { %3183 = vmatprep.subr.bf16.mxu1 %v11310_v40  ;;  %v3354_v40 = vld [vmem:[#allocation2 + $0x5a] sm:$0x3] }
 0x4a3   :  { %12284 = vmatmul.mubr.msk.bf16.vlgmr.msra.gmra.mrb[16].mxu0 %vm216_vm3, %v2749_v41  ;;  %v3355_v41 = vsel %vm174_vm1, %v3351_v51, 0.0 }
 0x4a4   :  { %3221 = vmatpush1.bf16.msra.mxu0 %v11295_v44  ;;  %3252 = vmatprep.mubr.bf16.mxu0 %v12894_v42  ;;  %v3365_v44 = vsel %vm174_vm1, %v3354_v40, 0.0 }
 0x4a5   :  { %3222 = vmatprep.subr.bf16.mxu0 %v11304_v45  ;;  %3184 = vmatpush1.bf16.msra.mxu1 %v11309_v9  ;;  %v3357_v9 = vadd.f32 %v3356_v16, %v3355_v41  ;;  %v3366_v46 = vadd.f32 %v3365_v44, %v3364_v43  ;;  %v2845_v41 = vld [vmem:[#allocation8 + $0x990] sm:$0xff]  ;;  %v2846_v43 = vld [vmem:[#allocation8 + $0x998] sm:$0xff] }
 0x4a6   :  { %3185 = vmatprep.subr.bf16.mxu1 %v11318_v49  ;;  %v2849_v16 = vld [vmem:[#allocation8 + $0x9b0] sm:$0xff]  ;;  %v2850_v44 = vld [vmem:[#allocation8 + $0x9b8] sm:$0xff] }
 0x4a7   :  { %v3367_v59 = vrot.slane %v3366_v46, 4 }
 0x4a8   :  { %3223 = vmatpush1.bf16.msra.mxu0 %v11303_v53  ;;  %v2809_v53 = vld [vmem:[#allocation8 + $0x870] sm:$0xff] }
 0x4a9   :  { %3224 = vmatprep.subr.bf16.mxu0 %v11312_v54  ;;  %3186 = vmatpush1.bf16.msra.mxu1 %v11317_v55  ;;  %v2806_v54 = vld [vmem:[#allocation8 + $0x858] sm:$0xff]  ;;  %v11305_v6 = vcombine.low %v2805_v50, %v2809_v53 }
 0x4aa   :  { %3187 = vmatprep.subr.bf16.mxu1 %v11326_v58  ;;  %v2810_v55 = vld [vmem:[#allocation8 + $0x878] sm:$0xff]  ;;  %v3358_v58 = vrot.slane %v3357_v9, 4 }
 0x4ab   :  { %v11307_v7 = vcombine.low %v2806_v54, %v2810_v55 }
 0x4ac   :  { %3225 = vmatpush1.bf16.msra.mxu0 %v11311_v60  ;;  %v11306_v60 = vcombine.high %v2805_v50, %v2809_v53  ;;  %v11348_v50 = vcombine.high %v2846_v43, %v2850_v44  ;;  %v2857_v53 = vld [vmem:[#allocation8 + $0x9f0] sm:$0xff] }
 0x4ad   :  { %3226 = vmatprep.subr.bf16.mxu0 %v11320_v61  ;;  %3188 = vmatpush1.bf16.msra.mxu1 %v11325_v62  ;;  %v11308_v61 = vcombine.high %v2806_v54, %v2810_v55  ;;  %v2813_v62 = vld [vmem:[#allocation8 + $0x890] sm:$0xff]  ;;  %v2854_v54 = vld [vmem:[#allocation8 + $0x9d8] sm:$0xff] }
 0x4ae   :  { %3189 = vmatprep.subr.bf16.mxu1 %v11334_v5  ;;  %v2818_v5 = vld [vmem:[#allocation8 + $0x8b8] sm:$0xff] }
 0x4af   :  { %v11316_v12 = vcombine.high %v2814_v2, %v2818_v5  ;;  %v11315_v18 = vcombine.low %v2814_v2, %v2818_v5  ;;  %v2858_v55 = vld [vmem:[#allocation8 + $0x9f8] sm:$0xff] }
 0x4b0   :  { %3227 = vmatpush1.bf16.msra.mxu0 %v11319_v8  ;;  %v3359_v8 = vadd.f32 %v3358_v58, %v3357_v9  ;;  %v11355_v5 = vcombine.low %v2854_v54, %v2858_v55 }
 0x4b1   :  { %3228 = vmatprep.subr.bf16.mxu0 %v11328_v10  ;;  %3190 = vmatpush1.bf16.msra.mxu1 %v11333_v11  ;;  %v3368_v10 = vadd.f32 %v3367_v59, %v3366_v46  ;;  %v11314_v11 = vcombine.high %v2813_v62, %v2817_v63 }
 0x4b2   :  { %3191 = vmatprep.subr.bf16.mxu1 %v11342_v14  ;;  %v2825_v14 = vld [vmem:[#allocation8 + $0x8f0] sm:$0xff]  ;;  %v3360_v19 = vrot.slane %v3359_v8, 2 }
 0x4b3   :  { %v11321_v27 = vcombine.low %v2821_v13, %v2825_v14 }
 0x4b4   :  { %3229 = vmatpush1.bf16.msra.mxu0 %v11327_v48  ;;  %v2822_v48 = vld [vmem:[#allocation8 + $0x8d8] sm:$0xff] }
 0x4b5   :  { %3230 = vmatprep.subr.bf16.mxu0 %v11336_v15  ;;  %3192 = vmatpush1.bf16.msra.mxu1 %v11341_v17  ;;  %v2826_v15 = vld [vmem:[#allocation8 + $0x8f8] sm:$0xff]  ;;  %v11313_v17 = vcombine.low %v2813_v62, %v2817_v63  ;;  %v3429_v62 = vld [vmem:[#allocation8 + $0xa08] sm:$0xff] }
 0x4b6   :  { %3193 = vmatprep.subr.bf16.mxu1 %v11350_v26  ;;  %v2834_v26 = vld [vmem:[#allocation8 + $0x938] sm:$0xff]  ;;  %v3433_v63 = vld [vmem:[#allocation8 + $0xa28] sm:$0xff] }
 0x4b7   :  { %v11332_v4 = vcombine.high %v2830_v25, %v2834_v26 }
 0x4b8   :  { %3231 = vmatpush1.bf16.msra.mxu0 %v11335_v20  ;;  %v3369_v20 = vrot.slane %v3368_v10, 2 }
 0x4b9   :  { %3232 = vmatprep.subr.bf16.mxu0 %v11344_v21  ;;  %3194 = vmatpush1.bf16.msra.mxu1 %v11349_v28  ;;  %v11322_v21 = vcombine.high %v2821_v13, %v2825_v14  ;;  %v11323_v28 = vcombine.low %v2822_v48, %v2826_v15  ;;  %v3441_v13 = vld [vmem:[#allocation8 + $0xa68] sm:$0xff] }
 0x4ba   :  { %3261 = vmatprep.subr.bf16.mxu1 %v11298_v34  ;;  %v2841_v34 = vld [vmem:[#allocation8 + $0x970] sm:$0xff] }
 0x4bb   :  { %v11338_v39 = vcombine.high %v2837_v33, %v2841_v34 }
 0x4bc   :  { %3233 = vmatpush1.bf16.msra.mxu0 %v11343_v22  ;;  %v11324_v22 = vcombine.high %v2822_v48, %v2826_v15 }
 0x4bd   :  { %3234 = vmatprep.subr.bf16.mxu0 %v11352_v30  ;;  %v3370_v30 = vadd.f32 %v3369_v20, %v3368_v10  ;;  %v3428_v10 = vld [vmem:[#allocation8 + $0xa00] sm:$0xff]  ;;  %v3449_v20 = vld [vmem:[#allocation8 + $0xaa8] sm:$0xff] }
 0x4bf   :  { %v3371_v38 = vrot.slane %v3370_v30, 1 }
 0x4c0   :  { %3235 = vmatpush1.bf16.msra.mxu0 %v11351_v29  ;;  %v3361_v29 = vadd.f32 %v3360_v19, %v3359_v8  ;;  %v11361_v8 = vcombine.high %v3429_v62, %v3433_v63  ;;  %v3445_v19 = vld [vmem:[#allocation8 + $0xa88] sm:$0xff] }
 0x4c1   :  { %3302 = vmatprep.subr.bf16.mxu0 %v11300_v37  ;;  %v11331_v37 = vcombine.low %v2830_v25, %v2834_v26  ;;  %v3440_v25 = vld [vmem:[#allocation8 + $0xa60] sm:$0xff]  ;;  %v11377_v26 = vcombine.high %v3445_v19, %v3449_v20 }
 0x4c2   :  { %v3362_v51 = vrot.slane %v3361_v29, 1 }
 0x4c4   :  { %v3363_v46 = vadd.f32 %v3362_v51, %v3361_v29 }
 0x4c6   :  { %v3373_v58 = vmul.f32 0.25, %v3363_v46  ;;  %v3464_v46 = vld [vmem:[#allocation8 + $0xb20] sm:$0xff] }
 0x576   :  { %v2787_v45 = vpop.f32.mrb[16].mxu0 }
 0x577   :  { %v2788_v47 = vadd.f32 %v13126_v3, %v2787_v45  ;;  %v12285_v49 = vpop.f32.mrb[17].mxu0  ;;  %v11337_v45 = vcombine.low %v2837_v33, %v2841_v34  ;;  %v3448_v33 = vld [vmem:[#allocation8 + $0xaa0] sm:$0xff] }
 0x578   :  { %v2790_v52 = vpop.f32.mrb[18].mxu0  ;;  %v11346_v49 = vcombine.high %v2845_v41, %v2849_v16 }
 0x579   :  { %v2793_v56 = vmax.f32 %v2788_v47, 0.0  ;;  %v12286_v57 = vpop.f32.mrb[19].mxu0  ;;  %v3372_v47 = vadd.f32 %v3371_v38, %v3370_v30  ;;  %v2853_v52 = vld [vmem:[#allocation8 + $0x9d0] sm:$0xff]  ;;  %v3452_v38 = vld [vmem:[#allocation8 + $0xac0] sm:$0xff] }
 0x57a   :  { %v11347_v57 = vcombine.low %v2846_v43, %v2850_v44  ;;  %v11353_v2 = vcombine.low %v2853_v52, %v2857_v53 }
 0x57b   :  { %v13150_v32 = vpack.c.bf16 %v2793_v56, %v2793_v56  ;;  %v11345_v56 = vcombine.low %v2845_v41, %v2849_v16  ;;  %v3374_v59 = vmul.f32 0.25, %v3372_v47  ;;  %v3469_v41 = vld [vmem:[#allocation8 + $0xb48] sm:$0xff] }
 0x57c   :  { %v3473_v16 = vld [vmem:[#allocation8 + $0xb68] sm:$0xff] }
 0x57d   :  { %3212 = vmatmul.mubr.bf16.vlgmr.msra.gmra.mrb[0].mxu1 %v13150_v32  ;;  %3253 = vmatmul.mubr.bf16.vlgmr.msra.gmra.mrb[4].mxu0 %v13150_v32  ;;  %v11401_v47 = vcombine.high %v3469_v41, %v3473_v16 }
 0x57e   :  { %3262 = vmatpush1.bf16.msra.mxu1 %v11297_v35  ;;  %3303 = vmatpush1.bf16.msra.mxu0 %v11299_v36  ;;  %v2842_v35 = vld [vmem:[#allocation8 + $0x978] sm:$0xff]  ;;  %v11329_v36 = vcombine.low %v2829_v23, %v2833_v24  ;;  %v3436_v24 = vld [vmem:[#allocation8 + $0xa40] sm:$0xff] }
 0x57f   :  { %3263 = vmatprep.subr.bf16.mxu1 %v11306_v60  ;;  %3304 = vmatprep.subr.bf16.mxu0 %v11308_v61  ;;  %v11340_v40 = vcombine.high %v2838_v1, %v2842_v35  ;;  %v11339_v9 = vcombine.low %v2838_v1, %v2842_v35  ;;  %v11354_v60 = vcombine.high %v2853_v52, %v2857_v53  ;;  %v3461_v1 = vld [vmem:[#allocation8 + $0xb08] sm:$0xff] }
 0x580   :  { %3293 = vmatprep.mubr.bf16.mxu1 %v12894_v42  ;;  %3334 = vmatprep.mubr.bf16.mxu0 %v12894_v42  ;;  %v11356_v61 = vcombine.high %v2854_v54, %v2858_v55  ;;  %v11367_v30 = vcombine.high %v3436_v24, %v3440_v25  ;;  %v3465_v35 = vld [vmem:[#allocation8 + $0xb28] sm:$0xff]  ;;  %v11400_v54 = vcombine.low %v3469_v41, %v3473_v16  ;;  %v3468_v55 = vld [vmem:[#allocation8 + $0xb40] sm:$0xff] }
 0x582   :  { %3264 = vmatpush1.bf16.msra.mxu1 %v11305_v6  ;;  %3305 = vmatpush1.bf16.msra.mxu0 %v11307_v7  ;;  %v3375_v6 = vpack.c.bf16 %v3373_v58, %v3373_v58  ;;  %v3376_v7 = vpack.c.bf16 %v3374_v59, %v3374_v59 }
 0x583   :  { %3265 = vmatprep.subr.bf16.mxu1 %v11314_v11  ;;  %3306 = vmatprep.subr.bf16.mxu0 %v11316_v12  ;;  %v3432_v11 = vld [vmem:[#allocation8 + $0xa20] sm:$0xff]  ;;  %v3437_v12 = vld [vmem:[#allocation8 + $0xa48] sm:$0xff] }
 0x584   :  { %v3379_v14 = vunpack.c.l.b16 %v3375_v6  ;;  %v3380_v48 = vunpack.c.l.b16 %v3376_v7  ;;  %v11359_v15 = vcombine.high %v3428_v10, %v3432_v11  ;;  %v11368_v23 = vcombine.low %v3437_v12, %v3441_v13  ;;  %v3484_v6 = vld [vmem:[#allocation8 + $0xbc0] sm:$0xff] }
 0x585   :  { %v11358_v29 = vcombine.low %v3428_v10, %v3432_v11  ;;  %v3488_v7 = vld [vmem:[#allocation8 + $0xbe0] sm:$0xff]  ;;  %v3489_v11 = vld [vmem:[#allocation8 + $0xbe8] sm:$0xff] }
 0x586   :  { %3266 = vmatpush1.bf16.msra.mxu1 %v11313_v17  ;;  %3307 = vmatpush1.bf16.msra.mxu0 %v11315_v18  ;;  %v11360_v17 = vcombine.low %v3429_v62, %v3433_v63  ;;  %v11369_v18 = vcombine.high %v3437_v12, %v3441_v13  ;;  %v3480_v62 = vld [vmem:[#allocation8 + $0xba0] sm:$0xff]  ;;  %v11415_v10 = vcombine.high %v3484_v6, %v3488_v7 }
 0x587   :  { %3267 = vmatprep.subr.bf16.mxu1 %v11322_v21  ;;  %3308 = vmatprep.subr.bf16.mxu0 %v11324_v22  ;;  %v13159_v21 = vld [vmem:[#allocation5] sm:$0xff]   ;;  %v3381_v22 = vsel %vm207_vm2, %v3380_v48, %v3379_v14  ;;  %v11414_v12 = vcombine.low %v3484_v6, %v3488_v7 }
 0x588   :  { %v3430_v48 = vld [vmem:[#allocation8 + $0xa10] sm:$0xff] }
 0x589   :  { %v3462_v6 = vld [vmem:[#allocation8 + $0xb10] sm:$0xff] }
 0x58a   :  { %3268 = vmatpush1.bf16.msra.mxu1 %v11321_v27  ;;  %3309 = vmatpush1.bf16.msra.mxu0 %v11323_v28  ;;  %v3453_v27 = vld [vmem:[#allocation8 + $0xac8] sm:$0xff]  ;;  %v3466_v7 = vld [vmem:[#allocation8 + $0xb30] sm:$0xff] }
 0x58b   :  { %3269 = vmatprep.subr.bf16.mxu1 %v11330_v31  ;;  %3310 = vmatprep.subr.bf16.mxu0 %v11332_v4  ;;  %v3457_v28 = vld [vmem:[#allocation8 + $0xae8] sm:$0xff]  ;;  %v11376_v31 = vcombine.low %v3445_v19, %v3449_v20  ;;  %v3444_v4 = vld [vmem:[#allocation8 + $0xa80] sm:$0xff]  ;;  %v3435_v19 = vld [vmem:[#allocation8 + $0xa38] sm:$0xff] }
 0x58c   :  { %v11385_v34 = vcombine.high %v3453_v27, %v3457_v28  ;;  %v11384_v51 = vcombine.low %v3453_v27, %v3457_v28  ;;  %v11374_v43 = vcombine.low %v3444_v4, %v3448_v33 }
 0x58e   :  { %3270 = vmatpush1.bf16.msra.mxu1 %v11329_v36  ;;  %3311 = vmatpush1.bf16.msra.mxu0 %v11331_v37  ;;  %v11366_v36 = vcombine.low %v3436_v24, %v3440_v25  ;;  %v11375_v37 = vcombine.high %v3444_v4, %v3448_v33  ;;  %v3984_v24 = vld [vmem:[#allocation2 + $0x14] sm:$0x3]  ;;  %v3985_v25 = vld [vmem:[#allocation2 + $0x1c] sm:$0x3] }
 0x58f   :  { %3271 = vmatprep.subr.bf16.mxu1 %v11338_v39  ;;  %3312 = vmatprep.subr.bf16.mxu0 %v11340_v40  ;;  %v3456_v39 = vld [vmem:[#allocation8 + $0xae0] sm:$0xff]  ;;  %v11393_v40 = vcombine.high %v3461_v1, %v3465_v35  ;;  %v3988_v27 = vsel %vm174_vm1, %v3984_v24, 0.0  ;;  %v3989_v28 = vsel %vm174_vm1, %v3985_v25, 0.0 }
 0x590   :  { %v11383_v44 = vcombine.high %v3452_v38, %v3456_v39  ;;  %v11382_v52 = vcombine.low %v3452_v38, %v3456_v39  ;;  %v3990_v4 = vadd.f32 %v3989_v28, %v3988_v27  ;;  %v3443_v38 = vld [vmem:[#allocation8 + $0xa78] sm:$0xff]  ;;  %v3478_v27 = vld [vmem:[#allocation8 + $0xb90] sm:$0xff] }
 0x591   :  { %v3482_v28 = vld [vmem:[#allocation8 + $0xbb0] sm:$0xff] }
 0x592   :  { %3272 = vmatpush1.bf16.msra.mxu1 %v11337_v45  ;;  %3313 = vmatpush1.bf16.msra.mxu0 %v11339_v9  ;;  %v11392_v45 = vcombine.low %v3461_v1, %v3465_v35  ;;  %v3460_v9 = vld [vmem:[#allocation8 + $0xb00] sm:$0xff]  ;;  %v3438_v35 = vld [vmem:[#allocation8 + $0xa50] sm:$0xff]  ;;  %v3991_v41 = vrot.slane %v3990_v4, 4 }
 0x593   :  { %3273 = vmatprep.subr.bf16.mxu1 %v11346_v49  ;;  %3314 = vmatprep.subr.bf16.mxu0 %v11348_v50  ;;  %v3477_v49 = vld [vmem:[#allocation8 + $0xb88] sm:$0xff]  ;;  %v11391_v53 = vcombine.high %v3460_v9, %v3464_v46  ;;  %v11390_v58 = vcombine.low %v3460_v9, %v3464_v46  ;;  %v3446_v9 = vld [vmem:[#allocation8 + $0xa90] sm:$0xff] }
 0x594   :  { %v3481_v50 = vld [vmem:[#allocation8 + $0xba8] sm:$0xff]  ;;  %v3450_v46 = vld [vmem:[#allocation8 + $0xab0] sm:$0xff] }
 0x596   :  { %3274 = vmatpush1.bf16.msra.mxu1 %v11345_v56  ;;  %3315 = vmatpush1.bf16.msra.mxu0 %v11347_v57  ;;  %v3472_v56 = vld [vmem:[#allocation8 + $0xb60] sm:$0xff]  ;;  %v11409_v57 = vcombine.high %v3477_v49, %v3481_v50 }
 0x597   :  { %3275 = vmatprep.subr.bf16.mxu1 %v11354_v60  ;;  %3316 = vmatprep.subr.bf16.mxu0 %v11356_v61  ;;  %v11399_v59 = vcombine.high %v3468_v55, %v3472_v56  ;;  %v11408_v60 = vcombine.low %v3477_v49, %v3481_v50  ;;  %v3476_v61 = vld [vmem:[#allocation8 + $0xb80] sm:$0xff]  ;;  %v11398_v63 = vcombine.low %v3468_v55, %v3472_v56  ;;  %v3451_v49 = vld [vmem:[#allocation8 + $0xab8] sm:$0xff]  ;;  %v3454_v56 = vld [vmem:[#allocation8 + $0xad0] sm:$0xff] }
 0x59a   :  { %3276 = vmatpush1.bf16.msra.mxu1 %v11353_v2  ;;  %3317 = vmatpush1.bf16.msra.mxu0 %v11355_v5  ;;  %v11407_v2 = vcombine.high %v3476_v61, %v3480_v62  ;;  %v11406_v5 = vcombine.low %v3476_v61, %v3480_v62 }
 0x59b   :  { %12287 = vmatprep.subr.bf16.mxu1 %v12892_v0  ;;  %3853 = vmatprep.subr.bf16.mxu0 %v11361_v8  ;;  %v3485_v8 = vld [vmem:[#allocation8 + $0xbc8] sm:$0xff] }
 0x59c   :  { %v11416_v13 = vcombine.low %v3485_v8, %v3489_v11  ;;  %v11417_v14 = vcombine.high %v3485_v8, %v3489_v11  ;;  %v3463_v8 = vld [vmem:[#allocation8 + $0xb18] sm:$0xff] }
 0x59d   :  { %3294 = vmatmul.mubr.bf16.vlgmr.msra.gmra.mrb[4].mxu1 %v13150_v32  ;;  %3335 = vmatmul.mubr.bf16.vlgmr.msra.gmra.mrb[8].mxu0 %v13150_v32  ;;  %v3382_v32 = vpack.c.b16 %v3381_v22, %v3381_v22 }
 0x59e   :  { %12288 = vmatpush3.bf16.msra.mxu1 %v13159_v21  ;;  %12289 = vmatprep.mubr.msk.bf16.mxu1 %vm12893_vm0, %v12892_v0 }
 0x59f   :  { %3812 = vmatprep.subr.bf16.mxu1 %v11359_v15  ;;  %3854 = vmatpush1.bf16.msra.mxu0 %v11360_v17  ;;  %v3434_v15 = vld [vmem:[#allocation8 + $0xa30] sm:$0xff]  ;;  %v3431_v17 = vld [vmem:[#allocation8 + $0xa18] sm:$0xff] }
 0x5a0   :  { %3855 = vmatprep.subr.bf16.mxu0 %v11369_v18  ;;  %3885 = vmatprep.mubr.bf16.mxu0 %v12894_v42  ;;  %v11363_v18 = vcombine.high %v3430_v48, %v3434_v15  ;;  %v11362_v20 = vcombine.low %v3430_v48, %v3434_v15  ;;  %v11364_v22 = vcombine.low %v3431_v17, %v3435_v19 }
 0x5a1   :  { %v11395_v48 = vcombine.high %v3462_v6, %v3466_v7 }
 0x5a3   :  { %3856 = vmatpush1.bf16.msra.mxu0 %v11368_v23  ;;  %v11365_v23 = vcombine.high %v3431_v17, %v3435_v19  ;;  %v3470_v17 = vld [vmem:[#allocation8 + $0xb50] sm:$0xff]  ;;  %v3471_v19 = vld [vmem:[#allocation8 + $0xb58] sm:$0xff] }
 0x5a4   :  { %3857 = vmatprep.subr.bf16.mxu0 %v11377_v26  ;;  %v3986_v26 = vld [vmem:[#allocation2 + $0x54] sm:$0x3] }
 0x5a5   :  { %12290 = vmatmul.mubr.msk.bf16.vlgmr.msra.gmra.mrb[16].mxu1 %vm216_vm3, %v3382_v32  ;;  %v3987_v32 = vld [vmem:[#allocation2 + $0x5c] sm:$0x3] }
 0x5a6   :  { %3813 = vmatpush1.bf16.msra.mxu1 %v11358_v29  ;;  %3844 = vmatprep.mubr.bf16.mxu1 %v12894_v42  ;;  %v3997_v29 = vsel %vm174_vm1, %v3986_v26, 0.0 }
 0x5a7   :  { %3814 = vmatprep.subr.bf16.mxu1 %v11367_v30  ;;  %3858 = vmatpush1.bf16.msra.mxu0 %v11376_v31  ;;  %v3998_v30 = vsel %vm174_vm1, %v3987_v32, 0.0 }
 0x5a8   :  { %3859 = vmatprep.subr.bf16.mxu0 %v11385_v34  ;;  %v3999_v33 = vadd.f32 %v3998_v30, %v3997_v29  ;;  %v3479_v29 = vld [vmem:[#allocation8 + $0xb98] sm:$0xff] }
 0x5a9   :  { %v3483_v30 = vld [vmem:[#allocation8 + $0xbb8] sm:$0xff] }
 0x5aa   :  { %3815 = vmatpush1.bf16.msra.mxu1 %v11366_v36  ;;  %v4000_v16 = vrot.slane %v3999_v33, 4 }
 0x5ab   :  { %3816 = vmatprep.subr.bf16.mxu1 %v11375_v37  ;;  %3860 = vmatpush1.bf16.msra.mxu0 %v11384_v51  ;;  %v3442_v37 = vld [vmem:[#allocation8 + $0xa70] sm:$0xff]  ;;  %v3439_v51 = vld [vmem:[#allocation8 + $0xa58] sm:$0xff] }
 0x5ac   :  { %3861 = vmatprep.subr.bf16.mxu0 %v11393_v40  ;;  %v11372_v50 = vcombine.low %v3439_v51, %v3443_v38 }
 0x5ae   :  { %3817 = vmatpush1.bf16.msra.mxu1 %v11374_v43 }
 0x5af   :  { %3818 = vmatprep.subr.bf16.mxu1 %v11383_v44  ;;  %3862 = vmatpush1.bf16.msra.mxu0 %v11392_v45  ;;  %v11371_v44 = vcombine.high %v3438_v35, %v3442_v37  ;;  %v11373_v45 = vcombine.high %v3439_v51, %v3443_v38  ;;  %v3487_v51 = vld [vmem:[#allocation8 + $0xbd8] sm:$0xff] }
 0x5b0   :  { %3863 = vmatprep.subr.bf16.mxu0 %v11401_v47  ;;  %v3447_v47 = vld [vmem:[#allocation8 + $0xa98] sm:$0xff] }
 0x5b1   :  { %v11381_v55 = vcombine.high %v3447_v47, %v3451_v49  ;;  %v11380_v61 = vcombine.low %v3447_v47, %v3451_v49  ;;  %v3491_v38 = vld [vmem:[#allocation8 + $0xbf8] sm:$0xff] }
 0x5b2   :  { %3819 = vmatpush1.bf16.msra.mxu1 %v11382_v52  ;;  %v3992_v52 = vadd.f32 %v3991_v41, %v3990_v4  ;;  %v11420_v49 = vcombine.low %v3487_v51, %v3491_v38 }
 0x5b3   :  { %3820 = vmatprep.subr.bf16.mxu1 %v11391_v53  ;;  %3864 = vmatpush1.bf16.msra.mxu0 %v11400_v54  ;;  %v4001_v53 = vadd.f32 %v4000_v16, %v3999_v33  ;;  %v11379_v54 = vcombine.high %v3446_v9, %v3450_v46 }
 0x5b4   :  { %3865 = vmatprep.subr.bf16.mxu0 %v11409_v57  ;;  %v3458_v57 = vld [vmem:[#allocation8 + $0xaf0] sm:$0xff]  ;;  %v3993_v62 = vrot.slane %v3992_v52, 2 }
 0x5b5   :  { %v11386_v11 = vcombine.low %v3454_v56, %v3458_v57 }
 0x5b6   :  { %3821 = vmatpush1.bf16.msra.mxu1 %v11390_v58  ;;  %v3455_v58 = vld [vmem:[#allocation8 + $0xad8] sm:$0xff] }
 0x5b7   :  { %3822 = vmatprep.subr.bf16.mxu1 %v11399_v59  ;;  %3866 = vmatpush1.bf16.msra.mxu0 %v11408_v60  ;;  %v3459_v59 = vld [vmem:[#allocation8 + $0xaf8] sm:$0xff]  ;;  %v11378_v60 = vcombine.low %v3446_v9, %v3450_v46  ;;  %v4061_v9 = vld [vmem:[#allocation8 + $0xc00] sm:$0xff] }
 0x5b8   :  { %3867 = vmatprep.subr.bf16.mxu0 %v11417_v14  ;;  %v4065_v46 = vld [vmem:[#allocation8 + $0xc20] sm:$0xff] }
 0x5ba   :  { %3823 = vmatpush1.bf16.msra.mxu1 %v11398_v63  ;;  %v4002_v63 = vrot.slane %v4001_v53, 2 }
 0x5bb   :  { %3824 = vmatprep.subr.bf16.mxu1 %v11407_v2  ;;  %3868 = vmatpush1.bf16.msra.mxu0 %v11416_v13  ;;  %v11387_v2 = vcombine.high %v3454_v56, %v3458_v57  ;;  %v3994_v13 = vadd.f32 %v3993_v62, %v3992_v52  ;;  %v11424_v52 = vcombine.high %v4061_v9, %v4065_v46  ;;  %v4073_v56 = vld [vmem:[#allocation8 + $0xc60] sm:$0xff] }
 0x5bc   :  { %3935 = vmatprep.subr.bf16.mxu0 %v11365_v23  ;;  %v4003_v14 = vadd.f32 %v4002_v63, %v4001_v53  ;;  %v4062_v53 = vld [vmem:[#allocation8 + $0xc08] sm:$0xff]  ;;  %v4077_v62 = vld [vmem:[#allocation8 + $0xc80] sm:$0xff] }
 0x5bd   :  { %v3995_v24 = vrot.slane %v3994_v13, 1  ;;  %v4081_v63 = vld [vmem:[#allocation8 + $0xca0] sm:$0xff] }
 0x5be   :  { %3825 = vmatpush1.bf16.msra.mxu1 %v11406_v5  ;;  %v11389_v5 = vcombine.high %v3455_v58, %v3459_v59  ;;  %v4004_v25 = vrot.slane %v4003_v14, 1 }
 0x5bf   :  { %3826 = vmatprep.subr.bf16.mxu1 %v11415_v10  ;;  %v3467_v10 = vld [vmem:[#allocation8 + $0xb38] sm:$0xff]  ;;  %v3996_v33 = vadd.f32 %v3995_v24, %v3994_v13  ;;  %v4086_v24 = vld [vmem:[#allocation8 + $0xcc8] sm:$0xff] }
 0x5c0   :  { %v11397_v15 = vcombine.high %v3463_v8, %v3467_v10  ;;  %v11396_v23 = vcombine.low %v3463_v8, %v3467_v10  ;;  %v11440_v8 = vcombine.high %v4077_v62, %v4081_v63 }
 0x5c1   :  { %v4006_v41 = vmul.f32 0.25, %v3996_v33 }
 0x5c2   :  { %3827 = vmatpush1.bf16.msra.mxu1 %v11414_v12  ;;  %v11388_v12 = vcombine.low %v3455_v58, %v3459_v59  ;;  %v11423_v59 = vcombine.low %v4061_v9, %v4065_v46 }
 0x5c3   :  { %3894 = vmatprep.subr.bf16.mxu1 %v11363_v18  ;;  %v3474_v18 = vld [vmem:[#allocation8 + $0xb70] sm:$0xff] }
 0x5c4   :  { %v11403_v26 = vcombine.high %v3470_v17, %v3474_v18 }
 0x678   :  { %v3420_v31 = vpop.f32.mrb[16].mxu1 }
 0x679   :  { %v3421_v34 = vadd.f32 %v13126_v3, %v3420_v31  ;;  %v12291_v1 = vpop.f32.mrb[17].mxu1  ;;  %v11370_v3 = vcombine.low %v3438_v35, %v3442_v37  ;;  %v11402_v31 = vcombine.low %v3470_v17, %v3474_v18  ;;  %v11413_v35 = vcombine.high %v3479_v29, %v3483_v30  ;;  %v3490_v37 = vld [vmem:[#allocation8 + $0xbf0] sm:$0xff]  ;;  %v4093_v18 = vld [vmem:[#allocation8 + $0xd00] sm:$0xff] }
 0x67a   :  { %v3423_v36 = vpop.f32.mrb[18].mxu1  ;;  %v11411_v1 = vcombine.high %v3478_v27, %v3482_v28 }
 0x67b   :  { %v3426_v39 = vmax.f32 %v3421_v34, 0.0  ;;  %v12292_v40 = vpop.f32.mrb[19].mxu1  ;;  %v4005_v34 = vadd.f32 %v4004_v25, %v4003_v14  ;;  %v3486_v36 = vld [vmem:[#allocation8 + $0xbd0] sm:$0xff]  ;;  %v11439_v14 = vcombine.low %v4077_v62, %v4081_v63  ;;  %v4090_v25 = vld [vmem:[#allocation8 + $0xce8] sm:$0xff] }
 0x67c   :  { %v11412_v40 = vcombine.low %v3479_v29, %v3483_v30  ;;  %v11418_v47 = vcombine.low %v3486_v36, %v3490_v37  ;;  %v11450_v29 = vcombine.high %v4086_v24, %v4090_v25 }
 0x67d   :  { %v13173_v43 = vpack.c.bf16 %v3426_v39, %v3426_v39  ;;  %v11410_v39 = vcombine.low %v3478_v27, %v3482_v28  ;;  %v4007_v16 = vmul.f32 0.25, %v4005_v34  ;;  %v4105_v27 = vld [vmem:[#allocation8 + $0xd60] sm:$0xff] }
 0x67e   :  { %v4109_v34 = vld [vmem:[#allocation8 + $0xd80] sm:$0xff] }
 0x67f   :  { %3845 = vmatmul.mubr.bf16.vlgmr.msra.gmra.mrb[0].mxu1 %v13173_v43  ;;  %3886 = vmatmul.mubr.bf16.vlgmr.msra.gmra.mrb[4].mxu0 %v13173_v43 }
 0x680   :  { %3895 = vmatpush1.bf16.msra.mxu1 %v11362_v20  ;;  %3936 = vmatpush1.bf16.msra.mxu0 %v11364_v22  ;;  %v3475_v20 = vld [vmem:[#allocation8 + $0xb78] sm:$0xff]  ;;  %v11394_v22 = vcombine.low %v3462_v6, %v3466_v7  ;;  %v4070_v6 = vld [vmem:[#allocation8 + $0xc48] sm:$0xff] }
 0x681   :  { %3896 = vmatprep.subr.bf16.mxu1 %v11371_v44  ;;  %3937 = vmatprep.subr.bf16.mxu0 %v11373_v45  ;;  %v11405_v32 = vcombine.high %v3471_v19, %v3475_v20  ;;  %v11404_v4 = vcombine.low %v3471_v19, %v3475_v20  ;;  %v11419_v44 = vcombine.high %v3486_v36, %v3490_v37  ;;  %v4074_v7 = vld [vmem:[#allocation8 + $0xc68] sm:$0xff]  ;;  %v4097_v19 = vld [vmem:[#allocation8 + $0xd20] sm:$0xff] }
 0x682   :  { %3926 = vmatprep.mubr.bf16.mxu1 %v12894_v42  ;;  %3967 = vmatprep.mubr.bf16.mxu0 %v12894_v42  ;;  %v11421_v45 = vcombine.high %v3487_v51, %v3491_v38  ;;  %v11434_v13 = vcombine.high %v4070_v6, %v4074_v7  ;;  %v11433_v20 = vcombine.low %v4070_v6, %v4074_v7  ;;  %v4102_v51 = vld [vmem:[#allocation8 + $0xd48] sm:$0xff]  ;;  %v4618_v6 = vld [vmem:[#allocation2 + $0x1e] sm:$0x3] }
 0x683   :  { %v11455_v30 = vcombine.low %v4093_v18, %v4097_v19  ;;  %v4106_v38 = vld [vmem:[#allocation8 + $0xd68] sm:$0xff] }
 0x684   :  { %3897 = vmatpush1.bf16.msra.mxu1 %v11370_v3  ;;  %3938 = vmatpush1.bf16.msra.mxu0 %v11372_v50  ;;  %v4008_v3 = vpack.c.bf16 %v4006_v41, %v4006_v41  ;;  %v4009_v50 = vpack.c.bf16 %v4007_v16, %v4007_v16  ;;  %v11466_v41 = vcombine.high %v4102_v51, %v4106_v38  ;;  %v4619_v7 = vld [vmem:[#allocation2 + $0x56] sm:$0x3] }
 0x685   :  { %3898 = vmatprep.subr.bf16.mxu1 %v11379_v54  ;;  %3939 = vmatprep.subr.bf16.mxu0 %v11381_v55  ;;  %v4066_v54 = vld [vmem:[#allocation8 + $0xc28] sm:$0xff]  ;;  %v4069_v55 = vld [vmem:[#allocation8 + $0xc40] sm:$0xff]  ;;  %v11465_v9 = vcombine.low %v4102_v51, %v4106_v38 }
 0x686   :  { %v4012_v57 = vunpack.c.l.b16 %v4008_v3  ;;  %v4013_v58 = vunpack.c.l.b16 %v4009_v50  ;;  %v4121_v3 = vld [vmem:[#allocation8 + $0xde0] sm:$0xff]  ;;  %v4118_v50 = vld [vmem:[#allocation8 + $0xdc8] sm:$0xff] }
 0x688   :  { %3899 = vmatpush1.bf16.msra.mxu1 %v11378_v60  ;;  %3940 = vmatpush1.bf16.msra.mxu0 %v11380_v61  ;;  %v11426_v60 = vcombine.high %v4062_v53, %v4066_v54  ;;  %v11432_v61 = vcombine.high %v4069_v55, %v4073_v56 }
 0x689   :  { %3900 = vmatprep.subr.bf16.mxu1 %v11387_v2  ;;  %3941 = vmatprep.subr.bf16.mxu0 %v11389_v5  ;;  %v4014_v2 = vsel %vm207_vm2, %v4013_v58, %v4012_v57  ;;  %v11431_v5 = vcombine.low %v4069_v55, %v4073_v56  ;;  %v4063_v57 = vld [vmem:[#allocation8 + $0xc10] sm:$0xff] }
 0x68a   :  { %v4015_v10 = vpack.c.b16 %v4014_v2, %v4014_v2  ;;  %v4067_v58 = vld [vmem:[#allocation8 + $0xc30] sm:$0xff] }
 0x68b   :  { %v11427_v62 = vcombine.low %v4063_v57, %v4067_v58 }
 0x68c   :  { %3901 = vmatpush1.bf16.msra.mxu1 %v11386_v11  ;;  %3942 = vmatpush1.bf16.msra.mxu0 %v11388_v12  ;;  %v4089_v11 = vld [vmem:[#allocation8 + $0xce0] sm:$0xff]  ;;  %v11425_v12 = vcombine.low %v4062_v53, %v4066_v54  ;;  %v4122_v53 = vld [vmem:[#allocation8 + $0xde8] sm:$0xff] }
 0x68d   :  { %3902 = vmatprep.subr.bf16.mxu1 %v11395_v48  ;;  %3943 = vmatprep.subr.bf16.mxu0 %v11397_v15  ;;  %v4078_v48 = vld [vmem:[#allocation8 + $0xc88] sm:$0xff]  ;;  %v11481_v55 = vcombine.low %v4118_v50, %v4122_v53  ;;  %v11482_v56 = vcombine.high %v4118_v50, %v4122_v53  ;;  %v4099_v50 = vld [vmem:[#allocation8 + $0xd30] sm:$0xff]  ;;  %v4100_v53 = vld [vmem:[#allocation8 + $0xd38] sm:$0xff] }
 0x68e   :  { %v4082_v15 = vld [vmem:[#allocation8 + $0xca8] sm:$0xff] }
 0x68f   :  { %v11441_v28 = vcombine.low %v4078_v48, %v4082_v15 }
 0x690   :  { %3903 = vmatpush1.bf16.msra.mxu1 %v11394_v22  ;;  %3944 = vmatpush1.bf16.msra.mxu0 %v11396_v23  ;;  %v11442_v22 = vcombine.high %v4078_v48, %v4082_v15  ;;  %v13193_v15 = vld [vmem:[#allocation7] ss:$0 sm:$0xff] }
 0x691   :  { %3904 = vmatprep.subr.bf16.mxu1 %v11403_v26  ;;  %3945 = vmatprep.subr.bf16.mxu0 %v11405_v32  ;;  %v11456_v26 = vcombine.high %v4093_v18, %v4097_v19  ;;  %v4101_v32 = vld [vmem:[#allocation8 + $0xd40] sm:$0xff]  ;;  %v4071_v19 = vld [vmem:[#allocation8 + $0xc50] sm:$0xff] }
 0x692   :  { %v11464_v33 = vcombine.high %v4101_v32, %v4105_v27  ;;  %v11463_v37 = vcombine.low %v4101_v32, %v4105_v27 }
 0x694   :  { %3905 = vmatpush1.bf16.msra.mxu1 %v11402_v31  ;;  %3946 = vmatpush1.bf16.msra.mxu0 %v11404_v4  ;;  %v4094_v31 = vld [vmem:[#allocation8 + $0xd08] sm:$0xff] }
 0x695   :  { %3906 = vmatprep.subr.bf16.mxu1 %v11411_v1  ;;  %3947 = vmatprep.subr.bf16.mxu0 %v11413_v35  ;;  %v4098_v4 = vld [vmem:[#allocation8 + $0xd28] sm:$0xff]  ;;  %v4113_v1 = vld [vmem:[#allocation8 + $0xda0] sm:$0xff]  ;;  %v11449_v35 = vcombine.low %v4086_v24, %v4090_v25  ;;  %v4076_v24 = vld [vmem:[#allocation8 + $0xc78] sm:$0xff] }
 0x696   :  { %v11458_v36 = vcombine.high %v4094_v31, %v4098_v4  ;;  %v11471_v16 = vcombine.low %v4109_v34, %v4113_v1 }
 0x698   :  { %3907 = vmatpush1.bf16.msra.mxu1 %v11410_v39  ;;  %3948 = vmatpush1.bf16.msra.mxu0 %v11412_v40  ;;  %v11472_v39 = vcombine.high %v4109_v34, %v4113_v1  ;;  %v11457_v40 = vcombine.low %v4094_v31, %v4098_v4  ;;  %v4079_v31 = vld [vmem:[#allocation8 + $0xc90] sm:$0xff]  ;;  %v4084_v34 = vld [vmem:[#allocation8 + $0xcb8] sm:$0xff] }
 0x699   :  { %3908 = vmatprep.subr.bf16.mxu1 %v11419_v44  ;;  %3949 = vmatprep.subr.bf16.mxu0 %v11421_v45  ;;  %v4110_v44 = vld [vmem:[#allocation8 + $0xd88] sm:$0xff]  ;;  %v4083_v4 = vld [vmem:[#allocation8 + $0xcb0] sm:$0xff] }
 0x69a   :  { %v4114_v45 = vld [vmem:[#allocation8 + $0xda8] sm:$0xff]  ;;  %v11444_v51 = vcombine.high %v4079_v31, %v4083_v4 }
 0x69b   :  { %v11474_v46 = vcombine.high %v4110_v44, %v4114_v45 }
 0x69c   :  { %3909 = vmatpush1.bf16.msra.mxu1 %v11418_v47  ;;  %3950 = vmatpush1.bf16.msra.mxu0 %v11420_v49  ;;  %v11473_v47 = vcombine.low %v4110_v44, %v4114_v45  ;;  %v4117_v49 = vld [vmem:[#allocation8 + $0xdc0] sm:$0xff]  ;;  %v11443_v44 = vcombine.low %v4079_v31, %v4083_v4  ;;  %v4695_v4 = vld [vmem:[#allocation8 + $0xe08] sm:$0xff] }
 0x69d   :  { %12293 = vmatprep.subr.bf16.mxu0 %v12892_v0  ;;  %4445 = vmatprep.subr.bf16.mxu1 %v11424_v52  ;;  %v11480_v52 = vcombine.high %v4117_v49, %v4121_v3  ;;  %v11479_v54 = vcombine.low %v4117_v49, %v4121_v3  ;;  %v4095_v3 = vld [vmem:[#allocation8 + $0xd10] sm:$0xff] }
 0x69f   :  { %3927 = vmatmul.mubr.bf16.vlgmr.msra.gmra.mrb[4].mxu1 %v13173_v43  ;;  %3968 = vmatmul.mubr.bf16.vlgmr.msra.gmra.mrb[8].mxu0 %v13173_v43  ;;  %v4085_v43 = vld [vmem:[#allocation8 + $0xcc0] sm:$0xff] }
 0x6a0   :  { %12294 = vmatpush3.bf16.msra.mxu0 %v13159_v21  ;;  %12295 = vmatprep.mubr.msk.bf16.mxu0 %vm12893_vm0, %v12892_v0  ;;  %v11448_v17 = vcombine.high %v4085_v43, %v4089_v11  ;;  %v11447_v23 = vcombine.low %v4085_v43, %v4089_v11  ;;  %v4622_v43 = vsel %vm174_vm1, %v4618_v6, 0.0  ;;  %v4630_v11 = vsel %vm174_vm1, %v4619_v7, 0.0 }
 0x6a1   :  { %4486 = vmatprep.subr.bf16.mxu0 %v11426_v60  ;;  %4446 = vmatpush1.bf16.msra.mxu1 %v11423_v59  ;;  %v4064_v59 = vld [vmem:[#allocation8 + $0xc18] sm:$0xff]  ;;  %v11428_v60 = vcombine.high %v4063_v57, %v4067_v58  ;;  %v11460_v58 = vcombine.high %v4095_v3, %v4099_v50 }
 0x6a2   :  { %4447 = vmatprep.subr.bf16.mxu1 %v11432_v61  ;;  %4477 = vmatprep.mubr.bf16.mxu1 %v12894_v42  ;;  %v4068_v61 = vld [vmem:[#allocation8 + $0xc38] sm:$0xff] }
 0x6a3   :  { %v11429_v63 = vcombine.low %v4064_v59, %v4068_v61  ;;  %v11430_v2 = vcombine.high %v4064_v59, %v4068_v61  ;;  %v4107_v61 = vld [vmem:[#allocation8 + $0xd70] sm:$0xff] }
 0x6a5   :  { %4448 = vmatpush1.bf16.msra.mxu1 %v11431_v5  ;;  %v4617_v5 = vld [vmem:[#allocation2 + $0x16] sm:$0x3] }
 0x6a6   :  { %4449 = vmatprep.subr.bf16.mxu1 %v11440_v8  ;;  %v4620_v8 = vld [vmem:[#allocation2 + $0x5e] sm:$0x3] }
 0x6a7   :  { %12296 = vmatmul.mubr.msk.bf16.vlgmr.msra.gmra.mrb[20].mxu0 %vm216_vm3, %v4015_v10  ;;  %v4621_v10 = vsel %vm174_vm1, %v4617_v5, 0.0 }
 0x6a8   :  { %4487 = vmatpush1.bf16.msra.mxu0 %v11425_v12  ;;  %4518 = vmatprep.mubr.bf16.mxu0 %v12894_v42  ;;  %v4631_v12 = vsel %vm174_vm1, %v4620_v8, 0.0 }
 0x6a9   :  { %4488 = vmatprep.subr.bf16.mxu0 %v11434_v13  ;;  %4450 = vmatpush1.bf16.msra.mxu1 %v11439_v14  ;;  %v4623_v14 = vadd.f32 %v4622_v43, %v4621_v10  ;;  %v4632_v48 = vadd.f32 %v4631_v12, %v4630_v11  ;;  %v4111_v43 = vld [vmem:[#allocation8 + $0xd90] sm:$0xff]  ;;  %v4112_v12 = vld [vmem:[#allocation8 + $0xd98] sm:$0xff] }
 0x6aa   :  { %4451 = vmatprep.subr.bf16.mxu1 %v11448_v17  ;;  %v4115_v11 = vld [vmem:[#allocation8 + $0xdb0] sm:$0xff] }
 0x6ab   :  { %v4624_v32 = vrot.slane %v4623_v14, 4  ;;  %v4633_v27 = vrot.slane %v4632_v48, 4 }
 0x6ac   :  { %4489 = vmatpush1.bf16.msra.mxu0 %v11433_v20 }
 0x6ad   :  { %4490 = vmatprep.subr.bf16.mxu0 %v11442_v22  ;;  %4452 = vmatpush1.bf16.msra.mxu1 %v11447_v23  ;;  %v4075_v22 = vld [vmem:[#allocation8 + $0xc70] sm:$0xff]  ;;  %v4072_v23 = vld [vmem:[#allocation8 + $0xc58] sm:$0xff] }
 0x6ae   :  { %4453 = vmatprep.subr.bf16.mxu1 %v11456_v26  ;;  %v11435_v1 = vcombine.low %v4071_v19, %v4075_v22 }
 0x6b0   :  { %4491 = vmatpush1.bf16.msra.mxu0 %v11441_v28 }
 0x6b1   :  { %4492 = vmatprep.subr.bf16.mxu0 %v11450_v29  ;;  %4454 = vmatpush1.bf16.msra.mxu1 %v11455_v30  ;;  %v11436_v29 = vcombine.high %v4071_v19, %v4075_v22  ;;  %v11438_v30 = vcombine.high %v4072_v23, %v4076_v24  ;;  %v11476_v19 = vcombine.high %v4111_v43, %v4115_v11  ;;  %v4119_v22 = vld [vmem:[#allocation8 + $0xdd0] sm:$0xff] }
 0x6b2   :  { %4455 = vmatprep.subr.bf16.mxu1 %v11464_v33  ;;  %v4080_v33 = vld [vmem:[#allocation8 + $0xc98] sm:$0xff] }
 0x6b3   :  { %v11446_v38 = vcombine.high %v4080_v33, %v4084_v34  ;;  %v11445_v45 = vcombine.low %v4080_v33, %v4084_v34  ;;  %v4699_v33 = vld [vmem:[#allocation8 + $0xe28] sm:$0xff] }
 0x6b4   :  { %4493 = vmatpush1.bf16.msra.mxu0 %v11449_v35  ;;  %v11437_v35 = vcombine.low %v4072_v23, %v4076_v24  ;;  %v4123_v23 = vld [vmem:[#allocation8 + $0xdf0] sm:$0xff]  ;;  %v4120_v24 = vld [vmem:[#allocation8 + $0xdd8] sm:$0xff] }
 0x6b5   :  { %4494 = vmatprep.subr.bf16.mxu0 %v11458_v36  ;;  %4456 = vmatpush1.bf16.msra.mxu1 %v11463_v37  ;;  %v4625_v36 = vadd.f32 %v4624_v32, %v4623_v14  ;;  %v4634_v37 = vadd.f32 %v4633_v27, %v4632_v48  ;;  %v11483_v34 = vcombine.low %v4119_v22, %v4123_v23 }
 0x6b6   :  { %4457 = vmatprep.subr.bf16.mxu1 %v11472_v39  ;;  %v4087_v39 = vld [vmem:[#allocation8 + $0xcd0] sm:$0xff] }
 0x6b8   :  { %4495 = vmatpush1.bf16.msra.mxu0 %v11457_v40  ;;  %v4091_v40 = vld [vmem:[#allocation8 + $0xcf0] sm:$0xff] }
 0x6b9   :  { %4496 = vmatprep.subr.bf16.mxu0 %v11466_v41  ;;  %4458 = vmatpush1.bf16.msra.mxu1 %v11471_v16  ;;  %v4088_v41 = vld [vmem:[#allocation8 + $0xcd8] sm:$0xff] }
 0x6ba   :  { %4459 = vmatprep.subr.bf16.mxu1 %v11480_v52  ;;  %v4092_v16 = vld [vmem:[#allocation8 + $0xcf8] sm:$0xff] }
 0x6bb   :  { %v11454_v49 = vcombine.high %v4088_v41, %v4092_v16  ;;  %v4096_v52 = vld [vmem:[#allocation8 + $0xd18] sm:$0xff] }
 0x6bc   :  { %4497 = vmatpush1.bf16.msra.mxu0 %v11465_v9  ;;  %v4626_v9 = vrot.slane %v4625_v36, 2  ;;  %v11462_v59 = vcombine.high %v4096_v52, %v4100_v53  ;;  %v11461_v5 = vcombine.low %v4096_v52, %v4100_v53  ;;  %v4706_v52 = vld [vmem:[#allocation8 + $0xe60] sm:$0xff] }
 0x6bd   :  { %4498 = vmatprep.subr.bf16.mxu0 %v11474_v46  ;;  %4460 = vmatpush1.bf16.msra.mxu1 %v11479_v54  ;;  %v4635_v46 = vrot.slane %v4634_v37, 2  ;;  %v11451_v54 = vcombine.low %v4087_v39, %v4091_v40 }
 0x6be   :  { %4527 = vmatprep.subr.bf16.mxu1 %v11428_v60  ;;  %v4103_v60 = vld [vmem:[#allocation8 + $0xd50] sm:$0xff] }
 0x6bf   :  { %v4636_v57 = vadd.f32 %v4635_v46, %v4634_v37  ;;  %v11468_v8 = vcombine.high %v4103_v60, %v4107_v61  ;;  %v11467_v14 = vcombine.low %v4103_v60, %v4107_v61  ;;  %v11491_v37 = vcombine.high %v4695_v4, %v4699_v33  ;;  %v4711_v46 = vld [vmem:[#allocation8 + $0xe88] sm:$0xff] }
 0x6c0   :  { %4499 = vmatpush1.bf16.msra.mxu0 %v11473_v47  ;;  %v11452_v47 = vcombine.high %v4087_v39, %v4091_v40  ;;  %v4703_v39 = vld [vmem:[#allocation8 + $0xe48] sm:$0xff] }
 0x6c1   :  { %4500 = vmatprep.subr.bf16.mxu0 %v11482_v56  ;;  %v4627_v56 = vadd.f32 %v4626_v9, %v4625_v36  ;;  %v4637_v7 = vrot.slane %v4636_v57, 1  ;;  %v4707_v40 = vld [vmem:[#allocation8 + $0xe68] sm:$0xff] }
 0x6c2   :  { %v11499_v9 = vcombine.high %v4703_v39, %v4707_v40  ;;  %v4727_v61 = vld [vmem:[#allocation8 + $0xf08] sm:$0xff] }
 0x6c3   :  { %v4628_v6 = vrot.slane %v4627_v56, 1 }
 0x6c4   :  { %4501 = vmatpush1.bf16.msra.mxu0 %v11481_v55  ;;  %v11453_v55 = vcombine.low %v4088_v41, %v4092_v16 }
 0x6c5   :  { %4568 = vmatprep.subr.bf16.mxu0 %v11430_v2  ;;  %v11459_v2 = vcombine.low %v4095_v3, %v4099_v50  ;;  %v11498_v3 = vcombine.low %v4703_v39, %v4707_v40  ;;  %v4702_v50 = vld [vmem:[#allocation8 + $0xe40] sm:$0xff] }
 0x77a   :  { %v4053_v13 = vpop.f32.mrb[20].mxu0 }
 0x77b   :  { %v4054_v17 = vadd.f32 %v13193_v15, %v4053_v13  ;;  %v12297_v18 = vpop.f32.mrb[21].mxu0  ;;  %v4116_v13 = vld [vmem:[#allocation8 + $0xdb8] sm:$0xff] }
 0x77c   :  { %v4056_v20 = vpop.f32.mrb[22].mxu0  ;;  %v4638_v18 = vadd.f32 %v4637_v7, %v4636_v57  ;;  %v11477_v32 = vcombine.low %v4112_v12, %v4116_v13  ;;  %v11497_v57 = vcombine.high %v4702_v50, %v4706_v52  ;;  %v4722_v7 = vld [vmem:[#allocation8 + $0xee0] sm:$0xff] }
 0x77d   :  { %v4059_v25 = vmax.f32 %v4054_v17, 0.0  ;;  %v12298_v26 = vpop.f32.mrb[23].mxu0  ;;  %v4629_v17 = vadd.f32 %v4628_v6, %v4627_v56  ;;  %v11478_v20 = vcombine.high %v4112_v12, %v4116_v13  ;;  %v4718_v6 = vld [vmem:[#allocation8 + $0xec0] sm:$0xff] }
 0x77e   :  { %v11475_v26 = vcombine.low %v4111_v43, %v4115_v11  ;;  %v4739_v43 = vld [vmem:[#allocation8 + $0xf68] sm:$0xff]  ;;  %v11513_v12 = vcombine.high %v4718_v6, %v4722_v7 }
 0x77f   :  { %v13196_v28 = vpack.c.bf16 %v4059_v25, %v4059_v25  ;;  %v4124_v25 = vld [vmem:[#allocation8 + $0xdf8] sm:$0xff]  ;;  %v4639_v27 = vmul.f32 0.25, %v4629_v17 }
 0x780   :  { %v11486_v31 = vcombine.high %v4120_v24, %v4124_v25 }
 0x781   :  { %4478 = vmatmul.mubr.bf16.vlgmr.msra.gmra.mrb[0].mxu1 %v13196_v28  ;;  %4519 = vmatmul.mubr.bf16.vlgmr.msra.gmra.mrb[4].mxu0 %v13196_v28 }
 0x782   :  { %4528 = vmatpush1.bf16.msra.mxu1 %v11427_v62  ;;  %4569 = vmatpush1.bf16.msra.mxu0 %v11429_v63  ;;  %v4104_v62 = vld [vmem:[#allocation8 + $0xd58] sm:$0xff] }
 0x783   :  { %4529 = vmatprep.subr.bf16.mxu1 %v11436_v29  ;;  %4570 = vmatprep.subr.bf16.mxu0 %v11438_v30  ;;  %v4108_v63 = vld [vmem:[#allocation8 + $0xd78] sm:$0xff]  ;;  %v4640_v29 = vmul.f32 0.25, %v4638_v18  ;;  %v11484_v30 = vcombine.high %v4119_v22, %v4123_v23  ;;  %v4743_v18 = vld [vmem:[#allocation8 + $0xf88] sm:$0xff] }
 0x784   :  { %4559 = vmatprep.mubr.bf16.mxu1 %v12894_v42  ;;  %4600 = vmatprep.mubr.bf16.mxu0 %v12894_v42  ;;  %v11470_v10 = vcombine.high %v4104_v62, %v4108_v63  ;;  %v11469_v48 = vcombine.low %v4104_v62, %v4108_v63  ;;  %v4731_v62 = vld [vmem:[#allocation8 + $0xf28] sm:$0xff]  ;;  %v11496_v63 = vcombine.low %v4702_v50, %v4706_v52  ;;  %v5252_v50 = vld [vmem:[#allocation2 + $0x28] sm:$0x3]  ;;  %v5253_v52 = vld [vmem:[#allocation2 + $0x60] sm:$0x3] }
 0x785   :  { %v4642_v36 = vpack.c.bf16 %v4640_v29, %v4640_v29  ;;  %v11522_v13 = vcombine.low %v4727_v61, %v4731_v62 }
 0x786   :  { %4530 = vmatpush1.bf16.msra.mxu1 %v11435_v1  ;;  %4571 = vmatpush1.bf16.msra.mxu0 %v11437_v35  ;;  %v11485_v1 = vcombine.low %v4120_v24, %v4124_v25  ;;  %v4641_v35 = vpack.c.bf16 %v4639_v27, %v4639_v27  ;;  %v4734_v24 = vld [vmem:[#allocation8 + $0xf40] sm:$0xff] }
 0x787   :  { %4531 = vmatprep.subr.bf16.mxu1 %v11444_v51  ;;  %4572 = vmatprep.subr.bf16.mxu0 %v11446_v38  ;;  %v4694_v51 = vld [vmem:[#allocation8 + $0xe00] sm:$0xff]  ;;  %v4646_v16 = vunpack.c.l.b16 %v4642_v36  ;;  %v4751_v36 = vld [vmem:[#allocation8 + $0xfc8] sm:$0xff] }
 0x788   :  { %v4698_v38 = vld [vmem:[#allocation8 + $0xe20] sm:$0xff]  ;;  %v4645_v41 = vunpack.c.l.b16 %v4641_v35 }
 0x789   :  { %v11488_v56 = vcombine.low %v4694_v51, %v4698_v38  ;;  %v4738_v25 = vld [vmem:[#allocation8 + $0xf60] sm:$0xff] }
 0x78a   :  { %4532 = vmatpush1.bf16.msra.mxu1 %v11443_v44  ;;  %4573 = vmatpush1.bf16.msra.mxu0 %v11445_v45  ;;  %v11489_v44 = vcombine.high %v4694_v51, %v4698_v38  ;;  %v11490_v45 = vcombine.low %v4695_v4, %v4699_v33  ;;  %v11529_v27 = vcombine.high %v4734_v24, %v4738_v25  ;;  %v4754_v35 = vld [vmem:[#allocation8 + $0xfe0] sm:$0xff]  ;;  %v4755_v51 = vld [vmem:[#allocation8 + $0xfe8] sm:$0xff] }
 0x78b   :  { %4533 = vmatprep.subr.bf16.mxu1 %v11452_v47  ;;  %4574 = vmatprep.subr.bf16.mxu0 %v11454_v49  ;;  %v4715_v47 = vld [vmem:[#allocation8 + $0xea8] sm:$0xff]  ;;  %v4647_v49 = vsel %vm207_vm2, %v4646_v16, %v4645_v41  ;;  %v11528_v4 = vcombine.low %v4734_v24, %v4738_v25  ;;  %v11546_v39 = vcombine.low %v4751_v36, %v4755_v51  ;;  %v4696_v41 = vld [vmem:[#allocation8 + $0xe10] sm:$0xff] }
 0x78c   :  { %v11507_v53 = vcombine.high %v4711_v46, %v4715_v47  ;;  %v11547_v40 = vcombine.high %v4751_v36, %v4755_v51  ;;  %v4700_v16 = vld [vmem:[#allocation8 + $0xe30] sm:$0xff]  ;;  %v4729_v36 = vld [vmem:[#allocation8 + $0xf18] sm:$0xff] }
 0x78d   :  { %v4720_v25 = vld [vmem:[#allocation8 + $0xed0] sm:$0xff] }
 0x78e   :  { %4534 = vmatpush1.bf16.msra.mxu1 %v11451_v54  ;;  %4575 = vmatpush1.bf16.msra.mxu0 %v11453_v55  ;;  %v4648_v54 = vpack.c.b16 %v4647_v49, %v4647_v49  ;;  %v4723_v55 = vld [vmem:[#allocation8 + $0xee8] sm:$0xff] }
 0x78f   :  { %4535 = vmatprep.subr.bf16.mxu1 %v11460_v58  ;;  %4576 = vmatprep.subr.bf16.mxu0 %v11462_v59  ;;  %v4710_v58 = vld [vmem:[#allocation8 + $0xe80] sm:$0xff] }
 0x790   :  { %v4714_v59 = vld [vmem:[#allocation8 + $0xea0] sm:$0xff] }
 0x791   :  { %v11504_v11 = vcombine.low %v4710_v58, %v4714_v59 }
 0x792   :  { %4536 = vmatpush1.bf16.msra.mxu1 %v11459_v2  ;;  %4577 = vmatpush1.bf16.msra.mxu0 %v11461_v5  ;;  %v11505_v2 = vcombine.high %v4710_v58, %v4714_v59 }
 0x793   :  { %4537 = vmatprep.subr.bf16.mxu1 %v11468_v8  ;;  %4578 = vmatprep.subr.bf16.mxu0 %v11470_v10  ;;  %v11523_v8 = vcombine.high %v4727_v61, %v4731_v62  ;;  %v4735_v10 = vld [vmem:[#allocation8 + $0xf48] sm:$0xff]  ;;  %v4704_v61 = vld [vmem:[#allocation8 + $0xe50] sm:$0xff] }
 0x794   :  { %v11531_v17 = vcombine.high %v4735_v10, %v4739_v43  ;;  %v11530_v23 = vcombine.low %v4735_v10, %v4739_v43 }
 0x796   :  { %4538 = vmatpush1.bf16.msra.mxu1 %v11467_v14  ;;  %4579 = vmatpush1.bf16.msra.mxu0 %v11469_v48  ;;  %v4726_v14 = vld [vmem:[#allocation8 + $0xf00] sm:$0xff] }
 0x797   :  { %4539 = vmatprep.subr.bf16.mxu1 %v11476_v19  ;;  %4580 = vmatprep.subr.bf16.mxu0 %v11478_v20  ;;  %v4730_v48 = vld [vmem:[#allocation8 + $0xf20] sm:$0xff]  ;;  %v4747_v19 = vld [vmem:[#allocation8 + $0xfa8] sm:$0xff]  ;;  %v11512_v20 = vcombine.low %v4718_v6, %v4722_v7 }
 0x798   :  { %v11521_v22 = vcombine.high %v4726_v14, %v4730_v48  ;;  %v11538_v29 = vcombine.low %v4743_v18, %v4747_v19 }
 0x79a   :  { %4540 = vmatpush1.bf16.msra.mxu1 %v11475_v26  ;;  %4581 = vmatpush1.bf16.msra.mxu0 %v11477_v32  ;;  %v11539_v26 = vcombine.high %v4743_v18, %v4747_v19  ;;  %v11520_v32 = vcombine.low %v4726_v14, %v4730_v48  ;;  %v4716_v14 = vld [vmem:[#allocation8 + $0xeb0] sm:$0xff]  ;;  %v4713_v48 = vld [vmem:[#allocation8 + $0xe98] sm:$0xff] }
 0x79b   :  { %4541 = vmatprep.subr.bf16.mxu1 %v11484_v30  ;;  %4582 = vmatprep.subr.bf16.mxu0 %v11486_v31  ;;  %v4742_v30 = vld [vmem:[#allocation8 + $0xf80] sm:$0xff] }
 0x79c   :  { %v4746_v31 = vld [vmem:[#allocation8 + $0xfa0] sm:$0xff] }
 0x79d   :  { %v11537_v33 = vcombine.high %v4742_v30, %v4746_v31 }
 0x79e   :  { %4542 = vmatpush1.bf16.msra.mxu1 %v11483_v34  ;;  %4583 = vmatpush1.bf16.msra.mxu0 %v11485_v1  ;;  %v11536_v34 = vcombine.low %v4742_v30, %v4746_v31  ;;  %v4750_v1 = vld [vmem:[#allocation8 + $0xfc0] sm:$0xff] }
 0x79f   :  { %12299 = vmatprep.subr.bf16.mxu1 %v12892_v0  ;;  %5119 = vmatprep.subr.bf16.mxu0 %v11491_v37  ;;  %v11545_v37 = vcombine.high %v4750_v1, %v4754_v35  ;;  %v11544_v38 = vcombine.low %v4750_v1, %v4754_v35  ;;  %v4728_v1 = vld [vmem:[#allocation8 + $0xf10] sm:$0xff] }
 0x7a0   :  { %v4732_v35 = vld [vmem:[#allocation8 + $0xf30] sm:$0xff] }
 0x7a1   :  { %4560 = vmatmul.mubr.bf16.vlgmr.msra.gmra.mrb[4].mxu1 %v13196_v28  ;;  %4601 = vmatmul.mubr.bf16.vlgmr.msra.gmra.mrb[8].mxu0 %v13196_v28  ;;  %v4719_v28 = vld [vmem:[#allocation8 + $0xec8] sm:$0xff] }
 0x7a2   :  { %12300 = vmatpush3.bf16.msra.mxu1 %v13159_v21  ;;  %12301 = vmatprep.mubr.msk.bf16.mxu1 %vm12893_vm0, %v12892_v0  ;;  %v11506_v21 = vcombine.low %v4711_v46, %v4715_v47  ;;  %v11515_v60 = vcombine.high %v4719_v28, %v4723_v55  ;;  %v11514_v5 = vcombine.low %v4719_v28, %v4723_v55  ;;  %v5256_v28 = vsel %vm174_vm1, %v5252_v50, 0.0 }
 0x7a3   :  { %5078 = vmatprep.subr.bf16.mxu1 %v11489_v44  ;;  %5120 = vmatpush1.bf16.msra.mxu0 %v11490_v45  ;;  %v4697_v44 = vld [vmem:[#allocation8 + $0xe18] sm:$0xff]  ;;  %v11493_v45 = vcombine.high %v4696_v41, %v4700_v16  ;;  %v11492_v46 = vcombine.low %v4696_v41, %v4700_v16  ;;  %v5264_v55 = vsel %vm174_vm1, %v5253_v52, 0.0  ;;  %v11525_v41 = vcombine.high %v4728_v1, %v4732_v35 }
 0x7a4   :  { %5121 = vmatprep.subr.bf16.mxu0 %v11499_v9  ;;  %5151 = vmatprep.mubr.bf16.mxu0 %v12894_v42  ;;  %v4701_v9 = vld [vmem:[#allocation8 + $0xe38] sm:$0xff] }
 0x7a5   :  { %v11494_v47 = vcombine.low %v4697_v44, %v4701_v9  ;;  %v11495_v49 = vcombine.high %v4697_v44, %v4701_v9  ;;  %v4736_v44 = vld [vmem:[#allocation8 + $0xf50] sm:$0xff]  ;;  %v4737_v9 = vld [vmem:[#allocation8 + $0xf58] sm:$0xff] }
 0x7a7   :  { %5122 = vmatpush1.bf16.msra.mxu0 %v11498_v3  ;;  %v5251_v3 = vld [vmem:[#allocation2 + $0x20] sm:$0x3] }
 0x7a8   :  { %5123 = vmatprep.subr.bf16.mxu0 %v11507_v53  ;;  %v5254_v53 = vld [vmem:[#allocation2 + $0x68] sm:$0x3] }
 0x7a9   :  { %12302 = vmatmul.mubr.msk.bf16.vlgmr.msra.gmra.mrb[20].mxu1 %vm216_vm3, %v4648_v54  ;;  %v5255_v54 = vsel %vm174_vm1, %v5251_v3, 0.0 }
 0x7aa   :  { %5079 = vmatpush1.bf16.msra.mxu1 %v11488_v56  ;;  %5110 = vmatprep.mubr.bf16.mxu1 %v12894_v42  ;;  %v5265_v56 = vsel %vm174_vm1, %v5254_v53, 0.0 }
 0x7ab   :  { %5080 = vmatprep.subr.bf16.mxu1 %v11497_v57  ;;  %5124 = vmatpush1.bf16.msra.mxu0 %v11506_v21  ;;  %v5257_v21 = vadd.f32 %v5256_v28, %v5255_v54  ;;  %v5266_v58 = vadd.f32 %v5265_v56, %v5264_v55  ;;  %v4744_v54 = vld [vmem:[#allocation8 + $0xf90] sm:$0xff]  ;;  %v4745_v55 = vld [vmem:[#allocation8 + $0xf98] sm:$0xff] }
 0x7ac   :  { %5125 = vmatprep.subr.bf16.mxu0 %v11515_v60  ;;  %v4748_v28 = vld [vmem:[#allocation8 + $0xfb0] sm:$0xff]  ;;  %v4749_v56 = vld [vmem:[#allocation8 + $0xfb8] sm:$0xff] }
 0x7ad   :  { %v5267_v10 = vrot.slane %v5266_v58, 4 }
 0x7ae   :  { %5081 = vmatpush1.bf16.msra.mxu1 %v11496_v63  ;;  %v4708_v63 = vld [vmem:[#allocation8 + $0xe70] sm:$0xff] }
 0x7af   :  { %5082 = vmatprep.subr.bf16.mxu1 %v11505_v2  ;;  %5126 = vmatpush1.bf16.msra.mxu0 %v11514_v5  ;;  %v4705_v2 = vld [vmem:[#allocation8 + $0xe58] sm:$0xff]  ;;  %v11500_v18 = vcombine.low %v4704_v61, %v4708_v63 }
 0x7b0   :  { %5127 = vmatprep.subr.bf16.mxu0 %v11523_v8  ;;  %v4709_v5 = vld [vmem:[#allocation8 + $0xe78] sm:$0xff]  ;;  %v5258_v8 = vrot.slane %v5257_v21, 4 }
 0x7b1   :  { %v11502_v19 = vcombine.low %v4705_v2, %v4709_v5 }
 0x7b2   :  { %5083 = vmatpush1.bf16.msra.mxu1 %v11504_v11  ;;  %v11501_v11 = vcombine.high %v4704_v61, %v4708_v63  ;;  %v11543_v61 = vcombine.high %v4745_v55, %v4749_v56  ;;  %v4756_v63 = vld [vmem:[#allocation8 + $0xff0] sm:$0xff] }
 0x7b3   :  { %5084 = vmatprep.subr.bf16.mxu1 %v11513_v12  ;;  %5128 = vmatpush1.bf16.msra.mxu0 %v11522_v13  ;;  %v11503_v12 = vcombine.high %v4705_v2, %v4709_v5  ;;  %v4712_v13 = vld [vmem:[#allocation8 + $0xe90] sm:$0xff]  ;;  %v4753_v2 = vld [vmem:[#allocation8 + $0xfd8] sm:$0xff] }
 0x7b4   :  { %5129 = vmatprep.subr.bf16.mxu0 %v11531_v17  ;;  %v4717_v17 = vld [vmem:[#allocation8 + $0xeb8] sm:$0xff] }
 0x7b5   :  { %v11511_v24 = vcombine.high %v4713_v48, %v4717_v17  ;;  %v11510_v30 = vcombine.low %v4713_v48, %v4717_v17  ;;  %v4757_v5 = vld [vmem:[#allocation8 + $0xff8] sm:$0xff] }
 0x7b6   :  { %5085 = vmatpush1.bf16.msra.mxu1 %v11512_v20  ;;  %v5259_v20 = vadd.f32 %v5258_v8, %v5257_v21  ;;  %v11550_v17 = vcombine.low %v4753_v2, %v4757_v5 }
 0x7b7   :  { %5086 = vmatprep.subr.bf16.mxu1 %v11521_v22  ;;  %5130 = vmatpush1.bf16.msra.mxu0 %v11530_v23  ;;  %v5268_v22 = vadd.f32 %v5267_v10, %v5266_v58  ;;  %v11509_v23 = vcombine.high %v4712_v13, %v4716_v14 }
 0x7b8   :  { %5131 = vmatprep.subr.bf16.mxu0 %v11539_v26  ;;  %v4724_v26 = vld [vmem:[#allocation8 + $0xef0] sm:$0xff]  ;;  %v5260_v31 = vrot.slane %v5259_v20, 2 }
 0x7b9   :  { %v11516_v51 = vcombine.low %v4720_v25, %v4724_v26 }
 0x7ba   :  { %5087 = vmatpush1.bf16.msra.mxu1 %v11520_v32  ;;  %v4721_v32 = vld [vmem:[#allocation8 + $0xed8] sm:$0xff] }
 0x7bb   :  { %5088 = vmatprep.subr.bf16.mxu1 %v11529_v27  ;;  %5132 = vmatpush1.bf16.msra.mxu0 %v11538_v29  ;;  %v4725_v27 = vld [vmem:[#allocation8 + $0xef8] sm:$0xff]  ;;  %v11508_v29 = vcombine.low %v4712_v13, %v4716_v14  ;;  %v5328_v13 = vld [vmem:[#allocation8 + $0x1000] sm:$0xff] }
 0x7bc   :  { %5133 = vmatprep.subr.bf16.mxu0 %v11547_v40  ;;  %v5332_v14 = vld [vmem:[#allocation8 + $0x1020] sm:$0xff] }
 0x7be   :  { %5089 = vmatpush1.bf16.msra.mxu1 %v11528_v4  ;;  %v5269_v4 = vrot.slane %v5268_v22, 2 }
 0x7bf   :  { %5090 = vmatprep.subr.bf16.mxu1 %v11537_v33  ;;  %5134 = vmatpush1.bf16.msra.mxu0 %v11546_v39  ;;  %v11517_v33 = vcombine.high %v4720_v25, %v4724_v26  ;;  %v5261_v39 = vadd.f32 %v5260_v31, %v5259_v20  ;;  %v11554_v20 = vcombine.high %v5328_v13, %v5332_v14  ;;  %v5340_v25 = vld [vmem:[#allocation8 + $0x1060] sm:$0xff] }
 0x7c0   :  { %5201 = vmatprep.subr.bf16.mxu0 %v11495_v49  ;;  %v5270_v40 = vadd.f32 %v5269_v4, %v5268_v22  ;;  %v5329_v22 = vld [vmem:[#allocation8 + $0x1008] sm:$0xff]  ;;  %v5344_v31 = vld [vmem:[#allocation8 + $0x1080] sm:$0xff] }
 0x7c1   :  { %v5262_v3 = vrot.slane %v5261_v39, 1  ;;  %v5348_v4 = vld [vmem:[#allocation8 + $0x10a0] sm:$0xff] }
 0x7c2   :  { %5091 = vmatpush1.bf16.msra.mxu1 %v11536_v34  ;;  %v11519_v34 = vcombine.high %v4721_v32, %v4725_v27  ;;  %v5271_v50 = vrot.slane %v5270_v40, 1 }
 0x7c3   :  { %5092 = vmatprep.subr.bf16.mxu1 %v11545_v37  ;;  %v4733_v37 = vld [vmem:[#allocation8 + $0xf38] sm:$0xff]  ;;  %v5263_v58 = vadd.f32 %v5262_v3, %v5261_v39 }
 0x7c4   :  { %v11527_v16 = vcombine.high %v4729_v36, %v4733_v37  ;;  %v11526_v49 = vcombine.low %v4729_v36, %v4733_v37  ;;  %v5341_v36 = vld [vmem:[#allocation8 + $0x1068] sm:$0xff]  ;;  %v11570_v37 = vcombine.high %v5344_v31, %v5348_v4 }
 0x7c5   :  { %v5273_v8 = vmul.f32 0.25, %v5263_v58  ;;  %v5365_v58 = vld [vmem:[#allocation8 + $0x1128] sm:$0xff] }
 0x7c6   :  { %5093 = vmatpush1.bf16.msra.mxu1 %v11544_v38  ;;  %v11518_v38 = vcombine.low %v4721_v32, %v4725_v27  ;;  %v11553_v27 = vcombine.low %v5328_v13, %v5332_v14  ;;  %v5381_v13 = vld [vmem:[#allocation8 + $0x11a8] sm:$0xff] }
 0x7c7   :  { %5160 = vmatprep.subr.bf16.mxu1 %v11493_v45  ;;  %v4740_v45 = vld [vmem:[#allocation8 + $0xf70] sm:$0xff] }
 0x7c8   :  { %v11533_v52 = vcombine.high %v4736_v44, %v4740_v45 }
 0x87c   :  { %v4686_v57 = vpop.f32.mrb[20].mxu1 }
 0x87d   :  { %v4687_v59 = vadd.f32 %v13193_v15, %v4686_v57  ;;  %v12303_v60 = vpop.f32.mrb[21].mxu1  ;;  %v11532_v57 = vcombine.low %v4736_v44, %v4740_v45  ;;  %v5349_v44 = vld [vmem:[#allocation8 + $0x10a8] sm:$0xff] }
 0x87e   :  { %v4689_v62 = vpop.f32.mrb[22].mxu1  ;;  %v11541_v60 = vcombine.high %v4744_v54, %v4748_v28 }
 0x87f   :  { %v4692_v6 = vmax.f32 %v4687_v59, 0.0  ;;  %v12304_v7 = vpop.f32.mrb[23].mxu1  ;;  %v5272_v59 = vadd.f32 %v5271_v50, %v5270_v40  ;;  %v4752_v62 = vld [vmem:[#allocation8 + $0xfd0] sm:$0xff]  ;;  %v5353_v50 = vld [vmem:[#allocation8 + $0x10c8] sm:$0xff] }
 0x880   :  { %v11542_v7 = vcombine.low %v4745_v55, %v4749_v56  ;;  %v11548_v48 = vcombine.low %v4752_v62, %v4756_v63 }
 0x881   :  { %v13217_v43 = vpack.c.bf16 %v4692_v6, %v4692_v6  ;;  %v11540_v6 = vcombine.low %v4744_v54, %v4748_v28  ;;  %v5274_v10 = vmul.f32 0.25, %v5272_v59  ;;  %v5368_v54 = vld [vmem:[#allocation8 + $0x1140] sm:$0xff] }
 0x882   :  { %v5372_v28 = vld [vmem:[#allocation8 + $0x1160] sm:$0xff] }
 0x883   :  { %5111 = vmatmul.mubr.bf16.vlgmr.msra.gmra.mrb[0].mxu1 %v13217_v43  ;;  %5152 = vmatmul.mubr.bf16.vlgmr.msra.gmra.mrb[4].mxu0 %v13217_v43  ;;  %v11594_v59 = vcombine.high %v5368_v54, %v5372_v28 }
 0x884   :  { %5161 = vmatpush1.bf16.msra.mxu1 %v11492_v46  ;;  %5202 = vmatpush1.bf16.msra.mxu0 %v11494_v47  ;;  %v4741_v46 = vld [vmem:[#allocation8 + $0xf78] sm:$0xff]  ;;  %v11524_v47 = vcombine.low %v4728_v1, %v4732_v35  ;;  %v5337_v35 = vld [vmem:[#allocation8 + $0x1048] sm:$0xff] }
 0x885   :  { %5162 = vmatprep.subr.bf16.mxu1 %v11501_v11  ;;  %5203 = vmatprep.subr.bf16.mxu0 %v11503_v12  ;;  %v11535_v53 = vcombine.high %v4737_v9, %v4741_v46  ;;  %v11534_v21 = vcombine.low %v4737_v9, %v4741_v46  ;;  %v11549_v11 = vcombine.high %v4752_v62, %v4756_v63  ;;  %v5360_v9 = vld [vmem:[#allocation8 + $0x1100] sm:$0xff] }
 0x886   :  { %5192 = vmatprep.mubr.bf16.mxu1 %v12894_v42  ;;  %5233 = vmatprep.mubr.bf16.mxu0 %v12894_v42  ;;  %v11551_v12 = vcombine.high %v4753_v2, %v4757_v5  ;;  %v11564_v40 = vcombine.high %v5337_v35, %v5341_v36  ;;  %v5364_v46 = vld [vmem:[#allocation8 + $0x1120] sm:$0xff]  ;;  %v11593_v2 = vcombine.low %v5368_v54, %v5372_v28  ;;  %v5369_v5 = vld [vmem:[#allocation8 + $0x1148] sm:$0xff] }
 0x888   :  { %5163 = vmatpush1.bf16.msra.mxu1 %v11500_v18  ;;  %5204 = vmatpush1.bf16.msra.mxu0 %v11502_v19  ;;  %v5275_v18 = vpack.c.bf16 %v5273_v8, %v5273_v8  ;;  %v5276_v19 = vpack.c.bf16 %v5274_v10, %v5274_v10 }
 0x889   :  { %5164 = vmatprep.subr.bf16.mxu1 %v11509_v23  ;;  %5205 = vmatprep.subr.bf16.mxu0 %v11511_v24  ;;  %v5333_v23 = vld [vmem:[#allocation8 + $0x1028] sm:$0xff]  ;;  %v5336_v24 = vld [vmem:[#allocation8 + $0x1040] sm:$0xff] }
 0x88a   :  { %v5279_v26 = vunpack.c.l.b16 %v5275_v18  ;;  %v5280_v32 = vunpack.c.l.b16 %v5276_v19  ;;  %v11561_v1 = vcombine.low %v5336_v24, %v5340_v25  ;;  %v11555_v39 = vcombine.low %v5329_v22, %v5333_v23  ;;  %v5384_v18 = vld [vmem:[#allocation8 + $0x11c0] sm:$0xff] }
 0x88b   :  { %v5388_v19 = vld [vmem:[#allocation8 + $0x11e0] sm:$0xff] }
 0x88c   :  { %5165 = vmatpush1.bf16.msra.mxu1 %v11508_v29  ;;  %5206 = vmatpush1.bf16.msra.mxu0 %v11510_v30  ;;  %v11556_v29 = vcombine.high %v5329_v22, %v5333_v23  ;;  %v11562_v30 = vcombine.high %v5336_v24, %v5340_v25  ;;  %v11610_v22 = vcombine.high %v5384_v18, %v5388_v19  ;;  %v5389_v23 = vld [vmem:[#allocation8 + $0x11e8] sm:$0xff] }
 0x88d   :  { %5166 = vmatprep.subr.bf16.mxu1 %v11517_v33  ;;  %5207 = vmatprep.subr.bf16.mxu0 %v11519_v34  ;;  %v13226_v33 = vld [vmem:[#allocation5] sm:$0xff]   ;;  %v5281_v34 = vsel %vm207_vm2, %v5280_v32, %v5279_v26  ;;  %v11609_v24 = vcombine.low %v5384_v18, %v5388_v19 }
 0x88e   :  { %v5330_v32 = vld [vmem:[#allocation8 + $0x1010] sm:$0xff] }
 0x88f   :  { %v5362_v18 = vld [vmem:[#allocation8 + $0x1110] sm:$0xff] }
 0x890   :  { %5167 = vmatpush1.bf16.msra.mxu1 %v11516_v51  ;;  %5208 = vmatpush1.bf16.msra.mxu0 %v11518_v38  ;;  %v5352_v51 = vld [vmem:[#allocation8 + $0x10c0] sm:$0xff]  ;;  %v5366_v19 = vld [vmem:[#allocation8 + $0x1130] sm:$0xff] }
 0x891   :  { %5168 = vmatprep.subr.bf16.mxu1 %v11525_v41  ;;  %5209 = vmatprep.subr.bf16.mxu0 %v11527_v16  ;;  %v5356_v38 = vld [vmem:[#allocation8 + $0x10e0] sm:$0xff]  ;;  %v11569_v41 = vcombine.low %v5344_v31, %v5348_v4  ;;  %v5345_v16 = vld [vmem:[#allocation8 + $0x1088] sm:$0xff]  ;;  %v5335_v31 = vld [vmem:[#allocation8 + $0x1038] sm:$0xff] }
 0x892   :  { %v11578_v45 = vcombine.high %v5352_v51, %v5356_v38  ;;  %v11577_v3 = vcombine.low %v5352_v51, %v5356_v38  ;;  %v11571_v55 = vcombine.low %v5345_v16, %v5349_v44 }
 0x894   :  { %5169 = vmatpush1.bf16.msra.mxu1 %v11524_v47  ;;  %5210 = vmatpush1.bf16.msra.mxu0 %v11526_v49  ;;  %v11563_v47 = vcombine.low %v5337_v35, %v5341_v36  ;;  %v11572_v49 = vcombine.high %v5345_v16, %v5349_v44  ;;  %v5884_v35 = vld [vmem:[#allocation2 + $0x22] sm:$0x3]  ;;  %v5885_v36 = vld [vmem:[#allocation2 + $0x2a] sm:$0x3] }
 0x895   :  { %5170 = vmatprep.subr.bf16.mxu1 %v11533_v52  ;;  %5211 = vmatprep.subr.bf16.mxu0 %v11535_v53  ;;  %v5357_v52 = vld [vmem:[#allocation8 + $0x10e8] sm:$0xff]  ;;  %v11586_v53 = vcombine.high %v5360_v9, %v5364_v46  ;;  %v5888_v51 = vsel %vm174_vm1, %v5884_v35, 0.0  ;;  %v5889_v38 = vsel %vm174_vm1, %v5885_v36, 0.0 }
 0x896   :  { %v11580_v56 = vcombine.high %v5353_v50, %v5357_v52  ;;  %v11579_v62 = vcombine.low %v5353_v50, %v5357_v52  ;;  %v5890_v16 = vadd.f32 %v5889_v38, %v5888_v51  ;;  %v5343_v50 = vld [vmem:[#allocation8 + $0x1078] sm:$0xff]  ;;  %v5378_v51 = vld [vmem:[#allocation8 + $0x1190] sm:$0xff] }
 0x897   :  { %v5382_v38 = vld [vmem:[#allocation8 + $0x11b0] sm:$0xff] }
 0x898   :  { %5171 = vmatpush1.bf16.msra.mxu1 %v11532_v57  ;;  %5212 = vmatpush1.bf16.msra.mxu0 %v11534_v21  ;;  %v11585_v57 = vcombine.low %v5360_v9, %v5364_v46  ;;  %v5361_v21 = vld [vmem:[#allocation8 + $0x1108] sm:$0xff]  ;;  %v5338_v46 = vld [vmem:[#allocation8 + $0x1050] sm:$0xff]  ;;  %v5891_v54 = vrot.slane %v5890_v16, 4 }
 0x899   :  { %5172 = vmatprep.subr.bf16.mxu1 %v11541_v60  ;;  %5213 = vmatprep.subr.bf16.mxu0 %v11543_v61  ;;  %v5376_v60 = vld [vmem:[#allocation8 + $0x1180] sm:$0xff]  ;;  %v11588_v63 = vcombine.high %v5361_v21, %v5365_v58  ;;  %v11587_v8 = vcombine.low %v5361_v21, %v5365_v58  ;;  %v5346_v21 = vld [vmem:[#allocation8 + $0x1090] sm:$0xff] }
 0x89a   :  { %v5380_v61 = vld [vmem:[#allocation8 + $0x11a0] sm:$0xff]  ;;  %v5350_v58 = vld [vmem:[#allocation8 + $0x10b0] sm:$0xff] }
 0x89c   :  { %5173 = vmatpush1.bf16.msra.mxu1 %v11540_v6  ;;  %5214 = vmatpush1.bf16.msra.mxu0 %v11542_v7  ;;  %v5373_v6 = vld [vmem:[#allocation8 + $0x1168] sm:$0xff]  ;;  %v11602_v7 = vcombine.high %v5376_v60, %v5380_v61 }
 0x89d   :  { %5174 = vmatprep.subr.bf16.mxu1 %v11549_v11  ;;  %5215 = vmatprep.subr.bf16.mxu0 %v11551_v12  ;;  %v11596_v10 = vcombine.high %v5369_v5, %v5373_v6  ;;  %v11601_v11 = vcombine.low %v5376_v60, %v5380_v61  ;;  %v5377_v12 = vld [vmem:[#allocation8 + $0x1188] sm:$0xff]  ;;  %v11595_v14 = vcombine.low %v5369_v5, %v5373_v6  ;;  %v5351_v60 = vld [vmem:[#allocation8 + $0x10b8] sm:$0xff]  ;;  %v5354_v6 = vld [vmem:[#allocation8 + $0x10d0] sm:$0xff] }
 0x8a0   :  { %5175 = vmatpush1.bf16.msra.mxu1 %v11548_v48  ;;  %5216 = vmatpush1.bf16.msra.mxu0 %v11550_v17  ;;  %v11604_v48 = vcombine.high %v5377_v12, %v5381_v13  ;;  %v11603_v17 = vcombine.low %v5377_v12, %v5381_v13 }
 0x8a1   :  { %12305 = vmatprep.subr.bf16.mxu0 %v12892_v0  ;;  %5712 = vmatprep.subr.bf16.mxu1 %v11554_v20  ;;  %v5385_v20 = vld [vmem:[#allocation8 + $0x11c8] sm:$0xff] }
 0x8a2   :  { %v11611_v25 = vcombine.low %v5385_v20, %v5389_v23  ;;  %v11612_v26 = vcombine.high %v5385_v20, %v5389_v23  ;;  %v5363_v20 = vld [vmem:[#allocation8 + $0x1118] sm:$0xff] }
 0x8a3   :  { %5193 = vmatmul.mubr.bf16.vlgmr.msra.gmra.mrb[4].mxu1 %v13217_v43  ;;  %5234 = vmatmul.mubr.bf16.vlgmr.msra.gmra.mrb[8].mxu0 %v13217_v43  ;;  %v5282_v43 = vpack.c.b16 %v5281_v34, %v5281_v34 }
 0x8a4   :  { %12306 = vmatpush3.bf16.msra.mxu0 %v13226_v33  ;;  %12307 = vmatprep.mubr.msk.bf16.mxu0 %vm12893_vm0, %v12892_v0 }
 0x8a5   :  { %5753 = vmatprep.subr.bf16.mxu0 %v11556_v29  ;;  %5713 = vmatpush1.bf16.msra.mxu1 %v11553_v27  ;;  %v5334_v27 = vld [vmem:[#allocation8 + $0x1030] sm:$0xff]  ;;  %v5331_v29 = vld [vmem:[#allocation8 + $0x1018] sm:$0xff] }
 0x8a6   :  { %5714 = vmatprep.subr.bf16.mxu1 %v11562_v30  ;;  %5744 = vmatprep.mubr.bf16.mxu1 %v12894_v42  ;;  %v11558_v30 = vcombine.high %v5330_v32, %v5334_v27  ;;  %v11557_v4 = vcombine.low %v5330_v32, %v5334_v27  ;;  %v11559_v34 = vcombine.low %v5331_v29, %v5335_v31 }
 0x8a7   :  { %v11590_v32 = vcombine.high %v5362_v18, %v5366_v19 }
 0x8a9   :  { %5715 = vmatpush1.bf16.msra.mxu1 %v11561_v1  ;;  %v11560_v1 = vcombine.high %v5331_v29, %v5335_v31  ;;  %v5370_v29 = vld [vmem:[#allocation8 + $0x1150] sm:$0xff]  ;;  %v5371_v31 = vld [vmem:[#allocation8 + $0x1158] sm:$0xff] }
 0x8aa   :  { %5716 = vmatprep.subr.bf16.mxu1 %v11570_v37  ;;  %v5886_v37 = vld [vmem:[#allocation2 + $0x62] sm:$0x3] }
 0x8ab   :  { %12308 = vmatmul.mubr.msk.bf16.vlgmr.msra.gmra.mrb[24].mxu0 %vm216_vm3, %v5282_v43  ;;  %v5887_v43 = vld [vmem:[#allocation2 + $0x6a] sm:$0x3] }
 0x8ac   :  { %5754 = vmatpush1.bf16.msra.mxu0 %v11555_v39  ;;  %5785 = vmatprep.mubr.bf16.mxu0 %v12894_v42  ;;  %v5897_v39 = vsel %vm174_vm1, %v5886_v37, 0.0 }
 0x8ad   :  { %5755 = vmatprep.subr.bf16.mxu0 %v11564_v40  ;;  %5717 = vmatpush1.bf16.msra.mxu1 %v11569_v41  ;;  %v5898_v40 = vsel %vm174_vm1, %v5887_v43, 0.0 }
 0x8ae   :  { %5718 = vmatprep.subr.bf16.mxu1 %v11578_v45  ;;  %v5899_v44 = vadd.f32 %v5898_v40, %v5897_v39  ;;  %v5379_v39 = vld [vmem:[#allocation8 + $0x1198] sm:$0xff] }
 0x8af   :  { %v5383_v40 = vld [vmem:[#allocation8 + $0x11b8] sm:$0xff] }
 0x8b0   :  { %5756 = vmatpush1.bf16.msra.mxu0 %v11563_v47  ;;  %v5900_v28 = vrot.slane %v5899_v44, 4 }
 0x8b1   :  { %5757 = vmatprep.subr.bf16.mxu0 %v11572_v49  ;;  %5719 = vmatpush1.bf16.msra.mxu1 %v11577_v3  ;;  %v5342_v49 = vld [vmem:[#allocation8 + $0x1070] sm:$0xff]  ;;  %v5339_v3 = vld [vmem:[#allocation8 + $0x1058] sm:$0xff] }
 0x8b2   :  { %5720 = vmatprep.subr.bf16.mxu1 %v11586_v53  ;;  %v11567_v61 = vcombine.low %v5339_v3, %v5343_v50 }
 0x8b4   :  { %5758 = vmatpush1.bf16.msra.mxu0 %v11571_v55 }
 0x8b5   :  { %5759 = vmatprep.subr.bf16.mxu0 %v11580_v56  ;;  %5721 = vmatpush1.bf16.msra.mxu1 %v11585_v57  ;;  %v11566_v56 = vcombine.high %v5338_v46, %v5342_v49  ;;  %v11568_v57 = vcombine.high %v5339_v3, %v5343_v50  ;;  %v5387_v3 = vld [vmem:[#allocation8 + $0x11d8] sm:$0xff] }
 0x8b6   :  { %5722 = vmatprep.subr.bf16.mxu1 %v11594_v59  ;;  %v5347_v59 = vld [vmem:[#allocation8 + $0x1098] sm:$0xff] }
 0x8b7   :  { %v11576_v5 = vcombine.high %v5347_v59, %v5351_v60  ;;  %v11575_v12 = vcombine.low %v5347_v59, %v5351_v60  ;;  %v5391_v50 = vld [vmem:[#allocation8 + $0x11f8] sm:$0xff] }
 0x8b8   :  { %5760 = vmatpush1.bf16.msra.mxu0 %v11579_v62  ;;  %v5892_v62 = vadd.f32 %v5891_v54, %v5890_v16  ;;  %v11615_v60 = vcombine.low %v5387_v3, %v5391_v50 }
 0x8b9   :  { %5761 = vmatprep.subr.bf16.mxu0 %v11588_v63  ;;  %5723 = vmatpush1.bf16.msra.mxu1 %v11593_v2  ;;  %v5901_v63 = vadd.f32 %v5900_v28, %v5899_v44  ;;  %v11574_v2 = vcombine.high %v5346_v21, %v5350_v58 }
 0x8ba   :  { %5724 = vmatprep.subr.bf16.mxu1 %v11602_v7  ;;  %v5358_v7 = vld [vmem:[#allocation8 + $0x10f0] sm:$0xff]  ;;  %v5893_v13 = vrot.slane %v5892_v62, 2 }
 0x8bb   :  { %v11581_v23 = vcombine.low %v5354_v6, %v5358_v7 }
 0x8bc   :  { %5762 = vmatpush1.bf16.msra.mxu0 %v11587_v8  ;;  %v5355_v8 = vld [vmem:[#allocation8 + $0x10d8] sm:$0xff] }
 0x8bd   :  { %5763 = vmatprep.subr.bf16.mxu0 %v11596_v10  ;;  %5725 = vmatpush1.bf16.msra.mxu1 %v11601_v11  ;;  %v5359_v10 = vld [vmem:[#allocation8 + $0x10f8] sm:$0xff]  ;;  %v11573_v11 = vcombine.low %v5346_v21, %v5350_v58  ;;  %v5962_v21 = vld [vmem:[#allocation8 + $0x1208] sm:$0xff] }
 0x8be   :  { %5726 = vmatprep.subr.bf16.mxu1 %v11610_v22  ;;  %v5367_v22 = vld [vmem:[#allocation8 + $0x1138] sm:$0xff]  ;;  %v5966_v58 = vld [vmem:[#allocation8 + $0x1228] sm:$0xff] }
 0x8bf   :  { %v11592_v27 = vcombine.high %v5363_v20, %v5367_v22 }
 0x8c0   :  { %5764 = vmatpush1.bf16.msra.mxu0 %v11595_v14  ;;  %v5902_v14 = vrot.slane %v5901_v63, 2 }
 0x8c1   :  { %5765 = vmatprep.subr.bf16.mxu0 %v11604_v48  ;;  %5727 = vmatpush1.bf16.msra.mxu1 %v11609_v24  ;;  %v11582_v48 = vcombine.high %v5354_v6, %v5358_v7  ;;  %v11583_v24 = vcombine.low %v5355_v8, %v5359_v10  ;;  %v5974_v6 = vld [vmem:[#allocation8 + $0x1268] sm:$0xff] }
 0x8c2   :  { %5794 = vmatprep.subr.bf16.mxu1 %v11558_v30  ;;  %v5374_v30 = vld [vmem:[#allocation8 + $0x1170] sm:$0xff] }
 0x8c3   :  { %v11598_v37 = vcombine.high %v5370_v29, %v5374_v30 }
 0x8c4   :  { %5766 = vmatpush1.bf16.msra.mxu0 %v11603_v17  ;;  %v11584_v17 = vcombine.high %v5355_v8, %v5359_v10 }
 0x8c5   :  { %5767 = vmatprep.subr.bf16.mxu0 %v11612_v26  ;;  %v5903_v26 = vadd.f32 %v5902_v14, %v5901_v63  ;;  %v5961_v63 = vld [vmem:[#allocation8 + $0x1200] sm:$0xff]  ;;  %v5982_v14 = vld [vmem:[#allocation8 + $0x12a8] sm:$0xff] }
 0x8c7   :  { %v5904_v36 = vrot.slane %v5903_v26, 1 }
 0x8c8   :  { %5768 = vmatpush1.bf16.msra.mxu0 %v11611_v25  ;;  %v5894_v25 = vadd.f32 %v5893_v13, %v5892_v62  ;;  %v11621_v62 = vcombine.high %v5962_v21, %v5966_v58  ;;  %v5978_v13 = vld [vmem:[#allocation8 + $0x1288] sm:$0xff] }
 0x8c9   :  { %5835 = vmatprep.subr.bf16.mxu0 %v11560_v1  ;;  %v11591_v1 = vcombine.low %v5363_v20, %v5367_v22  ;;  %v11637_v20 = vcombine.high %v5978_v13, %v5982_v14 }
 0x8ca   :  { %v5895_v35 = vrot.slane %v5894_v25, 1 }
 0x8cc   :  { %v5896_v44 = vadd.f32 %v5895_v35, %v5894_v25  ;;  %v5985_v35 = vld [vmem:[#allocation8 + $0x12c0] sm:$0xff] }
 0x8ce   :  { %v5906_v54 = vmul.f32 0.25, %v5896_v44 }
 0x97e   :  { %v5320_v41 = vpop.f32.mrb[24].mxu0 }
 0x97f   :  { %v5321_v45 = vadd.f32 %v13193_v15, %v5320_v41  ;;  %v12309_v9 = vpop.f32.mrb[25].mxu0  ;;  %v11565_v15 = vcombine.low %v5338_v46, %v5342_v49  ;;  %v11597_v41 = vcombine.low %v5370_v29, %v5374_v30  ;;  %v11608_v46 = vcombine.high %v5379_v39, %v5383_v40  ;;  %v5390_v49 = vld [vmem:[#allocation8 + $0x11f0] sm:$0xff]  ;;  %v5994_v30 = vld [vmem:[#allocation8 + $0x1308] sm:$0xff] }
 0x980   :  { %v5323_v47 = vpop.f32.mrb[26].mxu0  ;;  %v11606_v9 = vcombine.high %v5378_v51, %v5382_v38 }
 0x981   :  { %v5326_v52 = vmax.f32 %v5321_v45, 0.0  ;;  %v12310_v53 = vpop.f32.mrb[27].mxu0  ;;  %v5905_v45 = vadd.f32 %v5904_v36, %v5903_v26  ;;  %v5386_v47 = vld [vmem:[#allocation8 + $0x11d0] sm:$0xff]  ;;  %v11636_v26 = vcombine.low %v5978_v13, %v5982_v14  ;;  %v5989_v36 = vld [vmem:[#allocation8 + $0x12e0] sm:$0xff] }
 0x982   :  { %v11607_v53 = vcombine.low %v5379_v39, %v5383_v40  ;;  %v11613_v59 = vcombine.low %v5386_v47, %v5390_v49  ;;  %v11643_v39 = vcombine.high %v5985_v35, %v5989_v36 }
 0x983   :  { %v13240_v55 = vpack.c.bf16 %v5326_v52, %v5326_v52  ;;  %v11605_v52 = vcombine.low %v5378_v51, %v5382_v38  ;;  %v5907_v28 = vmul.f32 0.25, %v5905_v45  ;;  %v6006_v51 = vld [vmem:[#allocation8 + $0x1368] sm:$0xff] }
 0x984   :  { %v6010_v45 = vld [vmem:[#allocation8 + $0x1388] sm:$0xff] }
 0x985   :  { %5745 = vmatmul.mubr.bf16.vlgmr.msra.gmra.mrb[0].mxu1 %v13240_v55  ;;  %5786 = vmatmul.mubr.bf16.vlgmr.msra.gmra.mrb[4].mxu0 %v13240_v55 }
 0x986   :  { %5795 = vmatpush1.bf16.msra.mxu1 %v11557_v4  ;;  %5836 = vmatpush1.bf16.msra.mxu0 %v11559_v34  ;;  %v5375_v4 = vld [vmem:[#allocation8 + $0x1178] sm:$0xff]  ;;  %v11589_v34 = vcombine.low %v5362_v18, %v5366_v19  ;;  %v5969_v18 = vld [vmem:[#allocation8 + $0x1240] sm:$0xff] }
 0x987   :  { %5796 = vmatprep.subr.bf16.mxu1 %v11566_v56  ;;  %5837 = vmatprep.subr.bf16.mxu0 %v11568_v57  ;;  %v11600_v43 = vcombine.high %v5371_v31, %v5375_v4  ;;  %v11599_v16 = vcombine.low %v5371_v31, %v5375_v4  ;;  %v11614_v56 = vcombine.high %v5386_v47, %v5390_v49  ;;  %v5973_v19 = vld [vmem:[#allocation8 + $0x1260] sm:$0xff]  ;;  %v5998_v31 = vld [vmem:[#allocation8 + $0x1328] sm:$0xff] }
 0x988   :  { %5826 = vmatprep.mubr.bf16.mxu1 %v12894_v42  ;;  %5867 = vmatprep.mubr.bf16.mxu0 %v12894_v42  ;;  %v11616_v57 = vcombine.high %v5387_v3, %v5391_v50  ;;  %v11627_v25 = vcombine.high %v5969_v18, %v5973_v19  ;;  %v11626_v4 = vcombine.low %v5969_v18, %v5973_v19  ;;  %v6001_v3 = vld [vmem:[#allocation8 + $0x1340] sm:$0xff]  ;;  %v6519_v19 = vld [vmem:[#allocation2 + $0x64] sm:$0x3] }
 0x989   :  { %v11652_v40 = vcombine.low %v5994_v30, %v5998_v31  ;;  %v6005_v50 = vld [vmem:[#allocation8 + $0x1360] sm:$0xff] }
 0x98a   :  { %5797 = vmatpush1.bf16.msra.mxu1 %v11565_v15  ;;  %5838 = vmatpush1.bf16.msra.mxu0 %v11567_v61  ;;  %v5908_v15 = vpack.c.bf16 %v5906_v54, %v5906_v54  ;;  %v5909_v61 = vpack.c.bf16 %v5907_v28, %v5907_v28  ;;  %v11659_v54 = vcombine.high %v6001_v3, %v6005_v50  ;;  %v6518_v18 = vld [vmem:[#allocation2 + $0x2c] sm:$0x3] }
 0x98b   :  { %5798 = vmatprep.subr.bf16.mxu1 %v11574_v2  ;;  %5839 = vmatprep.subr.bf16.mxu0 %v11576_v5  ;;  %v5965_v2 = vld [vmem:[#allocation8 + $0x1220] sm:$0xff]  ;;  %v5970_v5 = vld [vmem:[#allocation8 + $0x1248] sm:$0xff] }
 0x98c   :  { %v5912_v7 = vunpack.c.l.b16 %v5908_v15  ;;  %v5913_v8 = vunpack.c.l.b16 %v5909_v61  ;;  %v11619_v10 = vcombine.high %v5961_v63, %v5965_v2  ;;  %v6021_v15 = vld [vmem:[#allocation8 + $0x13e0] sm:$0xff]  ;;  %v6018_v61 = vld [vmem:[#allocation8 + $0x13c8] sm:$0xff] }
 0x98e   :  { %5799 = vmatpush1.bf16.msra.mxu1 %v11573_v11  ;;  %5840 = vmatpush1.bf16.msra.mxu0 %v11575_v12  ;;  %v11620_v11 = vcombine.low %v5962_v21, %v5966_v58  ;;  %v11629_v12 = vcombine.high %v5970_v5, %v5974_v6  ;;  %v11658_v21 = vcombine.low %v6001_v3, %v6005_v50 }
 0x98f   :  { %5800 = vmatprep.subr.bf16.mxu1 %v11582_v48  ;;  %5841 = vmatprep.subr.bf16.mxu0 %v11584_v17  ;;  %v5914_v48 = vsel %vm207_vm2, %v5913_v8, %v5912_v7  ;;  %v11628_v17 = vcombine.low %v5970_v5, %v5974_v6  ;;  %v5963_v7 = vld [vmem:[#allocation8 + $0x1210] sm:$0xff] }
 0x990   :  { %v5915_v22 = vpack.c.b16 %v5914_v48, %v5914_v48  ;;  %v5967_v8 = vld [vmem:[#allocation8 + $0x1230] sm:$0xff] }
 0x991   :  { %v11622_v13 = vcombine.low %v5963_v7, %v5967_v8 }
 0x992   :  { %5801 = vmatpush1.bf16.msra.mxu1 %v11581_v23  ;;  %5842 = vmatpush1.bf16.msra.mxu0 %v11583_v24  ;;  %v5990_v23 = vld [vmem:[#allocation8 + $0x12e8] sm:$0xff]  ;;  %v11618_v24 = vcombine.low %v5961_v63, %v5965_v2 }
 0x993   :  { %5802 = vmatprep.subr.bf16.mxu1 %v11590_v32  ;;  %5843 = vmatprep.subr.bf16.mxu0 %v11592_v27  ;;  %v5977_v32 = vld [vmem:[#allocation8 + $0x1280] sm:$0xff]  ;;  %v6022_v63 = vld [vmem:[#allocation8 + $0x13e8] sm:$0xff] }
 0x994   :  { %v5981_v27 = vld [vmem:[#allocation8 + $0x12a0] sm:$0xff]  ;;  %v11676_v5 = vcombine.low %v6018_v61, %v6022_v63  ;;  %v11677_v6 = vcombine.high %v6018_v61, %v6022_v63  ;;  %v5999_v61 = vld [vmem:[#allocation8 + $0x1330] sm:$0xff]  ;;  %v6000_v63 = vld [vmem:[#allocation8 + $0x1338] sm:$0xff] }
 0x995   :  { %v11634_v38 = vcombine.low %v5977_v32, %v5981_v27 }
 0x996   :  { %5803 = vmatpush1.bf16.msra.mxu1 %v11589_v34  ;;  %5844 = vmatpush1.bf16.msra.mxu0 %v11591_v1  ;;  %v11635_v34 = vcombine.high %v5977_v32, %v5981_v27  ;;  %v13260_v27 = vld [vmem:[#allocation7] ss:$0 sm:$0xff] }
 0x997   :  { %5804 = vmatprep.subr.bf16.mxu1 %v11598_v37  ;;  %5845 = vmatprep.subr.bf16.mxu0 %v11600_v43  ;;  %v11653_v37 = vcombine.high %v5994_v30, %v5998_v31  ;;  %v6002_v43 = vld [vmem:[#allocation8 + $0x1348] sm:$0xff]  ;;  %v5971_v31 = vld [vmem:[#allocation8 + $0x1250] sm:$0xff] }
 0x998   :  { %v11661_v44 = vcombine.high %v6002_v43, %v6006_v51  ;;  %v11660_v49 = vcombine.low %v6002_v43, %v6006_v51 }
 0x99a   :  { %5805 = vmatpush1.bf16.msra.mxu1 %v11597_v41  ;;  %5846 = vmatpush1.bf16.msra.mxu0 %v11599_v16  ;;  %v5993_v41 = vld [vmem:[#allocation8 + $0x1300] sm:$0xff] }
 0x99b   :  { %5806 = vmatprep.subr.bf16.mxu1 %v11606_v9  ;;  %5847 = vmatprep.subr.bf16.mxu0 %v11608_v46  ;;  %v5997_v16 = vld [vmem:[#allocation8 + $0x1320] sm:$0xff]  ;;  %v6014_v9 = vld [vmem:[#allocation8 + $0x13a8] sm:$0xff]  ;;  %v11642_v46 = vcombine.low %v5985_v35, %v5989_v36  ;;  %v5976_v35 = vld [vmem:[#allocation8 + $0x1278] sm:$0xff] }
 0x99c   :  { %v11651_v47 = vcombine.high %v5993_v41, %v5997_v16  ;;  %v11668_v28 = vcombine.low %v6010_v45, %v6014_v9 }
 0x99e   :  { %5807 = vmatpush1.bf16.msra.mxu1 %v11605_v52  ;;  %5848 = vmatpush1.bf16.msra.mxu0 %v11607_v53  ;;  %v11669_v52 = vcombine.high %v6010_v45, %v6014_v9  ;;  %v11650_v53 = vcombine.low %v5993_v41, %v5997_v16  ;;  %v5979_v41 = vld [vmem:[#allocation8 + $0x1290] sm:$0xff]  ;;  %v5984_v45 = vld [vmem:[#allocation8 + $0x12b8] sm:$0xff] }
 0x99f   :  { %5808 = vmatprep.subr.bf16.mxu1 %v11614_v56  ;;  %5849 = vmatprep.subr.bf16.mxu0 %v11616_v57  ;;  %v6009_v56 = vld [vmem:[#allocation8 + $0x1380] sm:$0xff]  ;;  %v5983_v16 = vld [vmem:[#allocation8 + $0x12b0] sm:$0xff] }
 0x9a0   :  { %v6013_v57 = vld [vmem:[#allocation8 + $0x13a0] sm:$0xff]  ;;  %v11639_v3 = vcombine.high %v5979_v41, %v5983_v16 }
 0x9a1   :  { %v11667_v58 = vcombine.high %v6009_v56, %v6013_v57 }
 0x9a2   :  { %5809 = vmatpush1.bf16.msra.mxu1 %v11613_v59  ;;  %5850 = vmatpush1.bf16.msra.mxu0 %v11615_v60  ;;  %v11666_v59 = vcombine.low %v6009_v56, %v6013_v57  ;;  %v6017_v60 = vld [vmem:[#allocation8 + $0x13c0] sm:$0xff]  ;;  %v11638_v56 = vcombine.low %v5979_v41, %v5983_v16 }
 0x9a3   :  { %12311 = vmatprep.subr.bf16.mxu1 %v12892_v0  ;;  %6386 = vmatprep.subr.bf16.mxu0 %v11621_v62  ;;  %v11675_v62 = vcombine.high %v6017_v60, %v6021_v15  ;;  %v11674_v2 = vcombine.low %v6017_v60, %v6021_v15  ;;  %v5995_v15 = vld [vmem:[#allocation8 + $0x1310] sm:$0xff]  ;;  %v6594_v16 = vld [vmem:[#allocation8 + $0x1400] sm:$0xff] }
 0x9a5   :  { %5827 = vmatmul.mubr.bf16.vlgmr.msra.gmra.mrb[4].mxu1 %v13240_v55  ;;  %5868 = vmatmul.mubr.bf16.vlgmr.msra.gmra.mrb[8].mxu0 %v13240_v55  ;;  %v5986_v55 = vld [vmem:[#allocation8 + $0x12c8] sm:$0xff] }
 0x9a6   :  { %12312 = vmatpush3.bf16.msra.mxu1 %v13226_v33  ;;  %12313 = vmatprep.mubr.msk.bf16.mxu1 %vm12893_vm0, %v12892_v0  ;;  %v11645_v29 = vcombine.high %v5986_v55, %v5990_v23  ;;  %v11644_v1 = vcombine.low %v5986_v55, %v5990_v23  ;;  %v6522_v55 = vsel %vm174_vm1, %v6518_v18, 0.0  ;;  %v6530_v23 = vsel %vm174_vm1, %v6519_v19, 0.0 }
 0x9a7   :  { %6345 = vmatprep.subr.bf16.mxu1 %v11619_v10  ;;  %6387 = vmatpush1.bf16.msra.mxu0 %v11620_v11  ;;  %v5964_v10 = vld [vmem:[#allocation8 + $0x1218] sm:$0xff]  ;;  %v11623_v11 = vcombine.high %v5963_v7, %v5967_v8  ;;  %v11655_v8 = vcombine.high %v5995_v15, %v5999_v61 }
 0x9a8   :  { %6388 = vmatprep.subr.bf16.mxu0 %v11629_v12  ;;  %6418 = vmatprep.mubr.bf16.mxu0 %v12894_v42  ;;  %v5968_v12 = vld [vmem:[#allocation8 + $0x1238] sm:$0xff] }
 0x9a9   :  { %v11624_v14 = vcombine.low %v5964_v10, %v5968_v12  ;;  %v11625_v48 = vcombine.high %v5964_v10, %v5968_v12  ;;  %v6007_v12 = vld [vmem:[#allocation8 + $0x1370] sm:$0xff] }
 0x9ab   :  { %6389 = vmatpush1.bf16.msra.mxu0 %v11628_v17  ;;  %v6517_v17 = vld [vmem:[#allocation2 + $0x24] sm:$0x3] }
 0x9ac   :  { %6390 = vmatprep.subr.bf16.mxu0 %v11637_v20  ;;  %v6520_v20 = vld [vmem:[#allocation2 + $0x6c] sm:$0x3] }
 0x9ad   :  { %12314 = vmatmul.mubr.msk.bf16.vlgmr.msra.gmra.mrb[24].mxu1 %vm216_vm3, %v5915_v22  ;;  %v6521_v22 = vsel %vm174_vm1, %v6517_v17, 0.0 }
 0x9ae   :  { %6346 = vmatpush1.bf16.msra.mxu1 %v11618_v24  ;;  %6377 = vmatprep.mubr.bf16.mxu1 %v12894_v42  ;;  %v6531_v24 = vsel %vm174_vm1, %v6520_v20, 0.0 }
 0x9af   :  { %6347 = vmatprep.subr.bf16.mxu1 %v11627_v25  ;;  %6391 = vmatpush1.bf16.msra.mxu0 %v11636_v26  ;;  %v6523_v26 = vadd.f32 %v6522_v55, %v6521_v22  ;;  %v6532_v32 = vadd.f32 %v6531_v24, %v6530_v23  ;;  %v6011_v55 = vld [vmem:[#allocation8 + $0x1390] sm:$0xff]  ;;  %v6012_v24 = vld [vmem:[#allocation8 + $0x1398] sm:$0xff] }
 0x9b0   :  { %6392 = vmatprep.subr.bf16.mxu0 %v11645_v29  ;;  %v6015_v23 = vld [vmem:[#allocation8 + $0x13b0] sm:$0xff] }
 0x9b1   :  { %v6524_v43 = vrot.slane %v6523_v26, 4  ;;  %v6533_v51 = vrot.slane %v6532_v32, 4 }
 0x9b2   :  { %6348 = vmatpush1.bf16.msra.mxu1 %v11626_v4 }
 0x9b3   :  { %6349 = vmatprep.subr.bf16.mxu1 %v11635_v34  ;;  %6393 = vmatpush1.bf16.msra.mxu0 %v11644_v1  ;;  %v5975_v34 = vld [vmem:[#allocation8 + $0x1270] sm:$0xff]  ;;  %v5972_v1 = vld [vmem:[#allocation8 + $0x1258] sm:$0xff] }
 0x9b4   :  { %6394 = vmatprep.subr.bf16.mxu0 %v11653_v37  ;;  %v11630_v9 = vcombine.low %v5971_v31, %v5975_v34 }
 0x9b6   :  { %6350 = vmatpush1.bf16.msra.mxu1 %v11634_v38 }
 0x9b7   :  { %6351 = vmatprep.subr.bf16.mxu1 %v11643_v39  ;;  %6395 = vmatpush1.bf16.msra.mxu0 %v11652_v40  ;;  %v11631_v39 = vcombine.high %v5971_v31, %v5975_v34  ;;  %v11633_v40 = vcombine.high %v5972_v1, %v5976_v35  ;;  %v11671_v31 = vcombine.high %v6011_v55, %v6015_v23  ;;  %v6019_v34 = vld [vmem:[#allocation8 + $0x13d0] sm:$0xff] }
 0x9b8   :  { %6396 = vmatprep.subr.bf16.mxu0 %v11661_v44  ;;  %v5980_v44 = vld [vmem:[#allocation8 + $0x1298] sm:$0xff] }
 0x9b9   :  { %v11641_v50 = vcombine.high %v5980_v44, %v5984_v45  ;;  %v11640_v57 = vcombine.low %v5980_v44, %v5984_v45  ;;  %v6598_v44 = vld [vmem:[#allocation8 + $0x1420] sm:$0xff] }
 0x9ba   :  { %6352 = vmatpush1.bf16.msra.mxu1 %v11642_v46  ;;  %v11632_v46 = vcombine.low %v5972_v1, %v5976_v35  ;;  %v6023_v1 = vld [vmem:[#allocation8 + $0x13f0] sm:$0xff]  ;;  %v6020_v35 = vld [vmem:[#allocation8 + $0x13d8] sm:$0xff] }
 0x9bb   :  { %6353 = vmatprep.subr.bf16.mxu1 %v11651_v47  ;;  %6397 = vmatpush1.bf16.msra.mxu0 %v11660_v49  ;;  %v6525_v47 = vadd.f32 %v6524_v43, %v6523_v26  ;;  %v6534_v49 = vadd.f32 %v6533_v51, %v6532_v32  ;;  %v11678_v45 = vcombine.low %v6019_v34, %v6023_v1 }
 0x9bc   :  { %6398 = vmatprep.subr.bf16.mxu0 %v11669_v52  ;;  %v5987_v52 = vld [vmem:[#allocation8 + $0x12d0] sm:$0xff] }
 0x9be   :  { %6354 = vmatpush1.bf16.msra.mxu1 %v11650_v53  ;;  %v5991_v53 = vld [vmem:[#allocation8 + $0x12f0] sm:$0xff] }
 0x9bf   :  { %6355 = vmatprep.subr.bf16.mxu1 %v11659_v54  ;;  %6399 = vmatpush1.bf16.msra.mxu0 %v11668_v28  ;;  %v5988_v54 = vld [vmem:[#allocation8 + $0x12d8] sm:$0xff] }
 0x9c0   :  { %6400 = vmatprep.subr.bf16.mxu0 %v11677_v6  ;;  %v5992_v28 = vld [vmem:[#allocation8 + $0x12f8] sm:$0xff] }
 0x9c1   :  { %v11649_v60 = vcombine.high %v5988_v54, %v5992_v28 }
 0x9c2   :  { %6356 = vmatpush1.bf16.msra.mxu1 %v11658_v21  ;;  %v6526_v21 = vrot.slane %v6525_v47, 2 }
 0x9c3   :  { %6357 = vmatprep.subr.bf16.mxu1 %v11667_v58  ;;  %6401 = vmatpush1.bf16.msra.mxu0 %v11676_v5  ;;  %v6535_v58 = vrot.slane %v6534_v49, 2  ;;  %v11648_v5 = vcombine.low %v5988_v54, %v5992_v28 }
 0x9c4   :  { %6468 = vmatprep.subr.bf16.mxu0 %v11625_v48  ;;  %v6527_v6 = vadd.f32 %v6526_v21, %v6525_v47  ;;  %v11654_v48 = vcombine.low %v5995_v15, %v5999_v61  ;;  %v6603_v61 = vld [vmem:[#allocation8 + $0x1448] sm:$0xff] }
 0x9c5   :  { %v6536_v7 = vadd.f32 %v6535_v58, %v6534_v49  ;;  %v11684_v49 = vcombine.high %v6594_v16, %v6598_v44  ;;  %v6610_v58 = vld [vmem:[#allocation8 + $0x1480] sm:$0xff] }
 0x9c6   :  { %6358 = vmatpush1.bf16.msra.mxu1 %v11666_v59  ;;  %v11647_v59 = vcombine.high %v5987_v52, %v5991_v53  ;;  %v6528_v18 = vrot.slane %v6527_v6, 1 }
 0x9c7   :  { %6359 = vmatprep.subr.bf16.mxu1 %v11675_v62  ;;  %v5996_v62 = vld [vmem:[#allocation8 + $0x1318] sm:$0xff]  ;;  %v6537_v19 = vrot.slane %v6536_v7, 1 }
 0x9c8   :  { %v11657_v10 = vcombine.high %v5996_v62, %v6000_v63  ;;  %v11656_v17 = vcombine.low %v5996_v62, %v6000_v63  ;;  %v6607_v62 = vld [vmem:[#allocation8 + $0x1468] sm:$0xff] }
 0x9ca   :  { %6360 = vmatpush1.bf16.msra.mxu1 %v11674_v2  ;;  %v11646_v2 = vcombine.low %v5987_v52, %v5991_v53  ;;  %v6602_v52 = vld [vmem:[#allocation8 + $0x1440] sm:$0xff] }
 0x9cb   :  { %6427 = vmatprep.subr.bf16.mxu1 %v11623_v11  ;;  %v6003_v11 = vld [vmem:[#allocation8 + $0x1350] sm:$0xff]  ;;  %v6606_v53 = vld [vmem:[#allocation8 + $0x1460] sm:$0xff] }
 0x9cc   :  { %v11663_v20 = vcombine.high %v6003_v11, %v6007_v12  ;;  %v11662_v26 = vcombine.low %v6003_v11, %v6007_v12  ;;  %v11692_v21 = vcombine.high %v6602_v52, %v6606_v53  ;;  %v11691_v15 = vcombine.low %v6602_v52, %v6606_v53  ;;  %v6626_v12 = vld [vmem:[#allocation8 + $0x1500] sm:$0xff] }
 0xa80   :  { %v5953_v25 = vpop.f32.mrb[24].mxu1 }
 0xa81   :  { %v5954_v29 = vadd.f32 %v13260_v27, %v5953_v25  ;;  %v12315_v30 = vpop.f32.mrb[25].mxu1  ;;  %v6016_v25 = vld [vmem:[#allocation8 + $0x13b8] sm:$0xff] }
 0xa82   :  { %v5956_v4 = vpop.f32.mrb[26].mxu1  ;;  %v6538_v30 = vadd.f32 %v6537_v19, %v6536_v7  ;;  %v11672_v43 = vcombine.low %v6012_v24, %v6016_v25  ;;  %v11694_v7 = vcombine.high %v6603_v61, %v6607_v62  ;;  %v6623_v19 = vld [vmem:[#allocation8 + $0x14e8] sm:$0xff] }
 0xa83   :  { %v5959_v36 = vmax.f32 %v5954_v29, 0.0  ;;  %v12316_v37 = vpop.f32.mrb[27].mxu1  ;;  %v6529_v29 = vadd.f32 %v6528_v18, %v6527_v6  ;;  %v11673_v4 = vcombine.high %v6012_v24, %v6016_v25  ;;  %v6619_v18 = vld [vmem:[#allocation8 + $0x14c8] sm:$0xff] }
 0xa84   :  { %v11670_v37 = vcombine.low %v6011_v55, %v6015_v23  ;;  %v6638_v55 = vld [vmem:[#allocation8 + $0x1560] sm:$0xff]  ;;  %v11710_v24 = vcombine.high %v6619_v18, %v6623_v19 }
 0xa85   :  { %v13263_v38 = vpack.c.bf16 %v5959_v36, %v5959_v36  ;;  %v6024_v36 = vld [vmem:[#allocation8 + $0x13f8] sm:$0xff]  ;;  %v6539_v51 = vmul.f32 0.25, %v6529_v29 }
 0xa86   :  { %v11681_v41 = vcombine.high %v6020_v35, %v6024_v36 }
 0xa87   :  { %6378 = vmatmul.mubr.bf16.vlgmr.msra.gmra.mrb[0].mxu1 %v13263_v38  ;;  %6419 = vmatmul.mubr.bf16.vlgmr.msra.gmra.mrb[4].mxu0 %v13263_v38 }
 0xa88   :  { %6428 = vmatpush1.bf16.msra.mxu1 %v11622_v13  ;;  %6469 = vmatpush1.bf16.msra.mxu0 %v11624_v14  ;;  %v6004_v13 = vld [vmem:[#allocation8 + $0x1358] sm:$0xff] }
 0xa89   :  { %6429 = vmatprep.subr.bf16.mxu1 %v11631_v39  ;;  %6470 = vmatprep.subr.bf16.mxu0 %v11633_v40  ;;  %v6008_v14 = vld [vmem:[#allocation8 + $0x1378] sm:$0xff]  ;;  %v6540_v39 = vmul.f32 0.25, %v6538_v30  ;;  %v11679_v40 = vcombine.high %v6019_v34, %v6023_v1  ;;  %v6642_v30 = vld [vmem:[#allocation8 + $0x1580] sm:$0xff] }
 0xa8a   :  { %6459 = vmatprep.mubr.bf16.mxu1 %v12894_v42  ;;  %6500 = vmatprep.mubr.bf16.mxu0 %v12894_v42  ;;  %v11665_v22 = vcombine.high %v6004_v13, %v6008_v14  ;;  %v11664_v32 = vcombine.low %v6004_v13, %v6008_v14  ;;  %v6630_v13 = vld [vmem:[#allocation8 + $0x1520] sm:$0xff]  ;;  %v11693_v14 = vcombine.low %v6603_v61, %v6607_v62  ;;  %v7152_v62 = vld [vmem:[#allocation2 + $0x66] sm:$0x3] }
 0xa8b   :  { %v6542_v47 = vpack.c.bf16 %v6540_v39, %v6540_v39  ;;  %v11715_v25 = vcombine.low %v6626_v12, %v6630_v13  ;;  %v7151_v61 = vld [vmem:[#allocation2 + $0x2e] sm:$0x3] }
 0xa8c   :  { %6430 = vmatpush1.bf16.msra.mxu1 %v11630_v9  ;;  %6471 = vmatpush1.bf16.msra.mxu0 %v11632_v46  ;;  %v11680_v9 = vcombine.low %v6020_v35, %v6024_v36  ;;  %v6541_v46 = vpack.c.bf16 %v6539_v51, %v6539_v51  ;;  %v6635_v35 = vld [vmem:[#allocation8 + $0x1548] sm:$0xff] }
 0xa8d   :  { %6431 = vmatprep.subr.bf16.mxu1 %v11639_v3  ;;  %6472 = vmatprep.subr.bf16.mxu0 %v11641_v50  ;;  %v6595_v3 = vld [vmem:[#allocation8 + $0x1408] sm:$0xff]  ;;  %v6546_v28 = vunpack.c.l.b16 %v6542_v47 }
 0xa8e   :  { %v6599_v50 = vld [vmem:[#allocation8 + $0x1428] sm:$0xff]  ;;  %v6545_v54 = vunpack.c.l.b16 %v6541_v46  ;;  %v6654_v46 = vld [vmem:[#allocation8 + $0x15e0] sm:$0xff] }
 0xa8f   :  { %v11685_v6 = vcombine.low %v6595_v3, %v6599_v50  ;;  %v6639_v36 = vld [vmem:[#allocation8 + $0x1568] sm:$0xff] }
 0xa90   :  { %6432 = vmatpush1.bf16.msra.mxu1 %v11638_v56  ;;  %6473 = vmatpush1.bf16.msra.mxu0 %v11640_v57  ;;  %v11683_v56 = vcombine.low %v6594_v16, %v6598_v44  ;;  %v11686_v57 = vcombine.high %v6595_v3, %v6599_v50  ;;  %v11726_v51 = vcombine.high %v6635_v35, %v6639_v36  ;;  %v6651_v47 = vld [vmem:[#allocation8 + $0x15c8] sm:$0xff] }
 0xa91   :  { %6433 = vmatprep.subr.bf16.mxu1 %v11647_v59  ;;  %6474 = vmatprep.subr.bf16.mxu0 %v11649_v60  ;;  %v6614_v59 = vld [vmem:[#allocation8 + $0x14a0] sm:$0xff]  ;;  %v6547_v60 = vsel %vm207_vm2, %v6546_v28, %v6545_v54  ;;  %v11725_v16 = vcombine.low %v6635_v35, %v6639_v36  ;;  %v6655_v3 = vld [vmem:[#allocation8 + $0x15e8] sm:$0xff]  ;;  %v6596_v54 = vld [vmem:[#allocation8 + $0x1410] sm:$0xff] }
 0xa92   :  { %v11700_v63 = vcombine.high %v6610_v58, %v6614_v59  ;;  %v11741_v52 = vcombine.low %v6651_v47, %v6655_v3  ;;  %v11742_v53 = vcombine.high %v6651_v47, %v6655_v3  ;;  %v6600_v28 = vld [vmem:[#allocation8 + $0x1430] sm:$0xff]  ;;  %v6629_v47 = vld [vmem:[#allocation8 + $0x1518] sm:$0xff] }
 0xa93   :  { %v6620_v36 = vld [vmem:[#allocation8 + $0x14d0] sm:$0xff] }
 0xa94   :  { %6434 = vmatpush1.bf16.msra.mxu1 %v11646_v2  ;;  %6475 = vmatpush1.bf16.msra.mxu0 %v11648_v5  ;;  %v6548_v2 = vpack.c.b16 %v6547_v60, %v6547_v60  ;;  %v6622_v5 = vld [vmem:[#allocation8 + $0x14e0] sm:$0xff] }
 0xa95   :  { %6435 = vmatprep.subr.bf16.mxu1 %v11655_v8  ;;  %6476 = vmatprep.subr.bf16.mxu0 %v11657_v10  ;;  %v6611_v8 = vld [vmem:[#allocation8 + $0x1488] sm:$0xff] }
 0xa96   :  { %v6615_v10 = vld [vmem:[#allocation8 + $0x14a8] sm:$0xff] }
 0xa97   :  { %v11701_v23 = vcombine.low %v6611_v8, %v6615_v10 }
 0xa98   :  { %6436 = vmatpush1.bf16.msra.mxu1 %v11654_v48  ;;  %6477 = vmatpush1.bf16.msra.mxu0 %v11656_v17  ;;  %v11702_v48 = vcombine.high %v6611_v8, %v6615_v10 }
 0xa99   :  { %6437 = vmatprep.subr.bf16.mxu1 %v11663_v20  ;;  %6478 = vmatprep.subr.bf16.mxu0 %v11665_v22  ;;  %v11716_v20 = vcombine.high %v6626_v12, %v6630_v13  ;;  %v6634_v22 = vld [vmem:[#allocation8 + $0x1540] sm:$0xff]  ;;  %v6604_v12 = vld [vmem:[#allocation8 + $0x1450] sm:$0xff] }
 0xa9a   :  { %v11724_v29 = vcombine.high %v6634_v22, %v6638_v55  ;;  %v11723_v1 = vcombine.low %v6634_v22, %v6638_v55 }
 0xa9c   :  { %6438 = vmatpush1.bf16.msra.mxu1 %v11662_v26  ;;  %6479 = vmatpush1.bf16.msra.mxu0 %v11664_v32  ;;  %v6627_v26 = vld [vmem:[#allocation8 + $0x1508] sm:$0xff] }
 0xa9d   :  { %6439 = vmatprep.subr.bf16.mxu1 %v11671_v31  ;;  %6480 = vmatprep.subr.bf16.mxu0 %v11673_v4  ;;  %v6631_v32 = vld [vmem:[#allocation8 + $0x1528] sm:$0xff]  ;;  %v6646_v31 = vld [vmem:[#allocation8 + $0x15a0] sm:$0xff]  ;;  %v11709_v4 = vcombine.low %v6619_v18, %v6623_v19 }
 0xa9e   :  { %v11718_v34 = vcombine.high %v6627_v26, %v6631_v32  ;;  %v11731_v39 = vcombine.low %v6642_v30, %v6646_v31 }
 0xaa0   :  { %6440 = vmatpush1.bf16.msra.mxu1 %v11670_v37  ;;  %6481 = vmatpush1.bf16.msra.mxu0 %v11672_v43  ;;  %v11732_v37 = vcombine.high %v6642_v30, %v6646_v31  ;;  %v11717_v43 = vcombine.low %v6627_v26, %v6631_v32  ;;  %v6616_v26 = vld [vmem:[#allocation8 + $0x14b0] sm:$0xff]  ;;  %v6613_v32 = vld [vmem:[#allocation8 + $0x1498] sm:$0xff] }
 0xaa1   :  { %6441 = vmatprep.subr.bf16.mxu1 %v11679_v40  ;;  %6482 = vmatprep.subr.bf16.mxu0 %v11681_v41  ;;  %v6643_v40 = vld [vmem:[#allocation8 + $0x1588] sm:$0xff] }
 0xaa2   :  { %v6647_v41 = vld [vmem:[#allocation8 + $0x15a8] sm:$0xff] }
 0xaa3   :  { %v11734_v44 = vcombine.high %v6643_v40, %v6647_v41 }
 0xaa4   :  { %6442 = vmatpush1.bf16.msra.mxu1 %v11678_v45  ;;  %6483 = vmatpush1.bf16.msra.mxu0 %v11680_v9  ;;  %v11733_v45 = vcombine.low %v6643_v40, %v6647_v41  ;;  %v6650_v9 = vld [vmem:[#allocation8 + $0x15c0] sm:$0xff] }
 0xaa5   :  { %12317 = vmatprep.subr.bf16.mxu0 %v12892_v0  ;;  %6978 = vmatprep.subr.bf16.mxu1 %v11684_v49  ;;  %v11740_v49 = vcombine.high %v6650_v9, %v6654_v46  ;;  %v11739_v50 = vcombine.low %v6650_v9, %v6654_v46  ;;  %v6628_v9 = vld [vmem:[#allocation8 + $0x1510] sm:$0xff] }
 0xaa6   :  { %v6632_v46 = vld [vmem:[#allocation8 + $0x1530] sm:$0xff] }
 0xaa7   :  { %6460 = vmatmul.mubr.bf16.vlgmr.msra.gmra.mrb[4].mxu1 %v13263_v38  ;;  %6501 = vmatmul.mubr.bf16.vlgmr.msra.gmra.mrb[8].mxu0 %v13263_v38  ;;  %v6618_v38 = vld [vmem:[#allocation8 + $0x14c0] sm:$0xff] }
 0xaa8   :  { %12318 = vmatpush3.bf16.msra.mxu0 %v13226_v33  ;;  %12319 = vmatprep.mubr.msk.bf16.mxu0 %vm12893_vm0, %v12892_v0  ;;  %v11699_v33 = vcombine.low %v6610_v58, %v6614_v59  ;;  %v11708_v11 = vcombine.high %v6618_v38, %v6622_v5  ;;  %v11707_v17 = vcombine.low %v6618_v38, %v6622_v5  ;;  %v7155_v38 = vsel %vm174_vm1, %v7151_v61, 0.0 }
 0xaa9   :  { %7019 = vmatprep.subr.bf16.mxu0 %v11686_v57  ;;  %6979 = vmatpush1.bf16.msra.mxu1 %v11683_v56  ;;  %v6597_v56 = vld [vmem:[#allocation8 + $0x1418] sm:$0xff]  ;;  %v11688_v57 = vcombine.high %v6596_v54, %v6600_v28  ;;  %v11687_v58 = vcombine.low %v6596_v54, %v6600_v28  ;;  %v7163_v5 = vsel %vm174_vm1, %v7152_v62, 0.0  ;;  %v11720_v54 = vcombine.high %v6628_v9, %v6632_v46 }
 0xaaa   :  { %6980 = vmatprep.subr.bf16.mxu1 %v11692_v21  ;;  %7010 = vmatprep.mubr.bf16.mxu1 %v12894_v42  ;;  %v6601_v21 = vld [vmem:[#allocation8 + $0x1438] sm:$0xff] }
 0xaab   :  { %v11689_v59 = vcombine.low %v6597_v56, %v6601_v21  ;;  %v11690_v60 = vcombine.high %v6597_v56, %v6601_v21  ;;  %v6636_v56 = vld [vmem:[#allocation8 + $0x1550] sm:$0xff]  ;;  %v6637_v21 = vld [vmem:[#allocation8 + $0x1558] sm:$0xff] }
 0xaad   :  { %6981 = vmatpush1.bf16.msra.mxu1 %v11691_v15  ;;  %v7150_v15 = vld [vmem:[#allocation2 + $0x26] sm:$0x3] }
 0xaae   :  { %6982 = vmatprep.subr.bf16.mxu1 %v11700_v63  ;;  %v7153_v63 = vld [vmem:[#allocation2 + $0x6e] sm:$0x3] }
 0xaaf   :  { %12320 = vmatmul.mubr.msk.bf16.vlgmr.msra.gmra.mrb[28].mxu0 %vm216_vm3, %v6548_v2  ;;  %v7154_v2 = vsel %vm174_vm1, %v7150_v15, 0.0 }
 0xab0   :  { %7020 = vmatpush1.bf16.msra.mxu0 %v11685_v6  ;;  %7051 = vmatprep.mubr.bf16.mxu0 %v12894_v42  ;;  %v7164_v6 = vsel %vm174_vm1, %v7153_v63, 0.0 }
 0xab1   :  { %7021 = vmatprep.subr.bf16.mxu0 %v11694_v7  ;;  %6983 = vmatpush1.bf16.msra.mxu1 %v11699_v33  ;;  %v7156_v33 = vadd.f32 %v7155_v38, %v7154_v2  ;;  %v7165_v8 = vadd.f32 %v7164_v6, %v7163_v5  ;;  %v6644_v2 = vld [vmem:[#allocation8 + $0x1590] sm:$0xff]  ;;  %v6645_v5 = vld [vmem:[#allocation8 + $0x1598] sm:$0xff] }
 0xab2   :  { %6984 = vmatprep.subr.bf16.mxu1 %v11708_v11  ;;  %v6648_v38 = vld [vmem:[#allocation8 + $0x15b0] sm:$0xff]  ;;  %v6649_v6 = vld [vmem:[#allocation8 + $0x15b8] sm:$0xff] }
 0xab3   :  { %v7166_v22 = vrot.slane %v7165_v8, 4 }
 0xab4   :  { %7022 = vmatpush1.bf16.msra.mxu0 %v11693_v14  ;;  %v6608_v14 = vld [vmem:[#allocation8 + $0x1470] sm:$0xff] }
 0xab5   :  { %7023 = vmatprep.subr.bf16.mxu0 %v11702_v48  ;;  %6985 = vmatpush1.bf16.msra.mxu1 %v11707_v17  ;;  %v6605_v48 = vld [vmem:[#allocation8 + $0x1458] sm:$0xff]  ;;  %v11695_v30 = vcombine.low %v6604_v12, %v6608_v14 }
 0xab6   :  { %6986 = vmatprep.subr.bf16.mxu1 %v11716_v20  ;;  %v6609_v17 = vld [vmem:[#allocation8 + $0x1478] sm:$0xff]  ;;  %v7157_v20 = vrot.slane %v7156_v33, 4 }
 0xab7   :  { %v11697_v31 = vcombine.low %v6605_v48, %v6609_v17 }
 0xab8   :  { %7024 = vmatpush1.bf16.msra.mxu0 %v11701_v23  ;;  %v11696_v23 = vcombine.high %v6604_v12, %v6608_v14  ;;  %v11738_v12 = vcombine.high %v6645_v5, %v6649_v6  ;;  %v6656_v14 = vld [vmem:[#allocation8 + $0x15f0] sm:$0xff] }
 0xab9   :  { %7025 = vmatprep.subr.bf16.mxu0 %v11710_v24  ;;  %6987 = vmatpush1.bf16.msra.mxu1 %v11715_v25  ;;  %v11698_v24 = vcombine.high %v6605_v48, %v6609_v17  ;;  %v6612_v25 = vld [vmem:[#allocation8 + $0x1490] sm:$0xff]  ;;  %v6653_v48 = vld [vmem:[#allocation8 + $0x15d8] sm:$0xff] }
 0xaba   :  { %6988 = vmatprep.subr.bf16.mxu1 %v11724_v29  ;;  %v6617_v29 = vld [vmem:[#allocation8 + $0x14b8] sm:$0xff] }
 0xabb   :  { %v11706_v35 = vcombine.high %v6613_v32, %v6617_v29  ;;  %v11705_v40 = vcombine.low %v6613_v32, %v6617_v29  ;;  %v6657_v17 = vld [vmem:[#allocation8 + $0x15f8] sm:$0xff] }
 0xabc   :  { %7026 = vmatpush1.bf16.msra.mxu0 %v11709_v4  ;;  %v7158_v4 = vadd.f32 %v7157_v20, %v7156_v33  ;;  %v11745_v29 = vcombine.low %v6653_v48, %v6657_v17 }
 0xabd   :  { %7027 = vmatprep.subr.bf16.mxu0 %v11718_v34  ;;  %6989 = vmatpush1.bf16.msra.mxu1 %v11723_v1  ;;  %v7167_v34 = vadd.f32 %v7166_v22, %v7165_v8  ;;  %v11704_v1 = vcombine.high %v6612_v25, %v6616_v26 }
 0xabe   :  { %6990 = vmatprep.subr.bf16.mxu1 %v11732_v37  ;;  %v6624_v37 = vld [vmem:[#allocation8 + $0x14f0] sm:$0xff]  ;;  %v7159_v41 = vrot.slane %v7158_v4, 2 }
 0xabf   :  { %v11711_v3 = vcombine.low %v6620_v36, %v6624_v37 }
 0xac0   :  { %7028 = vmatpush1.bf16.msra.mxu0 %v11717_v43  ;;  %v6621_v43 = vld [vmem:[#allocation8 + $0x14d8] sm:$0xff] }
 0xac1   :  { %7029 = vmatprep.subr.bf16.mxu0 %v11726_v51  ;;  %6991 = vmatpush1.bf16.msra.mxu1 %v11731_v39  ;;  %v6625_v51 = vld [vmem:[#allocation8 + $0x14f8] sm:$0xff]  ;;  %v11703_v39 = vcombine.low %v6612_v25, %v6616_v26  ;;  %v7228_v25 = vld [vmem:[#allocation8 + $0x1608] sm:$0xff] }
 0xac2   :  { %6992 = vmatprep.subr.bf16.mxu1 %v11740_v49  ;;  %v6633_v49 = vld [vmem:[#allocation8 + $0x1538] sm:$0xff]  ;;  %v7232_v26 = vld [vmem:[#allocation8 + $0x1628] sm:$0xff] }
 0xac3   :  { %v11722_v28 = vcombine.high %v6629_v47, %v6633_v49 }
 0xac4   :  { %7030 = vmatpush1.bf16.msra.mxu0 %v11725_v16  ;;  %v7168_v16 = vrot.slane %v7167_v34, 2 }
 0xac5   :  { %7031 = vmatprep.subr.bf16.mxu0 %v11734_v44  ;;  %6993 = vmatpush1.bf16.msra.mxu1 %v11739_v50  ;;  %v11712_v44 = vcombine.high %v6620_v36, %v6624_v37  ;;  %v11713_v50 = vcombine.low %v6621_v43, %v6625_v51  ;;  %v7240_v36 = vld [vmem:[#allocation8 + $0x1668] sm:$0xff] }
 0xac6   :  { %7060 = vmatprep.subr.bf16.mxu1 %v11688_v57  ;;  %v6640_v57 = vld [vmem:[#allocation8 + $0x1570] sm:$0xff] }
 0xac7   :  { %v11728_v62 = vcombine.high %v6636_v56, %v6640_v57 }
 0xac8   :  { %7032 = vmatpush1.bf16.msra.mxu0 %v11733_v45  ;;  %v11714_v45 = vcombine.high %v6621_v43, %v6625_v51 }
 0xac9   :  { %7033 = vmatprep.subr.bf16.mxu0 %v11742_v53  ;;  %v7169_v53 = vadd.f32 %v7168_v16, %v7167_v34  ;;  %v7227_v34 = vld [vmem:[#allocation8 + $0x1600] sm:$0xff]  ;;  %v7248_v16 = vld [vmem:[#allocation8 + $0x16a8] sm:$0xff] }
 0xacb   :  { %v7170_v61 = vrot.slane %v7169_v53, 1 }
 0xacc   :  { %7034 = vmatpush1.bf16.msra.mxu0 %v11741_v52  ;;  %v7160_v52 = vadd.f32 %v7159_v41, %v7158_v4  ;;  %v11751_v4 = vcombine.high %v7228_v25, %v7232_v26  ;;  %v7244_v41 = vld [vmem:[#allocation8 + $0x1688] sm:$0xff] }
 0xacd   :  { %7101 = vmatprep.subr.bf16.mxu0 %v11690_v60  ;;  %v11721_v60 = vcombine.low %v6629_v47, %v6633_v49  ;;  %v7239_v47 = vld [vmem:[#allocation8 + $0x1660] sm:$0xff]  ;;  %v11767_v49 = vcombine.high %v7244_v41, %v7248_v16 }
 0xace   :  { %v7161_v15 = vrot.slane %v7160_v52, 1 }
 0xad0   :  { %v7162_v8 = vadd.f32 %v7161_v15, %v7160_v52 }
 0xad2   :  { %v7172_v20 = vmul.f32 0.25, %v7162_v8  ;;  %v7263_v8 = vld [vmem:[#allocation8 + $0x1720] sm:$0xff] }
 0xb82   :  { %v6586_v7 = vpop.f32.mrb[28].mxu0 }
 0xb83   :  { %v6587_v10 = vadd.f32 %v13260_v27, %v6586_v7  ;;  %v12321_v11 = vpop.f32.mrb[29].mxu0  ;;  %v11727_v7 = vcombine.low %v6636_v56, %v6640_v57  ;;  %v7247_v56 = vld [vmem:[#allocation8 + $0x16a0] sm:$0xff] }
 0xb84   :  { %v6589_v13 = vpop.f32.mrb[30].mxu0  ;;  %v11736_v11 = vcombine.high %v6644_v2, %v6648_v38 }
 0xb85   :  { %v6592_v18 = vmax.f32 %v6587_v10, 0.0  ;;  %v12322_v19 = vpop.f32.mrb[31].mxu0  ;;  %v7171_v10 = vadd.f32 %v7170_v61, %v7169_v53  ;;  %v6652_v13 = vld [vmem:[#allocation8 + $0x15d0] sm:$0xff]  ;;  %v7251_v61 = vld [vmem:[#allocation8 + $0x16c0] sm:$0xff] }
 0xb86   :  { %v11737_v19 = vcombine.low %v6645_v5, %v6649_v6  ;;  %v11743_v32 = vcombine.low %v6652_v13, %v6656_v14 }
 0xb87   :  { %v13284_v55 = vpack.c.bf16 %v6592_v18, %v6592_v18  ;;  %v11735_v18 = vcombine.low %v6644_v2, %v6648_v38  ;;  %v7173_v22 = vmul.f32 0.25, %v7171_v10  ;;  %v7268_v2 = vld [vmem:[#allocation8 + $0x1748] sm:$0xff] }
 0xb88   :  { %v7272_v38 = vld [vmem:[#allocation8 + $0x1768] sm:$0xff] }
 0xb89   :  { %7011 = vmatmul.mubr.bf16.vlgmr.msra.gmra.mrb[0].mxu1 %v13284_v55  ;;  %7052 = vmatmul.mubr.bf16.vlgmr.msra.gmra.mrb[4].mxu0 %v13284_v55  ;;  %v11791_v10 = vcombine.high %v7268_v2, %v7272_v38 }
 0xb8a   :  { %7061 = vmatpush1.bf16.msra.mxu1 %v11687_v58  ;;  %7102 = vmatpush1.bf16.msra.mxu0 %v11689_v59  ;;  %v6641_v58 = vld [vmem:[#allocation8 + $0x1578] sm:$0xff]  ;;  %v11719_v59 = vcombine.low %v6628_v9, %v6632_v46  ;;  %v7235_v46 = vld [vmem:[#allocation8 + $0x1640] sm:$0xff] }
 0xb8b   :  { %7062 = vmatprep.subr.bf16.mxu1 %v11696_v23  ;;  %7103 = vmatprep.subr.bf16.mxu0 %v11698_v24  ;;  %v11730_v63 = vcombine.high %v6637_v21, %v6641_v58  ;;  %v11729_v33 = vcombine.low %v6637_v21, %v6641_v58  ;;  %v11744_v23 = vcombine.high %v6652_v13, %v6656_v14  ;;  %v7260_v21 = vld [vmem:[#allocation8 + $0x1708] sm:$0xff] }
 0xb8c   :  { %7092 = vmatprep.mubr.bf16.mxu1 %v12894_v42  ;;  %7133 = vmatprep.mubr.bf16.mxu0 %v12894_v42  ;;  %v11746_v24 = vcombine.high %v6653_v48, %v6657_v17  ;;  %v11757_v53 = vcombine.high %v7235_v46, %v7239_v47  ;;  %v7264_v58 = vld [vmem:[#allocation8 + $0x1728] sm:$0xff]  ;;  %v11790_v48 = vcombine.low %v7268_v2, %v7272_v38  ;;  %v7267_v17 = vld [vmem:[#allocation8 + $0x1740] sm:$0xff] }
 0xb8e   :  { %7063 = vmatpush1.bf16.msra.mxu1 %v11695_v30  ;;  %7104 = vmatpush1.bf16.msra.mxu0 %v11697_v31  ;;  %v7174_v30 = vpack.c.bf16 %v7172_v20, %v7172_v20  ;;  %v7175_v31 = vpack.c.bf16 %v7173_v22, %v7173_v22 }
 0xb8f   :  { %7064 = vmatprep.subr.bf16.mxu1 %v11704_v1  ;;  %7105 = vmatprep.subr.bf16.mxu0 %v11706_v35  ;;  %v7231_v1 = vld [vmem:[#allocation8 + $0x1620] sm:$0xff]  ;;  %v7236_v35 = vld [vmem:[#allocation8 + $0x1648] sm:$0xff] }
 0xb90   :  { %v7178_v37 = vunpack.c.l.b16 %v7174_v30  ;;  %v7179_v43 = vunpack.c.l.b16 %v7175_v31  ;;  %v11749_v51 = vcombine.high %v7227_v34, %v7231_v1  ;;  %v11758_v9 = vcombine.low %v7236_v35, %v7240_v36  ;;  %v7283_v30 = vld [vmem:[#allocation8 + $0x17c0] sm:$0xff] }
 0xb91   :  { %v11748_v52 = vcombine.low %v7227_v34, %v7231_v1  ;;  %v7287_v31 = vld [vmem:[#allocation8 + $0x17e0] sm:$0xff]  ;;  %v7288_v1 = vld [vmem:[#allocation8 + $0x17e8] sm:$0xff] }
 0xb92   :  { %7065 = vmatpush1.bf16.msra.mxu1 %v11703_v39  ;;  %7106 = vmatpush1.bf16.msra.mxu0 %v11705_v40  ;;  %v11750_v39 = vcombine.low %v7228_v25, %v7232_v26  ;;  %v11759_v40 = vcombine.high %v7236_v35, %v7240_v36  ;;  %v7279_v25 = vld [vmem:[#allocation8 + $0x17a0] sm:$0xff]  ;;  %v11805_v34 = vcombine.high %v7283_v30, %v7287_v31 }
 0xb93   :  { %7066 = vmatprep.subr.bf16.mxu1 %v11712_v44  ;;  %7107 = vmatprep.subr.bf16.mxu0 %v11714_v45  ;;  %v13293_v44 = vld [vmem:[#allocation5] sm:$0xff]   ;;  %v7180_v45 = vsel %vm207_vm2, %v7179_v43, %v7178_v37  ;;  %v11804_v35 = vcombine.low %v7283_v30, %v7287_v31 }
 0xb94   :  { %v7229_v43 = vld [vmem:[#allocation8 + $0x1610] sm:$0xff] }
 0xb95   :  { %v7261_v30 = vld [vmem:[#allocation8 + $0x1710] sm:$0xff] }
 0xb96   :  { %7067 = vmatpush1.bf16.msra.mxu1 %v11711_v3  ;;  %7108 = vmatpush1.bf16.msra.mxu0 %v11713_v50  ;;  %v7252_v3 = vld [vmem:[#allocation8 + $0x16c8] sm:$0xff]  ;;  %v7265_v31 = vld [vmem:[#allocation8 + $0x1730] sm:$0xff] }
 0xb97   :  { %7068 = vmatprep.subr.bf16.mxu1 %v11720_v54  ;;  %7109 = vmatprep.subr.bf16.mxu0 %v11722_v28  ;;  %v7256_v50 = vld [vmem:[#allocation8 + $0x16e8] sm:$0xff]  ;;  %v11766_v54 = vcombine.low %v7244_v41, %v7248_v16  ;;  %v7243_v28 = vld [vmem:[#allocation8 + $0x1680] sm:$0xff]  ;;  %v7234_v41 = vld [vmem:[#allocation8 + $0x1638] sm:$0xff] }
 0xb98   :  { %v11775_v57 = vcombine.high %v7252_v3, %v7256_v50  ;;  %v11774_v15 = vcombine.low %v7252_v3, %v7256_v50  ;;  %v11764_v5 = vcombine.low %v7243_v28, %v7247_v56 }
 0xb9a   :  { %7069 = vmatpush1.bf16.msra.mxu1 %v11719_v59  ;;  %7110 = vmatpush1.bf16.msra.mxu0 %v11721_v60  ;;  %v11756_v59 = vcombine.low %v7235_v46, %v7239_v47  ;;  %v11765_v60 = vcombine.high %v7243_v28, %v7247_v56  ;;  %v7784_v46 = vld [vmem:[#allocation2 + $0x30] sm:$0x3]  ;;  %v7785_v47 = vld [vmem:[#allocation2 + $0x38] sm:$0x3] }
 0xb9b   :  { %7070 = vmatprep.subr.bf16.mxu1 %v11728_v62  ;;  %7111 = vmatprep.subr.bf16.mxu0 %v11730_v63  ;;  %v7255_v62 = vld [vmem:[#allocation8 + $0x16e0] sm:$0xff]  ;;  %v11783_v63 = vcombine.high %v7260_v21, %v7264_v58  ;;  %v7788_v3 = vsel %vm174_vm1, %v7784_v46, 0.0  ;;  %v7789_v50 = vsel %vm174_vm1, %v7785_v47, 0.0 }
 0xb9c   :  { %v11773_v6 = vcombine.high %v7251_v61, %v7255_v62  ;;  %v11772_v13 = vcombine.low %v7251_v61, %v7255_v62  ;;  %v7790_v28 = vadd.f32 %v7789_v50, %v7788_v3  ;;  %v7242_v61 = vld [vmem:[#allocation8 + $0x1678] sm:$0xff]  ;;  %v7277_v3 = vld [vmem:[#allocation8 + $0x1790] sm:$0xff] }
 0xb9d   :  { %v7281_v50 = vld [vmem:[#allocation8 + $0x17b0] sm:$0xff] }
 0xb9e   :  { %7071 = vmatpush1.bf16.msra.mxu1 %v11727_v7  ;;  %7112 = vmatpush1.bf16.msra.mxu0 %v11729_v33  ;;  %v11782_v7 = vcombine.low %v7260_v21, %v7264_v58  ;;  %v7259_v33 = vld [vmem:[#allocation8 + $0x1700] sm:$0xff]  ;;  %v7237_v58 = vld [vmem:[#allocation8 + $0x1650] sm:$0xff]  ;;  %v7791_v2 = vrot.slane %v7790_v28, 4 }
 0xb9f   :  { %7072 = vmatprep.subr.bf16.mxu1 %v11736_v11  ;;  %7113 = vmatprep.subr.bf16.mxu0 %v11738_v12  ;;  %v7276_v11 = vld [vmem:[#allocation8 + $0x1788] sm:$0xff]  ;;  %v11781_v14 = vcombine.high %v7259_v33, %v7263_v8  ;;  %v11780_v20 = vcombine.low %v7259_v33, %v7263_v8  ;;  %v7245_v33 = vld [vmem:[#allocation8 + $0x1690] sm:$0xff] }
 0xba0   :  { %v7280_v12 = vld [vmem:[#allocation8 + $0x17a8] sm:$0xff]  ;;  %v7249_v8 = vld [vmem:[#allocation8 + $0x16b0] sm:$0xff] }
 0xba2   :  { %7073 = vmatpush1.bf16.msra.mxu1 %v11735_v18  ;;  %7114 = vmatpush1.bf16.msra.mxu0 %v11737_v19  ;;  %v7271_v18 = vld [vmem:[#allocation8 + $0x1760] sm:$0xff]  ;;  %v11799_v19 = vcombine.high %v7276_v11, %v7280_v12 }
 0xba3   :  { %7074 = vmatprep.subr.bf16.mxu1 %v11744_v23  ;;  %7115 = vmatprep.subr.bf16.mxu0 %v11746_v24  ;;  %v11789_v22 = vcombine.high %v7267_v17, %v7271_v18  ;;  %v11798_v23 = vcombine.low %v7276_v11, %v7280_v12  ;;  %v7275_v24 = vld [vmem:[#allocation8 + $0x1780] sm:$0xff]  ;;  %v11788_v26 = vcombine.low %v7267_v17, %v7271_v18  ;;  %v7250_v11 = vld [vmem:[#allocation8 + $0x16b8] sm:$0xff]  ;;  %v7253_v18 = vld [vmem:[#allocation8 + $0x16d0] sm:$0xff] }
 0xba6   :  { %7075 = vmatpush1.bf16.msra.mxu1 %v11743_v32  ;;  %7116 = vmatpush1.bf16.msra.mxu0 %v11745_v29  ;;  %v11797_v32 = vcombine.high %v7275_v24, %v7279_v25  ;;  %v11796_v29 = vcombine.low %v7275_v24, %v7279_v25 }
 0xba7   :  { %12323 = vmatprep.subr.bf16.mxu1 %v12892_v0  ;;  %7652 = vmatprep.subr.bf16.mxu0 %v11751_v4  ;;  %v7284_v4 = vld [vmem:[#allocation8 + $0x17c8] sm:$0xff] }
 0xba8   :  { %v11806_v36 = vcombine.low %v7284_v4, %v7288_v1  ;;  %v11807_v37 = vcombine.high %v7284_v4, %v7288_v1  ;;  %v7262_v4 = vld [vmem:[#allocation8 + $0x1718] sm:$0xff] }
 0xba9   :  { %7093 = vmatmul.mubr.bf16.vlgmr.msra.gmra.mrb[4].mxu1 %v13284_v55  ;;  %7134 = vmatmul.mubr.bf16.vlgmr.msra.gmra.mrb[8].mxu0 %v13284_v55  ;;  %v7181_v55 = vpack.c.b16 %v7180_v45, %v7180_v45 }
 0xbaa   :  { %12324 = vmatpush3.bf16.msra.mxu1 %v13293_v44  ;;  %12325 = vmatprep.mubr.msk.bf16.mxu1 %vm12893_vm0, %v12892_v0 }
 0xbab   :  { %7611 = vmatprep.subr.bf16.mxu1 %v11749_v51  ;;  %7653 = vmatpush1.bf16.msra.mxu0 %v11750_v39  ;;  %v7233_v51 = vld [vmem:[#allocation8 + $0x1630] sm:$0xff]  ;;  %v7230_v39 = vld [vmem:[#allocation8 + $0x1618] sm:$0xff] }
 0xbac   :  { %7654 = vmatprep.subr.bf16.mxu0 %v11759_v40  ;;  %7684 = vmatprep.mubr.bf16.mxu0 %v12894_v42  ;;  %v11753_v40 = vcombine.high %v7229_v43, %v7233_v51  ;;  %v11752_v16 = vcombine.low %v7229_v43, %v7233_v51  ;;  %v11754_v45 = vcombine.low %v7230_v39, %v7234_v41 }
 0xbad   :  { %v11785_v43 = vcombine.high %v7261_v30, %v7265_v31 }
 0xbaf   :  { %7655 = vmatpush1.bf16.msra.mxu0 %v11758_v9  ;;  %v11755_v9 = vcombine.high %v7230_v39, %v7234_v41  ;;  %v7269_v39 = vld [vmem:[#allocation8 + $0x1750] sm:$0xff]  ;;  %v7270_v41 = vld [vmem:[#allocation8 + $0x1758] sm:$0xff] }
 0xbb0   :  { %7656 = vmatprep.subr.bf16.mxu0 %v11767_v49  ;;  %v7786_v49 = vld [vmem:[#allocation2 + $0x70] sm:$0x3] }
 0xbb1   :  { %12326 = vmatmul.mubr.msk.bf16.vlgmr.msra.gmra.mrb[28].mxu1 %vm216_vm3, %v7181_v55  ;;  %v7787_v55 = vld [vmem:[#allocation2 + $0x78] sm:$0x3] }
 0xbb2   :  { %7612 = vmatpush1.bf16.msra.mxu1 %v11748_v52  ;;  %7643 = vmatprep.mubr.bf16.mxu1 %v12894_v42  ;;  %v7797_v52 = vsel %vm174_vm1, %v7786_v49, 0.0 }
 0xbb3   :  { %7613 = vmatprep.subr.bf16.mxu1 %v11757_v53  ;;  %7657 = vmatpush1.bf16.msra.mxu0 %v11766_v54  ;;  %v7798_v53 = vsel %vm174_vm1, %v7787_v55, 0.0 }
 0xbb4   :  { %7658 = vmatprep.subr.bf16.mxu0 %v11775_v57  ;;  %v7799_v56 = vadd.f32 %v7798_v53, %v7797_v52  ;;  %v7278_v52 = vld [vmem:[#allocation8 + $0x1798] sm:$0xff] }
 0xbb5   :  { %v7282_v53 = vld [vmem:[#allocation8 + $0x17b8] sm:$0xff] }
 0xbb6   :  { %7614 = vmatpush1.bf16.msra.mxu1 %v11756_v59  ;;  %v7800_v38 = vrot.slane %v7799_v56, 4 }
 0xbb7   :  { %7615 = vmatprep.subr.bf16.mxu1 %v11765_v60  ;;  %7659 = vmatpush1.bf16.msra.mxu0 %v11774_v15  ;;  %v7241_v60 = vld [vmem:[#allocation8 + $0x1670] sm:$0xff]  ;;  %v7238_v15 = vld [vmem:[#allocation8 + $0x1658] sm:$0xff] }
 0xbb8   :  { %7660 = vmatprep.subr.bf16.mxu0 %v11783_v63  ;;  %v11762_v12 = vcombine.low %v7238_v15, %v7242_v61 }
 0xbba   :  { %7616 = vmatpush1.bf16.msra.mxu1 %v11764_v5 }
 0xbbb   :  { %7617 = vmatprep.subr.bf16.mxu1 %v11773_v6  ;;  %7661 = vmatpush1.bf16.msra.mxu0 %v11782_v7  ;;  %v11761_v6 = vcombine.high %v7237_v58, %v7241_v60  ;;  %v11763_v7 = vcombine.high %v7238_v15, %v7242_v61  ;;  %v7286_v15 = vld [vmem:[#allocation8 + $0x17d8] sm:$0xff] }
 0xbbc   :  { %7662 = vmatprep.subr.bf16.mxu0 %v11791_v10  ;;  %v7246_v10 = vld [vmem:[#allocation8 + $0x1698] sm:$0xff] }
 0xbbd   :  { %v11771_v17 = vcombine.high %v7246_v10, %v7250_v11  ;;  %v11770_v24 = vcombine.low %v7246_v10, %v7250_v11  ;;  %v7290_v61 = vld [vmem:[#allocation8 + $0x17f8] sm:$0xff] }
 0xbbe   :  { %7618 = vmatpush1.bf16.msra.mxu1 %v11772_v13  ;;  %v7792_v13 = vadd.f32 %v7791_v2, %v7790_v28  ;;  %v11810_v11 = vcombine.low %v7286_v15, %v7290_v61 }
 0xbbf   :  { %7619 = vmatprep.subr.bf16.mxu1 %v11781_v14  ;;  %7663 = vmatpush1.bf16.msra.mxu0 %v11790_v48  ;;  %v7801_v14 = vadd.f32 %v7800_v38, %v7799_v56  ;;  %v11769_v48 = vcombine.high %v7245_v33, %v7249_v8 }
 0xbc0   :  { %7664 = vmatprep.subr.bf16.mxu0 %v11799_v19  ;;  %v7257_v19 = vld [vmem:[#allocation8 + $0x16f0] sm:$0xff]  ;;  %v7793_v25 = vrot.slane %v7792_v13, 2 }
 0xbc1   :  { %v11776_v1 = vcombine.low %v7253_v18, %v7257_v19 }
 0xbc2   :  { %7620 = vmatpush1.bf16.msra.mxu1 %v11780_v20  ;;  %v7254_v20 = vld [vmem:[#allocation8 + $0x16d8] sm:$0xff] }
 0xbc3   :  { %7621 = vmatprep.subr.bf16.mxu1 %v11789_v22  ;;  %7665 = vmatpush1.bf16.msra.mxu0 %v11798_v23  ;;  %v7258_v22 = vld [vmem:[#allocation8 + $0x16f8] sm:$0xff]  ;;  %v11768_v23 = vcombine.low %v7245_v33, %v7249_v8  ;;  %v7861_v33 = vld [vmem:[#allocation8 + $0x1800] sm:$0xff] }
 0xbc4   :  { %7666 = vmatprep.subr.bf16.mxu0 %v11807_v37  ;;  %v7865_v8 = vld [vmem:[#allocation8 + $0x1820] sm:$0xff] }
 0xbc6   :  { %7622 = vmatpush1.bf16.msra.mxu1 %v11788_v26  ;;  %v7802_v26 = vrot.slane %v7801_v14, 2 }
 0xbc7   :  { %7623 = vmatprep.subr.bf16.mxu1 %v11797_v32  ;;  %7667 = vmatpush1.bf16.msra.mxu0 %v11806_v36  ;;  %v11777_v32 = vcombine.high %v7253_v18, %v7257_v19  ;;  %v7794_v36 = vadd.f32 %v7793_v25, %v7792_v13  ;;  %v11814_v13 = vcombine.high %v7861_v33, %v7865_v8  ;;  %v7873_v18 = vld [vmem:[#allocation8 + $0x1860] sm:$0xff] }
 0xbc8   :  { %7734 = vmatprep.subr.bf16.mxu0 %v11755_v9  ;;  %v7803_v37 = vadd.f32 %v7802_v26, %v7801_v14  ;;  %v7862_v14 = vld [vmem:[#allocation8 + $0x1808] sm:$0xff]  ;;  %v7877_v25 = vld [vmem:[#allocation8 + $0x1880] sm:$0xff] }
 0xbc9   :  { %v7795_v46 = vrot.slane %v7794_v36, 1  ;;  %v7881_v26 = vld [vmem:[#allocation8 + $0x18a0] sm:$0xff] }
 0xbca   :  { %7624 = vmatpush1.bf16.msra.mxu1 %v11796_v29  ;;  %v11779_v29 = vcombine.high %v7254_v20, %v7258_v22  ;;  %v7804_v47 = vrot.slane %v7803_v37, 1 }
 0xbcb   :  { %7625 = vmatprep.subr.bf16.mxu1 %v11805_v34  ;;  %v7266_v34 = vld [vmem:[#allocation8 + $0x1738] sm:$0xff]  ;;  %v7796_v56 = vadd.f32 %v7795_v46, %v7794_v36  ;;  %v7886_v46 = vld [vmem:[#allocation8 + $0x18c8] sm:$0xff] }
 0xbcc   :  { %v11787_v51 = vcombine.high %v7262_v4, %v7266_v34  ;;  %v11786_v9 = vcombine.low %v7262_v4, %v7266_v34  ;;  %v11830_v4 = vcombine.high %v7877_v25, %v7881_v26 }
 0xbcd   :  { %v7806_v2 = vmul.f32 0.25, %v7796_v56 }
 0xbce   :  { %7626 = vmatpush1.bf16.msra.mxu1 %v11804_v35  ;;  %v11778_v35 = vcombine.low %v7254_v20, %v7258_v22  ;;  %v11813_v22 = vcombine.low %v7861_v33, %v7865_v8 }
 0xbcf   :  { %7693 = vmatprep.subr.bf16.mxu1 %v11753_v40  ;;  %v7273_v40 = vld [vmem:[#allocation8 + $0x1770] sm:$0xff] }
 0xbd0   :  { %v11793_v49 = vcombine.high %v7269_v39, %v7273_v40 }
 0xc84   :  { %v7219_v54 = vpop.f32.mrb[28].mxu1 }
 0xc85   :  { %v7220_v57 = vadd.f32 %v13260_v27, %v7219_v54  ;;  %v12327_v21 = vpop.f32.mrb[29].mxu1  ;;  %v11760_v27 = vcombine.low %v7237_v58, %v7241_v60  ;;  %v11792_v54 = vcombine.low %v7269_v39, %v7273_v40  ;;  %v11803_v58 = vcombine.high %v7278_v52, %v7282_v53  ;;  %v7289_v60 = vld [vmem:[#allocation8 + $0x17f0] sm:$0xff]  ;;  %v7893_v40 = vld [vmem:[#allocation8 + $0x1900] sm:$0xff] }
 0xc86   :  { %v7222_v59 = vpop.f32.mrb[30].mxu1  ;;  %v11801_v21 = vcombine.high %v7277_v3, %v7281_v50 }
 0xc87   :  { %v7225_v62 = vmax.f32 %v7220_v57, 0.0  ;;  %v12328_v63 = vpop.f32.mrb[31].mxu1  ;;  %v7805_v57 = vadd.f32 %v7804_v47, %v7803_v37  ;;  %v7285_v59 = vld [vmem:[#allocation8 + $0x17d0] sm:$0xff]  ;;  %v11829_v37 = vcombine.low %v7877_v25, %v7881_v26  ;;  %v7890_v47 = vld [vmem:[#allocation8 + $0x18e8] sm:$0xff] }
 0xc88   :  { %v11802_v63 = vcombine.low %v7278_v52, %v7282_v53  ;;  %v11808_v10 = vcombine.low %v7285_v59, %v7289_v60  ;;  %v11840_v52 = vcombine.high %v7886_v46, %v7890_v47 }
 0xc89   :  { %v13307_v5 = vpack.c.bf16 %v7225_v62, %v7225_v62  ;;  %v11800_v62 = vcombine.low %v7277_v3, %v7281_v50  ;;  %v7807_v38 = vmul.f32 0.25, %v7805_v57  ;;  %v7905_v3 = vld [vmem:[#allocation8 + $0x1960] sm:$0xff] }
 0xc8a   :  { %v7909_v57 = vld [vmem:[#allocation8 + $0x1980] sm:$0xff] }
 0xc8b   :  { %7644 = vmatmul.mubr.bf16.vlgmr.msra.gmra.mrb[0].mxu1 %v13307_v5  ;;  %7685 = vmatmul.mubr.bf16.vlgmr.msra.gmra.mrb[4].mxu0 %v13307_v5 }
 0xc8c   :  { %7694 = vmatpush1.bf16.msra.mxu1 %v11752_v16  ;;  %7735 = vmatpush1.bf16.msra.mxu0 %v11754_v45  ;;  %v7274_v16 = vld [vmem:[#allocation8 + $0x1778] sm:$0xff]  ;;  %v11784_v45 = vcombine.low %v7261_v30, %v7265_v31  ;;  %v7870_v30 = vld [vmem:[#allocation8 + $0x1848] sm:$0xff] }
 0xc8d   :  { %7695 = vmatprep.subr.bf16.mxu1 %v11761_v6  ;;  %7736 = vmatprep.subr.bf16.mxu0 %v11763_v7  ;;  %v11795_v55 = vcombine.high %v7270_v41, %v7274_v16  ;;  %v11794_v28 = vcombine.low %v7270_v41, %v7274_v16  ;;  %v11809_v6 = vcombine.high %v7285_v59, %v7289_v60  ;;  %v7874_v31 = vld [vmem:[#allocation8 + $0x1868] sm:$0xff]  ;;  %v7897_v41 = vld [vmem:[#allocation8 + $0x1920] sm:$0xff] }
 0xc8e   :  { %7725 = vmatprep.mubr.bf16.mxu1 %v12894_v42  ;;  %7766 = vmatprep.mubr.bf16.mxu0 %v12894_v42  ;;  %v11811_v7 = vcombine.high %v7286_v15, %v7290_v61  ;;  %v11824_v36 = vcombine.high %v7870_v30, %v7874_v31  ;;  %v11823_v16 = vcombine.low %v7870_v30, %v7874_v31  ;;  %v7902_v15 = vld [vmem:[#allocation8 + $0x1948] sm:$0xff]  ;;  %v8418_v30 = vld [vmem:[#allocation2 + $0x3a] sm:$0x3] }
 0xc8f   :  { %v11845_v53 = vcombine.low %v7893_v40, %v7897_v41  ;;  %v7906_v61 = vld [vmem:[#allocation8 + $0x1968] sm:$0xff] }
 0xc90   :  { %7696 = vmatpush1.bf16.msra.mxu1 %v11760_v27  ;;  %7737 = vmatpush1.bf16.msra.mxu0 %v11762_v12  ;;  %v7808_v27 = vpack.c.bf16 %v7806_v2, %v7806_v2  ;;  %v7809_v12 = vpack.c.bf16 %v7807_v38, %v7807_v38  ;;  %v11856_v2 = vcombine.high %v7902_v15, %v7906_v61  ;;  %v8419_v31 = vld [vmem:[#allocation2 + $0x72] sm:$0x3] }
 0xc91   :  { %7697 = vmatprep.subr.bf16.mxu1 %v11769_v48  ;;  %7738 = vmatprep.subr.bf16.mxu0 %v11771_v17  ;;  %v7866_v48 = vld [vmem:[#allocation8 + $0x1828] sm:$0xff]  ;;  %v7869_v17 = vld [vmem:[#allocation8 + $0x1840] sm:$0xff]  ;;  %v11855_v33 = vcombine.low %v7902_v15, %v7906_v61 }
 0xc92   :  { %v7812_v19 = vunpack.c.l.b16 %v7808_v27  ;;  %v7813_v20 = vunpack.c.l.b16 %v7809_v12  ;;  %v7921_v27 = vld [vmem:[#allocation8 + $0x19e0] sm:$0xff]  ;;  %v7918_v12 = vld [vmem:[#allocation8 + $0x19c8] sm:$0xff] }
 0xc94   :  { %7698 = vmatpush1.bf16.msra.mxu1 %v11768_v23  ;;  %7739 = vmatpush1.bf16.msra.mxu0 %v11770_v24  ;;  %v11816_v23 = vcombine.high %v7862_v14, %v7866_v48  ;;  %v11822_v24 = vcombine.high %v7869_v17, %v7873_v18 }
 0xc95   :  { %7699 = vmatprep.subr.bf16.mxu1 %v11777_v32  ;;  %7740 = vmatprep.subr.bf16.mxu0 %v11779_v29  ;;  %v7814_v32 = vsel %vm207_vm2, %v7813_v20, %v7812_v19  ;;  %v11821_v29 = vcombine.low %v7869_v17, %v7873_v18  ;;  %v7863_v19 = vld [vmem:[#allocation8 + $0x1810] sm:$0xff] }
 0xc96   :  { %v7815_v34 = vpack.c.b16 %v7814_v32, %v7814_v32  ;;  %v7867_v20 = vld [vmem:[#allocation8 + $0x1830] sm:$0xff] }
 0xc97   :  { %v11817_v25 = vcombine.low %v7863_v19, %v7867_v20 }
 0xc98   :  { %7700 = vmatpush1.bf16.msra.mxu1 %v11776_v1  ;;  %7741 = vmatpush1.bf16.msra.mxu0 %v11778_v35  ;;  %v7889_v1 = vld [vmem:[#allocation8 + $0x18e0] sm:$0xff]  ;;  %v11815_v35 = vcombine.low %v7862_v14, %v7866_v48  ;;  %v7922_v14 = vld [vmem:[#allocation8 + $0x19e8] sm:$0xff] }
 0xc99   :  { %7701 = vmatprep.subr.bf16.mxu1 %v11785_v43  ;;  %7742 = vmatprep.subr.bf16.mxu0 %v11787_v51  ;;  %v7878_v43 = vld [vmem:[#allocation8 + $0x1888] sm:$0xff]  ;;  %v11871_v17 = vcombine.low %v7918_v12, %v7922_v14  ;;  %v11872_v18 = vcombine.high %v7918_v12, %v7922_v14  ;;  %v7899_v12 = vld [vmem:[#allocation8 + $0x1930] sm:$0xff]  ;;  %v7900_v14 = vld [vmem:[#allocation8 + $0x1938] sm:$0xff] }
 0xc9a   :  { %v7882_v51 = vld [vmem:[#allocation8 + $0x18a8] sm:$0xff] }
 0xc9b   :  { %v11831_v50 = vcombine.low %v7878_v43, %v7882_v51 }
 0xc9c   :  { %7702 = vmatpush1.bf16.msra.mxu1 %v11784_v45  ;;  %7743 = vmatpush1.bf16.msra.mxu0 %v11786_v9  ;;  %v11832_v45 = vcombine.high %v7878_v43, %v7882_v51  ;;  %v13327_v51 = vld [vmem:[#allocation7] ss:$0 sm:$0xff] }
 0xc9d   :  { %7703 = vmatprep.subr.bf16.mxu1 %v11793_v49  ;;  %7744 = vmatprep.subr.bf16.mxu0 %v11795_v55  ;;  %v11846_v49 = vcombine.high %v7893_v40, %v7897_v41  ;;  %v7901_v55 = vld [vmem:[#allocation8 + $0x1940] sm:$0xff]  ;;  %v7871_v41 = vld [vmem:[#allocation8 + $0x1850] sm:$0xff] }
 0xc9e   :  { %v11854_v56 = vcombine.high %v7901_v55, %v7905_v3  ;;  %v11853_v60 = vcombine.low %v7901_v55, %v7905_v3 }
 0xca0   :  { %7704 = vmatpush1.bf16.msra.mxu1 %v11792_v54  ;;  %7745 = vmatpush1.bf16.msra.mxu0 %v11794_v28  ;;  %v7894_v54 = vld [vmem:[#allocation8 + $0x1908] sm:$0xff] }
 0xca1   :  { %7705 = vmatprep.subr.bf16.mxu1 %v11801_v21  ;;  %7746 = vmatprep.subr.bf16.mxu0 %v11803_v58  ;;  %v7898_v28 = vld [vmem:[#allocation8 + $0x1928] sm:$0xff]  ;;  %v7913_v21 = vld [vmem:[#allocation8 + $0x19a0] sm:$0xff]  ;;  %v11839_v58 = vcombine.low %v7886_v46, %v7890_v47  ;;  %v7876_v46 = vld [vmem:[#allocation8 + $0x1878] sm:$0xff] }
 0xca2   :  { %v11848_v59 = vcombine.high %v7894_v54, %v7898_v28  ;;  %v11861_v38 = vcombine.low %v7909_v57, %v7913_v21 }
 0xca4   :  { %7706 = vmatpush1.bf16.msra.mxu1 %v11800_v62  ;;  %7747 = vmatpush1.bf16.msra.mxu0 %v11802_v63  ;;  %v11862_v62 = vcombine.high %v7909_v57, %v7913_v21  ;;  %v11847_v63 = vcombine.low %v7894_v54, %v7898_v28  ;;  %v7879_v54 = vld [vmem:[#allocation8 + $0x1890] sm:$0xff]  ;;  %v7884_v57 = vld [vmem:[#allocation8 + $0x18b8] sm:$0xff] }
 0xca5   :  { %7707 = vmatprep.subr.bf16.mxu1 %v11809_v6  ;;  %7748 = vmatprep.subr.bf16.mxu0 %v11811_v7  ;;  %v7910_v6 = vld [vmem:[#allocation8 + $0x1988] sm:$0xff]  ;;  %v7883_v28 = vld [vmem:[#allocation8 + $0x18b0] sm:$0xff] }
 0xca6   :  { %v7914_v7 = vld [vmem:[#allocation8 + $0x19a8] sm:$0xff]  ;;  %v11834_v15 = vcombine.high %v7879_v54, %v7883_v28 }
 0xca7   :  { %v11864_v8 = vcombine.high %v7910_v6, %v7914_v7 }
 0xca8   :  { %7708 = vmatpush1.bf16.msra.mxu1 %v11808_v10  ;;  %7749 = vmatpush1.bf16.msra.mxu0 %v11810_v11  ;;  %v11863_v10 = vcombine.low %v7910_v6, %v7914_v7  ;;  %v7917_v11 = vld [vmem:[#allocation8 + $0x19c0] sm:$0xff]  ;;  %v11833_v6 = vcombine.low %v7879_v54, %v7883_v28  ;;  %v8495_v28 = vld [vmem:[#allocation8 + $0x1a08] sm:$0xff] }
 0xca9   :  { %12329 = vmatprep.subr.bf16.mxu0 %v12892_v0  ;;  %8245 = vmatprep.subr.bf16.mxu1 %v11814_v13  ;;  %v11870_v13 = vcombine.high %v7917_v11, %v7921_v27  ;;  %v11869_v48 = vcombine.low %v7917_v11, %v7921_v27  ;;  %v7895_v27 = vld [vmem:[#allocation8 + $0x1910] sm:$0xff] }
 0xcab   :  { %7726 = vmatmul.mubr.bf16.vlgmr.msra.gmra.mrb[4].mxu1 %v13307_v5  ;;  %7767 = vmatmul.mubr.bf16.vlgmr.msra.gmra.mrb[8].mxu0 %v13307_v5  ;;  %v7885_v5 = vld [vmem:[#allocation8 + $0x18c0] sm:$0xff] }
 0xcac   :  { %12330 = vmatpush3.bf16.msra.mxu0 %v13293_v44  ;;  %12331 = vmatprep.mubr.msk.bf16.mxu0 %vm12893_vm0, %v12892_v0  ;;  %v11838_v39 = vcombine.high %v7885_v5, %v7889_v1  ;;  %v11837_v9 = vcombine.low %v7885_v5, %v7889_v1  ;;  %v8422_v5 = vsel %vm174_vm1, %v8418_v30, 0.0  ;;  %v8430_v1 = vsel %vm174_vm1, %v8419_v31, 0.0 }
 0xcad   :  { %8286 = vmatprep.subr.bf16.mxu0 %v11816_v23  ;;  %8246 = vmatpush1.bf16.msra.mxu1 %v11813_v22  ;;  %v7864_v22 = vld [vmem:[#allocation8 + $0x1818] sm:$0xff]  ;;  %v11818_v23 = vcombine.high %v7863_v19, %v7867_v20  ;;  %v11850_v20 = vcombine.high %v7895_v27, %v7899_v12 }
 0xcae   :  { %8247 = vmatprep.subr.bf16.mxu1 %v11822_v24  ;;  %8277 = vmatprep.mubr.bf16.mxu1 %v12894_v42  ;;  %v7868_v24 = vld [vmem:[#allocation8 + $0x1838] sm:$0xff] }
 0xcaf   :  { %v11819_v26 = vcombine.low %v7864_v22, %v7868_v24  ;;  %v11820_v32 = vcombine.high %v7864_v22, %v7868_v24  ;;  %v7907_v24 = vld [vmem:[#allocation8 + $0x1970] sm:$0xff] }
 0xcb1   :  { %8248 = vmatpush1.bf16.msra.mxu1 %v11821_v29  ;;  %v8417_v29 = vld [vmem:[#allocation2 + $0x32] sm:$0x3] }
 0xcb2   :  { %8249 = vmatprep.subr.bf16.mxu1 %v11830_v4  ;;  %v8420_v4 = vld [vmem:[#allocation2 + $0x7a] sm:$0x3] }
 0xcb3   :  { %12332 = vmatmul.mubr.msk.bf16.vlgmr.msra.gmra.mrb[32].mxu0 %vm216_vm3, %v7815_v34  ;;  %v8421_v34 = vsel %vm174_vm1, %v8417_v29, 0.0 }
 0xcb4   :  { %8287 = vmatpush1.bf16.msra.mxu0 %v11815_v35  ;;  %8318 = vmatprep.mubr.bf16.mxu0 %v12894_v42  ;;  %v8431_v35 = vsel %vm174_vm1, %v8420_v4, 0.0 }
 0xcb5   :  { %8288 = vmatprep.subr.bf16.mxu0 %v11824_v36  ;;  %8250 = vmatpush1.bf16.msra.mxu1 %v11829_v37  ;;  %v8423_v37 = vadd.f32 %v8422_v5, %v8421_v34  ;;  %v8432_v43 = vadd.f32 %v8431_v35, %v8430_v1  ;;  %v7911_v5 = vld [vmem:[#allocation8 + $0x1990] sm:$0xff]  ;;  %v7912_v35 = vld [vmem:[#allocation8 + $0x1998] sm:$0xff] }
 0xcb6   :  { %8251 = vmatprep.subr.bf16.mxu1 %v11838_v39  ;;  %v7915_v1 = vld [vmem:[#allocation8 + $0x19b0] sm:$0xff] }
 0xcb7   :  { %v8424_v55 = vrot.slane %v8423_v37, 4  ;;  %v8433_v3 = vrot.slane %v8432_v43, 4 }
 0xcb8   :  { %8289 = vmatpush1.bf16.msra.mxu0 %v11823_v16 }
 0xcb9   :  { %8290 = vmatprep.subr.bf16.mxu0 %v11832_v45  ;;  %8252 = vmatpush1.bf16.msra.mxu1 %v11837_v9  ;;  %v7875_v45 = vld [vmem:[#allocation8 + $0x1870] sm:$0xff]  ;;  %v7872_v9 = vld [vmem:[#allocation8 + $0x1858] sm:$0xff] }
 0xcba   :  { %8253 = vmatprep.subr.bf16.mxu1 %v11846_v49  ;;  %v11825_v21 = vcombine.low %v7871_v41, %v7875_v45 }
 0xcbc   :  { %8291 = vmatpush1.bf16.msra.mxu0 %v11831_v50 }
 0xcbd   :  { %8292 = vmatprep.subr.bf16.mxu0 %v11840_v52  ;;  %8254 = vmatpush1.bf16.msra.mxu1 %v11845_v53  ;;  %v11826_v52 = vcombine.high %v7871_v41, %v7875_v45  ;;  %v11828_v53 = vcombine.high %v7872_v9, %v7876_v46  ;;  %v11866_v41 = vcombine.high %v7911_v5, %v7915_v1  ;;  %v7919_v45 = vld [vmem:[#allocation8 + $0x19d0] sm:$0xff] }
 0xcbe   :  { %8255 = vmatprep.subr.bf16.mxu1 %v11854_v56  ;;  %v7880_v56 = vld [vmem:[#allocation8 + $0x1898] sm:$0xff] }
 0xcbf   :  { %v11836_v61 = vcombine.high %v7880_v56, %v7884_v57  ;;  %v11835_v7 = vcombine.low %v7880_v56, %v7884_v57  ;;  %v8499_v56 = vld [vmem:[#allocation8 + $0x1a28] sm:$0xff] }
 0xcc0   :  { %8293 = vmatpush1.bf16.msra.mxu0 %v11839_v58  ;;  %v11827_v58 = vcombine.low %v7872_v9, %v7876_v46  ;;  %v7923_v9 = vld [vmem:[#allocation8 + $0x19f0] sm:$0xff]  ;;  %v7920_v46 = vld [vmem:[#allocation8 + $0x19d8] sm:$0xff] }
 0xcc1   :  { %8294 = vmatprep.subr.bf16.mxu0 %v11848_v59  ;;  %8256 = vmatpush1.bf16.msra.mxu1 %v11853_v60  ;;  %v8425_v59 = vadd.f32 %v8424_v55, %v8423_v37  ;;  %v8434_v60 = vadd.f32 %v8433_v3, %v8432_v43  ;;  %v11873_v57 = vcombine.low %v7919_v45, %v7923_v9 }
 0xcc2   :  { %8257 = vmatprep.subr.bf16.mxu1 %v11862_v62  ;;  %v7887_v62 = vld [vmem:[#allocation8 + $0x18d0] sm:$0xff] }
 0xcc4   :  { %8295 = vmatpush1.bf16.msra.mxu0 %v11847_v63  ;;  %v7891_v63 = vld [vmem:[#allocation8 + $0x18f0] sm:$0xff] }
 0xcc5   :  { %8296 = vmatprep.subr.bf16.mxu0 %v11856_v2  ;;  %8258 = vmatpush1.bf16.msra.mxu1 %v11861_v38  ;;  %v7888_v2 = vld [vmem:[#allocation8 + $0x18d8] sm:$0xff] }
 0xcc6   :  { %8259 = vmatprep.subr.bf16.mxu1 %v11870_v13  ;;  %v7892_v38 = vld [vmem:[#allocation8 + $0x18f8] sm:$0xff] }
 0xcc7   :  { %v11844_v11 = vcombine.high %v7888_v2, %v7892_v38  ;;  %v7896_v13 = vld [vmem:[#allocation8 + $0x1918] sm:$0xff] }
 0xcc8   :  { %8297 = vmatpush1.bf16.msra.mxu0 %v11855_v33  ;;  %v8426_v33 = vrot.slane %v8425_v59, 2  ;;  %v11852_v22 = vcombine.high %v7896_v13, %v7900_v14  ;;  %v11851_v29 = vcombine.low %v7896_v13, %v7900_v14  ;;  %v8506_v13 = vld [vmem:[#allocation8 + $0x1a60] sm:$0xff] }
 0xcc9   :  { %8298 = vmatprep.subr.bf16.mxu0 %v11864_v8  ;;  %8260 = vmatpush1.bf16.msra.mxu1 %v11869_v48  ;;  %v8435_v8 = vrot.slane %v8434_v60, 2  ;;  %v11841_v48 = vcombine.low %v7887_v62, %v7891_v63 }
 0xcca   :  { %8327 = vmatprep.subr.bf16.mxu1 %v11818_v23  ;;  %v7903_v23 = vld [vmem:[#allocation8 + $0x1950] sm:$0xff] }
 0xccb   :  { %v8436_v19 = vadd.f32 %v8435_v8, %v8434_v60  ;;  %v11858_v4 = vcombine.high %v7903_v23, %v7907_v24  ;;  %v11857_v37 = vcombine.low %v7903_v23, %v7907_v24  ;;  %v11881_v60 = vcombine.high %v8495_v28, %v8499_v56  ;;  %v8511_v8 = vld [vmem:[#allocation8 + $0x1a88] sm:$0xff] }
 0xccc   :  { %8299 = vmatpush1.bf16.msra.mxu0 %v11863_v10  ;;  %v11842_v10 = vcombine.high %v7887_v62, %v7891_v63  ;;  %v8503_v62 = vld [vmem:[#allocation8 + $0x1a48] sm:$0xff] }
 0xccd   :  { %8300 = vmatprep.subr.bf16.mxu0 %v11872_v18  ;;  %v8427_v18 = vadd.f32 %v8426_v33, %v8425_v59  ;;  %v8437_v31 = vrot.slane %v8436_v19, 1  ;;  %v8507_v63 = vld [vmem:[#allocation8 + $0x1a68] sm:$0xff] }
 0xcce   :  { %v11889_v33 = vcombine.high %v8503_v62, %v8507_v63  ;;  %v8527_v24 = vld [vmem:[#allocation8 + $0x1b08] sm:$0xff] }
 0xccf   :  { %v8428_v30 = vrot.slane %v8427_v18, 1 }
 0xcd0   :  { %8301 = vmatpush1.bf16.msra.mxu0 %v11871_v17  ;;  %v11843_v17 = vcombine.low %v7888_v2, %v7892_v38 }
 0xcd1   :  { %8368 = vmatprep.subr.bf16.mxu0 %v11820_v32  ;;  %v11849_v32 = vcombine.low %v7895_v27, %v7899_v12  ;;  %v11888_v27 = vcombine.low %v8503_v62, %v8507_v63  ;;  %v8502_v12 = vld [vmem:[#allocation8 + $0x1a40] sm:$0xff] }
 0xd86   :  { %v7853_v36 = vpop.f32.mrb[32].mxu0 }
 0xd87   :  { %v7854_v39 = vadd.f32 %v13327_v51, %v7853_v36  ;;  %v12333_v40 = vpop.f32.mrb[33].mxu0  ;;  %v7916_v36 = vld [vmem:[#allocation8 + $0x19b8] sm:$0xff] }
 0xd88   :  { %v7856_v16 = vpop.f32.mrb[34].mxu0  ;;  %v8438_v40 = vadd.f32 %v8437_v31, %v8436_v19  ;;  %v11867_v55 = vcombine.low %v7912_v35, %v7916_v36  ;;  %v11887_v19 = vcombine.high %v8502_v12, %v8506_v13  ;;  %v8522_v31 = vld [vmem:[#allocation8 + $0x1ae0] sm:$0xff] }
 0xd89   :  { %v7859_v47 = vmax.f32 %v7854_v39, 0.0  ;;  %v12334_v49 = vpop.f32.mrb[35].mxu0  ;;  %v8429_v39 = vadd.f32 %v8428_v30, %v8427_v18  ;;  %v11868_v16 = vcombine.high %v7912_v35, %v7916_v36  ;;  %v8518_v30 = vld [vmem:[#allocation8 + $0x1ac0] sm:$0xff] }
 0xd8a   :  { %v11865_v49 = vcombine.low %v7911_v5, %v7915_v1  ;;  %v8539_v5 = vld [vmem:[#allocation8 + $0x1b68] sm:$0xff]  ;;  %v11903_v35 = vcombine.high %v8518_v30, %v8522_v31 }
 0xd8b   :  { %v13330_v50 = vpack.c.bf16 %v7859_v47, %v7859_v47  ;;  %v7924_v47 = vld [vmem:[#allocation8 + $0x19f8] sm:$0xff]  ;;  %v8439_v3 = vmul.f32 0.25, %v8429_v39 }
 0xd8c   :  { %v11876_v54 = vcombine.high %v7920_v46, %v7924_v47 }
 0xd8d   :  { %8278 = vmatmul.mubr.bf16.vlgmr.msra.gmra.mrb[0].mxu1 %v13330_v50  ;;  %8319 = vmatmul.mubr.bf16.vlgmr.msra.gmra.mrb[4].mxu0 %v13330_v50 }
 0xd8e   :  { %8328 = vmatpush1.bf16.msra.mxu1 %v11817_v25  ;;  %8369 = vmatpush1.bf16.msra.mxu0 %v11819_v26  ;;  %v7904_v25 = vld [vmem:[#allocation8 + $0x1958] sm:$0xff] }
 0xd8f   :  { %8329 = vmatprep.subr.bf16.mxu1 %v11826_v52  ;;  %8370 = vmatprep.subr.bf16.mxu0 %v11828_v53  ;;  %v7908_v26 = vld [vmem:[#allocation8 + $0x1978] sm:$0xff]  ;;  %v8440_v52 = vmul.f32 0.25, %v8438_v40  ;;  %v11874_v53 = vcombine.high %v7919_v45, %v7923_v9  ;;  %v8543_v40 = vld [vmem:[#allocation8 + $0x1b88] sm:$0xff] }
 0xd90   :  { %8359 = vmatprep.mubr.bf16.mxu1 %v12894_v42  ;;  %8400 = vmatprep.mubr.bf16.mxu0 %v12894_v42  ;;  %v11860_v34 = vcombine.high %v7904_v25, %v7908_v26  ;;  %v11859_v43 = vcombine.low %v7904_v25, %v7908_v26  ;;  %v8531_v25 = vld [vmem:[#allocation8 + $0x1b28] sm:$0xff]  ;;  %v11886_v26 = vcombine.low %v8502_v12, %v8506_v13  ;;  %v9051_v12 = vld [vmem:[#allocation2 + $0x3c] sm:$0x3] }
 0xd91   :  { %v8442_v59 = vpack.c.bf16 %v8440_v52, %v8440_v52  ;;  %v11912_v36 = vcombine.low %v8527_v24, %v8531_v25  ;;  %v9052_v13 = vld [vmem:[#allocation2 + $0x74] sm:$0x3] }
 0xd92   :  { %8330 = vmatpush1.bf16.msra.mxu1 %v11825_v21  ;;  %8371 = vmatpush1.bf16.msra.mxu0 %v11827_v58  ;;  %v11875_v21 = vcombine.low %v7920_v46, %v7924_v47  ;;  %v8441_v58 = vpack.c.bf16 %v8439_v3, %v8439_v3  ;;  %v8534_v46 = vld [vmem:[#allocation8 + $0x1b40] sm:$0xff] }
 0xd93   :  { %8331 = vmatprep.subr.bf16.mxu1 %v11834_v15  ;;  %8372 = vmatprep.subr.bf16.mxu0 %v11836_v61  ;;  %v8494_v15 = vld [vmem:[#allocation8 + $0x1a00] sm:$0xff]  ;;  %v8446_v38 = vunpack.c.l.b16 %v8442_v59  ;;  %v8551_v59 = vld [vmem:[#allocation8 + $0x1bc8] sm:$0xff] }
 0xd94   :  { %v8498_v61 = vld [vmem:[#allocation8 + $0x1a20] sm:$0xff]  ;;  %v8445_v2 = vunpack.c.l.b16 %v8441_v58 }
 0xd95   :  { %v11878_v18 = vcombine.low %v8494_v15, %v8498_v61  ;;  %v8538_v47 = vld [vmem:[#allocation8 + $0x1b60] sm:$0xff] }
 0xd96   :  { %8332 = vmatpush1.bf16.msra.mxu1 %v11833_v6  ;;  %8373 = vmatpush1.bf16.msra.mxu0 %v11835_v7  ;;  %v11879_v6 = vcombine.high %v8494_v15, %v8498_v61  ;;  %v11880_v7 = vcombine.low %v8495_v28, %v8499_v56  ;;  %v11919_v3 = vcombine.high %v8534_v46, %v8538_v47  ;;  %v8554_v58 = vld [vmem:[#allocation8 + $0x1be0] sm:$0xff]  ;;  %v8555_v15 = vld [vmem:[#allocation8 + $0x1be8] sm:$0xff] }
 0xd97   :  { %8333 = vmatprep.subr.bf16.mxu1 %v11842_v10  ;;  %8374 = vmatprep.subr.bf16.mxu0 %v11844_v11  ;;  %v8515_v10 = vld [vmem:[#allocation8 + $0x1aa8] sm:$0xff]  ;;  %v8447_v11 = vsel %vm207_vm2, %v8446_v38, %v8445_v2  ;;  %v11918_v28 = vcombine.low %v8534_v46, %v8538_v47  ;;  %v11936_v62 = vcombine.low %v8551_v59, %v8555_v15  ;;  %v8496_v2 = vld [vmem:[#allocation8 + $0x1a10] sm:$0xff] }
 0xd98   :  { %v11897_v14 = vcombine.high %v8511_v8, %v8515_v10  ;;  %v11937_v63 = vcombine.high %v8551_v59, %v8555_v15  ;;  %v8500_v38 = vld [vmem:[#allocation8 + $0x1a30] sm:$0xff]  ;;  %v8529_v59 = vld [vmem:[#allocation8 + $0x1b18] sm:$0xff] }
 0xd99   :  { %v8520_v47 = vld [vmem:[#allocation8 + $0x1ad0] sm:$0xff] }
 0xd9a   :  { %8334 = vmatpush1.bf16.msra.mxu1 %v11841_v48  ;;  %8375 = vmatpush1.bf16.msra.mxu0 %v11843_v17  ;;  %v8448_v48 = vpack.c.b16 %v8447_v11, %v8447_v11  ;;  %v8523_v17 = vld [vmem:[#allocation8 + $0x1ae8] sm:$0xff] }
 0xd9b   :  { %8335 = vmatprep.subr.bf16.mxu1 %v11850_v20  ;;  %8376 = vmatprep.subr.bf16.mxu0 %v11852_v22  ;;  %v8510_v20 = vld [vmem:[#allocation8 + $0x1a80] sm:$0xff] }
 0xd9c   :  { %v8514_v22 = vld [vmem:[#allocation8 + $0x1aa0] sm:$0xff] }
 0xd9d   :  { %v11894_v1 = vcombine.low %v8510_v20, %v8514_v22 }
 0xd9e   :  { %8336 = vmatpush1.bf16.msra.mxu1 %v11849_v32  ;;  %8377 = vmatpush1.bf16.msra.mxu0 %v11851_v29  ;;  %v11895_v32 = vcombine.high %v8510_v20, %v8514_v22 }
 0xd9f   :  { %8337 = vmatprep.subr.bf16.mxu1 %v11858_v4  ;;  %8378 = vmatprep.subr.bf16.mxu0 %v11860_v34  ;;  %v11913_v4 = vcombine.high %v8527_v24, %v8531_v25  ;;  %v8535_v34 = vld [vmem:[#allocation8 + $0x1b48] sm:$0xff]  ;;  %v8504_v24 = vld [vmem:[#allocation8 + $0x1a50] sm:$0xff] }
 0xda0   :  { %v11921_v39 = vcombine.high %v8535_v34, %v8539_v5  ;;  %v11920_v9 = vcombine.low %v8535_v34, %v8539_v5 }
 0xda2   :  { %8338 = vmatpush1.bf16.msra.mxu1 %v11857_v37  ;;  %8379 = vmatpush1.bf16.msra.mxu0 %v11859_v43  ;;  %v8526_v37 = vld [vmem:[#allocation8 + $0x1b00] sm:$0xff] }
 0xda3   :  { %8339 = vmatprep.subr.bf16.mxu1 %v11866_v41  ;;  %8380 = vmatprep.subr.bf16.mxu0 %v11868_v16  ;;  %v8530_v43 = vld [vmem:[#allocation8 + $0x1b20] sm:$0xff]  ;;  %v8547_v41 = vld [vmem:[#allocation8 + $0x1ba8] sm:$0xff]  ;;  %v11902_v16 = vcombine.low %v8518_v30, %v8522_v31 }
 0xda4   :  { %v11911_v45 = vcombine.high %v8526_v37, %v8530_v43  ;;  %v11928_v52 = vcombine.low %v8543_v40, %v8547_v41 }
 0xda6   :  { %8340 = vmatpush1.bf16.msra.mxu1 %v11865_v49  ;;  %8381 = vmatpush1.bf16.msra.mxu0 %v11867_v55  ;;  %v11929_v49 = vcombine.high %v8543_v40, %v8547_v41  ;;  %v11910_v55 = vcombine.low %v8526_v37, %v8530_v43  ;;  %v8516_v37 = vld [vmem:[#allocation8 + $0x1ab0] sm:$0xff]  ;;  %v8513_v43 = vld [vmem:[#allocation8 + $0x1a98] sm:$0xff] }
 0xda7   :  { %8341 = vmatprep.subr.bf16.mxu1 %v11874_v53  ;;  %8382 = vmatprep.subr.bf16.mxu0 %v11876_v54  ;;  %v8542_v53 = vld [vmem:[#allocation8 + $0x1b80] sm:$0xff] }
 0xda8   :  { %v8546_v54 = vld [vmem:[#allocation8 + $0x1ba0] sm:$0xff] }
 0xda9   :  { %v11927_v56 = vcombine.high %v8542_v53, %v8546_v54 }
 0xdaa   :  { %8342 = vmatpush1.bf16.msra.mxu1 %v11873_v57  ;;  %8383 = vmatpush1.bf16.msra.mxu0 %v11875_v21  ;;  %v11926_v57 = vcombine.low %v8542_v53, %v8546_v54  ;;  %v8550_v21 = vld [vmem:[#allocation8 + $0x1bc0] sm:$0xff] }
 0xdab   :  { %12335 = vmatprep.subr.bf16.mxu1 %v12892_v0  ;;  %8919 = vmatprep.subr.bf16.mxu0 %v11881_v60  ;;  %v11935_v60 = vcombine.high %v8550_v21, %v8554_v58  ;;  %v11934_v61 = vcombine.low %v8550_v21, %v8554_v58  ;;  %v8528_v21 = vld [vmem:[#allocation8 + $0x1b10] sm:$0xff] }
 0xdac   :  { %v8532_v58 = vld [vmem:[#allocation8 + $0x1b30] sm:$0xff] }
 0xdad   :  { %8360 = vmatmul.mubr.bf16.vlgmr.msra.gmra.mrb[4].mxu1 %v13330_v50  ;;  %8401 = vmatmul.mubr.bf16.vlgmr.msra.gmra.mrb[8].mxu0 %v13330_v50  ;;  %v8519_v50 = vld [vmem:[#allocation8 + $0x1ac8] sm:$0xff] }
 0xdae   :  { %12336 = vmatpush3.bf16.msra.mxu1 %v13293_v44  ;;  %12337 = vmatprep.mubr.msk.bf16.mxu1 %vm12893_vm0, %v12892_v0  ;;  %v11896_v44 = vcombine.low %v8511_v8, %v8515_v10  ;;  %v11905_v23 = vcombine.high %v8519_v50, %v8523_v17  ;;  %v11904_v29 = vcombine.low %v8519_v50, %v8523_v17  ;;  %v9055_v50 = vsel %vm174_vm1, %v9051_v12, 0.0 }
 0xdaf   :  { %8878 = vmatprep.subr.bf16.mxu1 %v11879_v6  ;;  %8920 = vmatpush1.bf16.msra.mxu0 %v11880_v7  ;;  %v8497_v6 = vld [vmem:[#allocation8 + $0x1a18] sm:$0xff]  ;;  %v11883_v7 = vcombine.high %v8496_v2, %v8500_v38  ;;  %v11882_v8 = vcombine.low %v8496_v2, %v8500_v38  ;;  %v9063_v17 = vsel %vm174_vm1, %v9052_v13, 0.0  ;;  %v11915_v2 = vcombine.high %v8528_v21, %v8532_v58 }
 0xdb0   :  { %8921 = vmatprep.subr.bf16.mxu0 %v11889_v33  ;;  %8951 = vmatprep.mubr.bf16.mxu0 %v12894_v42  ;;  %v8501_v33 = vld [vmem:[#allocation8 + $0x1a38] sm:$0xff] }
 0xdb1   :  { %v11884_v10 = vcombine.low %v8497_v6, %v8501_v33  ;;  %v11885_v11 = vcombine.high %v8497_v6, %v8501_v33  ;;  %v8536_v6 = vld [vmem:[#allocation8 + $0x1b50] sm:$0xff]  ;;  %v8537_v33 = vld [vmem:[#allocation8 + $0x1b58] sm:$0xff] }
 0xdb3   :  { %8922 = vmatpush1.bf16.msra.mxu0 %v11888_v27  ;;  %v9050_v27 = vld [vmem:[#allocation2 + $0x34] sm:$0x3] }
 0xdb4   :  { %8923 = vmatprep.subr.bf16.mxu0 %v11897_v14  ;;  %v9053_v14 = vld [vmem:[#allocation2 + $0x7c] sm:$0x3] }
 0xdb5   :  { %12338 = vmatmul.mubr.msk.bf16.vlgmr.msra.gmra.mrb[32].mxu1 %vm216_vm3, %v8448_v48  ;;  %v9054_v48 = vsel %vm174_vm1, %v9050_v27, 0.0 }
 0xdb6   :  { %8879 = vmatpush1.bf16.msra.mxu1 %v11878_v18  ;;  %8910 = vmatprep.mubr.bf16.mxu1 %v12894_v42  ;;  %v9064_v18 = vsel %vm174_vm1, %v9053_v14, 0.0 }
 0xdb7   :  { %8880 = vmatprep.subr.bf16.mxu1 %v11887_v19  ;;  %8924 = vmatpush1.bf16.msra.mxu0 %v11896_v44  ;;  %v9056_v44 = vadd.f32 %v9055_v50, %v9054_v48  ;;  %v9065_v20 = vadd.f32 %v9064_v18, %v9063_v17  ;;  %v8544_v48 = vld [vmem:[#allocation8 + $0x1b90] sm:$0xff]  ;;  %v8545_v17 = vld [vmem:[#allocation8 + $0x1b98] sm:$0xff] }
 0xdb8   :  { %8925 = vmatprep.subr.bf16.mxu0 %v11905_v23  ;;  %v8548_v50 = vld [vmem:[#allocation8 + $0x1bb0] sm:$0xff]  ;;  %v8549_v18 = vld [vmem:[#allocation8 + $0x1bb8] sm:$0xff] }
 0xdb9   :  { %v9066_v34 = vrot.slane %v9065_v20, 4 }
 0xdba   :  { %8881 = vmatpush1.bf16.msra.mxu1 %v11886_v26  ;;  %v8508_v26 = vld [vmem:[#allocation8 + $0x1a70] sm:$0xff] }
 0xdbb   :  { %8882 = vmatprep.subr.bf16.mxu1 %v11895_v32  ;;  %8926 = vmatpush1.bf16.msra.mxu0 %v11904_v29  ;;  %v8505_v32 = vld [vmem:[#allocation8 + $0x1a58] sm:$0xff]  ;;  %v11890_v40 = vcombine.low %v8504_v24, %v8508_v26 }
 0xdbc   :  { %8927 = vmatprep.subr.bf16.mxu0 %v11913_v4  ;;  %v8509_v29 = vld [vmem:[#allocation8 + $0x1a78] sm:$0xff]  ;;  %v9057_v4 = vrot.slane %v9056_v44, 4 }
 0xdbd   :  { %v11892_v41 = vcombine.low %v8505_v32, %v8509_v29 }
 0xdbe   :  { %8883 = vmatpush1.bf16.msra.mxu1 %v11894_v1  ;;  %v11891_v1 = vcombine.high %v8504_v24, %v8508_v26  ;;  %v11933_v24 = vcombine.high %v8545_v17, %v8549_v18  ;;  %v8556_v26 = vld [vmem:[#allocation8 + $0x1bf0] sm:$0xff] }
 0xdbf   :  { %8884 = vmatprep.subr.bf16.mxu1 %v11903_v35  ;;  %8928 = vmatpush1.bf16.msra.mxu0 %v11912_v36  ;;  %v11893_v35 = vcombine.high %v8505_v32, %v8509_v29  ;;  %v8512_v36 = vld [vmem:[#allocation8 + $0x1a90] sm:$0xff]  ;;  %v8553_v32 = vld [vmem:[#allocation8 + $0x1bd8] sm:$0xff] }
 0xdc0   :  { %8929 = vmatprep.subr.bf16.mxu0 %v11921_v39  ;;  %v8517_v39 = vld [vmem:[#allocation8 + $0x1ab8] sm:$0xff] }
 0xdc1   :  { %v11901_v46 = vcombine.high %v8513_v43, %v8517_v39  ;;  %v11900_v53 = vcombine.low %v8513_v43, %v8517_v39  ;;  %v8557_v29 = vld [vmem:[#allocation8 + $0x1bf8] sm:$0xff] }
 0xdc2   :  { %8885 = vmatpush1.bf16.msra.mxu1 %v11902_v16  ;;  %v9058_v16 = vadd.f32 %v9057_v4, %v9056_v44  ;;  %v11940_v39 = vcombine.low %v8553_v32, %v8557_v29 }
 0xdc3   :  { %8886 = vmatprep.subr.bf16.mxu1 %v11911_v45  ;;  %8930 = vmatpush1.bf16.msra.mxu0 %v11920_v9  ;;  %v9067_v45 = vadd.f32 %v9066_v34, %v9065_v20  ;;  %v11899_v9 = vcombine.high %v8512_v36, %v8516_v37 }
 0xdc4   :  { %8931 = vmatprep.subr.bf16.mxu0 %v11929_v49  ;;  %v8524_v49 = vld [vmem:[#allocation8 + $0x1af0] sm:$0xff]  ;;  %v9059_v54 = vrot.slane %v9058_v16, 2 }
 0xdc5   :  { %v11906_v15 = vcombine.low %v8520_v47, %v8524_v49 }
 0xdc6   :  { %8887 = vmatpush1.bf16.msra.mxu1 %v11910_v55  ;;  %v8521_v55 = vld [vmem:[#allocation8 + $0x1ad8] sm:$0xff] }
 0xdc7   :  { %8888 = vmatprep.subr.bf16.mxu1 %v11919_v3  ;;  %8932 = vmatpush1.bf16.msra.mxu0 %v11928_v52  ;;  %v8525_v3 = vld [vmem:[#allocation8 + $0x1af8] sm:$0xff]  ;;  %v11898_v52 = vcombine.low %v8512_v36, %v8516_v37  ;;  %v9127_v36 = vld [vmem:[#allocation8 + $0x1c00] sm:$0xff] }
 0xdc8   :  { %8933 = vmatprep.subr.bf16.mxu0 %v11937_v63  ;;  %v9131_v37 = vld [vmem:[#allocation8 + $0x1c20] sm:$0xff] }
 0xdca   :  { %8889 = vmatpush1.bf16.msra.mxu1 %v11918_v28  ;;  %v9068_v28 = vrot.slane %v9067_v45, 2 }
 0xdcb   :  { %8890 = vmatprep.subr.bf16.mxu1 %v11927_v56  ;;  %8934 = vmatpush1.bf16.msra.mxu0 %v11936_v62  ;;  %v11907_v56 = vcombine.high %v8520_v47, %v8524_v49  ;;  %v9060_v62 = vadd.f32 %v9059_v54, %v9058_v16  ;;  %v11944_v16 = vcombine.high %v9127_v36, %v9131_v37  ;;  %v9139_v47 = vld [vmem:[#allocation8 + $0x1c60] sm:$0xff] }
 0xdcc   :  { %9001 = vmatprep.subr.bf16.mxu0 %v11885_v11  ;;  %v9069_v63 = vadd.f32 %v9068_v28, %v9067_v45  ;;  %v9128_v45 = vld [vmem:[#allocation8 + $0x1c08] sm:$0xff]  ;;  %v9143_v54 = vld [vmem:[#allocation8 + $0x1c80] sm:$0xff] }
 0xdcd   :  { %v9061_v27 = vrot.slane %v9060_v62, 1  ;;  %v9147_v28 = vld [vmem:[#allocation8 + $0x1ca0] sm:$0xff] }
 0xdce   :  { %8891 = vmatpush1.bf16.msra.mxu1 %v11926_v57  ;;  %v11909_v57 = vcombine.high %v8521_v55, %v8525_v3  ;;  %v9070_v12 = vrot.slane %v9069_v63, 1 }
 0xdcf   :  { %8892 = vmatprep.subr.bf16.mxu1 %v11935_v60  ;;  %v8533_v60 = vld [vmem:[#allocation8 + $0x1b38] sm:$0xff]  ;;  %v9062_v20 = vadd.f32 %v9061_v27, %v9060_v62 }
 0xdd0   :  { %v11917_v38 = vcombine.high %v8529_v59, %v8533_v60  ;;  %v11916_v11 = vcombine.low %v8529_v59, %v8533_v60  ;;  %v9140_v59 = vld [vmem:[#allocation8 + $0x1c68] sm:$0xff]  ;;  %v11960_v60 = vcombine.high %v9143_v54, %v9147_v28 }
 0xdd1   :  { %v9072_v4 = vmul.f32 0.25, %v9062_v20  ;;  %v9164_v20 = vld [vmem:[#allocation8 + $0x1d28] sm:$0xff] }
 0xdd2   :  { %8893 = vmatpush1.bf16.msra.mxu1 %v11934_v61  ;;  %v11908_v61 = vcombine.low %v8521_v55, %v8525_v3  ;;  %v11943_v3 = vcombine.low %v9127_v36, %v9131_v37  ;;  %v9180_v36 = vld [vmem:[#allocation8 + $0x1da8] sm:$0xff] }
 0xdd3   :  { %8960 = vmatprep.subr.bf16.mxu1 %v11883_v7  ;;  %v8540_v7 = vld [vmem:[#allocation8 + $0x1b70] sm:$0xff] }
 0xdd4   :  { %v11923_v13 = vcombine.high %v8536_v6, %v8540_v7 }
 0xe88   :  { %v8486_v19 = vpop.f32.mrb[32].mxu1 }
 0xe89   :  { %v8487_v22 = vadd.f32 %v13327_v51, %v8486_v19  ;;  %v12339_v23 = vpop.f32.mrb[33].mxu1  ;;  %v11922_v19 = vcombine.low %v8536_v6, %v8540_v7  ;;  %v9148_v6 = vld [vmem:[#allocation8 + $0x1ca8] sm:$0xff] }
 0xe8a   :  { %v8489_v25 = vpop.f32.mrb[34].mxu1  ;;  %v11931_v23 = vcombine.high %v8544_v48, %v8548_v50 }
 0xe8b   :  { %v8492_v30 = vmax.f32 %v8487_v22, 0.0  ;;  %v12340_v31 = vpop.f32.mrb[35].mxu1  ;;  %v9071_v22 = vadd.f32 %v9070_v12, %v9069_v63  ;;  %v8552_v25 = vld [vmem:[#allocation8 + $0x1bd0] sm:$0xff]  ;;  %v9152_v12 = vld [vmem:[#allocation8 + $0x1cc8] sm:$0xff] }
 0xe8c   :  { %v11932_v31 = vcombine.low %v8545_v17, %v8549_v18  ;;  %v11938_v43 = vcombine.low %v8552_v25, %v8556_v26 }
 0xe8d   :  { %v13351_v5 = vpack.c.bf16 %v8492_v30, %v8492_v30  ;;  %v11930_v30 = vcombine.low %v8544_v48, %v8548_v50  ;;  %v9073_v34 = vmul.f32 0.25, %v9071_v22  ;;  %v9167_v48 = vld [vmem:[#allocation8 + $0x1d40] sm:$0xff] }
 0xe8e   :  { %v9171_v50 = vld [vmem:[#allocation8 + $0x1d60] sm:$0xff] }
 0xe8f   :  { %8911 = vmatmul.mubr.bf16.vlgmr.msra.gmra.mrb[0].mxu1 %v13351_v5  ;;  %8952 = vmatmul.mubr.bf16.vlgmr.msra.gmra.mrb[4].mxu0 %v13351_v5  ;;  %v11984_v22 = vcombine.high %v9167_v48, %v9171_v50 }
 0xe90   :  { %8961 = vmatpush1.bf16.msra.mxu1 %v11882_v8  ;;  %9002 = vmatpush1.bf16.msra.mxu0 %v11884_v10  ;;  %v8541_v8 = vld [vmem:[#allocation8 + $0x1b78] sm:$0xff]  ;;  %v11914_v10 = vcombine.low %v8528_v21, %v8532_v58  ;;  %v9136_v58 = vld [vmem:[#allocation8 + $0x1c48] sm:$0xff] }
 0xe91   :  { %8962 = vmatprep.subr.bf16.mxu1 %v11891_v1  ;;  %9003 = vmatprep.subr.bf16.mxu0 %v11893_v35  ;;  %v11925_v14 = vcombine.high %v8537_v33, %v8541_v8  ;;  %v11924_v44 = vcombine.low %v8537_v33, %v8541_v8  ;;  %v11939_v1 = vcombine.high %v8552_v25, %v8556_v26  ;;  %v9159_v33 = vld [vmem:[#allocation8 + $0x1d00] sm:$0xff] }
 0xe92   :  { %8992 = vmatprep.mubr.bf16.mxu1 %v12894_v42  ;;  %9033 = vmatprep.mubr.bf16.mxu0 %v12894_v42  ;;  %v11941_v35 = vcombine.high %v8553_v32, %v8557_v29  ;;  %v11954_v63 = vcombine.high %v9136_v58, %v9140_v59  ;;  %v9163_v8 = vld [vmem:[#allocation8 + $0x1d20] sm:$0xff]  ;;  %v11983_v32 = vcombine.low %v9167_v48, %v9171_v50  ;;  %v9168_v29 = vld [vmem:[#allocation8 + $0x1d48] sm:$0xff] }
 0xe94   :  { %8963 = vmatpush1.bf16.msra.mxu1 %v11890_v40  ;;  %9004 = vmatpush1.bf16.msra.mxu0 %v11892_v41  ;;  %v9074_v40 = vpack.c.bf16 %v9072_v4, %v9072_v4  ;;  %v9075_v41 = vpack.c.bf16 %v9073_v34, %v9073_v34 }
 0xe95   :  { %8964 = vmatprep.subr.bf16.mxu1 %v11899_v9  ;;  %9005 = vmatprep.subr.bf16.mxu0 %v11901_v46  ;;  %v9132_v9 = vld [vmem:[#allocation8 + $0x1c28] sm:$0xff]  ;;  %v9135_v46 = vld [vmem:[#allocation8 + $0x1c40] sm:$0xff] }
 0xe96   :  { %v9078_v49 = vunpack.c.l.b16 %v9074_v40  ;;  %v9079_v55 = vunpack.c.l.b16 %v9075_v41  ;;  %v11951_v21 = vcombine.low %v9135_v46, %v9139_v47  ;;  %v11945_v62 = vcombine.low %v9128_v45, %v9132_v9  ;;  %v9183_v40 = vld [vmem:[#allocation8 + $0x1dc0] sm:$0xff] }
 0xe97   :  { %v9187_v41 = vld [vmem:[#allocation8 + $0x1de0] sm:$0xff] }
 0xe98   :  { %8965 = vmatpush1.bf16.msra.mxu1 %v11898_v52  ;;  %9006 = vmatpush1.bf16.msra.mxu0 %v11900_v53  ;;  %v11946_v52 = vcombine.high %v9128_v45, %v9132_v9  ;;  %v11952_v53 = vcombine.high %v9135_v46, %v9139_v47  ;;  %v12000_v45 = vcombine.high %v9183_v40, %v9187_v41  ;;  %v9188_v9 = vld [vmem:[#allocation8 + $0x1de8] sm:$0xff] }
 0xe99   :  { %8966 = vmatprep.subr.bf16.mxu1 %v11907_v56  ;;  %9007 = vmatprep.subr.bf16.mxu0 %v11909_v57  ;;  %v13360_v56 = vld [vmem:[#allocation5] sm:$0xff]   ;;  %v9080_v57 = vsel %vm207_vm2, %v9079_v55, %v9078_v49  ;;  %v11999_v46 = vcombine.low %v9183_v40, %v9187_v41 }
 0xe9a   :  { %v9129_v55 = vld [vmem:[#allocation8 + $0x1c10] sm:$0xff] }
 0xe9b   :  { %v9161_v40 = vld [vmem:[#allocation8 + $0x1d10] sm:$0xff] }
 0xe9c   :  { %8967 = vmatpush1.bf16.msra.mxu1 %v11906_v15  ;;  %9008 = vmatpush1.bf16.msra.mxu0 %v11908_v61  ;;  %v9151_v15 = vld [vmem:[#allocation8 + $0x1cc0] sm:$0xff]  ;;  %v9165_v41 = vld [vmem:[#allocation8 + $0x1d30] sm:$0xff] }
 0xe9d   :  { %8968 = vmatprep.subr.bf16.mxu1 %v11915_v2  ;;  %9009 = vmatprep.subr.bf16.mxu0 %v11917_v38  ;;  %v9155_v61 = vld [vmem:[#allocation8 + $0x1ce0] sm:$0xff]  ;;  %v11959_v2 = vcombine.low %v9143_v54, %v9147_v28  ;;  %v9144_v38 = vld [vmem:[#allocation8 + $0x1c88] sm:$0xff]  ;;  %v9134_v54 = vld [vmem:[#allocation8 + $0x1c38] sm:$0xff] }
 0xe9e   :  { %v11968_v7 = vcombine.high %v9151_v15, %v9155_v61  ;;  %v11967_v27 = vcombine.low %v9151_v15, %v9155_v61  ;;  %v11961_v17 = vcombine.low %v9144_v38, %v9148_v6 }
 0xea0   :  { %8969 = vmatpush1.bf16.msra.mxu1 %v11914_v10  ;;  %9010 = vmatpush1.bf16.msra.mxu0 %v11916_v11  ;;  %v11953_v10 = vcombine.low %v9136_v58, %v9140_v59  ;;  %v11962_v11 = vcombine.high %v9144_v38, %v9148_v6  ;;  %v9683_v58 = vld [vmem:[#allocation2 + $0x36] sm:$0x3]  ;;  %v9684_v59 = vld [vmem:[#allocation2 + $0x3e] sm:$0x3] }
 0xea1   :  { %8970 = vmatprep.subr.bf16.mxu1 %v11923_v13  ;;  %9011 = vmatprep.subr.bf16.mxu0 %v11925_v14  ;;  %v9156_v13 = vld [vmem:[#allocation8 + $0x1ce8] sm:$0xff]  ;;  %v11976_v14 = vcombine.high %v9159_v33, %v9163_v8  ;;  %v9687_v15 = vsel %vm174_vm1, %v9683_v58, 0.0  ;;  %v9688_v61 = vsel %vm174_vm1, %v9684_v59, 0.0 }
 0xea2   :  { %v11970_v18 = vcombine.high %v9152_v12, %v9156_v13  ;;  %v11969_v25 = vcombine.low %v9152_v12, %v9156_v13  ;;  %v9689_v38 = vadd.f32 %v9688_v61, %v9687_v15  ;;  %v9142_v12 = vld [vmem:[#allocation8 + $0x1c78] sm:$0xff]  ;;  %v9177_v15 = vld [vmem:[#allocation8 + $0x1d90] sm:$0xff] }
 0xea3   :  { %v9181_v61 = vld [vmem:[#allocation8 + $0x1db0] sm:$0xff] }
 0xea4   :  { %8971 = vmatpush1.bf16.msra.mxu1 %v11922_v19  ;;  %9012 = vmatpush1.bf16.msra.mxu0 %v11924_v44  ;;  %v11975_v19 = vcombine.low %v9159_v33, %v9163_v8  ;;  %v9160_v44 = vld [vmem:[#allocation8 + $0x1d08] sm:$0xff]  ;;  %v9137_v8 = vld [vmem:[#allocation8 + $0x1c50] sm:$0xff]  ;;  %v9690_v48 = vrot.slane %v9689_v38, 4 }
 0xea5   :  { %8972 = vmatprep.subr.bf16.mxu1 %v11931_v23  ;;  %9013 = vmatprep.subr.bf16.mxu0 %v11933_v24  ;;  %v9175_v23 = vld [vmem:[#allocation8 + $0x1d80] sm:$0xff]  ;;  %v11978_v26 = vcombine.high %v9160_v44, %v9164_v20  ;;  %v11977_v4 = vcombine.low %v9160_v44, %v9164_v20  ;;  %v9145_v44 = vld [vmem:[#allocation8 + $0x1c90] sm:$0xff] }
 0xea6   :  { %v9179_v24 = vld [vmem:[#allocation8 + $0x1da0] sm:$0xff]  ;;  %v9149_v20 = vld [vmem:[#allocation8 + $0x1cb0] sm:$0xff] }
 0xea8   :  { %8973 = vmatpush1.bf16.msra.mxu1 %v11930_v30  ;;  %9014 = vmatpush1.bf16.msra.mxu0 %v11932_v31  ;;  %v9172_v30 = vld [vmem:[#allocation8 + $0x1d68] sm:$0xff]  ;;  %v11992_v31 = vcombine.high %v9175_v23, %v9179_v24 }
 0xea9   :  { %8974 = vmatprep.subr.bf16.mxu1 %v11939_v1  ;;  %9015 = vmatprep.subr.bf16.mxu0 %v11941_v35  ;;  %v11986_v34 = vcombine.high %v9168_v29, %v9172_v30  ;;  %v11991_v1 = vcombine.low %v9175_v23, %v9179_v24  ;;  %v9176_v35 = vld [vmem:[#allocation8 + $0x1d88] sm:$0xff]  ;;  %v11985_v37 = vcombine.low %v9168_v29, %v9172_v30  ;;  %v9150_v23 = vld [vmem:[#allocation8 + $0x1cb8] sm:$0xff]  ;;  %v9153_v30 = vld [vmem:[#allocation8 + $0x1cd0] sm:$0xff] }
 0xeac   :  { %8975 = vmatpush1.bf16.msra.mxu1 %v11938_v43  ;;  %9016 = vmatpush1.bf16.msra.mxu0 %v11940_v39  ;;  %v11994_v43 = vcombine.high %v9176_v35, %v9180_v36  ;;  %v11993_v39 = vcombine.low %v9176_v35, %v9180_v36 }
 0xead   :  { %12341 = vmatprep.subr.bf16.mxu0 %v12892_v0  ;;  %9511 = vmatprep.subr.bf16.mxu1 %v11944_v16  ;;  %v9184_v16 = vld [vmem:[#allocation8 + $0x1dc8] sm:$0xff] }
 0xeae   :  { %v12001_v47 = vcombine.low %v9184_v16, %v9188_v9  ;;  %v12002_v49 = vcombine.high %v9184_v16, %v9188_v9  ;;  %v9162_v16 = vld [vmem:[#allocation8 + $0x1d18] sm:$0xff] }
 0xeaf   :  { %8993 = vmatmul.mubr.bf16.vlgmr.msra.gmra.mrb[4].mxu1 %v13351_v5  ;;  %9034 = vmatmul.mubr.bf16.vlgmr.msra.gmra.mrb[8].mxu0 %v13351_v5  ;;  %v9081_v5 = vpack.c.b16 %v9080_v57, %v9080_v57 }
 0xeb0   :  { %12342 = vmatpush3.bf16.msra.mxu0 %v13360_v56  ;;  %12343 = vmatprep.mubr.msk.bf16.mxu0 %vm12893_vm0, %v12892_v0 }
 0xeb1   :  { %9552 = vmatprep.subr.bf16.mxu0 %v11946_v52  ;;  %9512 = vmatpush1.bf16.msra.mxu1 %v11943_v3  ;;  %v9133_v3 = vld [vmem:[#allocation8 + $0x1c30] sm:$0xff]  ;;  %v9130_v52 = vld [vmem:[#allocation8 + $0x1c18] sm:$0xff] }
 0xeb2   :  { %9513 = vmatprep.subr.bf16.mxu1 %v11952_v53  ;;  %9543 = vmatprep.mubr.bf16.mxu1 %v12894_v42  ;;  %v11948_v53 = vcombine.high %v9129_v55, %v9133_v3  ;;  %v11947_v28 = vcombine.low %v9129_v55, %v9133_v3  ;;  %v11949_v57 = vcombine.low %v9130_v52, %v9134_v54 }
 0xeb3   :  { %v11980_v55 = vcombine.high %v9161_v40, %v9165_v41 }
 0xeb5   :  { %9514 = vmatpush1.bf16.msra.mxu1 %v11951_v21  ;;  %v11950_v21 = vcombine.high %v9130_v52, %v9134_v54  ;;  %v9169_v52 = vld [vmem:[#allocation8 + $0x1d50] sm:$0xff]  ;;  %v9170_v54 = vld [vmem:[#allocation8 + $0x1d58] sm:$0xff] }
 0xeb6   :  { %9515 = vmatprep.subr.bf16.mxu1 %v11960_v60  ;;  %v9685_v60 = vld [vmem:[#allocation2 + $0x76] sm:$0x3] }
 0xeb7   :  { %12344 = vmatmul.mubr.msk.bf16.vlgmr.msra.gmra.mrb[36].mxu0 %vm216_vm3, %v9081_v5  ;;  %v9686_v5 = vld [vmem:[#allocation2 + $0x7e] sm:$0x3] }
 0xeb8   :  { %9553 = vmatpush1.bf16.msra.mxu0 %v11945_v62  ;;  %9584 = vmatprep.mubr.bf16.mxu0 %v12894_v42  ;;  %v9696_v62 = vsel %vm174_vm1, %v9685_v60, 0.0 }
 0xeb9   :  { %9554 = vmatprep.subr.bf16.mxu0 %v11954_v63  ;;  %9516 = vmatpush1.bf16.msra.mxu1 %v11959_v2  ;;  %v9697_v63 = vsel %vm174_vm1, %v9686_v5, 0.0 }
 0xeba   :  { %9517 = vmatprep.subr.bf16.mxu1 %v11968_v7  ;;  %v9698_v6 = vadd.f32 %v9697_v63, %v9696_v62  ;;  %v9178_v62 = vld [vmem:[#allocation8 + $0x1d98] sm:$0xff] }
 0xebb   :  { %v9182_v63 = vld [vmem:[#allocation8 + $0x1db8] sm:$0xff] }
 0xebc   :  { %9555 = vmatpush1.bf16.msra.mxu0 %v11953_v10  ;;  %v9699_v50 = vrot.slane %v9698_v6, 4 }
 0xebd   :  { %9556 = vmatprep.subr.bf16.mxu0 %v11962_v11  ;;  %9518 = vmatpush1.bf16.msra.mxu1 %v11967_v27  ;;  %v9141_v11 = vld [vmem:[#allocation8 + $0x1c70] sm:$0xff]  ;;  %v9138_v27 = vld [vmem:[#allocation8 + $0x1c58] sm:$0xff] }
 0xebe   :  { %9519 = vmatprep.subr.bf16.mxu1 %v11976_v14  ;;  %v11957_v24 = vcombine.low %v9138_v27, %v9142_v12 }
 0xec0   :  { %9557 = vmatpush1.bf16.msra.mxu0 %v11961_v17 }
 0xec1   :  { %9558 = vmatprep.subr.bf16.mxu0 %v11970_v18  ;;  %9520 = vmatpush1.bf16.msra.mxu1 %v11975_v19  ;;  %v11956_v18 = vcombine.high %v9137_v8, %v9141_v11  ;;  %v11958_v19 = vcombine.high %v9138_v27, %v9142_v12  ;;  %v9186_v27 = vld [vmem:[#allocation8 + $0x1dd8] sm:$0xff] }
 0xec2   :  { %9521 = vmatprep.subr.bf16.mxu1 %v11984_v22  ;;  %v9146_v22 = vld [vmem:[#allocation8 + $0x1c98] sm:$0xff] }
 0xec3   :  { %v11966_v29 = vcombine.high %v9146_v22, %v9150_v23  ;;  %v11965_v35 = vcombine.low %v9146_v22, %v9150_v23  ;;  %v9190_v12 = vld [vmem:[#allocation8 + $0x1df8] sm:$0xff] }
 0xec4   :  { %9559 = vmatpush1.bf16.msra.mxu0 %v11969_v25  ;;  %v9691_v25 = vadd.f32 %v9690_v48, %v9689_v38  ;;  %v12005_v23 = vcombine.low %v9186_v27, %v9190_v12 }
 0xec5   :  { %9560 = vmatprep.subr.bf16.mxu0 %v11978_v26  ;;  %9522 = vmatpush1.bf16.msra.mxu1 %v11983_v32  ;;  %v9700_v26 = vadd.f32 %v9699_v50, %v9698_v6  ;;  %v11964_v32 = vcombine.high %v9145_v44, %v9149_v20 }
 0xec6   :  { %9523 = vmatprep.subr.bf16.mxu1 %v11992_v31  ;;  %v9157_v31 = vld [vmem:[#allocation8 + $0x1cf0] sm:$0xff]  ;;  %v9692_v36 = vrot.slane %v9691_v25, 2 }
 0xec7   :  { %v11971_v9 = vcombine.low %v9153_v30, %v9157_v31 }
 0xec8   :  { %9561 = vmatpush1.bf16.msra.mxu0 %v11977_v4  ;;  %v9154_v4 = vld [vmem:[#allocation8 + $0x1cd8] sm:$0xff] }
 0xec9   :  { %9562 = vmatprep.subr.bf16.mxu0 %v11986_v34  ;;  %9524 = vmatpush1.bf16.msra.mxu1 %v11991_v1  ;;  %v9158_v34 = vld [vmem:[#allocation8 + $0x1cf8] sm:$0xff]  ;;  %v11963_v1 = vcombine.low %v9145_v44, %v9149_v20  ;;  %v9761_v44 = vld [vmem:[#allocation8 + $0x1e08] sm:$0xff] }
 0xeca   :  { %9525 = vmatprep.subr.bf16.mxu1 %v12000_v45  ;;  %v9166_v45 = vld [vmem:[#allocation8 + $0x1d38] sm:$0xff]  ;;  %v9765_v20 = vld [vmem:[#allocation8 + $0x1e28] sm:$0xff] }
 0xecb   :  { %v11982_v3 = vcombine.high %v9162_v16, %v9166_v45 }
 0xecc   :  { %9563 = vmatpush1.bf16.msra.mxu0 %v11985_v37  ;;  %v9701_v37 = vrot.slane %v9700_v26, 2 }
 0xecd   :  { %9564 = vmatprep.subr.bf16.mxu0 %v11994_v43  ;;  %9526 = vmatpush1.bf16.msra.mxu1 %v11999_v46  ;;  %v11972_v43 = vcombine.high %v9153_v30, %v9157_v31  ;;  %v11973_v46 = vcombine.low %v9154_v4, %v9158_v34  ;;  %v9773_v30 = vld [vmem:[#allocation8 + $0x1e68] sm:$0xff] }
 0xece   :  { %9593 = vmatprep.subr.bf16.mxu1 %v11948_v53  ;;  %v9173_v53 = vld [vmem:[#allocation8 + $0x1d70] sm:$0xff] }
 0xecf   :  { %v11988_v60 = vcombine.high %v9169_v52, %v9173_v53 }
 0xed0   :  { %9565 = vmatpush1.bf16.msra.mxu0 %v11993_v39  ;;  %v11974_v39 = vcombine.high %v9154_v4, %v9158_v34 }
 0xed1   :  { %9566 = vmatprep.subr.bf16.mxu0 %v12002_v49  ;;  %v9702_v49 = vadd.f32 %v9701_v37, %v9700_v26  ;;  %v9760_v26 = vld [vmem:[#allocation8 + $0x1e00] sm:$0xff]  ;;  %v9781_v37 = vld [vmem:[#allocation8 + $0x1ea8] sm:$0xff] }
 0xed3   :  { %v9703_v59 = vrot.slane %v9702_v49, 1 }
 0xed4   :  { %9567 = vmatpush1.bf16.msra.mxu0 %v12001_v47  ;;  %v9693_v47 = vadd.f32 %v9692_v36, %v9691_v25  ;;  %v12011_v25 = vcombine.high %v9761_v44, %v9765_v20  ;;  %v9777_v36 = vld [vmem:[#allocation8 + $0x1e88] sm:$0xff] }
 0xed5   :  { %9634 = vmatprep.subr.bf16.mxu0 %v11950_v21  ;;  %v11981_v21 = vcombine.low %v9162_v16, %v9166_v45  ;;  %v12027_v16 = vcombine.high %v9777_v36, %v9781_v37 }
 0xed6   :  { %v9694_v58 = vrot.slane %v9693_v47, 1 }
 0xed8   :  { %v9695_v6 = vadd.f32 %v9694_v58, %v9693_v47 }
 0xeda   :  { %v9705_v48 = vmul.f32 0.25, %v9695_v6  ;;  %v9813_v6 = vld [vmem:[#allocation8 + $0x1fa8] sm:$0xff] }
 0xf8a   :  { %v9119_v2 = vpop.f32.mrb[36].mxu0 }
 0xf8b   :  { %v9120_v7 = vadd.f32 %v13327_v51, %v9119_v2  ;;  %v12345_v33 = vpop.f32.mrb[37].mxu0  ;;  %v11955_v51 = vcombine.low %v9137_v8, %v9141_v11  ;;  %v11987_v2 = vcombine.low %v9169_v52, %v9173_v53  ;;  %v11998_v8 = vcombine.high %v9178_v62, %v9182_v63  ;;  %v9189_v11 = vld [vmem:[#allocation8 + $0x1df0] sm:$0xff]  ;;  %v9797_v52 = vld [vmem:[#allocation8 + $0x1f28] sm:$0xff] }
 0xf8c   :  { %v9122_v10 = vpop.f32.mrb[38].mxu0  ;;  %v11996_v33 = vcombine.high %v9177_v15, %v9181_v61 }
 0xf8d   :  { %v9125_v13 = vmax.f32 %v9120_v7, 0.0  ;;  %v12346_v14 = vpop.f32.mrb[39].mxu0  ;;  %v9704_v7 = vadd.f32 %v9703_v59, %v9702_v49  ;;  %v9185_v10 = vld [vmem:[#allocation8 + $0x1dd0] sm:$0xff]  ;;  %v9776_v49 = vld [vmem:[#allocation8 + $0x1e80] sm:$0xff]  ;;  %v9801_v59 = vld [vmem:[#allocation8 + $0x1f48] sm:$0xff] }
 0xf8e   :  { %v11997_v14 = vcombine.low %v9178_v62, %v9182_v63  ;;  %v12003_v22 = vcombine.low %v9185_v10, %v9189_v11  ;;  %v9792_v62 = vld [vmem:[#allocation8 + $0x1f00] sm:$0xff] }
 0xf8f   :  { %v13374_v17 = vpack.c.bf16 %v9125_v13, %v9125_v13  ;;  %v11995_v13 = vcombine.low %v9177_v15, %v9181_v61  ;;  %v9706_v50 = vmul.f32 0.25, %v9704_v7  ;;  %v9796_v63 = vld [vmem:[#allocation8 + $0x1f20] sm:$0xff] }
 0xf91   :  { %9544 = vmatmul.mubr.bf16.vlgmr.msra.gmra.mrb[0].mxu1 %v13374_v17  ;;  %9585 = vmatmul.mubr.bf16.vlgmr.msra.gmra.mrb[4].mxu0 %v13374_v17 }
 0xf92   :  { %9594 = vmatpush1.bf16.msra.mxu1 %v11947_v28  ;;  %9635 = vmatpush1.bf16.msra.mxu0 %v11949_v57  ;;  %v9174_v28 = vld [vmem:[#allocation8 + $0x1d78] sm:$0xff]  ;;  %v11979_v57 = vcombine.low %v9161_v40, %v9165_v41  ;;  %v9768_v40 = vld [vmem:[#allocation8 + $0x1e40] sm:$0xff] }
 0xf93   :  { %9595 = vmatprep.subr.bf16.mxu1 %v11956_v18  ;;  %9636 = vmatprep.subr.bf16.mxu0 %v11958_v19  ;;  %v11990_v5 = vcombine.high %v9170_v54, %v9174_v28  ;;  %v11989_v38 = vcombine.low %v9170_v54, %v9174_v28  ;;  %v12004_v18 = vcombine.high %v9185_v10, %v9189_v11  ;;  %v9772_v41 = vld [vmem:[#allocation8 + $0x1e60] sm:$0xff] }
 0xf94   :  { %9625 = vmatprep.mubr.bf16.mxu1 %v12894_v42  ;;  %9666 = vmatprep.mubr.bf16.mxu0 %v12894_v42  ;;  %v12006_v19 = vcombine.high %v9186_v27, %v9190_v12  ;;  %v12017_v47 = vcombine.high %v9768_v40, %v9772_v41  ;;  %v12016_v53 = vcombine.low %v9768_v40, %v9772_v41  ;;  %v9800_v10 = vld [vmem:[#allocation8 + $0x1f40] sm:$0xff]  ;;  %v9770_v41 = vld [vmem:[#allocation8 + $0x1e50] sm:$0xff] }
 0xf95   :  { %v9804_v11 = vld [vmem:[#allocation8 + $0x1f60] sm:$0xff]  ;;  %v12040_v12 = vcombine.low %v9792_v62, %v9796_v63 }
 0xf96   :  { %9596 = vmatpush1.bf16.msra.mxu1 %v11955_v51  ;;  %9637 = vmatpush1.bf16.msra.mxu0 %v11957_v24  ;;  %v9707_v51 = vpack.c.bf16 %v9705_v48, %v9705_v48  ;;  %v9708_v24 = vpack.c.bf16 %v9706_v50, %v9706_v50  ;;  %v9808_v48 = vld [vmem:[#allocation8 + $0x1f80] sm:$0xff] }
 0xf97   :  { %9597 = vmatprep.subr.bf16.mxu1 %v11964_v32  ;;  %9638 = vmatprep.subr.bf16.mxu0 %v11966_v29  ;;  %v9764_v32 = vld [vmem:[#allocation8 + $0x1e20] sm:$0xff]  ;;  %v9769_v29 = vld [vmem:[#allocation8 + $0x1e48] sm:$0xff] }
 0xf98   :  { %v9711_v31 = vunpack.c.l.b16 %v9707_v51  ;;  %v9712_v4 = vunpack.c.l.b16 %v9708_v24  ;;  %v12009_v34 = vcombine.high %v9760_v26, %v9764_v32  ;;  %v9812_v50 = vld [vmem:[#allocation8 + $0x1fa0] sm:$0xff]  ;;  %v9821_v24 = vld [vmem:[#allocation8 + $0x1fe8] sm:$0xff] }
 0xf9a   :  { %9598 = vmatpush1.bf16.msra.mxu1 %v11963_v1  ;;  %9639 = vmatpush1.bf16.msra.mxu0 %v11965_v35  ;;  %v12010_v1 = vcombine.low %v9761_v44, %v9765_v20  ;;  %v12019_v35 = vcombine.high %v9769_v29, %v9773_v30  ;;  %v12056_v44 = vcombine.low %v9808_v48, %v9812_v50  ;;  %v9816_v20 = vld [vmem:[#allocation8 + $0x1fc0] sm:$0xff] }
 0xf9b   :  { %9599 = vmatprep.subr.bf16.mxu1 %v11972_v43  ;;  %9640 = vmatprep.subr.bf16.mxu0 %v11974_v39  ;;  %v9713_v43 = vsel %vm207_vm2, %v9712_v4, %v9711_v31  ;;  %v12018_v39 = vcombine.low %v9769_v29, %v9773_v30  ;;  %v9762_v29 = vld [vmem:[#allocation8 + $0x1e10] sm:$0xff]  ;;  %v9763_v31 = vld [vmem:[#allocation8 + $0x1e18] sm:$0xff] }
 0xf9c   :  { %v9714_v45 = vpack.c.b16 %v9713_v43, %v9713_v43  ;;  %v9766_v30 = vld [vmem:[#allocation8 + $0x1e30] sm:$0xff]  ;;  %v12692_v43 = vld [vmem:[#allocation7] ss:$0 sm:$0xff] }
 0xf9d   :  { %v12013_v4 = vcombine.high %v9762_v29, %v9766_v30 }
 0xf9e   :  { %9600 = vmatpush1.bf16.msra.mxu1 %v11971_v9  ;;  %9641 = vmatpush1.bf16.msra.mxu0 %v11973_v46  ;;  %v9789_v9 = vld [vmem:[#allocation8 + $0x1ee8] sm:$0xff]  ;;  %v12008_v46 = vcombine.low %v9760_v26, %v9764_v32 }
 0xf9f   :  { %9601 = vmatprep.subr.bf16.mxu1 %v11980_v55  ;;  %9642 = vmatprep.subr.bf16.mxu0 %v11982_v3  ;;  %v9793_v3 = vld [vmem:[#allocation8 + $0x1f08] sm:$0xff] }
 0xfa0   :  { %v12043_v58 = vcombine.high %v9793_v3, %v9797_v52  ;;  %v12042_v61 = vcombine.low %v9793_v3, %v9797_v52  ;;  %v9782_v3 = vld [vmem:[#allocation8 + $0x1eb0] sm:$0xff]  ;;  %v9779_v52 = vld [vmem:[#allocation8 + $0x1e98] sm:$0xff] }
 0xfa2   :  { %9602 = vmatpush1.bf16.msra.mxu1 %v11979_v57  ;;  %9643 = vmatpush1.bf16.msra.mxu0 %v11981_v21  ;;  %v9784_v57 = vld [vmem:[#allocation8 + $0x1ec0] sm:$0xff] }
 0xfa3   :  { %9603 = vmatprep.subr.bf16.mxu1 %v11988_v60  ;;  %9644 = vmatprep.subr.bf16.mxu0 %v11990_v5  ;;  %v9788_v21 = vld [vmem:[#allocation8 + $0x1ee0] sm:$0xff]  ;;  %v9805_v60 = vld [vmem:[#allocation8 + $0x1f68] sm:$0xff] }
 0xfa4   :  { %v12033_v15 = vcombine.high %v9784_v57, %v9788_v21  ;;  %v12032_v7 = vcombine.low %v9784_v57, %v9788_v21 }
 0xfa6   :  { %9604 = vmatpush1.bf16.msra.mxu1 %v11987_v2  ;;  %9645 = vmatpush1.bf16.msra.mxu0 %v11989_v38  ;;  %v12051_v2 = vcombine.high %v9801_v59, %v9805_v60  ;;  %v9809_v38 = vld [vmem:[#allocation8 + $0x1f88] sm:$0xff] }
 0xfa7   :  { %9605 = vmatprep.subr.bf16.mxu1 %v11996_v33  ;;  %9646 = vmatprep.subr.bf16.mxu0 %v11998_v8  ;;  %v12041_v33 = vcombine.high %v9792_v62, %v9796_v63  ;;  %v12050_v8 = vcombine.low %v9801_v59, %v9805_v60  ;;  %v12059_v27 = vcombine.high %v9809_v38, %v9813_v6  ;;  %v9790_v59 = vld [vmem:[#allocation8 + $0x1ef0] sm:$0xff]  ;;  %v9787_v60 = vld [vmem:[#allocation8 + $0x1ed8] sm:$0xff] }
 0xfaa   :  { %9606 = vmatpush1.bf16.msra.mxu1 %v11995_v13  ;;  %9647 = vmatpush1.bf16.msra.mxu0 %v11997_v14  ;;  %v12049_v13 = vcombine.high %v9800_v10, %v9804_v11  ;;  %v12058_v14 = vcombine.low %v9809_v38, %v9813_v6  ;;  %v9798_v38 = vld [vmem:[#allocation8 + $0x1f30] sm:$0xff]  ;;  %v9795_v6 = vld [vmem:[#allocation8 + $0x1f18] sm:$0xff] }
 0xfab   :  { %9607 = vmatprep.subr.bf16.mxu1 %v12004_v18  ;;  %9648 = vmatprep.subr.bf16.mxu0 %v12006_v19  ;;  %v12048_v18 = vcombine.low %v9800_v10, %v9804_v11  ;;  %v12057_v19 = vcombine.high %v9808_v48, %v9812_v50  ;;  %v9802_v11 = vld [vmem:[#allocation8 + $0x1f50] sm:$0xff] }
 0xfae   :  { %9608 = vmatpush1.bf16.msra.mxu1 %v12003_v22  ;;  %9649 = vmatpush1.bf16.msra.mxu0 %v12005_v23  ;;  %v9820_v22 = vld [vmem:[#allocation8 + $0x1fe0] sm:$0xff]  ;;  %v9817_v23 = vld [vmem:[#allocation8 + $0x1fc8] sm:$0xff] }
 0xfaf   :  { %12347 = vmatprep.subr.bf16.mxu1 %v12892_v0  ;;  %10185 = vmatprep.subr.bf16.mxu0 %v12011_v25  ;;  %v12065_v51 = vcombine.high %v9816_v20, %v9820_v22  ;;  %v12064_v25 = vcombine.low %v9816_v20, %v9820_v22  ;;  %v12066_v26 = vcombine.low %v9817_v23, %v9821_v24  ;;  %v9811_v20 = vld [vmem:[#allocation8 + $0x1f98] sm:$0xff] }
 0xfb0   :  { %v12067_v32 = vcombine.high %v9817_v23, %v9821_v24  ;;  %v9815_v22 = vld [vmem:[#allocation8 + $0x1fb8] sm:$0xff] }
 0xfb1   :  { %9626 = vmatmul.mubr.bf16.vlgmr.msra.gmra.mrb[4].mxu1 %v13374_v17  ;;  %9667 = vmatmul.mubr.bf16.vlgmr.msra.gmra.mrb[8].mxu0 %v13374_v17  ;;  %v9785_v17 = vld [vmem:[#allocation8 + $0x1ec8] sm:$0xff] }
 0xfb2   :  { %12348 = vmatpush3.bf16.msra.mxu1 %v13360_v56  ;;  %12349 = vmatprep.mubr.msk.bf16.mxu1 %vm12893_vm0, %v12892_v0  ;;  %v12026_v56 = vcombine.low %v9777_v36, %v9781_v37  ;;  %v9780_v0 = vld [vmem:[#allocation8 + $0x1ea0] sm:$0xff]  ;;  %v12035_v55 = vcombine.high %v9785_v17, %v9789_v9  ;;  %v12034_v28 = vcombine.low %v9785_v17, %v9789_v9  ;;  %v9771_v17 = vld [vmem:[#allocation8 + $0x1e58] sm:$0xff] }
 0xfb3   :  { %10144 = vmatprep.subr.bf16.mxu1 %v12009_v34  ;;  %10186 = vmatpush1.bf16.msra.mxu0 %v12010_v1  ;;  %v12025_v54 = vcombine.high %v9776_v49, %v9780_v0  ;;  %v12024_v5 = vcombine.low %v9776_v49, %v9780_v0  ;;  %v9767_v34 = vld [vmem:[#allocation8 + $0x1e38] sm:$0xff]  ;;  %v12012_v1 = vcombine.low %v9762_v29, %v9766_v30 }
 0xfb4   :  { %10187 = vmatprep.subr.bf16.mxu0 %v12019_v35  ;;  %10217 = vmatprep.mubr.bf16.mxu0 %v12894_v42  ;;  %v12014_v35 = vcombine.low %v9763_v31, %v9767_v34  ;;  %v12015_v36 = vcombine.high %v9763_v31, %v9767_v34  ;;  %v9775_v9 = vld [vmem:[#allocation8 + $0x1e78] sm:$0xff] }
 0xfb5   :  { %v12023_v0 = vcombine.high %v9771_v17, %v9775_v9  ;;  %v9819_v29 = vld [vmem:[#allocation8 + $0x1fd8] sm:$0xff] }
 0xfb6   :  { %v9823_v30 = vld [vmem:[#allocation8 + $0x1ff8] sm:$0xff] }
 0xfb7   :  { %10188 = vmatpush1.bf16.msra.mxu0 %v12018_v39 }
 0xfb8   :  { %10189 = vmatprep.subr.bf16.mxu0 %v12027_v16 }
 0xfb9   :  { %12350 = vmatmul.mubr.msk.bf16.vlgmr.msra.gmra.mrb[36].mxu1 %vm216_vm3, %v9714_v45  ;;  %v9774_v45 = vld [vmem:[#allocation8 + $0x1e70] sm:$0xff] }
 0xfba   :  { %10145 = vmatpush1.bf16.msra.mxu1 %v12008_v46  ;;  %10176 = vmatprep.mubr.bf16.mxu1 %v12894_v42  ;;  %v12021_v49 = vcombine.high %v9770_v41, %v9774_v45 }
 0xfbb   :  { %10146 = vmatprep.subr.bf16.mxu1 %v12017_v47  ;;  %10190 = vmatpush1.bf16.msra.mxu0 %v12026_v56 }
 0xfbc   :  { %10191 = vmatprep.subr.bf16.mxu0 %v12035_v55  ;;  %v9778_v55 = vld [vmem:[#allocation8 + $0x1e90] sm:$0xff] }
 0xfbd   :  { %v12029_v57 = vcombine.high %v9778_v55, %v9782_v3 }
 0xfbe   :  { %10147 = vmatpush1.bf16.msra.mxu1 %v12016_v53  ;;  %v9783_v53 = vld [vmem:[#allocation8 + $0x1eb8] sm:$0xff] }
 0xfbf   :  { %10148 = vmatprep.subr.bf16.mxu1 %v12025_v54  ;;  %10192 = vmatpush1.bf16.msra.mxu0 %v12034_v28  ;;  %v12020_v54 = vcombine.low %v9770_v41, %v9774_v45  ;;  %v12022_v28 = vcombine.low %v9771_v17, %v9775_v9  ;;  %v12031_v21 = vcombine.high %v9779_v52, %v9783_v53  ;;  %v12623_v41 = vld [vmem:[#allocation11 + $0x48] sm:$0xff]   ;;  %v12627_v9 = vld [vmem:[#allocation11 + $0x50] sm:$0xff]  }
 0xfc0   :  { %10193 = vmatprep.subr.bf16.mxu0 %v12043_v58  ;;  %v9786_v58 = vld [vmem:[#allocation8 + $0x1ed0] sm:$0xff] }
 0xfc1   :  { %v12037_v62 = vcombine.high %v9786_v58, %v9790_v59  ;;  %v12625_v45 = vld [vmem:[#allocation11 + $0x8] sm:$0xff]  }
 0xfc2   :  { %10149 = vmatpush1.bf16.msra.mxu1 %v12024_v5  ;;  %v9791_v5 = vld [vmem:[#allocation8 + $0x1ef8] sm:$0xff]  ;;  %v12626_v17 = vld [vmem:[#allocation11 + $0x88] sm:$0xff]  }
 0xfc3   :  { %10150 = vmatprep.subr.bf16.mxu1 %v12033_v15  ;;  %10194 = vmatpush1.bf16.msra.mxu0 %v12042_v61  ;;  %v12028_v15 = vcombine.low %v9778_v55, %v9782_v3  ;;  %v12030_v61 = vcombine.low %v9779_v52, %v9783_v53  ;;  %v12039_v63 = vcombine.high %v9787_v60, %v9791_v5  ;;  %v12632_v55 = vld [vmem:[#allocation11 + $0xd8] sm:$0xff]   ;;  %v12635_v52 = vld [vmem:[#allocation11 + $0x60] sm:$0xff]  }
 0xfc4   :  { %10195 = vmatprep.subr.bf16.mxu0 %v12051_v2  ;;  %v9794_v2 = vld [vmem:[#allocation8 + $0x1f10] sm:$0xff]  ;;  %v12633_v3 = vld [vmem:[#allocation11 + $0x18] sm:$0xff]   ;;  %v12636_v53 = vld [vmem:[#allocation11 + $0xe0] sm:$0xff]  }
 0xfc5   :  { %v12045_v10 = vcombine.high %v9794_v2, %v9798_v38 }
 0xfc6   :  { %10151 = vmatpush1.bf16.msra.mxu1 %v12032_v7  ;;  %v9799_v7 = vld [vmem:[#allocation8 + $0x1f38] sm:$0xff] }
 0xfc7   :  { %10152 = vmatprep.subr.bf16.mxu1 %v12041_v33  ;;  %10196 = vmatpush1.bf16.msra.mxu0 %v12050_v8  ;;  %v12036_v33 = vcombine.low %v9786_v58, %v9790_v59  ;;  %v12038_v8 = vcombine.low %v9787_v60, %v9791_v5  ;;  %v12046_v48 = vcombine.low %v9795_v6, %v9799_v7  ;;  %v12641_v58 = vld [vmem:[#allocation11 + $0x28] sm:$0xff]   ;;  %v12643_v60 = vld [vmem:[#allocation11 + $0x70] sm:$0xff]  }
 0xfc8   :  { %10197 = vmatprep.subr.bf16.mxu0 %v12059_v27  ;;  %v9806_v27 = vld [vmem:[#allocation8 + $0x1f70] sm:$0xff]  ;;  %v12644_v5 = vld [vmem:[#allocation11 + $0xf0] sm:$0xff]  }
 0xfc9   :  { %v12053_v50 = vcombine.high %v9802_v11, %v9806_v27  ;;  %v12052_v23 = vcombine.low %v9802_v11, %v9806_v27  ;;  %v12642_v59 = vld [vmem:[#allocation11 + $0xa8] sm:$0xff]   ;;  %v13402_v11 = vld [vmem:[#allocation10] sm:$0xff] }
 0xfca   :  { %10153 = vmatpush1.bf16.msra.mxu1 %v12040_v12  ;;  %v9803_v12 = vld [vmem:[#allocation8 + $0x1f58] sm:$0xff] }
 0xfcb   :  { %10154 = vmatprep.subr.bf16.mxu1 %v12049_v13  ;;  %10198 = vmatpush1.bf16.msra.mxu0 %v12058_v14  ;;  %v9807_v13 = vld [vmem:[#allocation8 + $0x1f78] sm:$0xff]  ;;  %v12044_v14 = vcombine.low %v9794_v2, %v9798_v38  ;;  %v12649_v2 = vld [vmem:[#allocation11 + $0x38] sm:$0xff]  }
 0xfcc   :  { %10199 = vmatprep.subr.bf16.mxu0 %v12067_v32  ;;  %v9822_v32 = vld [vmem:[#allocation8 + $0x1ff0] sm:$0xff]  ;;  %v12650_v38 = vld [vmem:[#allocation11 + $0xb8] sm:$0xff]  }
 0xfce   :  { %10155 = vmatpush1.bf16.msra.mxu1 %v12048_v18  ;;  %v12055_v18 = vcombine.high %v9803_v12, %v9807_v13 }
 0xfcf   :  { %10156 = vmatprep.subr.bf16.mxu1 %v12057_v19  ;;  %10200 = vmatpush1.bf16.msra.mxu0 %v12066_v26  ;;  %v9810_v19 = vld [vmem:[#allocation8 + $0x1f90] sm:$0xff] }
 0xfd0   :  { %10267 = vmatprep.subr.bf16.mxu0 %v12015_v36  ;;  %v9818_v26 = vld [vmem:[#allocation8 + $0x1fd0] sm:$0xff]  ;;  %v12070_v36 = vcombine.low %v9819_v29, %v9823_v30 }
 0xfd1   :  { %v12069_v34 = vcombine.high %v9818_v26, %v9822_v32 }
 0xfd2   :  { %10157 = vmatpush1.bf16.msra.mxu1 %v12056_v44  ;;  %v9814_v44 = vld [vmem:[#allocation8 + $0x1fb0] sm:$0xff] }
 0xfd3   :  { %10158 = vmatprep.subr.bf16.mxu1 %v12065_v51  ;;  %v12054_v51 = vcombine.low %v9803_v12, %v9807_v13  ;;  %v12061_v24 = vcombine.high %v9810_v19, %v9814_v44  ;;  %v12060_v31 = vcombine.low %v9810_v19, %v9814_v44 }
 0xfd6   :  { %10159 = vmatpush1.bf16.msra.mxu1 %v12064_v25  ;;  %v12063_v25 = vcombine.high %v9811_v20, %v9815_v22 }
 0xfd7   :  { %10226 = vmatprep.subr.bf16.mxu1 %v12013_v4  ;;  %v12062_v4 = vcombine.low %v9811_v20, %v9815_v22 }
0x108c   :  { %v9752_v37 = vpop.f32.mrb[36].mxu1 }
0x108d   :  { %v9753_v39 = vadd.f32 %v12692_v43, %v9752_v37  ;;  %v12351_v40 = vpop.f32.mrb[37].mxu1  ;;  %v12619_v37 = vld [vmem:[#allocation11 + $0x40] sm:$0xff]  }
0x108e   :  { %v9755_v16 = vpop.f32.mrb[38].mxu1  ;;  %v12620_v43 = vld [vmem:[#allocation11 + $0xc0] sm:$0xff]  }
0x108f   :  { %v9758_v46 = vmax.f32 %v9753_v39, 0.0  ;;  %v12352_v47 = vpop.f32.mrb[39].mxu1  ;;  %v12621_v39 = vld [vmem:[#allocation11] sm:$0xff]   ;;  %v12624_v16 = vld [vmem:[#allocation11 + $0xc8] sm:$0xff]  }
0x1090   :  { %v12622_v40 = vld [vmem:[#allocation11 + $0x80] sm:$0xff]   ;;  %v12629_v47 = vld [vmem:[#allocation11 + $0x10] sm:$0xff]  }
0x1091   :  { %v13390_v56 = vpack.c.bf16 %v9758_v46, %v9758_v46  ;;  %v12628_v46 = vld [vmem:[#allocation11 + $0xd0] sm:$0xff]  }
0x1093   :  { %10177 = vmatmul.mubr.bf16.vlgmr.msra.gmra.mrb[0].mxu1 %v13390_v56  ;;  %10218 = vmatmul.mubr.bf16.vlgmr.msra.gmra.mrb[4].mxu0 %v13390_v56 }
0x1094   :  { %10227 = vmatpush1.bf16.msra.mxu1 %v12012_v1  ;;  %10268 = vmatpush1.bf16.msra.mxu0 %v12014_v35  ;;  %v12071_v1 = vcombine.high %v9819_v29, %v9823_v30  ;;  %v12068_v35 = vcombine.low %v9818_v26, %v9822_v32 }
0x1095   :  { %10228 = vmatprep.subr.bf16.mxu1 %v12021_v49  ;;  %10269 = vmatprep.subr.bf16.mxu0 %v12023_v0  ;;  %v12630_v49 = vld [vmem:[#allocation11 + $0x90] sm:$0xff]   ;;  %v12631_v0 = vld [vmem:[#allocation11 + $0x58] sm:$0xff]  }
0x1096   :  { %10258 = vmatprep.mubr.bf16.mxu1 %v12894_v42  ;;  %10299 = vmatprep.mubr.bf16.mxu0 %v12894_v42  ;;  %v12047_v42 = vcombine.high %v9795_v6, %v9799_v7  ;;  %v12651_v6 = vld [vmem:[#allocation11 + $0x140] sm:$0xff]  }
0x1097   :  { %v12652_v7 = vld [vmem:[#allocation11 + $0x1c0] sm:$0xff]  }
0x1098   :  { %10229 = vmatpush1.bf16.msra.mxu1 %v12020_v54  ;;  %10270 = vmatpush1.bf16.msra.mxu0 %v12022_v28  ;;  %v12637_v54 = vld [vmem:[#allocation11 + $0x20] sm:$0xff]  }
0x1099   :  { %10230 = vmatprep.subr.bf16.mxu1 %v12029_v57  ;;  %10271 = vmatprep.subr.bf16.mxu0 %v12031_v21  ;;  %v12638_v28 = vld [vmem:[#allocation11 + $0xa0] sm:$0xff]   ;;  %v12639_v57 = vld [vmem:[#allocation11 + $0x68] sm:$0xff]  }
0x109a   :  { %v12640_v21 = vld [vmem:[#allocation11 + $0xe8] sm:$0xff]  }
0x109c   :  { %10231 = vmatpush1.bf16.msra.mxu1 %v12028_v15  ;;  %10272 = vmatpush1.bf16.msra.mxu0 %v12030_v61  ;;  %v12645_v15 = vld [vmem:[#allocation11 + $0x30] sm:$0xff]  }
0x109d   :  { %10232 = vmatprep.subr.bf16.mxu1 %v12037_v62  ;;  %10273 = vmatprep.subr.bf16.mxu0 %v12039_v63  ;;  %v12646_v61 = vld [vmem:[#allocation11 + $0xb0] sm:$0xff]   ;;  %v12647_v62 = vld [vmem:[#allocation11 + $0x78] sm:$0xff]  }
0x109e   :  { %v12648_v63 = vld [vmem:[#allocation11 + $0xf8] sm:$0xff]  }
0x10a0   :  { %10233 = vmatpush1.bf16.msra.mxu1 %v12036_v33  ;;  %10274 = vmatpush1.bf16.msra.mxu0 %v12038_v8  ;;  %v122_v33 = vlaneseq }
0x10a1   :  { %10234 = vmatprep.subr.bf16.mxu1 %v12045_v10  ;;  %10275 = vmatprep.subr.bf16.mxu0 %v12047_v42 }
0x10a2   :  { %v13398_v8 = vshrl.u32 %v122_v33, 7  ;;  %v12678_v33 = vld [vmem:[#allocation11 + $0x1b0] sm:$0xff]  }
0x10a4   :  { %10235 = vmatpush1.bf16.msra.mxu1 %v12044_v14  ;;  %10276 = vmatpush1.bf16.msra.mxu0 %v12046_v48  ;;  %v124_v10 = vsub.s32 0, %v13398_v8  ;;  %v132_v42 = vsub.s32 2, %v13398_v8  ;;  %v128_v27 = vsub.s32 1, %v13398_v8  ;;  %v136_v12 = vsub.s32 3, %v13398_v8 }
0x10a5   :  { %10236 = vmatprep.subr.bf16.mxu1 %v12053_v50  ;;  %10277 = vmatprep.subr.bf16.mxu0 %v12055_v18 }
0x10a6   :  { %v125_v13 = vrot.slane %v13402_v11, %v124_v10  ;;  %v133_v14 = vrot.slane %v13402_v11, %v132_v42  ;;  %v129_v48 = vrot.slane %v13402_v11, %v128_v27  ;;  %v137_v50 = vrot.slane %v13402_v11, %v136_v12  ;;  %v12679_v10 = vld [vmem:[#allocation11 + $0x178] sm:$0xff]  }
0x10a8   :  { %10237 = vmatpush1.bf16.msra.mxu1 %v12052_v23  ;;  %10278 = vmatpush1.bf16.msra.mxu0 %v12054_v51 }
0x10a9   :  { %10238 = vmatprep.subr.bf16.mxu1 %v12061_v24  ;;  %10279 = vmatprep.subr.bf16.mxu0 %v12063_v25 }
0x10ac   :  { %10239 = vmatpush1.bf16.msra.mxu1 %v12060_v31  ;;  %10280 = vmatpush1.bf16.msra.mxu0 %v12062_v4 }
0x10ad   :  { %10240 = vmatprep.subr.bf16.mxu1 %v12069_v34  ;;  %10281 = vmatprep.subr.bf16.mxu0 %v12071_v1 }
0x10b0   :  { %10241 = vmatpush1.bf16.msra.mxu1 %v12068_v35  ;;  %10282 = vmatpush1.bf16.msra.mxu0 %v12070_v36  ;;  %v12653_v36 = vld [vmem:[#allocation11 + $0x100] sm:$0xff]  }
0x10b1   :  { %12169 = vmatprep.subr.bf16.mxu0 %v12619_v37  ;;  %12191 = vmatprep.subr.bf16.mxu1 %v12620_v43  ;;  %v12654_v37 = vld [vmem:[#allocation11 + $0x180] sm:$0xff]  }
0x10b3   :  { %10259 = vmatmul.mubr.bf16.vlgmr.msra.gmra.mrb[4].mxu1 %v13390_v56  ;;  %10300 = vmatmul.mubr.bf16.vlgmr.msra.gmra.mrb[8].mxu0 %v13390_v56  ;;  %v12634_v56 = vld [vmem:[#allocation11 + $0x98] sm:$0xff]  }
0x10b4   :  { %12170 = vmatpush3.bf16.msra.mxu0 %v12621_v39  ;;  %12192 = vmatpush3.bf16.msra.mxu1 %v12622_v40  ;;  %v12655_v40 = vld [vmem:[#allocation11 + $0x148] sm:$0xff]  }
0x10b5   :  { %12171 = vmatprep.subr.bf16.mxu0 %v12623_v41  ;;  %12193 = vmatprep.subr.bf16.mxu1 %v12624_v16  ;;  %v12656_v41 = vld [vmem:[#allocation11 + $0x1c8] sm:$0xff]  }
0x10b6   :  { %v12657_v16 = vld [vmem:[#allocation11 + $0x108] sm:$0xff]  }
0x10b8   :  { %12172 = vmatpush3.bf16.msra.mxu0 %v12625_v45  ;;  %12194 = vmatpush3.bf16.msra.mxu1 %v12626_v17  ;;  %v12658_v45 = vld [vmem:[#allocation11 + $0x188] sm:$0xff]   ;;  %v12659_v17 = vld [vmem:[#allocation11 + $0x150] sm:$0xff]  }
0x10b9   :  { %12173 = vmatprep.subr.bf16.mxu0 %v12627_v9  ;;  %12195 = vmatprep.subr.bf16.mxu1 %v12628_v46  ;;  %v12660_v9 = vld [vmem:[#allocation11 + $0x1d0] sm:$0xff]  }
0x10ba   :  { %v12661_v46 = vld [vmem:[#allocation11 + $0x110] sm:$0xff]  }
0x10bc   :  { %12174 = vmatpush3.bf16.msra.mxu0 %v12629_v47  ;;  %12196 = vmatpush3.bf16.msra.mxu1 %v12630_v49  ;;  %v12662_v47 = vld [vmem:[#allocation11 + $0x190] sm:$0xff]   ;;  %v12663_v49 = vld [vmem:[#allocation11 + $0x158] sm:$0xff]  }
0x10bd   :  { %12175 = vmatprep.subr.bf16.mxu0 %v12631_v0  ;;  %12197 = vmatprep.subr.bf16.mxu1 %v12632_v55  ;;  %v12664_v0 = vld [vmem:[#allocation11 + $0x1d8] sm:$0xff]  }
0x10be   :  { %v12665_v55 = vld [vmem:[#allocation11 + $0x118] sm:$0xff]  }
0x10c0   :  { %12176 = vmatpush3.bf16.msra.mxu0 %v12633_v3  ;;  %12198 = vmatpush3.bf16.msra.mxu1 %v12634_v56  ;;  %v12666_v3 = vld [vmem:[#allocation11 + $0x198] sm:$0xff]   ;;  %v12667_v56 = vld [vmem:[#allocation11 + $0x160] sm:$0xff]  }
0x10c1   :  { %12177 = vmatprep.subr.bf16.mxu0 %v12635_v52  ;;  %12199 = vmatprep.subr.bf16.mxu1 %v12636_v53  ;;  %v12668_v52 = vld [vmem:[#allocation11 + $0x1e0] sm:$0xff]  }
0x10c2   :  { %v12669_v53 = vld [vmem:[#allocation11 + $0x120] sm:$0xff]  }
0x10c4   :  { %12178 = vmatpush3.bf16.msra.mxu0 %v12637_v54  ;;  %12200 = vmatpush3.bf16.msra.mxu1 %v12638_v28  ;;  %v12670_v54 = vld [vmem:[#allocation11 + $0x1a0] sm:$0xff]   ;;  %v12671_v28 = vld [vmem:[#allocation11 + $0x168] sm:$0xff]  }
0x10c5   :  { %12179 = vmatprep.subr.bf16.mxu0 %v12639_v57  ;;  %12201 = vmatprep.subr.bf16.mxu1 %v12640_v21  ;;  %v12672_v57 = vld [vmem:[#allocation11 + $0x1e8] sm:$0xff]   ;;  %v140_v21 = vsub.s32 4, %v13398_v8 }
0x10c8   :  { %12180 = vmatpush3.bf16.msra.mxu0 %v12641_v58  ;;  %12202 = vmatpush3.bf16.msra.mxu1 %v12642_v59  ;;  %v148_v58 = vsub.s32 6, %v13398_v8  ;;  %v12673_v59 = vld [vmem:[#allocation11 + $0x128] sm:$0xff]  }
0x10c9   :  { %12181 = vmatprep.subr.bf16.mxu0 %v12643_v60  ;;  %12203 = vmatprep.subr.bf16.mxu1 %v12644_v5  ;;  %v12674_v60 = vld [vmem:[#allocation11 + $0x1a8] sm:$0xff]   ;;  %v144_v5 = vsub.s32 5, %v13398_v8 }
0x10cc   :  { %12182 = vmatpush3.bf16.msra.mxu0 %v12645_v15  ;;  %12204 = vmatpush3.bf16.msra.mxu1 %v12646_v61  ;;  %v152_v15 = vsub.s32 7, %v13398_v8  ;;  %v12675_v61 = vld [vmem:[#allocation11 + $0x170] sm:$0xff]   ;;  %v12680_v8 = vld [vmem:[#allocation11 + $0x1f8] sm:$0xff]  }
0x10cd   :  { %12183 = vmatprep.subr.bf16.mxu0 %v12647_v62  ;;  %12205 = vmatprep.subr.bf16.mxu1 %v12648_v63  ;;  %v12676_v62 = vld [vmem:[#allocation11 + $0x1f0] sm:$0xff]   ;;  %v141_v63 = vrot.slane %v13402_v11, %v140_v21 }
0x10d0   :  { %12184 = vmatpush3.bf16.msra.mxu0 %v12649_v2  ;;  %12206 = vmatpush3.bf16.msra.mxu1 %v12650_v38  ;;  %v149_v2 = vrot.slane %v13402_v11, %v148_v58  ;;  %v145_v38 = vrot.slane %v13402_v11, %v144_v5 }
0x10d1   :  { %12213 = vmatprep.subr.bf16.mxu0 %v12651_v6  ;;  %12235 = vmatprep.subr.bf16.mxu1 %v12652_v7  ;;  %v153_v6 = vrot.slane %v13402_v11, %v152_v15  ;;  %v12677_v7 = vld [vmem:[#allocation11 + $0x130] sm:$0xff]   ;;  %v12682_v11 = vld [vmem:[#allocation11 + $0x1b8] sm:$0xff]  }
0x1166   :  { %v10178_v18 = vpop.f32.mrb[0].mxu1  ;;  %v10219_v19 = vpop.f32.mrb[4].mxu0 }
0x1167   :  { %v12353_v44 = vadd.f32 %v10178_v18, %v125_v13  ;;  %v12355_v20 = vadd.f32 %v10219_v19, %v133_v14  ;;  %v10180_v22 = vpop.f32.mrb[1].mxu1  ;;  %v10221_v23 = vpop.f32.mrb[5].mxu0 }
0x1168   :  { %v12354_v51 = vadd.f32 %v10180_v22, %v129_v48  ;;  %v12356_v24 = vadd.f32 %v10221_v23, %v137_v50  ;;  %v10182_v25 = vpop.f32.mrb[2].mxu1  ;;  %v10223_v26 = vpop.f32.mrb[6].mxu0 }
0x1169   :  { %v10316_v32 = vmax.f32 %v12353_v44, 0.0  ;;  %v10318_v29 = vmax.f32 %v12355_v20, 0.0  ;;  %v10183_v30 = vpop.f32.mrb[3].mxu1  ;;  %v10224_v31 = vpop.f32.mrb[7].mxu0  ;;  %v12681_v20 = vld [vmem:[#allocation11 + $0x138] sm:$0xff]  }
0x116a   :  { %v10317_v4 = vmax.f32 %v12354_v51, 0.0  ;;  %v10319_v34 = vmax.f32 %v12356_v24, 0.0 }
0x116b   :  { %v10324_v43 = vpack.c.bf16 %v10316_v32, %v10316_v32  ;;  %v10326_v39 = vpack.c.bf16 %v10318_v29, %v10318_v29 }
0x116c   :  { %v10325_v1 = vpack.c.bf16 %v10317_v4, %v10317_v4  ;;  %v10327_v35 = vpack.c.bf16 %v10319_v34, %v10319_v34 }
0x116e   :  { %10883 = vmatprep.mubr.bf16.mxu0 %v10325_v1  ;;  %10923 = vmatprep.mubr.bf16.mxu1 %v10327_v35  ;;  %v12072_v1 = vld [vmem:[#allocation13] ss:$0 sm:$0xff] }
0x116f   :  { %10884 = vmatmul.mubr.bf16.vlgmr.msra.gmra.mrb[40].mxu0 %v10324_v43  ;;  %10924 = vmatmul.mubr.bf16.vlgmr.msra.gmra.mrb[40].mxu1 %v10326_v39 }
0x1170   :  { %12214 = vmatpush3.bf16.msra.mxu0 %v12653_v36  ;;  %12236 = vmatpush3.bf16.msra.mxu1 %v12654_v37 }
0x1171   :  { %12215 = vmatprep.subr.bf16.mxu0 %v12655_v40  ;;  %12237 = vmatprep.subr.bf16.mxu1 %v12656_v41 }
0x1174   :  { %12216 = vmatpush3.bf16.msra.mxu0 %v12657_v16  ;;  %12238 = vmatpush3.bf16.msra.mxu1 %v12658_v45 }
0x1175   :  { %12217 = vmatprep.subr.bf16.mxu0 %v12659_v17  ;;  %12239 = vmatprep.subr.bf16.mxu1 %v12660_v9 }
0x1178   :  { %12218 = vmatpush3.bf16.msra.mxu0 %v12661_v46  ;;  %12240 = vmatpush3.bf16.msra.mxu1 %v12662_v47 }
0x1179   :  { %12219 = vmatprep.subr.bf16.mxu0 %v12663_v49  ;;  %12241 = vmatprep.subr.bf16.mxu1 %v12664_v0 }
0x117c   :  { %12220 = vmatpush3.bf16.msra.mxu0 %v12665_v55  ;;  %12242 = vmatpush3.bf16.msra.mxu1 %v12666_v3 }
0x117d   :  { %12221 = vmatprep.subr.bf16.mxu0 %v12667_v56  ;;  %12243 = vmatprep.subr.bf16.mxu1 %v12668_v52 }
0x1180   :  { %12222 = vmatpush3.bf16.msra.mxu0 %v12669_v53  ;;  %12244 = vmatpush3.bf16.msra.mxu1 %v12670_v54 }
0x1181   :  { %12223 = vmatprep.subr.bf16.mxu0 %v12671_v28  ;;  %12245 = vmatprep.subr.bf16.mxu1 %v12672_v57 }
0x1184   :  { %12224 = vmatpush3.bf16.msra.mxu0 %v12673_v59  ;;  %12246 = vmatpush3.bf16.msra.mxu1 %v12674_v60 }
0x1185   :  { %12225 = vmatprep.subr.bf16.mxu0 %v12675_v61  ;;  %12247 = vmatprep.subr.bf16.mxu1 %v12676_v62 }
0x1186   :  { %v10260_v42 = vpop.f32.mrb[4].mxu1  ;;  %v10301_v27 = vpop.f32.mrb[8].mxu0 }
0x1187   :  { %v12357_v12 = vadd.f32 %v10260_v42, %v141_v63  ;;  %v12359_v13 = vadd.f32 %v10301_v27, %v149_v2  ;;  %v10262_v14 = vpop.f32.mrb[5].mxu1  ;;  %v10303_v48 = vpop.f32.mrb[9].mxu0 }
0x1188   :  { %v12358_v50 = vadd.f32 %v10262_v14, %v145_v38  ;;  %v12360_v18 = vadd.f32 %v10303_v48, %v153_v6  ;;  %v10264_v19 = vpop.f32.mrb[6].mxu1  ;;  %v10305_v44 = vpop.f32.mrb[10].mxu0  ;;  %12226 = vmatpush3.bf16.msra.mxu0 %v12677_v7  ;;  %12248 = vmatpush3.bf16.msra.mxu1 %v12678_v33 }
0x1189   :  { %v10320_v22 = vmax.f32 %v12357_v12, 0.0  ;;  %v10322_v23 = vmax.f32 %v12359_v13, 0.0  ;;  %v10265_v51 = vpop.f32.mrb[7].mxu1  ;;  %v10306_v24 = vpop.f32.mrb[11].mxu0  ;;  %12227 = vmatprep.subr.bf16.mxu0 %v12679_v10  ;;  %12249 = vmatprep.subr.bf16.mxu1 %v12680_v8 }
0x118a   :  { %v10321_v25 = vmax.f32 %v12358_v50, 0.0  ;;  %v10323_v26 = vmax.f32 %v12360_v18, 0.0 }
0x118b   :  { %v10328_v30 = vpack.c.bf16 %v10320_v22, %v10320_v22  ;;  %v10330_v31 = vpack.c.bf16 %v10322_v23, %v10322_v23 }
0x118c   :  { %v10329_v32 = vpack.c.bf16 %v10321_v25, %v10321_v25  ;;  %v10331_v29 = vpack.c.bf16 %v10323_v26, %v10323_v26  ;;  %12228 = vmatpush3.bf16.msra.mxu0 %v12681_v20  ;;  %12250 = vmatpush3.bf16.msra.mxu1 %v12682_v11 }
0x118e   :  { %10963 = vmatprep.mubr.bf16.mxu0 %v10329_v32  ;;  %11003 = vmatprep.mubr.bf16.mxu1 %v10331_v29 }
0x118f   :  { %10964 = vmatmul.mubr.bf16.vlgmr.msra.gmra.mrb[44].mxu0 %v10328_v30  ;;  %11004 = vmatmul.mubr.bf16.vlgmr.msra.gmra.mrb[44].mxu1 %v10330_v31 }
0x1242   :  { %v12185_v4 = vpop.f32.mrb[40].mxu0  ;;  %v12207_v34 = vpop.f32.mrb[40].mxu1 }
0x1243   :  { %v12186_v35 = vpop.f32.mrb[41].mxu0  ;;  %v12208_v36 = vpop.f32.mrb[41].mxu1 }
0x1244   :  { %v12187_v37 = vadd.f32 %v12186_v35, %v12185_v4  ;;  %v12209_v43 = vadd.f32 %v12208_v36, %v12207_v34  ;;  %v12188_v39 = vpop.f32.mrb[42].mxu0  ;;  %v12210_v40 = vpop.f32.mrb[42].mxu1 }
0x1245   :  { %v12189_v41 = vpop.f32.mrb[43].mxu0  ;;  %v12211_v16 = vpop.f32.mrb[43].mxu1 }
0x1246   :  { %v10886_v45 = vadd.f32 %v12187_v37, %v12072_v1 }
0x1248   :  { %v10926_v17 = vadd.f32 %v12209_v43, %v10886_v45 }
0x1262   :  { %v12229_v9 = vpop.f32.mrb[44].mxu0  ;;  %v12251_v46 = vpop.f32.mrb[44].mxu1 }
0x1263   :  { %v12230_v47 = vpop.f32.mrb[45].mxu0  ;;  %v12252_v49 = vpop.f32.mrb[45].mxu1 }
0x1264   :  { %v12231_v0 = vadd.f32 %v12230_v47, %v12229_v9  ;;  %v12253_v55 = vadd.f32 %v12252_v49, %v12251_v46  ;;  %v12232_v3 = vpop.f32.mrb[46].mxu0  ;;  %v12254_v56 = vpop.f32.mrb[46].mxu1 }
0x1265   :  { %v12233_v52 = vpop.f32.mrb[47].mxu0  ;;  %v12255_v53 = vpop.f32.mrb[47].mxu1 }
0x1266   :  { %v10966_v54 = vadd.f32 %v12231_v0, %v10926_v17 }
0x1268   :  { %v11006_v28 = vadd.f32 %v12253_v55, %v10966_v54 }
0x126a   :  { %11011 = vst [vmem:[#allocation14] sm:$0x3] %v11006_v28 }
0x126b   :  { %12858 = shalt.err (!%p12855_p4)
}
0x126c   :  { %s12859_s16 = scalar_lea.hbm %s13437_s7, 32 }
0x126d   :  { %p12860_p5 = scmp.ne.s32.totalorder %s13437_s7, %s12859_s16  ;;  %p12863_p6 = scmp.lt.u32.totalorder %s12859_s16, %s13437_s7 }
0x126f   :  { %p12865_p7 = pnand %p12863_p6, %p12860_p5 }
0x1271   :  { %12868 = shalt.err (!%p12865_p7)
}
0x1272   :  { %11021 = dma.vmem_to_hbm [thread:$0]  %s11019_s18, 32, %s13437_s7, [#allocation4]  }
0x1273   :  { %12877 = dma.done.wait [#allocation4], 32  }
0x1274   :  { %12878 = vsyncadd [#allocation4], 4294967264 }
0x1275   :  { %11025 = vsyncpa [#allocation3], 1 }
0x1276   :  { %11026 = vsyncpa [#allocation6], 1 }
0x1277   :  { %11027 = vsyncpa [#allocation9], 1 }
0x1278   :  { %11028 = vsyncpa [#allocation12], 1 }
0x1279   :  { %11029 = vsyncpa [#allocation4], 1 }

</bundles_post_ra>
